<compile_context>
chip_gen: v6e
topology: v6e:2x2x1
jax: 0.10.0
libtpu: 0.0.40
codegen_flags: <defaults>
</compile_context>

<pallas_src>
import functools

import jax
import jax.numpy as jnp
from jax.experimental import pallas as pl
from jax.experimental.pallas import tpu as pltpu

HI = 1026          # LSTM input size  = 256 * 2 * 2 + 2
HH = 256           # LSTM hidden size
NUM_GATES = 4 * HH


# ----------------------------------------------------------------------------
# Fused kernel: conv chain + hoisted input projection + LSTM recurrence + head
# ----------------------------------------------------------------------------
def _fused_kernel(xc_ref, t1_ref, t2_ref, t3_ref, b1_ref, b2_ref, b3_ref,
                  w0_ref, w1_ref, wev_ref, wtm_ref, ev_ref, tm_ref, bg_ref,
                  whh_ref, wl1_ref, bl1_ref, out_ref, *, n, bs, ts):
    """Activations live as (H*n, W*C): row = h*n + sample (sample m = t*bs + b),
    col = w*C + c.  Each 3x3 VALID conv = sum over kh of a sublane-aligned row
    slice matmul'd with a per-kh Toeplitz weight (kw shift folded into the
    weights), bias + ReLU fused; nothing leaves VMEM until the final (bs,4)."""
    f32, bf16 = jnp.float32, jnp.bfloat16

    # ---- conv1: rows pre-shifted by the wrapper -> single K=3*W*C matmul -----
    y = jnp.dot(xc_ref[...].astype(bf16), t1_ref[...],
                preferred_element_type=f32) + b1_ref[...]
    y = jnp.maximum(y, 0.0)                                    # (6n, 6*64)

    # ---- conv2 / conv3: 3 sublane-aligned shifted-row matmuls each -----------
    def conv_relu(x, t_ref, b_ref, h_out):
        xb = x.astype(bf16)
        acc = b_ref[...]
        for kh in range(3):
            acc = acc + jnp.dot(xb[kh * n:(kh + h_out) * n, :], t_ref[kh],
                                preferred_element_type=f32)
        return jnp.maximum(acc, 0.0)

    y = conv_relu(y, t2_ref, b2_ref, 4)                        # (4n, 4*128)
    y = conv_relu(y, t3_ref, b3_ref, 2)                        # (2n, 2*256)

    # ---- hoisted LSTM input projection for all bs*ts frames ------------------
    # Row blocks of y are the ho=0 / ho=1 halves; W_ih rows were pre-permuted to
    # the kernel's (wo, c) column order and its gate columns to [i, f, o, g].
    yb = y.astype(bf16)
    gx = (jnp.dot(yb[0:n, :], w0_ref[...], preferred_element_type=f32)
          + jnp.dot(yb[n:2 * n, :], w1_ref[...], preferred_element_type=f32)
          + ev_ref[...] * wev_ref[...]
          + tm_ref[...] * wtm_ref[...]
          + bg_ref[...])                                       # (n, 4*HH)

    # ---- serial recurrence: h/c carried in vregs, loop fully unrolled --------
    # (ts is small and static; for large ts, spill gx to a VMEM scratch and use
    #  lax.fori_loop to bound vreg pressure instead of full unrolling.)
    whh = whh_ref[...]
    h = jnp.zeros((bs, HH), f32)
    c = jnp.zeros((bs, HH), f32)
    for t in range(ts):
        gates = (gx[t * bs:(t + 1) * bs, :]
                 + jnp.dot(h.astype(bf16), whh, preferred_element_type=f32))
        # gate order is [i | f | o | g]: one contiguous tanh-sigmoid over 3*HH.
        sig = 0.5 * jnp.tanh(0.5 * gates[:, :3 * HH]) + 0.5
        g_g = jnp.tanh(gates[:, 3 * HH:])
        c = sig[:, HH:2 * HH] * c + sig[:, 0:HH] * g_g
        h = sig[:, 2 * HH:3 * HH] * jnp.tanh(c)

    # ---- final Linear (256 -> 4) folded into the epilogue --------------------
    out_ref[...] = (jnp.dot(h, wl1_ref[...], preferred_element_type=f32)
                    + bl1_ref[...])


# ----------------------------------------------------------------------------
# One-time weight preparation (Toeplitz conv weights, W_ih permutations, bf16)
# ----------------------------------------------------------------------------
def prepare_params(params):
    f32, bf16 = jnp.float32, jnp.bfloat16

    def toeplitz(w_oihw, w_in):
        cout, cin, k, _ = w_oihw.shape
        wo = w_in - k + 1
        wmat = jnp.transpose(w_oihw, (2, 3, 1, 0))              # (kh, kw, ci, co)
        sel = (jnp.arange(w_in)[None, :, None]
               - jnp.arange(wo)[None, None, :]
               == jnp.arange(k)[:, None, None]).astype(f32)     # (kw, w, wo)
        t = jnp.einsum('kwo,hkcd->hwcod', sel, wmat)            # (kh, w, ci, wo, co)
        return t.reshape(k, w_in * cin, wo * cout)

    def bias_row(b, wo):
        return jnp.tile(b, wo).reshape(1, -1)                   # [wo*Cout + co] = b[co]

    # Gate permutation: PyTorch order [i, f, g, o] -> kernel order [i, f, o, g]
    perm = jnp.concatenate([jnp.arange(0, 2 * HH),
                            jnp.arange(3 * HH, 4 * HH),
                            jnp.arange(2 * HH, 3 * HH)])

    wih = params['lstm_wih']                                    # (1024, 1026)
    # conv-feature columns of W_ih, re-ordered to the kernel's (ho, wo*256+c) layout
    wih_conv = wih[:, :1024].reshape(NUM_GATES, 256, 2, 2)      # (g, c, ho, wo)
    w_blocks = jnp.transpose(wih_conv, (2, 3, 1, 0)).reshape(2, 2 * 256, NUM_GATES)

    t1 = toeplitz(params['conv1_w'], 8)                         # (3, 48, 384)
    return {
        't1': t1.reshape(3 * 48, 6 * 64).astype(bf16),          # kh folded into K
        't2': toeplitz(params['conv2_w'], 6).astype(bf16),      # (3, 384, 512)
        't3': toeplitz(params['conv3_w'], 4).astype(bf16),      # (3, 512, 512)
        'b1r': bias_row(params['conv1_b'], 6),
        'b2r': bias_row(params['conv2_b'], 4),
        'b3r': bias_row(params['conv3_b'], 2),
        'w0': w_blocks[0][:, perm].astype(bf16),                # (512, 1024)
        'w1': w_blocks[1][:, perm].astype(bf16),                # (512, 1024)
        'wev': wih[:, 1024][perm].reshape(1, NUM_GATES),
        'wtm': wih[:, 1025][perm].reshape(1, NUM_GATES),
        'bg': (params['lstm_bih'] + params['lstm_bhh'])[perm].reshape(1, NUM_GATES),
        'whh_t': params['lstm_whh'].T[:, perm].astype(bf16),    # (256, 1024)
        'wl1': params['l1_w'].T,                                # (256, 4)
        'bl1': params['l1_b'].reshape(1, 4),
    }


# ----------------------------------------------------------------------------
# Full forward: ONE pallas_call, tiny XLA glue on the (small) inputs only
# ----------------------------------------------------------------------------
@jax.jit
def conv_lstm_extra_forward(prep, board, evals, times):
    bs, ts, C, H, W = board.shape
    n = bs * ts
    # (bs, ts, C, H, W) -> (H, ts, bs, W, C) -> (H*n, W*C); sample m = t*bs + b
    x2d = jnp.transpose(board, (3, 1, 0, 4, 2)).reshape(H * n, W * C)
    # Pre-shift rows for conv1 so the kernel runs a single K=3*W*C matmul.
    h1 = H - 2
    xc = jnp.concatenate([x2d[kh * n:(kh + h1) * n, :] for kh in range(3)], axis=1)
    ev = evals.T.reshape(n, 1)
    tm = times.T.reshape(n, 1)
    return pl.pallas_call(
        functools.partial(_fused_kernel, n=n, bs=bs, ts=ts),
        out_shape=jax.ShapeDtypeStruct((bs, 4), jnp.float32),
    )(xc, prep['t1'], prep['t2'], prep['t3'],
      prep['b1r'], prep['b2r'], prep['b3r'],
      prep['w0'], prep['w1'], prep['wev'], prep['wtm'], ev, tm,
      prep['bg'], prep['whh_t'], prep['wl1'], prep['bl1'])


# ----------------------------------------------------------------------------
# Pure-JAX reference for verification (uses original PyTorch-shaped params)
# ----------------------------------------------------------------------------
def reference_forward(params, board, evals, times):
    bs, ts, C, H, W = board.shape

    def conv(x, w, b):
        y = jax.lax.conv_general_dilated(
            x, w, window_strides=(1, 1), padding='VALID',
            dimension_numbers=('NCHW', 'OIHW', 'NCHW'))
        return jax.nn.relu(y + b[None, :, None, None])

    feats = []
    for i in range(ts):
        xt = board[:, i]
        xt = conv(xt, params['conv1_w'], params['conv1_b'])
        xt = conv(xt, params['conv2_w'], params['conv2_b'])
        xt = conv(xt, params['conv3_w'], params['conv3_b'])
        xt = xt.reshape(bs, -1)
        xt = jnp.concatenate([xt, evals[:, i:i + 1], times[:, i:i + 1]], axis=1)
        feats.append(xt)
    x = jnp.stack(feats, axis=1)

    h = jnp.zeros((bs, HH), jnp.float32)
    c = jnp.zeros((bs, HH), jnp.float32)
    for t in range(ts):
        gates = (x[:, t] @ params['lstm_wih'].T + params['lstm_bih']
                 + h @ params['lstm_whh'].T + params['lstm_bhh'])
        i_g = jax.nn.sigmoid(gates[:, 0 * HH:1 * HH])
        f_g = jax.nn.sigmoid(gates[:, 1 * HH:2 * HH])
        g_g = jnp.tanh(gates[:, 2 * HH:3 * HH])
        o_g = jax.nn.sigmoid(gates[:, 3 * HH:4 * HH])
        c = f_g * c + i_g * g_g
        h = o_g * jnp.tanh(c)
    return h @ params['l1_w'].T + params['l1_b']


# ----------------------------------------------------------------------------
# Deterministic parameter init (PyTorch-shaped, uniform(-1/sqrt(fan_in), .))
# ----------------------------------------------------------------------------
def init_params(key):
    def u(key, shape, fan_in):
        bound = 1.0 / jnp.sqrt(jnp.float32(fan_in))
        return jax.random.uniform(key, shape, jnp.float32, -bound, bound)

    ks = jax.random.split(key, 12)
    return {
        'conv1_w': u(ks[0], (64, 6, 3, 3), 6 * 9),
        'conv1_b': u(ks[1], (64,), 6 * 9),
        'conv2_w': u(ks[2], (128, 64, 3, 3), 64 * 9),
        'conv2_b': u(ks[3], (128,), 64 * 9),
        'conv3_w': u(ks[4], (256, 128, 3, 3), 128 * 9),
        'conv3_b': u(ks[5], (256,), 128 * 9),
        'lstm_wih': u(ks[6], (NUM_GATES, HI), HH),
        'lstm_whh': u(ks[7], (NUM_GATES, HH), HH),
        'lstm_bih': u(ks[8], (NUM_GATES,), HH),
        'lstm_bhh': u(ks[9], (NUM_GATES,), HH),
        'l1_w': u(ks[10], (4, HH), HH),
        'l1_b': u(ks[11], (4,), HH),
    }


if __name__ == "__main__":
    key = jax.random.PRNGKey(0)
    pkey, bkey, ekey, tkey = jax.random.split(key, 4)

    params = init_params(pkey)

    bs, ts = 2, 4
    # spatial must be 8x8 so that 256 * 2 * 2 + 2 == 1026 (LSTM input size)
    board = jax.random.normal(bkey, (bs, ts, 6, 8, 8), jnp.float32)
    evals = jax.random.normal(ekey, (bs, ts), jnp.float32)
    times = jax.random.normal(tkey, (bs, ts), jnp.float32)

    prep = prepare_params(params)       # one-time weight layout / dtype transform
    out = jax.block_until_ready(conv_lstm_extra_forward(prep, board, evals, times))

    ref = jax.block_until_ready(reference_forward(params, board, evals, times))

    assert out.shape == (bs, 4), out.shape
    assert jnp.allclose(out, ref, rtol=2e-2, atol=2e-2), (out, ref)
    print("KERNEL_OK")
</pallas_src>

<mosaic_0001>
module attributes {stable_mosaic.version = 11 : i64} {
  func.func @_fused_kernel(%arg0: memref<48x144xf32, #tpu.memory_space<vmem>>, %arg1: memref<144x384xbf16, #tpu.memory_space<vmem>>, %arg2: memref<3x384x512xbf16, #tpu.memory_space<vmem>>, %arg3: memref<3x512x512xbf16, #tpu.memory_space<vmem>>, %arg4: memref<1x384xf32, #tpu.memory_space<vmem>>, %arg5: memref<1x512xf32, #tpu.memory_space<vmem>>, %arg6: memref<1x512xf32, #tpu.memory_space<vmem>>, %arg7: memref<512x1024xbf16, #tpu.memory_space<vmem>>, %arg8: memref<512x1024xbf16, #tpu.memory_space<vmem>>, %arg9: memref<1x1024xf32, #tpu.memory_space<vmem>>, %arg10: memref<1x1024xf32, #tpu.memory_space<vmem>>, %arg11: memref<8x1xf32, #tpu.memory_space<vmem>>, %arg12: memref<8x1xf32, #tpu.memory_space<vmem>>, %arg13: memref<1x1024xf32, #tpu.memory_space<vmem>>, %arg14: memref<256x1024xbf16, #tpu.memory_space<vmem>>, %arg15: memref<256x4xf32, #tpu.memory_space<vmem>>, %arg16: memref<1x4xf32, #tpu.memory_space<vmem>>, %arg17: memref<2x4xf32, #tpu.memory_space<vmem>>) attributes {dimension_semantics = [], scalar_prefetch = 0 : i64, scratch_operands = 0 : i64, tpu.core_type = #tpu.core_type<tc>} {
    %c0 = arith.constant 0 : index
    %c0_0 = arith.constant 0 : index
    %0 = vector.load %arg0[%c0, %c0_0] : memref<48x144xf32, #tpu.memory_space<vmem>>, vector<48x144xf32>
    %1 = arith.truncf %0 : vector<48x144xf32> to vector<48x144xbf16>
    %c0_1 = arith.constant 0 : index
    %c0_2 = arith.constant 0 : index
    %2 = vector.load %arg1[%c0_1, %c0_2] : memref<144x384xbf16, #tpu.memory_space<vmem>>, vector<144x384xbf16>
    %cst = arith.constant dense<0.000000e+00> : vector<48x384xf32>
    %3 = tpu.matmul %1, %2, %cst {dimension_numbers = #tpu.dot_dimension_numbers<[1], [0], [0], [1], [0, 0, 1, 1], [], []>} : vector<48x144xbf16>, vector<144x384xbf16>, vector<48x384xf32> -> vector<48x384xf32>
    %c0_3 = arith.constant 0 : index
    %c0_4 = arith.constant 0 : index
    %4 = vector.load %arg4[%c0_3, %c0_4] : memref<1x384xf32, #tpu.memory_space<vmem>>, vector<1x384xf32>
    %5 = vector.broadcast %4 : vector<1x384xf32> to vector<48x384xf32>
    %6 = arith.addf %3, %5 : vector<48x384xf32>
    %cst_5 = arith.constant 0.000000e+00 : f32
    %7 = vector.broadcast %cst_5 : f32 to vector<48x384xf32>
    %8 = arith.maximumf %6, %7 : vector<48x384xf32>
    %9 = arith.truncf %8 : vector<48x384xf32> to vector<48x384xbf16>
    %c0_6 = arith.constant 0 : index
    %c0_7 = arith.constant 0 : index
    %10 = vector.load %arg5[%c0_6, %c0_7] : memref<1x512xf32, #tpu.memory_space<vmem>>, vector<1x512xf32>
    %11 = vector.extract_strided_slice %9 {offsets = [0, 0], sizes = [32, 384], strides = [1, 1]} : vector<48x384xbf16> to vector<32x384xbf16>
    %c0_8 = arith.constant 0 : index
    %c0_9 = arith.constant 0 : index
    %c0_10 = arith.constant 0 : index
    %12 = vector.load %arg2[%c0_8, %c0_9, %c0_10] : memref<3x384x512xbf16, #tpu.memory_space<vmem>>, vector<1x384x512xbf16>
    %13 = vector.shape_cast %12 : vector<1x384x512xbf16> to vector<384x512xbf16>
    %cst_11 = arith.constant dense<0.000000e+00> : vector<32x512xf32>
    %14 = tpu.matmul %11, %13, %cst_11 {dimension_numbers = #tpu.dot_dimension_numbers<[1], [0], [0], [1], [0, 0, 1, 1], [], []>} : vector<32x384xbf16>, vector<384x512xbf16>, vector<32x512xf32> -> vector<32x512xf32>
    %15 = vector.broadcast %10 : vector<1x512xf32> to vector<32x512xf32>
    %16 = arith.addf %15, %14 : vector<32x512xf32>
    %17 = vector.extract_strided_slice %9 {offsets = [8, 0], sizes = [32, 384], strides = [1, 1]} : vector<48x384xbf16> to vector<32x384xbf16>
    %c1 = arith.constant 1 : index
    %c0_12 = arith.constant 0 : index
    %c0_13 = arith.constant 0 : index
    %18 = vector.load %arg2[%c1, %c0_12, %c0_13] : memref<3x384x512xbf16, #tpu.memory_space<vmem>>, vector<1x384x512xbf16>
    %19 = vector.shape_cast %18 : vector<1x384x512xbf16> to vector<384x512xbf16>
    %cst_14 = arith.constant dense<0.000000e+00> : vector<32x512xf32>
    %20 = tpu.matmul %17, %19, %cst_14 {dimension_numbers = #tpu.dot_dimension_numbers<[1], [0], [0], [1], [0, 0, 1, 1], [], []>} : vector<32x384xbf16>, vector<384x512xbf16>, vector<32x512xf32> -> vector<32x512xf32>
    %21 = arith.addf %16, %20 : vector<32x512xf32>
    %22 = vector.extract_strided_slice %9 {offsets = [16, 0], sizes = [32, 384], strides = [1, 1]} : vector<48x384xbf16> to vector<32x384xbf16>
    %c2 = arith.constant 2 : index
    %c0_15 = arith.constant 0 : index
    %c0_16 = arith.constant 0 : index
    %23 = vector.load %arg2[%c2, %c0_15, %c0_16] : memref<3x384x512xbf16, #tpu.memory_space<vmem>>, vector<1x384x512xbf16>
    %24 = vector.shape_cast %23 : vector<1x384x512xbf16> to vector<384x512xbf16>
    %cst_17 = arith.constant dense<0.000000e+00> : vector<32x512xf32>
    %25 = tpu.matmul %22, %24, %cst_17 {dimension_numbers = #tpu.dot_dimension_numbers<[1], [0], [0], [1], [0, 0, 1, 1], [], []>} : vector<32x384xbf16>, vector<384x512xbf16>, vector<32x512xf32> -> vector<32x512xf32>
    %26 = arith.addf %21, %25 : vector<32x512xf32>
    %cst_18 = arith.constant 0.000000e+00 : f32
    %27 = vector.broadcast %cst_18 : f32 to vector<32x512xf32>
    %28 = arith.maximumf %26, %27 : vector<32x512xf32>
    %29 = arith.truncf %28 : vector<32x512xf32> to vector<32x512xbf16>
    %c0_19 = arith.constant 0 : index
    %c0_20 = arith.constant 0 : index
    %30 = vector.load %arg6[%c0_19, %c0_20] : memref<1x512xf32, #tpu.memory_space<vmem>>, vector<1x512xf32>
    %31 = vector.extract_strided_slice %29 {offsets = [0, 0], sizes = [16, 512], strides = [1, 1]} : vector<32x512xbf16> to vector<16x512xbf16>
    %c0_21 = arith.constant 0 : index
    %c0_22 = arith.constant 0 : index
    %c0_23 = arith.constant 0 : index
    %32 = vector.load %arg3[%c0_21, %c0_22, %c0_23] : memref<3x512x512xbf16, #tpu.memory_space<vmem>>, vector<1x512x512xbf16>
    %33 = vector.shape_cast %32 : vector<1x512x512xbf16> to vector<512x512xbf16>
    %cst_24 = arith.constant dense<0.000000e+00> : vector<16x512xf32>
    %34 = tpu.matmul %31, %33, %cst_24 {dimension_numbers = #tpu.dot_dimension_numbers<[1], [0], [0], [1], [0, 0, 1, 1], [], []>} : vector<16x512xbf16>, vector<512x512xbf16>, vector<16x512xf32> -> vector<16x512xf32>
    %35 = vector.broadcast %30 : vector<1x512xf32> to vector<16x512xf32>
    %36 = arith.addf %35, %34 : vector<16x512xf32>
    %37 = vector.extract_strided_slice %29 {offsets = [8, 0], sizes = [16, 512], strides = [1, 1]} : vector<32x512xbf16> to vector<16x512xbf16>
    %c1_25 = arith.constant 1 : index
    %c0_26 = arith.constant 0 : index
    %c0_27 = arith.constant 0 : index
    %38 = vector.load %arg3[%c1_25, %c0_26, %c0_27] : memref<3x512x512xbf16, #tpu.memory_space<vmem>>, vector<1x512x512xbf16>
    %39 = vector.shape_cast %38 : vector<1x512x512xbf16> to vector<512x512xbf16>
    %cst_28 = arith.constant dense<0.000000e+00> : vector<16x512xf32>
    %40 = tpu.matmul %37, %39, %cst_28 {dimension_numbers = #tpu.dot_dimension_numbers<[1], [0], [0], [1], [0, 0, 1, 1], [], []>} : vector<16x512xbf16>, vector<512x512xbf16>, vector<16x512xf32> -> vector<16x512xf32>
    %41 = arith.addf %36, %40 : vector<16x512xf32>
    %42 = vector.extract_strided_slice %29 {offsets = [16, 0], sizes = [16, 512], strides = [1, 1]} : vector<32x512xbf16> to vector<16x512xbf16>
    %c2_29 = arith.constant 2 : index
    %c0_30 = arith.constant 0 : index
    %c0_31 = arith.constant 0 : index
    %43 = vector.load %arg3[%c2_29, %c0_30, %c0_31] : memref<3x512x512xbf16, #tpu.memory_space<vmem>>, vector<1x512x512xbf16>
    %44 = vector.shape_cast %43 : vector<1x512x512xbf16> to vector<512x512xbf16>
    %cst_32 = arith.constant dense<0.000000e+00> : vector<16x512xf32>
    %45 = tpu.matmul %42, %44, %cst_32 {dimension_numbers = #tpu.dot_dimension_numbers<[1], [0], [0], [1], [0, 0, 1, 1], [], []>} : vector<16x512xbf16>, vector<512x512xbf16>, vector<16x512xf32> -> vector<16x512xf32>
    %46 = arith.addf %41, %45 : vector<16x512xf32>
    %cst_33 = arith.constant 0.000000e+00 : f32
    %47 = vector.broadcast %cst_33 : f32 to vector<16x512xf32>
    %48 = arith.maximumf %46, %47 : vector<16x512xf32>
    %49 = arith.truncf %48 : vector<16x512xf32> to vector<16x512xbf16>
    %50 = vector.extract_strided_slice %49 {offsets = [0, 0], sizes = [8, 512], strides = [1, 1]} : vector<16x512xbf16> to vector<8x512xbf16>
    %c0_34 = arith.constant 0 : index
    %c0_35 = arith.constant 0 : index
    %51 = vector.load %arg7[%c0_34, %c0_35] : memref<512x1024xbf16, #tpu.memory_space<vmem>>, vector<512x1024xbf16>
    %cst_36 = arith.constant dense<0.000000e+00> : vector<8x1024xf32>
    %52 = tpu.matmul %50, %51, %cst_36 {dimension_numbers = #tpu.dot_dimension_numbers<[1], [0], [0], [1], [0, 0, 1, 1], [], []>} : vector<8x512xbf16>, vector<512x1024xbf16>, vector<8x1024xf32> -> vector<8x1024xf32>
    %53 = vector.extract_strided_slice %49 {offsets = [8, 0], sizes = [8, 512], strides = [1, 1]} : vector<16x512xbf16> to vector<8x512xbf16>
    %c0_37 = arith.constant 0 : index
    %c0_38 = arith.constant 0 : index
    %54 = vector.load %arg8[%c0_37, %c0_38] : memref<512x1024xbf16, #tpu.memory_space<vmem>>, vector<512x1024xbf16>
    %cst_39 = arith.constant dense<0.000000e+00> : vector<8x1024xf32>
    %55 = tpu.matmul %53, %54, %cst_39 {dimension_numbers = #tpu.dot_dimension_numbers<[1], [0], [0], [1], [0, 0, 1, 1], [], []>} : vector<8x512xbf16>, vector<512x1024xbf16>, vector<8x1024xf32> -> vector<8x1024xf32>
    %56 = arith.addf %52, %55 : vector<8x1024xf32>
    %c0_40 = arith.constant 0 : index
    %c0_41 = arith.constant 0 : index
    %57 = vector.load %arg11[%c0_40, %c0_41] : memref<8x1xf32, #tpu.memory_space<vmem>>, vector<8x1xf32>
    %c0_42 = arith.constant 0 : index
    %c0_43 = arith.constant 0 : index
    %58 = vector.load %arg9[%c0_42, %c0_43] : memref<1x1024xf32, #tpu.memory_space<vmem>>, vector<1x1024xf32>
    %59 = vector.broadcast %57 : vector<8x1xf32> to vector<8x1024xf32>
    %60 = vector.broadcast %58 : vector<1x1024xf32> to vector<8x1024xf32>
    %61 = arith.mulf %59, %60 : vector<8x1024xf32>
    %62 = arith.addf %56, %61 : vector<8x1024xf32>
    %c0_44 = arith.constant 0 : index
    %c0_45 = arith.constant 0 : index
    %63 = vector.load %arg12[%c0_44, %c0_45] : memref<8x1xf32, #tpu.memory_space<vmem>>, vector<8x1xf32>
    %c0_46 = arith.constant 0 : index
    %c0_47 = arith.constant 0 : index
    %64 = vector.load %arg10[%c0_46, %c0_47] : memref<1x1024xf32, #tpu.memory_space<vmem>>, vector<1x1024xf32>
    %65 = vector.broadcast %63 : vector<8x1xf32> to vector<8x1024xf32>
    %66 = vector.broadcast %64 : vector<1x1024xf32> to vector<8x1024xf32>
    %67 = arith.mulf %65, %66 : vector<8x1024xf32>
    %68 = arith.addf %62, %67 : vector<8x1024xf32>
    %c0_48 = arith.constant 0 : index
    %c0_49 = arith.constant 0 : index
    %69 = vector.load %arg13[%c0_48, %c0_49] : memref<1x1024xf32, #tpu.memory_space<vmem>>, vector<1x1024xf32>
    %70 = vector.broadcast %69 : vector<1x1024xf32> to vector<8x1024xf32>
    %71 = arith.addf %68, %70 : vector<8x1024xf32>
    %c0_50 = arith.constant 0 : index
    %c0_51 = arith.constant 0 : index
    %72 = vector.load %arg14[%c0_50, %c0_51] : memref<256x1024xbf16, #tpu.memory_space<vmem>>, vector<256x1024xbf16>
    %cst_52 = arith.constant 0.000000e+00 : f32
    %73 = vector.broadcast %cst_52 : f32 to vector<2x256xf32>
    %cst_53 = arith.constant 0.000000e+00 : f32
    %74 = vector.broadcast %cst_53 : f32 to vector<2x256xf32>
    %75 = vector.extract_strided_slice %71 {offsets = [0, 0], sizes = [2, 1024], strides = [1, 1]} : vector<8x1024xf32> to vector<2x1024xf32>
    %76 = arith.truncf %73 : vector<2x256xf32> to vector<2x256xbf16>
    %cst_54 = arith.constant dense<0.000000e+00> : vector<2x1024xf32>
    %77 = tpu.matmul %76, %72, %cst_54 {dimension_numbers = #tpu.dot_dimension_numbers<[1], [0], [0], [1], [0, 0, 1, 1], [], []>} : vector<2x256xbf16>, vector<256x1024xbf16>, vector<2x1024xf32> -> vector<2x1024xf32>
    %78 = arith.addf %75, %77 : vector<2x1024xf32>
    %79 = vector.extract_strided_slice %78 {offsets = [0, 0], sizes = [2, 768], strides = [1, 1]} : vector<2x1024xf32> to vector<2x768xf32>
    %cst_55 = arith.constant 5.000000e-01 : f32
    %80 = vector.broadcast %cst_55 : f32 to vector<2x768xf32>
    %81 = arith.mulf %80, %79 : vector<2x768xf32>
    %82 = math.tanh %81 : vector<2x768xf32>
    %cst_56 = arith.constant 5.000000e-01 : f32
    %83 = vector.broadcast %cst_56 : f32 to vector<2x768xf32>
    %84 = arith.mulf %83, %82 : vector<2x768xf32>
    %cst_57 = arith.constant 5.000000e-01 : f32
    %85 = vector.broadcast %cst_57 : f32 to vector<2x768xf32>
    %86 = arith.addf %84, %85 : vector<2x768xf32>
    %87 = vector.extract_strided_slice %78 {offsets = [0, 768], sizes = [2, 256], strides = [1, 1]} : vector<2x1024xf32> to vector<2x256xf32>
    %88 = math.tanh %87 : vector<2x256xf32>
    %89 = vector.extract_strided_slice %86 {offsets = [0, 256], sizes = [2, 256], strides = [1, 1]} : vector<2x768xf32> to vector<2x256xf32>
    %90 = arith.mulf %89, %74 : vector<2x256xf32>
    %91 = vector.extract_strided_slice %86 {offsets = [0, 0], sizes = [2, 256], strides = [1, 1]} : vector<2x768xf32> to vector<2x256xf32>
    %92 = arith.mulf %91, %88 : vector<2x256xf32>
    %93 = arith.addf %90, %92 : vector<2x256xf32>
    %94 = vector.extract_strided_slice %86 {offsets = [0, 512], sizes = [2, 256], strides = [1, 1]} : vector<2x768xf32> to vector<2x256xf32>
    %95 = math.tanh %93 : vector<2x256xf32>
    %96 = arith.mulf %94, %95 : vector<2x256xf32>
    %97 = vector.extract_strided_slice %71 {offsets = [2, 0], sizes = [2, 1024], strides = [1, 1]} : vector<8x1024xf32> to vector<2x1024xf32>
    %98 = arith.truncf %96 : vector<2x256xf32> to vector<2x256xbf16>
    %cst_58 = arith.constant dense<0.000000e+00> : vector<2x1024xf32>
    %99 = tpu.matmul %98, %72, %cst_58 {dimension_numbers = #tpu.dot_dimension_numbers<[1], [0], [0], [1], [0, 0, 1, 1], [], []>} : vector<2x256xbf16>, vector<256x1024xbf16>, vector<2x1024xf32> -> vector<2x1024xf32>
    %100 = arith.addf %97, %99 : vector<2x1024xf32>
    %101 = vector.extract_strided_slice %100 {offsets = [0, 0], sizes = [2, 768], strides = [1, 1]} : vector<2x1024xf32> to vector<2x768xf32>
    %cst_59 = arith.constant 5.000000e-01 : f32
    %102 = vector.broadcast %cst_59 : f32 to vector<2x768xf32>
    %103 = arith.mulf %102, %101 : vector<2x768xf32>
    %104 = math.tanh %103 : vector<2x768xf32>
    %cst_60 = arith.constant 5.000000e-01 : f32
    %105 = vector.broadcast %cst_60 : f32 to vector<2x768xf32>
    %106 = arith.mulf %105, %104 : vector<2x768xf32>
    %cst_61 = arith.constant 5.000000e-01 : f32
    %107 = vector.broadcast %cst_61 : f32 to vector<2x768xf32>
    %108 = arith.addf %106, %107 : vector<2x768xf32>
    %109 = vector.extract_strided_slice %100 {offsets = [0, 768], sizes = [2, 256], strides = [1, 1]} : vector<2x1024xf32> to vector<2x256xf32>
    %110 = math.tanh %109 : vector<2x256xf32>
    %111 = vector.extract_strided_slice %108 {offsets = [0, 256], sizes = [2, 256], strides = [1, 1]} : vector<2x768xf32> to vector<2x256xf32>
    %112 = arith.mulf %111, %93 : vector<2x256xf32>
    %113 = vector.extract_strided_slice %108 {offsets = [0, 0], sizes = [2, 256], strides = [1, 1]} : vector<2x768xf32> to vector<2x256xf32>
    %114 = arith.mulf %113, %110 : vector<2x256xf32>
    %115 = arith.addf %112, %114 : vector<2x256xf32>
    %116 = vector.extract_strided_slice %108 {offsets = [0, 512], sizes = [2, 256], strides = [1, 1]} : vector<2x768xf32> to vector<2x256xf32>
    %117 = math.tanh %115 : vector<2x256xf32>
    %118 = arith.mulf %116, %117 : vector<2x256xf32>
    %119 = vector.extract_strided_slice %71 {offsets = [4, 0], sizes = [2, 1024], strides = [1, 1]} : vector<8x1024xf32> to vector<2x1024xf32>
    %120 = arith.truncf %118 : vector<2x256xf32> to vector<2x256xbf16>
    %cst_62 = arith.constant dense<0.000000e+00> : vector<2x1024xf32>
    %121 = tpu.matmul %120, %72, %cst_62 {dimension_numbers = #tpu.dot_dimension_numbers<[1], [0], [0], [1], [0, 0, 1, 1], [], []>} : vector<2x256xbf16>, vector<256x1024xbf16>, vector<2x1024xf32> -> vector<2x1024xf32>
    %122 = arith.addf %119, %121 : vector<2x1024xf32>
    %123 = vector.extract_strided_slice %122 {offsets = [0, 0], sizes = [2, 768], strides = [1, 1]} : vector<2x1024xf32> to vector<2x768xf32>
    %cst_63 = arith.constant 5.000000e-01 : f32
    %124 = vector.broadcast %cst_63 : f32 to vector<2x768xf32>
    %125 = arith.mulf %124, %123 : vector<2x768xf32>
    %126 = math.tanh %125 : vector<2x768xf32>
    %cst_64 = arith.constant 5.000000e-01 : f32
    %127 = vector.broadcast %cst_64 : f32 to vector<2x768xf32>
    %128 = arith.mulf %127, %126 : vector<2x768xf32>
    %cst_65 = arith.constant 5.000000e-01 : f32
    %129 = vector.broadcast %cst_65 : f32 to vector<2x768xf32>
    %130 = arith.addf %128, %129 : vector<2x768xf32>
    %131 = vector.extract_strided_slice %122 {offsets = [0, 768], sizes = [2, 256], strides = [1, 1]} : vector<2x1024xf32> to vector<2x256xf32>
    %132 = math.tanh %131 : vector<2x256xf32>
    %133 = vector.extract_strided_slice %130 {offsets = [0, 256], sizes = [2, 256], strides = [1, 1]} : vector<2x768xf32> to vector<2x256xf32>
    %134 = arith.mulf %133, %115 : vector<2x256xf32>
    %135 = vector.extract_strided_slice %130 {offsets = [0, 0], sizes = [2, 256], strides = [1, 1]} : vector<2x768xf32> to vector<2x256xf32>
    %136 = arith.mulf %135, %132 : vector<2x256xf32>
    %137 = arith.addf %134, %136 : vector<2x256xf32>
    %138 = vector.extract_strided_slice %130 {offsets = [0, 512], sizes = [2, 256], strides = [1, 1]} : vector<2x768xf32> to vector<2x256xf32>
    %139 = math.tanh %137 : vector<2x256xf32>
    %140 = arith.mulf %138, %139 : vector<2x256xf32>
    %141 = vector.extract_strided_slice %71 {offsets = [6, 0], sizes = [2, 1024], strides = [1, 1]} : vector<8x1024xf32> to vector<2x1024xf32>
    %142 = arith.truncf %140 : vector<2x256xf32> to vector<2x256xbf16>
    %cst_66 = arith.constant dense<0.000000e+00> : vector<2x1024xf32>
    %143 = tpu.matmul %142, %72, %cst_66 {dimension_numbers = #tpu.dot_dimension_numbers<[1], [0], [0], [1], [0, 0, 1, 1], [], []>} : vector<2x256xbf16>, vector<256x1024xbf16>, vector<2x1024xf32> -> vector<2x1024xf32>
    %144 = arith.addf %141, %143 : vector<2x1024xf32>
    %145 = vector.extract_strided_slice %144 {offsets = [0, 0], sizes = [2, 768], strides = [1, 1]} : vector<2x1024xf32> to vector<2x768xf32>
    %cst_67 = arith.constant 5.000000e-01 : f32
    %146 = vector.broadcast %cst_67 : f32 to vector<2x768xf32>
    %147 = arith.mulf %146, %145 : vector<2x768xf32>
    %148 = math.tanh %147 : vector<2x768xf32>
    %cst_68 = arith.constant 5.000000e-01 : f32
    %149 = vector.broadcast %cst_68 : f32 to vector<2x768xf32>
    %150 = arith.mulf %149, %148 : vector<2x768xf32>
    %cst_69 = arith.constant 5.000000e-01 : f32
    %151 = vector.broadcast %cst_69 : f32 to vector<2x768xf32>
    %152 = arith.addf %150, %151 : vector<2x768xf32>
    %153 = vector.extract_strided_slice %144 {offsets = [0, 768], sizes = [2, 256], strides = [1, 1]} : vector<2x1024xf32> to vector<2x256xf32>
    %154 = math.tanh %153 : vector<2x256xf32>
    %155 = vector.extract_strided_slice %152 {offsets = [0, 256], sizes = [2, 256], strides = [1, 1]} : vector<2x768xf32> to vector<2x256xf32>
    %156 = arith.mulf %155, %137 : vector<2x256xf32>
    %157 = vector.extract_strided_slice %152 {offsets = [0, 0], sizes = [2, 256], strides = [1, 1]} : vector<2x768xf32> to vector<2x256xf32>
    %158 = arith.mulf %157, %154 : vector<2x256xf32>
    %159 = arith.addf %156, %158 : vector<2x256xf32>
    %160 = vector.extract_strided_slice %152 {offsets = [0, 512], sizes = [2, 256], strides = [1, 1]} : vector<2x768xf32> to vector<2x256xf32>
    %161 = math.tanh %159 : vector<2x256xf32>
    %162 = arith.mulf %160, %161 : vector<2x256xf32>
    %c0_70 = arith.constant 0 : index
    %c0_71 = arith.constant 0 : index
    %163 = vector.load %arg15[%c0_70, %c0_71] : memref<256x4xf32, #tpu.memory_space<vmem>>, vector<256x4xf32>
    %cst_72 = arith.constant dense<0.000000e+00> : vector<2x4xf32>
    %164 = tpu.matmul %162, %163, %cst_72 {dimension_numbers = #tpu.dot_dimension_numbers<[1], [0], [0], [1], [0, 0, 1, 1], [], []>} : vector<2x256xf32>, vector<256x4xf32>, vector<2x4xf32> -> vector<2x4xf32>
    %c0_73 = arith.constant 0 : index
    %c0_74 = arith.constant 0 : index
    %165 = vector.load %arg16[%c0_73, %c0_74] : memref<1x4xf32, #tpu.memory_space<vmem>>, vector<1x4xf32>
    %166 = vector.broadcast %165 : vector<1x4xf32> to vector<2x4xf32>
    %167 = arith.addf %164, %166 : vector<2x4xf32>
    %c0_75 = arith.constant 0 : index
    %c0_76 = arith.constant 0 : index
    %168 = vector.load %arg17[%c0_75, %c0_76] : memref<2x4xf32, #tpu.memory_space<vmem>>, vector<2x4xf32>
    tpu.vector_store %arg17[%c0_75, %c0_76], %167 {strides = array<i32>} : memref<2x4xf32, #tpu.memory_space<vmem>>, vector<2x4xf32>,
    return
  }
}

</mosaic_0001>

<bundles_post_ra>
// kernel: conv_lstm_extra_forward.1
= control target key start
LH: loop header
LB: loop body
LE: loop exit
PB: predicated region body
PF: predicated region fallthrough
CT: control target
= control target key end

     0   :  { %s17561_s0 = inlined_call_operand.vmem [shape: f32[48,144], index: 0, kind: input, shape index: {}]   ;;  %s17562_s1 = inlined_call_operand.vmem [shape: bf16[144,384], index: 1, kind: input, shape index: {}]   ;;  %s17563_s2 = inlined_call_operand.hbm [shape: bf16[3,384,512], index: 2, kind: input, shape index: {}]   ;;  %s17564_s3 = inlined_call_operand.vmem [shape: bf16[3,512,512], index: 3, kind: input, shape index: {}]   ;;  %s17565_s4 = inlined_call_operand.vmem [shape: f32[1,384], index: 4, kind: input, shape index: {}]   ;;  %s17566_s5 = inlined_call_operand.vmem [shape: f32[1,512], index: 5, kind: input, shape index: {}]   ;;  %s17567_s6 = inlined_call_operand.vmem [shape: f32[1,512], index: 6, kind: input, shape index: {}]   ;;  %s17568_s7 = inlined_call_operand.hbm [shape: bf16[512,1024], index: 7, kind: input, shape index: {}]   ;;  %s17569_s8 = inlined_call_operand.hbm [shape: bf16[512,1024], index: 8, kind: input, shape index: {}]   ;;  %s17570_s9 = inlined_call_operand.vmem [shape: f32[1,1024], index: 9, kind: input, shape index: {}]   ;;  %s17571_s10 = inlined_call_operand.vmem [shape: f32[1,1024], index: 10, kind: input, shape index: {}]   ;;  %s17572_s11 = inlined_call_operand.vmem [shape: f32[8,1], index: 11, kind: input, shape index: {}]   ;;  %s17573_s12 = inlined_call_operand.vmem [shape: f32[8,1], index: 12, kind: input, shape index: {}]   ;;  %s17574_s13 = inlined_call_operand.vmem [shape: f32[1,1024], index: 13, kind: input, shape index: {}]   ;;  %s17575_s14 = inlined_call_operand.hbm [shape: bf16[256,1024], index: 14, kind: input, shape index: {}]   ;;  %s17576_s15 = inlined_call_operand.vmem [shape: f32[256,4], index: 15, kind: input, shape index: {}]   ;;  %s17577_s16 = inlined_call_operand.vmem [shape: f32[1,4], index: 16, kind: input, shape index: {}]   ;;  %s17578_s17 = inlined_call_operand.hbm [shape: f32[2,4], index: 17, kind: output, shape index: {}]  }
   0x1   :  { %17827 = sst [smem:[#allocation137_spill]] %s17561_s0 }
   0x2   :  { %17828 = sst [smem:[#allocation138_spill]] %s17562_s1 }
   0x3   :  { %22 = vsyncpa [#allocation3], 0 }
   0x4   :  { %23 = vsyncpa [#allocation6], 0 }
   0x5   :  { %24 = vsyncpa [#allocation9], 0 }
   0x6   :  { %25 = vsyncpa [#allocation4], 0  ;;  %s14520_s24 = smov [#allocation5]  }
   0x7   :  { %s55_s25 = sshll.u32 %s14520_s24, 4  ;;  %s56_s25 = int_to_ptr.vmem [resolvable:$true] %s55_s25 }
   0x8   :  { %s14420_s26 = scalar_lea.vmem %s56_s25, 32768  ;;  %p14425_p1 = scmp.lt.s32.totalorder %s56_s25, %s56_s25 }
   0x9   :  { %p14421_p0 = scmp.ne.s32.totalorder %s56_s25, %s14420_s26  ;;  %p14426_p2 = scmp.lt.s32.totalorder %s14420_s26, %s14420_s26 }
   0xb   :  { %p14427_p3 = por %p14426_p2, %p14425_p1 }
   0xd   :  { %p14428_p4 = pnand %p14427_p3, %p14421_p0 }
   0xf   :  { %14431 = shalt.err (!%p14428_p4)
}
  0x10   :  { %s14521_s27 = smov 512   ;;  %s14522_s28 = smov 32  }
  0x11   :  { %61 = dma.hbm_to_vmem [thread:$0]  %s17568_s7, 32768, %s56_s25, [#allocation6], %s14521_s27, %s14521_s27, %s14522_s28  }
  0x12   :  { %s14523_s30 = smov [#allocation2]  }
  0x13   :  { %s35_s18 = sshll.u32 %s14523_s30, 4  ;;  %s36_s18 = int_to_ptr.vmem [resolvable:$true] %s35_s18 }
  0x14   :  { %s14440_s19 = scalar_lea.vmem %s36_s18, 36864  ;;  %p14445_p6 = scmp.lt.s32.totalorder %s36_s18, %s36_s18 }
  0x15   :  { %p14441_p5 = scmp.ne.s32.totalorder %s36_s18, %s14440_s19  ;;  %p14446_p7 = scmp.lt.s32.totalorder %s14440_s19, %s14440_s19 }
  0x17   :  { %p14447_p8 = por %p14446_p7, %p14445_p6 }
  0x19   :  { %p14448_p9 = pnand %p14447_p8, %p14441_p5 }
  0x1b   :  { %14451 = shalt.err (!%p14448_p9)
}
  0x1c   :  { %s14524_s1 = smov 256   ;;  %s14525_s20 = smov 16  }
  0x1d   :  { %41 = dma.hbm_to_vmem [thread:$0]  %s17563_s2, 36864, %s36_s18, [#allocation3], %s14524_s1, %s14524_s1, %s14525_s20  }
  0x1e   :  { %s14526_s23 = smov [#allocation7]   ;;  %s14527_s26 = smov [#allocation8]  }
  0x1f   :  { %s67_s24 = sshll.u32 %s14526_s23, 4  ;;  %s89_s7 = sshll.u32 %s14527_s26, 4  ;;  %s68_s24 = int_to_ptr.vmem [resolvable:$true] %s67_s24  ;;  %s90_s7 = int_to_ptr.vmem [resolvable:$true] %s89_s7 }
  0x20   :  { %s14460_s25 = scalar_lea.vmem %s68_s24, 32768  ;;  %p14465_p11 = scmp.lt.s32.totalorder %s68_s24, %s68_s24 }
  0x21   :  { %p14461_p10 = scmp.ne.s32.totalorder %s68_s24, %s14460_s25  ;;  %p14466_p12 = scmp.lt.s32.totalorder %s14460_s25, %s14460_s25 }
  0x23   :  { %p14467_p13 = por %p14466_p12, %p14465_p11 }
  0x25   :  { %p14468_p0 = pnand %p14467_p13, %p14461_p10 }
  0x27   :  { %14471 = shalt.err (!%p14468_p0)
}
  0x28   :  { %73 = dma.hbm_to_vmem [thread:$0]  %s17569_s8, 32768, %s68_s24, [#allocation6], %s14521_s27, %s14521_s27, %s14522_s28  }
  0x29   :  { %s14480_s2 = scalar_lea.vmem %s90_s7, 16384  ;;  %p14485_p2 = scmp.lt.s32.totalorder %s90_s7, %s90_s7 }
  0x2a   :  { %p14481_p1 = scmp.ne.s32.totalorder %s90_s7, %s14480_s2  ;;  %p14486_p3 = scmp.lt.s32.totalorder %s14480_s2, %s14480_s2 }
  0x2c   :  { %p14487_p4 = por %p14486_p3, %p14485_p2 }
  0x2e   :  { %p14488_p5 = pnand %p14487_p4, %p14481_p1 }
  0x30   :  { %14491 = shalt.err (!%p14488_p5)
}
  0x31   :  { %95 = dma.hbm_to_vmem [thread:$0]  %s17575_s14, 16384, %s90_s7, [#allocation9], %s14521_s27, %s14521_s27, %s14522_s28  }
  0x32   :  { %14512 = dma.done.wait [#allocation3], 36864  }
  0x33   :  { %14513 = vsyncadd [#allocation3], 4294930432 }
  0x34   :  { %14514 = dma.done.wait [#allocation6], 65536  }
  0x35   :  { %14515 = vsyncadd [#allocation6], 4294901760 }
  0x36   :  { %14516 = dma.done.wait [#allocation9], 16384  }
  0x37   :  { %14517 = vsyncadd [#allocation9], 4294950912  ;;  %v17581_v0 = vmov 0   ;;  %s17829_s1 = sld [smem:[#allocation138_spill]]  ;;  %vm328_vm0 = vcmask 130048   ;;  %vm1417_vm1 = vcmask 1043456  }
  0x38   :  { %401 = vmatprep.subr.bf16.mxu1 %v17581_v0  ;;  %13287 = vset.pattern.permute.xlu0 %v17581_v0  ;;  %s17830_s14 = sld [smem:[#allocation137_spill]]  ;;  %v13326_v35 = vld [vmem:[#allocation2 + $0xe4] ss:$16 sps:$4 sm:$0xff]   ;;  %v13324_v38 = vld [vmem:[#allocation2 + $0xe0] ss:$16 sps:$4 sm:$0xff]   ;;  %vm11621_vm2 = vcmask 25600  }
  0x39   :  { %v13329_v39 = vld [vmem:[#allocation2 + $0xc4] ss:$16 sps:$4 sm:$0xff]   ;;  %v13348_v42 = vld [vmem:[#allocation2 + $0x2e0] ss:$16 sps:$4 sm:$0xff]  }
  0x3a   :  { %v13350_v40 = vld [vmem:[#allocation2 + $0x2e4] ss:$16 sps:$4 sm:$0xff]   ;;  %v13327_v47 = vld [vmem:[#allocation2 + $0xc0] ss:$16 sps:$4 sm:$0xff]  }
  0x3b   :  { %v13356_v46 = vld [vmem:[#allocation2 + $0x2c4] ss:$16 sps:$4 sm:$0xff]   ;;  %v13354_v49 = vld [vmem:[#allocation2 + $0x2c0] ss:$16 sps:$4 sm:$0xff]  }
  0x3c   :  { %v13332_v48 = vld [vmem:[#allocation2 + $0xa4] ss:$16 sps:$4 sm:$0xff]   ;;  %v13330_v53 = vld [vmem:[#allocation2 + $0xa0] ss:$16 sps:$4 sm:$0xff]  }
  0x3d   :  { %v13288_v1 = vld [vmem:[%s17829_s1 + $0xac] ss:$12 sps:$4 sm:$0xff]   ;;  %v13290_v2 = vld [vmem:[%s17829_s1 + $0xb0] ss:$12 sps:$4 sm:$0xff]   ;;  %v13291_v3 = vld [vmem:[%s17829_s1 + $0xa8] ss:$12 sps:$4 sm:$0xff]  }
  0x3e   :  { %338 = vmatprep.subr.bf16.mxu0 %v13288_v1  ;;  %402 = vmatpush1.bf16.msra.mxu1 %v13290_v2  ;;  %v13292_v4 = vld [vmem:[%s17829_s1 + $0x94] ss:$12 sps:$4 sm:$0xff]   ;;  %v13294_v5 = vld [vmem:[%s17829_s1 + $0x98] ss:$12 sps:$4 sm:$0xff]   ;;  %v13295_v6 = vld [vmem:[%s17829_s1 + $0x90] ss:$12 sps:$4 sm:$0xff]  }
  0x3f   :  { %339 = vmatpush1.bf16.msra.mxu0 %v13291_v3  ;;  %403 = vmatprep.subr.bf16.mxu1 %v17581_v0  ;;  %v13296_v7 = vld [vmem:[%s17829_s1 + $0x7c] ss:$12 sps:$4 sm:$0xff]   ;;  %v13298_v8 = vld [vmem:[%s17829_s1 + $0x80] ss:$12 sps:$4 sm:$0xff]   ;;  %v13299_v9 = vld [vmem:[%s17829_s1 + $0x78] ss:$12 sps:$4 sm:$0xff]  }
  0x40   :  { %340 = vmatprep.subr.bf16.mxu0 %v13292_v4  ;;  %v13300_v10 = vld [vmem:[%s17829_s1 + $0x64] ss:$12 sps:$4 sm:$0xff]   ;;  %v13302_v11 = vld [vmem:[%s17829_s1 + $0x68] ss:$12 sps:$4 sm:$0xff]   ;;  %v13303_v12 = vld [vmem:[%s17829_s1 + $0x60] ss:$12 sps:$4 sm:$0xff]  }
  0x41   :  { %v13304_v13 = vld [vmem:[%s17829_s1 + $0x4c] ss:$12 sps:$4 sm:$0xff]   ;;  %v13306_v14 = vld [vmem:[%s17829_s1 + $0x50] ss:$12 sps:$4 sm:$0xff]   ;;  %v13307_v15 = vld [vmem:[%s17829_s1 + $0x48] ss:$12 sps:$4 sm:$0xff]  }
  0x42   :  { %404 = vmatpush1.bf16.msra.mxu1 %v13294_v5  ;;  %v13308_v16 = vld [vmem:[%s17829_s1 + $0x34] ss:$12 sps:$4 sm:$0xff]   ;;  %v13310_v17 = vld [vmem:[%s17829_s1 + $0x38] ss:$12 sps:$4 sm:$0xff]   ;;  %v13311_v18 = vld [vmem:[%s17829_s1 + $0x30] ss:$12 sps:$4 sm:$0xff]  }
  0x43   :  { %341 = vmatpush1.bf16.msra.mxu0 %v13295_v6  ;;  %405 = vmatprep.subr.bf16.mxu1 %v17581_v0  ;;  %v13312_v19 = vld [vmem:[%s17829_s1 + $0x1c] ss:$12 sps:$4 sm:$0xff]   ;;  %v13314_v23 = vld [vmem:[%s17829_s1 + $0x20] ss:$12 sps:$4 sm:$0xff]   ;;  %v13315_v24 = vld [vmem:[%s17829_s1 + $0x18] ss:$12 sps:$4 sm:$0xff]  }
  0x44   :  { %342 = vmatprep.subr.bf16.mxu0 %v13296_v7  ;;  %v114_v20 = vld [vmem:[%s17830_s14 + $0x8] sm:$0xff]  ;;  %v116_v21 = vld [vmem:[%s17830_s14 + $0x18] sm:$0xff]  ;;  %v13316_v25 = vld [vmem:[%s17829_s1 + $0x4] ss:$12 sps:$4 sm:$0xff]  }
  0x45   :  { %v126_v22 = vpack.c.bf16 %v116_v21, %v114_v20  ;;  %v13318_v26 = vld [vmem:[%s17829_s1 + $0x8] ss:$12 sps:$4 sm:$0xff]   ;;  %v13319_v27 = vld [vmem:[%s17829_s1] ss:$12 sps:$4 sm:$0xff]   ;;  %v13320_v28 = vld [vmem:[%s17829_s1 + $0xc4] ss:$12 sps:$4 sm:$0xff]  }
  0x46   :  { %406 = vmatpush1.bf16.msra.mxu1 %v13298_v8  ;;  %v13322_v29 = vld [vmem:[%s17829_s1 + $0xc8] ss:$12 sps:$4 sm:$0xff]   ;;  %v13323_v30 = vld [vmem:[%s17829_s1 + $0xc0] ss:$12 sps:$4 sm:$0xff]   ;;  %v120_v34 = vld [vmem:[%s17830_s14 + $0x38] sm:$0xff]  ;;  %s14529_s1 = smov [#allocation10]  }
  0x47   :  { %343 = vmatpush1.bf16.msra.mxu0 %v13299_v9  ;;  %407 = vmatprep.subr.bf16.mxu1 %v17581_v0  ;;  %v113_v31 = vld [vmem:[%s17830_s14] sm:$0xff]  ;;  %v115_v32 = vld [vmem:[%s17830_s14 + $0x10] sm:$0xff]  ;;  %v118_v33 = vld [vmem:[%s17830_s14 + $0x28] sm:$0xff]  ;;  %s11629_s0 = sshll.u32 %s14529_s1, 4  ;;  %s11630_s0 = int_to_ptr.vmem [resolvable:$true] %s11629_s0 }
  0x48   :  { %344 = vmatprep.subr.bf16.mxu0 %v13300_v10  ;;  %11670 = vmatprep.mubr.msk.bf16.mxu1 %vm328_vm0, %v126_v22  ;;  %v125_v36 = vpack.c.bf16 %v115_v32, %v113_v31  ;;  %v128_v37 = vpack.c.bf16 %v120_v34, %v118_v33  ;;  %v117_v41 = vld [vmem:[%s17830_s14 + $0x20] sm:$0xff]  ;;  %v119_v43 = vld [vmem:[%s17830_s14 + $0x30] sm:$0xff]  ;;  %v122_v44 = vld [vmem:[%s17830_s14 + $0x48] sm:$0xff]  ;;  %v169_v33 = vlaneseq  ;;  %s14492_s2 = scalar_lea.vmem %s11630_s0, 32  ;;  %p14497_p7 = scmp.lt.s32.totalorder %s11630_s0, %s11630_s0 }
  0x49   :  { %11667 = vmatprep.mubr.msk.bf16.mxu0 %vm328_vm0, %v126_v22  ;;  %v124_v45 = vld [vmem:[%s17830_s14 + $0x58] sm:$0xff]  ;;  %v127_v50 = vpack.c.bf16 %v119_v43, %v117_v41  ;;  %v13362_v51 = vld [vmem:[#allocation2 + $0x2a4] ss:$16 sps:$4 sm:$0xff]   ;;  %v13360_v55 = vld [vmem:[#allocation2 + $0x2a0] ss:$16 sps:$4 sm:$0xff]   ;;  %p14493_p6 = scmp.ne.s32.totalorder %s11630_s0, %s14492_s2  ;;  %p14498_p8 = scmp.lt.s32.totalorder %s14492_s2, %s14492_s2 }
  0x4a   :  { %408 = vmatpush1.bf16.msra.mxu1 %v13302_v11  ;;  %v130_v52 = vpack.c.bf16 %v124_v45, %v122_v44  ;;  %v13335_v54 = vld [vmem:[#allocation2 + $0x84] ss:$16 sps:$4 sm:$0xff]   ;;  %v13333_v59 = vld [vmem:[#allocation2 + $0x80] ss:$16 sps:$4 sm:$0xff]   ;;  %v13404_v32 = vld [vmem:[#allocation2 + $0x2ec] ss:$16 sps:$4 sm:$0xff]  }
  0x4b   :  { %345 = vmatpush1.bf16.msra.mxu0 %v13303_v12  ;;  %409 = vmatprep.subr.bf16.mxu1 %v17581_v0  ;;  %v13368_v56 = vld [vmem:[#allocation2 + $0x284] ss:$16 sps:$4 sm:$0xff]   ;;  %v13366_v61 = vld [vmem:[#allocation2 + $0x280] ss:$16 sps:$4 sm:$0xff]   ;;  %v14775_v34 = vshrl.u32 %v169_v33, 7  ;;  %p14499_p9 = por %p14498_p8, %p14497_p7 }
  0x4c   :  { %346 = vmatprep.subr.bf16.mxu0 %v13304_v13  ;;  %v121_v57 = vld [vmem:[%s17830_s14 + $0x40] sm:$0xff]  ;;  %v123_v58 = vld [vmem:[%s17830_s14 + $0x50] sm:$0xff] }
  0x4d   :  { %v13338_v60 = vld [vmem:[#allocation2 + $0x64] ss:$16 sps:$4 sm:$0xff]   ;;  %v13336_v62 = vld [vmem:[#allocation2 + $0x60] ss:$16 sps:$4 sm:$0xff]   ;;  %v129_v1 = vpack.c.bf16 %v123_v58, %v121_v57  ;;  %17831 = vst [vmem:[#allocation15_spill] sm:$0xff] %v14775_v34  ;;  %p14500_p10 = pnand %p14499_p9, %p14493_p6 }
  0x4e   :  { %410 = vmatpush1.bf16.msra.mxu1 %v13306_v14  ;;  %v13374_v63 = vld [vmem:[#allocation2 + $0x264] ss:$16 sps:$4 sm:$0xff]   ;;  %v13372_v3 = vld [vmem:[#allocation2 + $0x260] ss:$16 sps:$4 sm:$0xff]  }
  0x4f   :  { %347 = vmatpush1.bf16.msra.mxu0 %v13307_v15  ;;  %411 = vmatprep.subr.bf16.mxu1 %v17581_v0  ;;  %v13341_v2 = vld [vmem:[#allocation2 + $0x44] ss:$16 sps:$4 sm:$0xff]   ;;  %v13339_v5 = vld [vmem:[#allocation2 + $0x40] ss:$16 sps:$4 sm:$0xff]  }
  0x50   :  { %348 = vmatprep.subr.bf16.mxu0 %v13308_v16  ;;  %v13380_v4 = vld [vmem:[#allocation2 + $0x244] ss:$16 sps:$4 sm:$0xff]   ;;  %v13378_v7 = vld [vmem:[#allocation2 + $0x240] ss:$16 sps:$4 sm:$0xff]  }
  0x51   :  { %v13344_v6 = vld [vmem:[#allocation2 + $0x24] ss:$16 sps:$4 sm:$0xff]   ;;  %v13342_v8 = vld [vmem:[#allocation2 + $0x20] ss:$16 sps:$4 sm:$0xff]  }
  0x52   :  { %412 = vmatpush1.bf16.msra.mxu1 %v13310_v17  ;;  %v13347_v9 = vld [vmem:[#allocation2 + $0x4] ss:$16 sps:$4 sm:$0xff]   ;;  %v13345_v10 = vld [vmem:[#allocation2] ss:$16 sps:$4 sm:$0xff]  }
  0x53   :  { %349 = vmatpush1.bf16.msra.mxu0 %v13311_v18  ;;  %413 = vmatprep.subr.bf16.mxu1 %v17581_v0  ;;  %v13353_v11 = vld [vmem:[#allocation2 + $0x1e4] ss:$16 sps:$4 sm:$0xff]   ;;  %v13351_v12 = vld [vmem:[#allocation2 + $0x1e0] ss:$16 sps:$4 sm:$0xff]  }
  0x54   :  { %350 = vmatprep.subr.bf16.mxu0 %v13312_v19  ;;  %v13359_v13 = vld [vmem:[#allocation2 + $0x1c4] ss:$16 sps:$4 sm:$0xff]   ;;  %v13357_v14 = vld [vmem:[#allocation2 + $0x1c0] ss:$16 sps:$4 sm:$0xff]  }
  0x55   :  { %v13365_v15 = vld [vmem:[#allocation2 + $0x1a4] ss:$16 sps:$4 sm:$0xff]   ;;  %v13363_v16 = vld [vmem:[#allocation2 + $0x1a0] ss:$16 sps:$4 sm:$0xff]  }
  0x56   :  { %414 = vmatpush1.bf16.msra.mxu1 %v13314_v23  ;;  %v13371_v17 = vld [vmem:[#allocation2 + $0x184] ss:$16 sps:$4 sm:$0xff]   ;;  %v13369_v18 = vld [vmem:[#allocation2 + $0x180] ss:$16 sps:$4 sm:$0xff]  }
  0x57   :  { %351 = vmatpush1.bf16.msra.mxu0 %v13315_v24  ;;  %415 = vmatprep.subr.bf16.mxu1 %v17581_v0  ;;  %v13377_v19 = vld [vmem:[#allocation2 + $0x164] ss:$16 sps:$4 sm:$0xff]   ;;  %v13375_v20 = vld [vmem:[#allocation2 + $0x160] ss:$16 sps:$4 sm:$0xff]  }
  0x58   :  { %352 = vmatprep.subr.bf16.mxu0 %v13316_v25  ;;  %v13383_v21 = vld [vmem:[#allocation2 + $0x144] ss:$16 sps:$4 sm:$0xff]   ;;  %v13381_v23 = vld [vmem:[#allocation2 + $0x140] ss:$16 sps:$4 sm:$0xff]  }
  0x59   :  { %v13386_v22 = vld [vmem:[#allocation2 + $0x224] ss:$16 sps:$4 sm:$0xff]   ;;  %v13384_v24 = vld [vmem:[#allocation2 + $0x220] ss:$16 sps:$4 sm:$0xff]  }
  0x5a   :  { %416 = vmatpush1.bf16.msra.mxu1 %v13318_v26  ;;  %v13389_v25 = vld [vmem:[#allocation2 + $0x124] ss:$16 sps:$4 sm:$0xff]   ;;  %v13393_v31 = vld [vmem:[#allocation2 + $0x100] ss:$16 sps:$4 sm:$0xff]  }
  0x5b   :  { %353 = vmatpush1.bf16.msra.mxu0 %v13319_v27  ;;  %431 = vmatprep.subr.bf16.mxu1 %v17581_v0  ;;  %v13392_v26 = vld [vmem:[#allocation2 + $0x204] ss:$16 sps:$4 sm:$0xff]   ;;  %v13387_v27 = vld [vmem:[#allocation2 + $0x120] ss:$16 sps:$4 sm:$0xff]  }
  0x5c   :  { %368 = vmatprep.subr.bf16.mxu0 %v13320_v28  ;;  %v13390_v28 = vld [vmem:[#allocation2 + $0x200] ss:$16 sps:$4 sm:$0xff]  }
  0x5e   :  { %432 = vmatpush2.bf16.msra.mxu1 %v13322_v29  ;;  %v13395_v29 = vld [vmem:[#allocation2 + $0x104] ss:$16 sps:$4 sm:$0xff]  }
  0x5f   :  { %369 = vmatpush2.bf16.msra.mxu0 %v13323_v30  ;;  %1115 = vmatprep.subr.bf16.mxu1 %v13350_v40  ;;  %v13398_v30 = vld [vmem:[#allocation2 + $0xec] ss:$16 sps:$4 sm:$0xff]  }
  0x60   :  { %1062 = vmatprep.subr.bf16.mxu0 %v13326_v35  ;;  %v167_v35 = vld [vmem:[%s17565_s4] sm:$0x7] }
  0x61   :  { %434 = vmatmul.mubr.bf16.vlgmr.msra.gmra.mxu1 %v125_v36 }
  0x62   :  { %371 = vmatmul.mubr.bf16.vlgmr.msra.gmra.mxu0 %v125_v36  ;;  %11671 = vmatprep.mubr.msk.bf16.mxu1 %vm328_vm0, %v128_v37  ;;  %v14781_v36 = vsub.s32 2, %v14775_v34 }
  0x63   :  { %11668 = vmatprep.mubr.msk.bf16.mxu0 %vm328_vm0, %v128_v37  ;;  %1063 = vmatpush1.bf16.msra.mxu0 %v13324_v38  ;;  %v14784_v37 = vsub.s32 0, %v14775_v34  ;;  %v14787_v38 = vsub.s32 1, %v14775_v34 }
  0x64   :  { %1064 = vmatprep.subr.bf16.mxu0 %v13329_v39  ;;  %1116 = vmatpush1.bf16.msra.mxu1 %v13348_v42  ;;  %17832 = vst [vmem:[#allocation16_spill] sm:$0xff] %v14781_v36  ;;  %v14790_v39 = vrot.slane %v167_v35, %v14781_v36 }
  0x65   :  { %1117 = vmatprep.subr.bf16.mxu1 %v13356_v46  ;;  %17833 = vst [vmem:[#allocation17_spill] sm:$0xff] %v14784_v37  ;;  %17834 = vst [vmem:[#allocation18_spill] sm:$0xff] %v14787_v38  ;;  %v14793_v40 = vrot.slane %v167_v35, %v14784_v37  ;;  %v14796_v42 = vrot.slane %v167_v35, %v14787_v38  ;;  %v13411_v35 = vld [vmem:[#allocation2 + $0x88] ss:$16 sps:$4 sm:$0xff]  }
  0x67   :  { %1065 = vmatpush1.bf16.msra.mxu0 %v13327_v47 }
  0x68   :  { %1066 = vmatprep.subr.bf16.mxu0 %v13332_v48  ;;  %1118 = vmatpush1.bf16.msra.mxu1 %v13354_v49 }
  0x69   :  { %442 = vmatmul.mubr.bf16.gmra.mxu1 %v127_v50  ;;  %1119 = vmatprep.subr.bf16.mxu1 %v13362_v51 }
  0x6a   :  { %381 = vmatmul.mubr.bf16.gmra.mxu0 %v127_v50  ;;  %11672 = vmatprep.mubr.msk.bf16.mxu1 %vm328_vm0, %v130_v52 }
  0x6b   :  { %11669 = vmatprep.mubr.msk.bf16.mxu0 %vm328_vm0, %v130_v52  ;;  %1067 = vmatpush1.bf16.msra.mxu0 %v13330_v53 }
  0x6c   :  { %1068 = vmatprep.subr.bf16.mxu0 %v13335_v54  ;;  %1120 = vmatpush1.bf16.msra.mxu1 %v13360_v55  ;;  %v13396_v54 = vld [vmem:[#allocation2 + $0xe8] ss:$16 sps:$4 sm:$0xff]  }
  0x6d   :  { %1121 = vmatprep.subr.bf16.mxu1 %v13368_v56 }
  0x6f   :  { %1069 = vmatpush1.bf16.msra.mxu0 %v13333_v59 }
  0x70   :  { %1070 = vmatprep.subr.bf16.mxu0 %v13338_v60  ;;  %1122 = vmatpush1.bf16.msra.mxu1 %v13366_v61 }
  0x71   :  { %450 = vmatmul.mubr.bf16.gmra.mxu1 %v129_v1  ;;  %1123 = vmatprep.subr.bf16.mxu1 %v13374_v63 }
  0x72   :  { %391 = vmatmul.mubr.bf16.gmra.mxu0 %v129_v1  ;;  %1147 = vmatprep.mubr.bf16.mxu1 %v17581_v0 }
  0x73   :  { %1071 = vmatpush1.bf16.msra.mxu0 %v13336_v62 }
  0x74   :  { %1072 = vmatprep.subr.bf16.mxu0 %v13341_v2  ;;  %1124 = vmatpush1.bf16.msra.mxu1 %v13372_v3  ;;  %v13401_v2 = vld [vmem:[#allocation2 + $0xcc] ss:$16 sps:$4 sm:$0xff]  }
  0x75   :  { %1125 = vmatprep.subr.bf16.mxu1 %v13380_v4 }
  0x77   :  { %1073 = vmatpush1.bf16.msra.mxu0 %v13339_v5 }
  0x78   :  { %1074 = vmatprep.subr.bf16.mxu0 %v13344_v6  ;;  %1126 = vmatpush1.bf16.msra.mxu1 %v13378_v7  ;;  %v13399_v6 = vld [vmem:[#allocation2 + $0xc8] ss:$16 sps:$4 sm:$0xff]  }
  0x79   :  { %1127 = vmatprep.subr.bf16.mxu1 %v13386_v22  ;;  %v13402_v7 = vld [vmem:[#allocation2 + $0x2e8] ss:$16 sps:$4 sm:$0xff]  }
  0x7b   :  { %1075 = vmatpush1.bf16.msra.mxu0 %v13342_v8 }
  0x7c   :  { %1076 = vmatprep.subr.bf16.mxu0 %v13347_v9  ;;  %1128 = vmatpush1.bf16.msra.mxu1 %v13384_v24  ;;  %v13413_v24 = vld [vmem:[#allocation2 + $0x8c] ss:$16 sps:$4 sm:$0xff]  }
  0x7d   :  { %1129 = vmatprep.subr.bf16.mxu1 %v13392_v26 }
  0x7f   :  { %1077 = vmatpush1.bf16.msra.mxu0 %v13345_v10 }
  0x80   :  { %1078 = vmatprep.subr.bf16.mxu0 %v13353_v11  ;;  %1130 = vmatpush1.bf16.msra.mxu1 %v13390_v28 }
  0x81   :  { %1168 = vmatprep.subr.bf16.mxu1 %v13398_v30  ;;  %v13416_v30 = vld [vmem:[#allocation2 + $0x2ac] ss:$16 sps:$4 sm:$0xff]  }
  0x83   :  { %1079 = vmatpush2.bf16.msra.mxu0 %v13351_v12 }
  0x84   :  { %1080 = vmatprep.subr.bf16.mxu0 %v13359_v13 }
  0x87   :  { %1081 = vmatpush2.bf16.msra.mxu0 %v13357_v14 }
  0x88   :  { %1082 = vmatprep.subr.bf16.mxu0 %v13365_v15  ;;  %v13407_v15 = vld [vmem:[#allocation2 + $0xac] ss:$16 sps:$4 sm:$0xff]  }
  0x8b   :  { %1083 = vmatpush2.bf16.msra.mxu0 %v13363_v16  ;;  %v13410_v16 = vld [vmem:[#allocation2 + $0x2cc] ss:$16 sps:$4 sm:$0xff]  }
  0x8c   :  { %1084 = vmatprep.subr.bf16.mxu0 %v13371_v17 }
  0x8f   :  { %1085 = vmatpush2.bf16.msra.mxu0 %v13369_v18 }
  0x90   :  { %1086 = vmatprep.subr.bf16.mxu0 %v13377_v19  ;;  %v13405_v19 = vld [vmem:[#allocation2 + $0xa8] ss:$16 sps:$4 sm:$0xff]  }
  0x93   :  { %1087 = vmatpush2.bf16.msra.mxu0 %v13375_v20  ;;  %v13408_v20 = vld [vmem:[#allocation2 + $0x2c8] ss:$16 sps:$4 sm:$0xff]  }
  0x94   :  { %1088 = vmatprep.subr.bf16.mxu0 %v13383_v21 }
  0x97   :  { %1089 = vmatpush2.bf16.msra.mxu0 %v13381_v23 }
  0x98   :  { %1090 = vmatprep.subr.bf16.mxu0 %v13389_v25 }
  0x9b   :  { %1091 = vmatpush2.bf16.msra.mxu0 %v13387_v27 }
  0x9c   :  { %1092 = vmatprep.subr.bf16.mxu0 %v13395_v29 }
  0x9f   :  { %1093 = vmatpush2.bf16.msra.mxu0 %v13393_v31 }
  0xa0   :  { %1221 = vmatprep.subr.bf16.mxu0 %v13404_v32 }
 0x121   :  { %v435_v41 = vpop.f32.mrf.mxu1 }
 0x122   :  { %v372_v43 = vpop.f32.mrf.mxu0  ;;  %v436_v45 = vadd.f32 %v435_v41, %v14790_v39  ;;  %v13414_v41 = vld [vmem:[#allocation2 + $0x2a8] ss:$16 sps:$4 sm:$0xff]  }
 0x123   :  { %v437_v44 = vpop.f32.mrf.mxu1  ;;  %v373_v46 = vadd.f32 %v372_v43, %v14793_v40 }
 0x124   :  { %v374_v47 = vpop.f32.mrf.mxu0  ;;  %v460_v55 = vmax.f32 %v436_v45, 0.0 }
 0x125   :  { %v375_v48 = vadd.f32 %v374_v47, %v14796_v42  ;;  %v438_v49 = vpop.f32.mrf.mxu1  ;;  %v458_v56 = vmax.f32 %v373_v46, 0.0  ;;  %v13419_v47 = vld [vmem:[#allocation2 + $0x6c] ss:$16 sps:$4 sm:$0xff]  }
 0x126   :  { %v439_v50 = vadd.f32 %v438_v49, %v14790_v39  ;;  %v376_v51 = vpop.f32.mrf.mxu0 }
 0x127   :  { %v377_v52 = vadd.f32 %v376_v51, %v14793_v40  ;;  %v440_v53 = vpop.f32.mrf.mxu1  ;;  %v459_v59 = vmax.f32 %v375_v48, 0.0  ;;  %v13422_v48 = vld [vmem:[#allocation2 + $0x28c] ss:$16 sps:$4 sm:$0xff]  }
 0x128   :  { %v463_v57 = vmax.f32 %v439_v50, 0.0  ;;  %v378_v58 = vpop.f32.mrf.mxu0 }
 0x129   :  { %v461_v60 = vmax.f32 %v377_v52, 0.0  ;;  %v379_v61 = vadd.f32 %v378_v58, %v14796_v42  ;;  %v443_v62 = vpop.f32.mrf.mxu1  ;;  %v13417_v52 = vld [vmem:[#allocation2 + $0x68] ss:$16 sps:$4 sm:$0xff]  }
 0x12a   :  { %v14804_v63 = vpack.c.bf16 %v463_v57, %v460_v55  ;;  %v444_v1 = vadd.f32 %v443_v62, %v14790_v39  ;;  %v382_v3 = vpop.f32.mrf.mxu0  ;;  %v13428_v57 = vld [vmem:[#allocation2 + $0x26c] ss:$16 sps:$4 sm:$0xff]   ;;  %v13429_v62 = vld [vmem:[#allocation2 + $0x28] ss:$16 sps:$4 sm:$0xff]  }
 0x12b   :  { %v462_v4 = vmax.f32 %v379_v61, 0.0  ;;  %v445_v5 = vpop.f32.mrf.mxu1  ;;  %v14807_v8 = vpack.c.bf16 %v461_v60, %v458_v56  ;;  %v383_v17 = vadd.f32 %v382_v3, %v14793_v40  ;;  %v13425_v56 = vld [vmem:[#allocation2 + $0x4c] ss:$16 sps:$4 sm:$0xff]  }
 0x12c   :  { %1148 = vmatmul.mubr.bf16.vlgmr.msra.gmra.mxu1 %v14804_v63  ;;  %v384_v9 = vpop.f32.mrf.mxu0  ;;  %v466_v13 = vmax.f32 %v444_v1, 0.0  ;;  %v13431_v60 = vld [vmem:[#allocation2 + $0x2c] ss:$16 sps:$4 sm:$0xff]   ;;  %v13432_v1 = vld [vmem:[#allocation2 + $0x248] ss:$16 sps:$4 sm:$0xff]  }
 0x12d   :  { %1169 = vmatpush1.bf16.msra.mxu1 %v13396_v54  ;;  %v446_v10 = vpop.f32.mrf.mxu1  ;;  %v14810_v11 = vpack.c.bf16 %v462_v4, %v459_v59  ;;  %v385_v12 = vadd.f32 %v384_v9, %v14796_v42  ;;  %1157 = vmatprep.mubr.bf16.mxu1 %v17581_v0  ;;  %v464_v31 = vmax.f32 %v383_v17, 0.0  ;;  %v13420_v54 = vld [vmem:[#allocation2 + $0x288] ss:$16 sps:$4 sm:$0xff]   ;;  %v13434_v61 = vld [vmem:[#allocation2 + $0x24c] ss:$16 sps:$4 sm:$0xff]  }
 0x12e   :  { %v447_v14 = vadd.f32 %v446_v10, %v14790_v39  ;;  %1170 = vmatprep.subr.bf16.mxu1 %v13401_v2  ;;  %v386_v18 = vpop.f32.mrf.mxu0  ;;  %v13423_v59 = vld [vmem:[#allocation2 + $0x48] ss:$16 sps:$4 sm:$0xff]   ;;  %v13437_v2 = vld [vmem:[#allocation2 + $0xc] ss:$16 sps:$4 sm:$0xff]   ;;  %v13458_v17 = vld [vmem:[#allocation2 + $0x3c4] ss:$16 sps:$4 sm:$0xff]  }
 0x12f   :  { %1094 = vmatprep.mubr.bf16.mxu0 %v14810_v11  ;;  %v387_v21 = vadd.f32 %v386_v18, %v14793_v40  ;;  %v448_v22 = vpop.f32.mrf.mxu1  ;;  %v465_v26 = vmax.f32 %v385_v12, 0.0  ;;  %v13440_v3 = vld [vmem:[#allocation2 + $0x22c] ss:$16 sps:$4 sm:$0xff]   ;;  %v13435_v4 = vld [vmem:[#allocation2 + $0x8] ss:$16 sps:$4 sm:$0xff]  }
 0x130   :  { %v469_v23 = vmax.f32 %v447_v14, 0.0  ;;  %1095 = vmatmul.mubr.bf16.vlgmr.msra.gmra.mxu0 %v14807_v8  ;;  %v388_v25 = vpop.f32.mrf.mxu0  ;;  %v13438_v5 = vld [vmem:[#allocation2 + $0x228] ss:$16 sps:$4 sm:$0xff]   ;;  %v13449_v12 = vld [vmem:[#allocation2 + $0x1cc] ss:$16 sps:$4 sm:$0xff]  }
 0x131   :  { %1171 = vmatpush1.bf16.msra.mxu1 %v13399_v6  ;;  %1222 = vmatpush1.bf16.msra.mxu0 %v13402_v7  ;;  %v389_v27 = vadd.f32 %v388_v25, %v14796_v42  ;;  %v451_v28 = vpop.f32.mrf.mxu1  ;;  %v467_v32 = vmax.f32 %v387_v21, 0.0  ;;  %v13443_v6 = vld [vmem:[#allocation2 + $0x1ec] ss:$16 sps:$4 sm:$0xff]   ;;  %v13441_v9 = vld [vmem:[#allocation2 + $0x1e8] ss:$16 sps:$4 sm:$0xff]  }
 0x132   :  { %v14820_v29 = vpack.c.bf16 %v469_v23, %v466_v13  ;;  %1172 = vmatprep.subr.bf16.mxu1 %v13407_v15  ;;  %1223 = vmatprep.subr.bf16.mxu0 %v13410_v16  ;;  %v452_v33 = vadd.f32 %v451_v28, %v14790_v39  ;;  %v13446_v7 = vld [vmem:[#allocation2 + $0x20c] ss:$16 sps:$4 sm:$0xff]   ;;  %v13444_v10 = vld [vmem:[#allocation2 + $0x208] ss:$16 sps:$4 sm:$0xff]   ;;  %v13452_v13 = vld [vmem:[#allocation2 + $0x3e4] ss:$16 sps:$4 sm:$0xff]  }
 0x133   :  { %v468_v43 = vmax.f32 %v389_v27, 0.0  ;;  %v453_v44 = vpop.f32.mrf.mxu1  ;;  %v14826_v49 = vpack.c.bf16 %v467_v32, %v464_v31  ;;  %v13447_v14 = vld [vmem:[#allocation2 + $0x1c8] ss:$16 sps:$4 sm:$0xff]   ;;  %v13450_v15 = vld [vmem:[#allocation2 + $0x3e0] ss:$16 sps:$4 sm:$0xff]  }
 0x134   :  { %1158 = vmatmul.mubr.bf16.gmra.mxu1 %v14820_v29  ;;  %v472_v50 = vmax.f32 %v452_v33, 0.0  ;;  %v13455_v16 = vld [vmem:[#allocation2 + $0x1ac] ss:$16 sps:$4 sm:$0xff]   ;;  %v13453_v18 = vld [vmem:[#allocation2 + $0x1a8] ss:$16 sps:$4 sm:$0xff]  }
 0x135   :  { %1173 = vmatpush1.bf16.msra.mxu1 %v13405_v19  ;;  %1224 = vmatpush1.bf16.msra.mxu0 %v13408_v20  ;;  %v14824_v45 = vpack.c.bf16 %v468_v43, %v465_v26  ;;  %v454_v46 = vpop.f32.mrf.mxu1  ;;  %v13456_v19 = vld [vmem:[#allocation2 + $0x3c0] ss:$16 sps:$4 sm:$0xff]   ;;  %v13461_v20 = vld [vmem:[#allocation2 + $0x18c] ss:$16 sps:$4 sm:$0xff]   ;;  %v13464_v21 = vld [vmem:[#allocation2 + $0x3a4] ss:$16 sps:$4 sm:$0xff]  }
 0x136   :  { %1174 = vmatprep.subr.bf16.mxu1 %v13413_v24  ;;  %1225 = vmatprep.subr.bf16.mxu0 %v13416_v30  ;;  %v455_v51 = vadd.f32 %v454_v46, %v14790_v39  ;;  %v13426_v39 = vld [vmem:[#allocation2 + $0x268] ss:$16 sps:$4 sm:$0xff]   ;;  %v13462_v23 = vld [vmem:[#allocation2 + $0x3a0] ss:$16 sps:$4 sm:$0xff]   ;;  %v1421_v24 = vrot.slane %v14810_v11, 4 }
 0x137   :  { %1200 = vmatprep.mubr.bf16.mxu1 %v14810_v11  ;;  %1104 = vmatprep.mubr.bf16.mxu0 %v14824_v45  ;;  %v456_v53 = vpop.f32.mrf.mxu1  ;;  %v13459_v22 = vld [vmem:[#allocation2 + $0x188] ss:$16 sps:$4 sm:$0xff]   ;;  %v1422_v25 = vrot.slane %v14824_v45, 4  ;;  %v13467_v26 = vld [vmem:[#allocation2 + $0x16c] ss:$16 sps:$4 sm:$0xff]  }
 0x138   :  { %1105 = vmatmul.mubr.bf16.gmra.mxu0 %v14826_v49  ;;  %v475_v55 = vmax.f32 %v455_v51, 0.0  ;;  %v13465_v27 = vld [vmem:[#allocation2 + $0x168] ss:$16 sps:$4 sm:$0xff]   ;;  %v13468_v28 = vld [vmem:[#allocation2 + $0x380] ss:$16 sps:$4 sm:$0xff]  }
 0x139   :  { %1175 = vmatpush1.bf16.msra.mxu1 %v13411_v35  ;;  %1226 = vmatpush1.bf16.msra.mxu0 %v13414_v41  ;;  %v13470_v30 = vld [vmem:[#allocation2 + $0x384] ss:$16 sps:$4 sm:$0xff]   ;;  %v14843_v31 = vsel %vm1417_vm1, %v1421_v24, %v1422_v25  ;;  %v13473_v11 = vld [vmem:[#allocation2 + $0x14c] ss:$16 sps:$4 sm:$0xff]   ;;  %v13471_v33 = vld [vmem:[#allocation2 + $0x148] ss:$16 sps:$4 sm:$0xff]  }
 0x13a   :  { %1176 = vmatprep.subr.bf16.mxu1 %v13419_v47  ;;  %1227 = vmatprep.subr.bf16.mxu0 %v13422_v48  ;;  %v14832_v58 = vpack.c.bf16 %v475_v55, %v472_v50  ;;  %v13476_v32 = vld [vmem:[#allocation2 + $0x364] ss:$16 sps:$4 sm:$0xff]   ;;  %v13474_v35 = vld [vmem:[#allocation2 + $0x360] ss:$16 sps:$4 sm:$0xff]   ;;  %v13479_v41 = vld [vmem:[#allocation2 + $0x12c] ss:$16 sps:$4 sm:$0xff]  }
 0x13b   :  { %1253 = vmatprep.mubr.bf16.mxu0 %v17581_v0  ;;  %v13482_v43 = vld [vmem:[#allocation2 + $0x344] ss:$16 sps:$4 sm:$0xff]   ;;  %v13477_v44 = vld [vmem:[#allocation2 + $0x128] ss:$16 sps:$4 sm:$0xff]   ;;  %v13480_v46 = vld [vmem:[#allocation2 + $0x340] ss:$16 sps:$4 sm:$0xff]  }
 0x13c   :  { %v13485_v47 = vld [vmem:[#allocation2 + $0x10c] ss:$16 sps:$4 sm:$0xff]   ;;  %v13488_v48 = vld [vmem:[#allocation2 + $0x324] ss:$16 sps:$4 sm:$0xff]   ;;  %v13483_v50 = vld [vmem:[#allocation2 + $0x108] ss:$16 sps:$4 sm:$0xff]  }
 0x13d   :  { %1177 = vmatpush1.bf16.msra.mxu1 %v13417_v52  ;;  %1228 = vmatpush1.bf16.msra.mxu0 %v13420_v54  ;;  %v13486_v51 = vld [vmem:[#allocation2 + $0x320] ss:$16 sps:$4 sm:$0xff]   ;;  %v13491_v52 = vld [vmem:[#allocation2 + $0x304] ss:$16 sps:$4 sm:$0xff]  }
 0x13e   :  { %1178 = vmatprep.subr.bf16.mxu1 %v13425_v56  ;;  %1229 = vmatprep.subr.bf16.mxu0 %v13428_v57  ;;  %v13494_v53 = vld [vmem:[#allocation2 + $0x5e4] ss:$16 sps:$4 sm:$0xff]   ;;  %v13489_v54 = vld [vmem:[#allocation2 + $0x300] ss:$16 sps:$4 sm:$0xff]  }
 0x13f   :  { %v13492_v55 = vld [vmem:[#allocation2 + $0x5e0] ss:$16 sps:$4 sm:$0xff]   ;;  %v13497_v56 = vld [vmem:[#allocation2 + $0x4e4] ss:$16 sps:$4 sm:$0xff]  }
 0x140   :  { %v13495_v57 = vld [vmem:[#allocation2 + $0x4e0] ss:$16 sps:$4 sm:$0xff]  }
 0x141   :  { %1179 = vmatpush1.bf16.msra.mxu1 %v13423_v59  ;;  %1230 = vmatpush1.bf16.msra.mxu0 %v13426_v39  ;;  %v13500_v59 = vld [vmem:[#allocation2 + $0x5c4] ss:$16 sps:$4 sm:$0xff]   ;;  %v13498_v39 = vld [vmem:[#allocation2 + $0x5c0] ss:$16 sps:$4 sm:$0xff]  }
 0x142   :  { %1180 = vmatprep.subr.bf16.mxu1 %v13431_v60  ;;  %1231 = vmatprep.subr.bf16.mxu0 %v13434_v61  ;;  %v13503_v60 = vld [vmem:[#allocation2 + $0x4c4] ss:$16 sps:$4 sm:$0xff]  }
 0x143   :  { %v13506_v61 = vld [vmem:[#allocation2 + $0x5a4] ss:$16 sps:$4 sm:$0xff]  }
 0x145   :  { %1181 = vmatpush1.bf16.msra.mxu1 %v13429_v62  ;;  %1232 = vmatpush1.bf16.msra.mxu0 %v13432_v1  ;;  %v13501_v62 = vld [vmem:[#allocation2 + $0x4c0] ss:$16 sps:$4 sm:$0xff]  }
 0x146   :  { %1182 = vmatprep.subr.bf16.mxu1 %v13437_v2  ;;  %1233 = vmatprep.subr.bf16.mxu0 %v13440_v3  ;;  %v13504_v1 = vld [vmem:[#allocation2 + $0x5a0] ss:$16 sps:$4 sm:$0xff]   ;;  %v13509_v2 = vld [vmem:[#allocation2 + $0x4a4] ss:$16 sps:$4 sm:$0xff]   ;;  %v392_v3 = vpop.f32.mrf.mxu0 }
 0x149   :  { %1183 = vmatpush1.bf16.msra.mxu1 %v13435_v4  ;;  %1234 = vmatpush1.bf16.msra.mxu0 %v13438_v5  ;;  %v13507_v4 = vld [vmem:[#allocation2 + $0x4a0] ss:$16 sps:$4 sm:$0xff]   ;;  %v13512_v5 = vld [vmem:[#allocation2 + $0x584] ss:$16 sps:$4 sm:$0xff]  }
 0x14a   :  { %1184 = vmatprep.subr.bf16.mxu1 %v13443_v6  ;;  %1235 = vmatprep.subr.bf16.mxu0 %v13446_v7  ;;  %v13510_v6 = vld [vmem:[#allocation2 + $0x580] ss:$16 sps:$4 sm:$0xff]   ;;  %v13515_v7 = vld [vmem:[#allocation2 + $0x484] ss:$16 sps:$4 sm:$0xff]  }
 0x14d   :  { %1185 = vmatpush2.bf16.msra.mxu1 %v13441_v9  ;;  %1236 = vmatpush1.bf16.msra.mxu0 %v13444_v10  ;;  %v394_v9 = vpop.f32.mrf.mxu0  ;;  %v13518_v10 = vld [vmem:[#allocation2 + $0x564] ss:$16 sps:$4 sm:$0xff]  }
 0x14e   :  { %1186 = vmatprep.subr.bf16.mxu1 %v13449_v12  ;;  %1919 = vmatprep.subr.bf16.mxu0 %v13452_v13  ;;  %v13513_v12 = vld [vmem:[#allocation2 + $0x480] ss:$16 sps:$4 sm:$0xff]  }
 0x14f   :  { %v396_v13 = vpop.f32.mrf.mxu0 }
 0x150   :  { %1254 = vmatmul.mubr.bf16.vlgmr.msra.gmra.mxu0 %v14804_v63 }
 0x151   :  { %1187 = vmatpush2.bf16.msra.mxu1 %v13447_v14  ;;  %1920 = vmatpush1.bf16.msra.mxu0 %v13450_v15  ;;  %v13516_v14 = vld [vmem:[#allocation2 + $0x560] ss:$16 sps:$4 sm:$0xff]   ;;  %v13521_v15 = vld [vmem:[#allocation2 + $0x464] ss:$16 sps:$4 sm:$0xff]  }
 0x152   :  { %1188 = vmatprep.subr.bf16.mxu1 %v13455_v16  ;;  %1921 = vmatprep.subr.bf16.mxu0 %v13458_v17  ;;  %v13519_v16 = vld [vmem:[#allocation2 + $0x460] ss:$16 sps:$4 sm:$0xff]   ;;  %v13524_v17 = vld [vmem:[#allocation2 + $0x544] ss:$16 sps:$4 sm:$0xff]  }
 0x153   :  { %1263 = vmatprep.mubr.bf16.mxu0 %v17581_v0 }
 0x155   :  { %1189 = vmatpush2.bf16.msra.mxu1 %v13453_v18  ;;  %1922 = vmatpush1.bf16.msra.mxu0 %v13456_v19  ;;  %v398_v18 = vpop.f32.mrf.mxu0  ;;  %v13522_v19 = vld [vmem:[#allocation2 + $0x540] ss:$16 sps:$4 sm:$0xff]  }
 0x156   :  { %1190 = vmatprep.subr.bf16.mxu1 %v13461_v20  ;;  %1923 = vmatprep.subr.bf16.mxu0 %v13464_v21  ;;  %v13527_v20 = vld [vmem:[#allocation2 + $0x444] ss:$16 sps:$4 sm:$0xff]   ;;  %v13525_v21 = vld [vmem:[#allocation2 + $0x440] ss:$16 sps:$4 sm:$0xff]   ;;  %v399_v24 = vadd.f32 %v398_v18, %v14796_v42  ;;  %v13567_v18 = vld [vmem:[#allocation2 + $0x348] ss:$16 sps:$4 sm:$0xff]  }
 0x158   :  { %1264 = vmatmul.mubr.bf16.gmra.mxu0 %v14820_v29 }
 0x159   :  { %1191 = vmatpush2.bf16.msra.mxu1 %v13459_v22  ;;  %1924 = vmatpush1.bf16.msra.mxu0 %v13462_v23  ;;  %v13530_v22 = vld [vmem:[#allocation2 + $0x524] ss:$16 sps:$4 sm:$0xff]   ;;  %v395_v23 = vadd.f32 %v394_v9, %v14796_v42  ;;  %v13537_v42 = vld [vmem:[#allocation2 + $0x400] ss:$16 sps:$4 sm:$0xff]   ;;  %v13555_v9 = vld [vmem:[#allocation2 + $0x388] ss:$16 sps:$4 sm:$0xff]  }
 0x15a   :  { %1951 = vmatprep.mubr.bf16.mxu0 %v14843_v31  ;;  %1192 = vmatprep.subr.bf16.mxu1 %v13467_v26  ;;  %v13528_v26 = vld [vmem:[#allocation2 + $0x520] ss:$16 sps:$4 sm:$0xff]  }
 0x15b   :  { %1925 = vmatprep.subr.bf16.mxu0 %v13470_v30  ;;  %v13536_v30 = vld [vmem:[#allocation2 + $0x504] ss:$16 sps:$4 sm:$0xff]  }
 0x15d   :  { %1193 = vmatpush2.bf16.msra.mxu1 %v13465_v27  ;;  %1926 = vmatpush1.bf16.msra.mxu0 %v13468_v28  ;;  %v13533_v27 = vld [vmem:[#allocation2 + $0x424] ss:$16 sps:$4 sm:$0xff]   ;;  %v13531_v28 = vld [vmem:[#allocation2 + $0x420] ss:$16 sps:$4 sm:$0xff]  }
 0x15e   :  { %1194 = vmatprep.subr.bf16.mxu1 %v13473_v11  ;;  %1927 = vmatprep.subr.bf16.mxu0 %v13476_v32  ;;  %v471_v11 = vmax.f32 %v395_v23, 0.0  ;;  %v474_v32 = vmax.f32 %v399_v24, 0.0  ;;  %v13584_v23 = vld [vmem:[#allocation2 + $0x52c] ss:$16 sps:$4 sm:$0xff]  }
 0x15f   :  { %v13581_v24 = vld [vmem:[#allocation2 + $0x30c] ss:$16 sps:$4 sm:$0xff]  }
 0x161   :  { %1195 = vmatpush2.bf16.msra.mxu1 %v13471_v33  ;;  %1928 = vmatpush1.bf16.msra.mxu0 %v13474_v35  ;;  %v13534_v33 = vld [vmem:[#allocation2 + $0x500] ss:$16 sps:$4 sm:$0xff]   ;;  %v13539_v35 = vld [vmem:[#allocation2 + $0x404] ss:$16 sps:$4 sm:$0xff]  }
 0x162   :  { %1196 = vmatprep.subr.bf16.mxu1 %v13479_v41  ;;  %1929 = vmatprep.subr.bf16.mxu0 %v13482_v43  ;;  %v393_v41 = vadd.f32 %v392_v3, %v14793_v40  ;;  %v397_v43 = vadd.f32 %v396_v13, %v14793_v40  ;;  %v1419_v40 = vrot.slane %v14826_v49, 4  ;;  %v13549_v3 = vld [vmem:[#allocation2 + $0x3a8] ss:$16 sps:$4 sm:$0xff]   ;;  %v13563_v13 = vld [vmem:[#allocation2 + $0x36c] ss:$16 sps:$4 sm:$0xff]  }
 0x165   :  { %1197 = vmatpush2.bf16.msra.mxu1 %v13477_v44  ;;  %1930 = vmatpush1.bf16.msra.mxu0 %v13480_v46  ;;  %v13542_v44 = vld [vmem:[#allocation2 + $0x3ec] ss:$16 sps:$4 sm:$0xff]   ;;  %v14854_v46 = vpack.c.bf16 %v474_v32, %v471_v11  ;;  %v13588_v11 = vld [vmem:[#allocation2 + $0x508] ss:$16 sps:$4 sm:$0xff]  }
 0x166   :  { %1198 = vmatprep.subr.bf16.mxu1 %v13485_v47  ;;  %1931 = vmatprep.subr.bf16.mxu0 %v13488_v48  ;;  %v1425_v47 = vrot.slane %v14820_v29, 4  ;;  %v13540_v48 = vld [vmem:[#allocation2 + $0x3e8] ss:$16 sps:$4 sm:$0xff]  }
 0x167   :  { %v13585_v32 = vld [vmem:[#allocation2 + $0x4e8] ss:$16 sps:$4 sm:$0xff]  }
 0x169   :  { %1199 = vmatpush2.bf16.msra.mxu1 %v13483_v50  ;;  %1932 = vmatpush1.bf16.msra.mxu0 %v13486_v51  ;;  %v1424_v50 = vrot.slane %v14804_v63, 4  ;;  %v13545_v51 = vld [vmem:[#allocation2 + $0x3cc] ss:$16 sps:$4 sm:$0xff]  }
 0x16a   :  { %1933 = vmatprep.subr.bf16.mxu0 %v13491_v52  ;;  %1972 = vmatprep.subr.bf16.mxu1 %v13494_v53  ;;  %v13548_v52 = vld [vmem:[#allocation2 + $0x5ec] ss:$16 sps:$4 sm:$0xff]   ;;  %v1418_v53 = vrot.slane %v14807_v8, 4 }
 0x16c   :  { %1201 = vmatmul.mubr.bf16.vlgmr.msra.gmra.mxu1 %v14807_v8  ;;  %v14868_v8 = vsel %vm1417_vm1, %v1418_v53, %v1419_v40  ;;  %v13603_v53 = vld [vmem:[#allocation2 + $0x488] ss:$16 sps:$4 sm:$0xff]  }
 0x16d   :  { %1210 = vmatprep.mubr.bf16.mxu1 %v14824_v45  ;;  %1934 = vmatpush1.bf16.msra.mxu0 %v13489_v54  ;;  %v470_v54 = vmax.f32 %v393_v41, 0.0  ;;  %v13594_v41 = vld [vmem:[#allocation2 + $0x6e0] ss:$16 sps:$4 sm:$0xff]  }
 0x16e   :  { %1973 = vmatpush1.bf16.msra.mxu1 %v13492_v55  ;;  %1935 = vmatprep.subr.bf16.mxu0 %v13497_v56  ;;  %v473_v55 = vmax.f32 %v397_v43, 0.0  ;;  %v13546_v56 = vld [vmem:[#allocation2 + $0x5e8] ss:$16 sps:$4 sm:$0xff]  }
 0x16f   :  { %1974 = vmatprep.subr.bf16.mxu1 %v13500_v59  ;;  %v13543_v59 = vld [vmem:[#allocation2 + $0x3c8] ss:$16 sps:$4 sm:$0xff]  }
 0x170   :  { %v14865_v63 = vpack.c.bf16 %v473_v55, %v470_v54  ;;  %v13591_v43 = vld [vmem:[#allocation2 + $0x4c8] ss:$16 sps:$4 sm:$0xff]   ;;  %v13614_v54 = vld [vmem:[#allocation2 + $0x684] ss:$16 sps:$4 sm:$0xff]   ;;  %v13611_v55 = vld [vmem:[#allocation2 + $0x46c] ss:$16 sps:$4 sm:$0xff]  }
 0x171   :  { %1936 = vmatpush2.bf16.msra.mxu0 %v13495_v57  ;;  %v14861_v57 = vsel %vm1417_vm1, %v1424_v50, %v1425_v47  ;;  %v13608_v50 = vld [vmem:[#allocation2 + $0x6a4] ss:$16 sps:$4 sm:$0xff]  }
 0x172   :  { %1975 = vmatpush1.bf16.msra.mxu1 %v13498_v39  ;;  %1937 = vmatprep.subr.bf16.mxu0 %v13503_v60  ;;  %v1429_v39 = vrot.slane %v14854_v46, 4  ;;  %v13554_v60 = vld [vmem:[#allocation2 + $0x5cc] ss:$16 sps:$4 sm:$0xff]  }
 0x173   :  { %1976 = vmatprep.subr.bf16.mxu1 %v13506_v61  ;;  %v13551_v61 = vld [vmem:[#allocation2 + $0x3ac] ss:$16 sps:$4 sm:$0xff]  }
 0x174   :  { %1211 = vmatmul.mubr.bf16.gmra.mxu1 %v14826_v49 }
 0x175   :  { %1938 = vmatpush2.bf16.msra.mxu0 %v13501_v62  ;;  %2004 = vmatprep.mubr.bf16.mxu1 %v17581_v0  ;;  %v14875_v62 = vsel %vm1417_vm1, %v1422_v25, %v1429_v39  ;;  %v13558_v25 = vld [vmem:[#allocation2 + $0x5a8] ss:$16 sps:$4 sm:$0xff]   ;;  %v13618_v39 = vld [vmem:[#allocation2 + $0x660] ss:$16 sps:$4 sm:$0xff]  }
 0x176   :  { %1977 = vmatpush1.bf16.msra.mxu1 %v13504_v1  ;;  %1939 = vmatprep.subr.bf16.mxu0 %v13509_v2  ;;  %v1431_v1 = vrot.slane %v14832_v58, 4  ;;  %v13552_v2 = vld [vmem:[#allocation2 + $0x5c8] ss:$16 sps:$4 sm:$0xff]  }
 0x177   :  { %1978 = vmatprep.subr.bf16.mxu1 %v13512_v5  ;;  %v13557_v5 = vld [vmem:[#allocation2 + $0x38c] ss:$16 sps:$4 sm:$0xff]  }
 0x179   :  { %1940 = vmatpush2.bf16.msra.mxu0 %v13507_v4  ;;  %v1427_v4 = vrot.slane %v14865_v63, 4 }
 0x17a   :  { %1979 = vmatpush1.bf16.msra.mxu1 %v13510_v6  ;;  %1941 = vmatprep.subr.bf16.mxu0 %v13515_v7  ;;  %v13560_v6 = vld [vmem:[#allocation2 + $0x5ac] ss:$16 sps:$4 sm:$0xff]   ;;  %v14881_v7 = vsel %vm1417_vm1, %v1425_v47, %v1431_v1  ;;  %v13600_v47 = vld [vmem:[#allocation2 + $0x6c0] ss:$16 sps:$4 sm:$0xff]  }
 0x17b   :  { %1980 = vmatprep.subr.bf16.mxu1 %v13518_v10  ;;  %v13566_v10 = vld [vmem:[#allocation2 + $0x58c] ss:$16 sps:$4 sm:$0xff]  }
 0x17c   :  { %v13623_v1 = vld [vmem:[#allocation2 + $0x42c] ss:$16 sps:$4 sm:$0xff]  }
 0x17d   :  { %1942 = vmatpush2.bf16.msra.mxu0 %v13513_v12  ;;  %v14886_v12 = vsel %vm1417_vm1, %v1419_v40, %v1427_v4  ;;  %v13612_v40 = vld [vmem:[#allocation2 + $0x680] ss:$16 sps:$4 sm:$0xff]   ;;  %v13632_v4 = vld [vmem:[#allocation2 + $0x624] ss:$16 sps:$4 sm:$0xff]  }
 0x17e   :  { %1981 = vmatpush1.bf16.msra.mxu1 %v13516_v14  ;;  %1943 = vmatprep.subr.bf16.mxu0 %v13521_v15  ;;  %v13564_v14 = vld [vmem:[#allocation2 + $0x588] ss:$16 sps:$4 sm:$0xff]  }
 0x17f   :  { %1982 = vmatprep.subr.bf16.mxu1 %v13524_v17  ;;  %v13561_v15 = vld [vmem:[#allocation2 + $0x368] ss:$16 sps:$4 sm:$0xff]  }
 0x180   :  { %v13570_v17 = vld [vmem:[#allocation2 + $0x568] ss:$16 sps:$4 sm:$0xff]  }
 0x181   :  { %1944 = vmatpush2.bf16.msra.mxu0 %v13519_v16  ;;  %v13572_v16 = vld [vmem:[#allocation2 + $0x56c] ss:$16 sps:$4 sm:$0xff]  }
 0x182   :  { %1983 = vmatpush1.bf16.msra.mxu1 %v13522_v19  ;;  %1945 = vmatprep.subr.bf16.mxu0 %v13527_v20  ;;  %v13578_v19 = vld [vmem:[#allocation2 + $0x54c] ss:$16 sps:$4 sm:$0xff]  }
 0x183   :  { %1984 = vmatprep.subr.bf16.mxu1 %v13530_v22  ;;  %v13575_v20 = vld [vmem:[#allocation2 + $0x32c] ss:$16 sps:$4 sm:$0xff]   ;;  %v13573_v22 = vld [vmem:[#allocation2 + $0x328] ss:$16 sps:$4 sm:$0xff]  }
 0x185   :  { %1946 = vmatpush2.bf16.msra.mxu0 %v13525_v21  ;;  %v13576_v21 = vld [vmem:[#allocation2 + $0x548] ss:$16 sps:$4 sm:$0xff]  }
 0x186   :  { %1985 = vmatpush1.bf16.msra.mxu1 %v13528_v26  ;;  %1947 = vmatprep.subr.bf16.mxu0 %v13533_v27  ;;  %v13582_v26 = vld [vmem:[#allocation2 + $0x528] ss:$16 sps:$4 sm:$0xff]  }
 0x187   :  { %1986 = vmatprep.subr.bf16.mxu1 %v13536_v30  ;;  %v13579_v27 = vld [vmem:[#allocation2 + $0x308] ss:$16 sps:$4 sm:$0xff]   ;;  %v13587_v30 = vld [vmem:[#allocation2 + $0x4ec] ss:$16 sps:$4 sm:$0xff]  }
 0x189   :  { %1948 = vmatpush2.bf16.msra.mxu0 %v13531_v28  ;;  %v13590_v28 = vld [vmem:[#allocation2 + $0x50c] ss:$16 sps:$4 sm:$0xff]  }
 0x18a   :  { %1987 = vmatpush1.bf16.msra.mxu1 %v13534_v33  ;;  %1949 = vmatprep.subr.bf16.mxu0 %v13539_v35  ;;  %v13596_v33 = vld [vmem:[#allocation2 + $0x6e4] ss:$16 sps:$4 sm:$0xff]   ;;  %v13593_v35 = vld [vmem:[#allocation2 + $0x4cc] ss:$16 sps:$4 sm:$0xff]  }
 0x18b   :  { %2025 = vmatprep.subr.bf16.mxu1 %v13542_v44  ;;  %v13599_v44 = vld [vmem:[#allocation2 + $0x4ac] ss:$16 sps:$4 sm:$0xff]  }
 0x18d   :  { %2005 = vmatmul.mubr.bf16.vlgmr.msra.gmra.mxu1 %v14861_v57  ;;  %1950 = vmatpush2.bf16.msra.mxu0 %v13537_v42  ;;  %v13602_v42 = vld [vmem:[#allocation2 + $0x6c4] ss:$16 sps:$4 sm:$0xff]  }
 0x18e   :  { %2026 = vmatpush1.bf16.msra.mxu1 %v13540_v48  ;;  %2078 = vmatprep.subr.bf16.mxu0 %v13548_v52  ;;  %v13597_v48 = vld [vmem:[#allocation2 + $0x4a8] ss:$16 sps:$4 sm:$0xff]   ;;  %v13606_v52 = vld [vmem:[#allocation2 + $0x6a0] ss:$16 sps:$4 sm:$0xff]  }
 0x18f   :  { %2027 = vmatprep.subr.bf16.mxu1 %v13545_v51  ;;  %2014 = vmatprep.mubr.bf16.mxu1 %v17581_v0  ;;  %v13605_v51 = vld [vmem:[#allocation2 + $0x48c] ss:$16 sps:$4 sm:$0xff]  }
 0x190   :  { %1952 = vmatmul.mubr.bf16.vlgmr.msra.gmra.mxu0 %v14868_v8 }
 0x191   :  { %1961 = vmatprep.mubr.bf16.mxu0 %v14875_v62  ;;  %2079 = vmatpush1.bf16.msra.mxu0 %v13546_v56  ;;  %v13609_v56 = vld [vmem:[#allocation2 + $0x468] ss:$16 sps:$4 sm:$0xff]  }
 0x192   :  { %2028 = vmatpush1.bf16.msra.mxu1 %v13543_v59  ;;  %2080 = vmatprep.subr.bf16.mxu0 %v13554_v60  ;;  %v13617_v59 = vld [vmem:[#allocation2 + $0x44c] ss:$16 sps:$4 sm:$0xff]   ;;  %v13615_v60 = vld [vmem:[#allocation2 + $0x448] ss:$16 sps:$4 sm:$0xff]  }
 0x193   :  { %2029 = vmatprep.subr.bf16.mxu1 %v13551_v61  ;;  %v13626_v61 = vld [vmem:[#allocation2 + $0x644] ss:$16 sps:$4 sm:$0xff]  }
 0x195   :  { %2015 = vmatmul.mubr.bf16.gmra.mxu1 %v14881_v7  ;;  %2081 = vmatpush1.bf16.msra.mxu0 %v13552_v2  ;;  %v13624_v2 = vld [vmem:[#allocation2 + $0x640] ss:$16 sps:$4 sm:$0xff]  }
 0x196   :  { %2030 = vmatpush1.bf16.msra.mxu1 %v13549_v3  ;;  %2057 = vmatprep.mubr.bf16.mxu1 %v14843_v31  ;;  %v13569_v31 = vld [vmem:[#allocation2 + $0x34c] ss:$16 sps:$4 sm:$0xff]   ;;  %v13621_v3 = vld [vmem:[#allocation2 + $0x428] ss:$16 sps:$4 sm:$0xff]  }
 0x197   :  { %2031 = vmatprep.subr.bf16.mxu1 %v13557_v5  ;;  %2082 = vmatprep.subr.bf16.mxu0 %v13560_v6  ;;  %v13629_v5 = vld [vmem:[#allocation2 + $0x40c] ss:$16 sps:$4 sm:$0xff]   ;;  %v13630_v6 = vld [vmem:[#allocation2 + $0x620] ss:$16 sps:$4 sm:$0xff]  }
 0x198   :  { %1962 = vmatmul.mubr.bf16.gmra.mxu0 %v14886_v12 }
 0x199   :  { %2083 = vmatpush1.bf16.msra.mxu0 %v13558_v25  ;;  %2110 = vmatprep.mubr.bf16.mxu0 %v17581_v0  ;;  %v13635_v25 = vld [vmem:[#allocation2 + $0x604] ss:$16 sps:$4 sm:$0xff]  }
 0x19a   :  { %2032 = vmatpush1.bf16.msra.mxu1 %v13555_v9  ;;  %2084 = vmatprep.subr.bf16.mxu0 %v13566_v10  ;;  %v13638_v9 = vld [vmem:[#allocation2 + $0x8e4] ss:$16 sps:$4 sm:$0xff]   ;;  %v13633_v10 = vld [vmem:[#allocation2 + $0x600] ss:$16 sps:$4 sm:$0xff]  }
 0x19b   :  { %2033 = vmatprep.subr.bf16.mxu1 %v13563_v13  ;;  %v13636_v13 = vld [vmem:[#allocation2 + $0x8e0] ss:$16 sps:$4 sm:$0xff]  }
 0x19d   :  { %2085 = vmatpush1.bf16.msra.mxu0 %v13564_v14  ;;  %v13641_v14 = vld [vmem:[#allocation2 + $0x7e4] ss:$16 sps:$4 sm:$0xff]  }
 0x19e   :  { %2034 = vmatpush1.bf16.msra.mxu1 %v13561_v15  ;;  %2086 = vmatprep.subr.bf16.mxu0 %v13572_v16  ;;  %v13644_v15 = vld [vmem:[#allocation2 + $0x8c4] ss:$16 sps:$4 sm:$0xff]   ;;  %v13639_v16 = vld [vmem:[#allocation2 + $0x7e0] ss:$16 sps:$4 sm:$0xff]  }
 0x19f   :  { %2035 = vmatprep.subr.bf16.mxu1 %v13569_v31  ;;  %v13642_v31 = vld [vmem:[#allocation2 + $0x8c0] ss:$16 sps:$4 sm:$0xff]  }
 0x1a1   :  { %2087 = vmatpush1.bf16.msra.mxu0 %v13570_v17  ;;  %v13647_v17 = vld [vmem:[#allocation2 + $0x7c4] ss:$16 sps:$4 sm:$0xff]  }
 0x1a2   :  { %2036 = vmatpush1.bf16.msra.mxu1 %v13567_v18  ;;  %2088 = vmatprep.subr.bf16.mxu0 %v13578_v19  ;;  %v13650_v18 = vld [vmem:[#allocation2 + $0x8a4] ss:$16 sps:$4 sm:$0xff]   ;;  %v13645_v19 = vld [vmem:[#allocation2 + $0x7c0] ss:$16 sps:$4 sm:$0xff]  }
 0x1a3   :  { %2037 = vmatprep.subr.bf16.mxu1 %v13575_v20  ;;  %v13648_v20 = vld [vmem:[#allocation2 + $0x8a0] ss:$16 sps:$4 sm:$0xff]  }
 0x1a5   :  { %2089 = vmatpush1.bf16.msra.mxu0 %v13576_v21  ;;  %v13653_v21 = vld [vmem:[#allocation2 + $0x7a4] ss:$16 sps:$4 sm:$0xff]  }
 0x1a6   :  { %2038 = vmatpush1.bf16.msra.mxu1 %v13573_v22  ;;  %2090 = vmatprep.subr.bf16.mxu0 %v13584_v23  ;;  %v13656_v22 = vld [vmem:[#allocation2 + $0x884] ss:$16 sps:$4 sm:$0xff]  }
 0x1a7   :  { %2039 = vmatprep.subr.bf16.mxu1 %v13581_v24  ;;  %v13659_v23 = vld [vmem:[#allocation2 + $0x784] ss:$16 sps:$4 sm:$0xff]  }
 0x1a8   :  { %v13662_v24 = vld [vmem:[#allocation2 + $0x864] ss:$16 sps:$4 sm:$0xff]  }
 0x1a9   :  { %2091 = vmatpush1.bf16.msra.mxu0 %v13582_v26  ;;  %v13657_v26 = vld [vmem:[#allocation2 + $0x780] ss:$16 sps:$4 sm:$0xff]  }
 0x1aa   :  { %2040 = vmatpush1.bf16.msra.mxu1 %v13579_v27  ;;  %2092 = vmatprep.subr.bf16.mxu0 %v13590_v28  ;;  %v13660_v27 = vld [vmem:[#allocation2 + $0x860] ss:$16 sps:$4 sm:$0xff]   ;;  %v13665_v28 = vld [vmem:[#allocation2 + $0x764] ss:$16 sps:$4 sm:$0xff]  }
 0x1ab   :  { %2041 = vmatprep.subr.bf16.mxu1 %v13587_v30  ;;  %v13668_v30 = vld [vmem:[#allocation2 + $0x844] ss:$16 sps:$4 sm:$0xff]  }
 0x1ad   :  { %2093 = vmatpush1.bf16.msra.mxu0 %v13588_v11  ;;  %v13666_v11 = vld [vmem:[#allocation2 + $0x840] ss:$16 sps:$4 sm:$0xff]  }
 0x1ae   :  { %2042 = vmatpush2.bf16.msra.mxu1 %v13585_v32  ;;  %2724 = vmatprep.subr.bf16.mxu0 %v13596_v33  ;;  %v13671_v32 = vld [vmem:[#allocation2 + $0x744] ss:$16 sps:$4 sm:$0xff]  }
 0x1af   :  { %2043 = vmatprep.subr.bf16.mxu1 %v13593_v35  ;;  %v13674_v33 = vld [vmem:[#allocation2 + $0x824] ss:$16 sps:$4 sm:$0xff]   ;;  %v13669_v35 = vld [vmem:[#allocation2 + $0x740] ss:$16 sps:$4 sm:$0xff]  }
 0x1b0   :  { %2111 = vmatmul.mubr.bf16.vlgmr.msra.gmra.mxu0 %v14861_v57  ;;  %v13620_v57 = vld [vmem:[#allocation2 + $0x664] ss:$16 sps:$4 sm:$0xff]  }
 0x1b1   :  { %2725 = vmatpush1.bf16.msra.mxu0 %v13594_v41  ;;  %2120 = vmatprep.mubr.bf16.mxu0 %v17581_v0  ;;  %v13672_v41 = vld [vmem:[#allocation2 + $0x820] ss:$16 sps:$4 sm:$0xff]  }
 0x1b2   :  { %2044 = vmatpush2.bf16.msra.mxu1 %v13591_v43  ;;  %2726 = vmatprep.subr.bf16.mxu0 %v13602_v42  ;;  %v13677_v43 = vld [vmem:[#allocation2 + $0x724] ss:$16 sps:$4 sm:$0xff]  }
 0x1b3   :  { %2045 = vmatprep.subr.bf16.mxu1 %v13599_v44  ;;  %v13680_v42 = vld [vmem:[#allocation2 + $0x804] ss:$16 sps:$4 sm:$0xff]   ;;  %v13675_v44 = vld [vmem:[#allocation2 + $0x720] ss:$16 sps:$4 sm:$0xff]  }
 0x1b5   :  { %2727 = vmatpush1.bf16.msra.mxu0 %v13600_v47  ;;  %v13678_v47 = vld [vmem:[#allocation2 + $0x800] ss:$16 sps:$4 sm:$0xff]  }
 0x1b6   :  { %2046 = vmatpush2.bf16.msra.mxu1 %v13597_v48  ;;  %2728 = vmatprep.subr.bf16.mxu0 %v13608_v50  ;;  %v13683_v48 = vld [vmem:[#allocation2 + $0x704] ss:$16 sps:$4 sm:$0xff]   ;;  %v13686_v50 = vld [vmem:[#allocation2 + $0x6ec] ss:$16 sps:$4 sm:$0xff]  }
 0x1b7   :  { %2047 = vmatprep.subr.bf16.mxu1 %v13605_v51  ;;  %v13681_v51 = vld [vmem:[#allocation2 + $0x700] ss:$16 sps:$4 sm:$0xff]  }
 0x1b8   :  { %2121 = vmatmul.mubr.bf16.gmra.mxu0 %v14881_v7  ;;  %v13627_v7 = vld [vmem:[#allocation2 + $0x408] ss:$16 sps:$4 sm:$0xff]  }
 0x1b9   :  { %2729 = vmatpush1.bf16.msra.mxu0 %v13606_v52  ;;  %2756 = vmatprep.mubr.bf16.mxu0 %v14824_v45  ;;  %v13684_v52 = vld [vmem:[#allocation2 + $0x6e8] ss:$16 sps:$4 sm:$0xff]  }
 0x1ba   :  { %2048 = vmatpush2.bf16.msra.mxu1 %v13603_v53  ;;  %2730 = vmatprep.subr.bf16.mxu0 %v13614_v54  ;;  %v13692_v53 = vld [vmem:[#allocation2 + $0x8ec] ss:$16 sps:$4 sm:$0xff]  }
 0x1bb   :  { %2049 = vmatprep.subr.bf16.mxu1 %v13611_v55  ;;  %v13689_v54 = vld [vmem:[#allocation2 + $0x6cc] ss:$16 sps:$4 sm:$0xff]  }
 0x1bd   :  { %2731 = vmatpush1.bf16.msra.mxu0 %v13612_v40  ;;  %v13690_v40 = vld [vmem:[#allocation2 + $0x8e8] ss:$16 sps:$4 sm:$0xff]  }
 0x1be   :  { %2050 = vmatpush2.bf16.msra.mxu1 %v13609_v56  ;;  %2732 = vmatprep.subr.bf16.mxu0 %v13620_v57  ;;  %v13687_v57 = vld [vmem:[#allocation2 + $0x6c8] ss:$16 sps:$4 sm:$0xff]  }
 0x1bf   :  { %2051 = vmatprep.subr.bf16.mxu1 %v13617_v59  ;;  %v13698_v59 = vld [vmem:[#allocation2 + $0x8cc] ss:$16 sps:$4 sm:$0xff]  }
 0x1c1   :  { %2733 = vmatpush1.bf16.msra.mxu0 %v13618_v39  ;;  %v13695_v39 = vld [vmem:[#allocation2 + $0x6ac] ss:$16 sps:$4 sm:$0xff]  }
 0x1c2   :  { %2052 = vmatpush2.bf16.msra.mxu1 %v13615_v60  ;;  %2734 = vmatprep.subr.bf16.mxu0 %v13626_v61 }
 0x1c3   :  { %2053 = vmatprep.subr.bf16.mxu1 %v13623_v1 }
 0x1c5   :  { %2735 = vmatpush1.bf16.msra.mxu0 %v13624_v2  ;;  %v13696_v2 = vld [vmem:[#allocation2 + $0x8c8] ss:$16 sps:$4 sm:$0xff]  }
 0x1c6   :  { %2054 = vmatpush2.bf16.msra.mxu1 %v13621_v3  ;;  %2736 = vmatprep.subr.bf16.mxu0 %v13632_v4 }
 0x1c7   :  { %2055 = vmatprep.subr.bf16.mxu1 %v13629_v5  ;;  %v13693_v5 = vld [vmem:[#allocation2 + $0x6a8] ss:$16 sps:$4 sm:$0xff]  }
 0x1c9   :  { %2737 = vmatpush1.bf16.msra.mxu0 %v13630_v6 }
 0x1ca   :  { %2056 = vmatpush2.bf16.msra.mxu1 %v13627_v7  ;;  %2738 = vmatprep.subr.bf16.mxu0 %v13635_v25  ;;  %v13701_v7 = vld [vmem:[#allocation2 + $0x68c] ss:$16 sps:$4 sm:$0xff]  }
 0x1cb   :  { %2777 = vmatprep.subr.bf16.mxu1 %v13638_v9  ;;  %v13704_v25 = vld [vmem:[#allocation2 + $0x8ac] ss:$16 sps:$4 sm:$0xff]  }
 0x1cd   :  { %2058 = vmatmul.mubr.bf16.vlgmr.msra.gmra.mxu1 %v14868_v8  ;;  %2739 = vmatpush1.bf16.msra.mxu0 %v13633_v10  ;;  %v13651_v8 = vld [vmem:[#allocation2 + $0x7a0] ss:$16 sps:$4 sm:$0xff]  }
 0x1ce   :  { %2067 = vmatprep.mubr.bf16.mxu1 %v14875_v62  ;;  %2778 = vmatpush1.bf16.msra.mxu1 %v13636_v13  ;;  %v13654_v62 = vld [vmem:[#allocation2 + $0x880] ss:$16 sps:$4 sm:$0xff]   ;;  %v13702_v13 = vld [vmem:[#allocation2 + $0x8a8] ss:$16 sps:$4 sm:$0xff]  }
 0x1cf   :  { %2740 = vmatprep.subr.bf16.mxu0 %v13641_v14  ;;  %2779 = vmatprep.subr.bf16.mxu1 %v13644_v15  ;;  %v14916_v14 = vld [vmem:[%s17566_s5] sm:$0xf] }
 0x1d1   :  { %2741 = vmatpush2.bf16.msra.mxu0 %v13639_v16  ;;  %v13699_v16 = vld [vmem:[#allocation2 + $0x688] ss:$16 sps:$4 sm:$0xff]  }
 0x1d2   :  { %2780 = vmatpush1.bf16.msra.mxu1 %v13642_v31  ;;  %2742 = vmatprep.subr.bf16.mxu0 %v13647_v17  ;;  %v13710_v31 = vld [vmem:[#allocation2 + $0x88c] ss:$16 sps:$4 sm:$0xff]  }
 0x1d3   :  { %2781 = vmatprep.subr.bf16.mxu1 %v13650_v18  ;;  %v13707_v17 = vld [vmem:[#allocation2 + $0x66c] ss:$16 sps:$4 sm:$0xff]  }
 0x1d5   :  { %2068 = vmatmul.mubr.bf16.gmra.mxu1 %v14886_v12  ;;  %2743 = vmatpush2.bf16.msra.mxu0 %v13645_v19  ;;  %v13663_v12 = vld [vmem:[#allocation2 + $0x760] ss:$16 sps:$4 sm:$0xff]  }
 0x1d6   :  { %2782 = vmatpush1.bf16.msra.mxu1 %v13648_v20  ;;  %2744 = vmatprep.subr.bf16.mxu0 %v13653_v21  ;;  %v14924_v20 = vrot.slane %v14916_v14, %v14784_v37  ;;  %v13708_v21 = vld [vmem:[#allocation2 + $0x888] ss:$16 sps:$4 sm:$0xff]  }
 0x1d7   :  { %2783 = vmatprep.subr.bf16.mxu1 %v13656_v22  ;;  %2809 = vmatprep.mubr.bf16.mxu1 %v17581_v0  ;;  %v13705_v22 = vld [vmem:[#allocation2 + $0x668] ss:$16 sps:$4 sm:$0xff]  }
 0x1d9   :  { %2745 = vmatpush2.bf16.msra.mxu0 %v13651_v8  ;;  %v13716_v8 = vld [vmem:[#allocation2 + $0x86c] ss:$16 sps:$4 sm:$0xff]  }
 0x1da   :  { %2784 = vmatpush1.bf16.msra.mxu1 %v13654_v62  ;;  %2746 = vmatprep.subr.bf16.mxu0 %v13659_v23  ;;  %v14929_v23 = vrot.slane %v14916_v14, %v14787_v38 }
 0x1db   :  { %2785 = vmatprep.subr.bf16.mxu1 %v13662_v24  ;;  %v13713_v24 = vld [vmem:[#allocation2 + $0x64c] ss:$16 sps:$4 sm:$0xff]  }
 0x1dd   :  { %2747 = vmatpush2.bf16.msra.mxu0 %v13657_v26 }
 0x1de   :  { %2786 = vmatpush1.bf16.msra.mxu1 %v13660_v27  ;;  %2748 = vmatprep.subr.bf16.mxu0 %v13665_v28 }
 0x1df   :  { %2787 = vmatprep.subr.bf16.mxu1 %v13668_v30 }
 0x1e1   :  { %2749 = vmatpush2.bf16.msra.mxu0 %v13663_v12  ;;  %v13714_v12 = vld [vmem:[#allocation2 + $0x868] ss:$16 sps:$4 sm:$0xff]  }
 0x1e2   :  { %2788 = vmatpush1.bf16.msra.mxu1 %v13666_v11  ;;  %2750 = vmatprep.subr.bf16.mxu0 %v13671_v32 }
 0x1e3   :  { %2789 = vmatprep.subr.bf16.mxu1 %v13674_v33  ;;  %v13711_v33 = vld [vmem:[#allocation2 + $0x648] ss:$16 sps:$4 sm:$0xff]  }
 0x1e5   :  { %2751 = vmatpush2.bf16.msra.mxu0 %v13669_v35  ;;  %v13722_v35 = vld [vmem:[#allocation2 + $0x84c] ss:$16 sps:$4 sm:$0xff]  }
 0x1e6   :  { %2790 = vmatpush1.bf16.msra.mxu1 %v13672_v41  ;;  %2752 = vmatprep.subr.bf16.mxu0 %v13677_v43  ;;  %v13719_v41 = vld [vmem:[#allocation2 + $0x62c] ss:$16 sps:$4 sm:$0xff]  }
 0x1e7   :  { %2791 = vmatprep.subr.bf16.mxu1 %v13680_v42  ;;  %v13720_v42 = vld [vmem:[#allocation2 + $0x848] ss:$16 sps:$4 sm:$0xff]  }
 0x1e9   :  { %2753 = vmatpush2.bf16.msra.mxu0 %v13675_v44  ;;  %v13717_v44 = vld [vmem:[#allocation2 + $0x628] ss:$16 sps:$4 sm:$0xff]  }
 0x1ea   :  { %2792 = vmatpush1.bf16.msra.mxu1 %v13678_v47  ;;  %2754 = vmatprep.subr.bf16.mxu0 %v13683_v48  ;;  %v13728_v47 = vld [vmem:[#allocation2 + $0x82c] ss:$16 sps:$4 sm:$0xff]  }
 0x1eb   :  { %2830 = vmatprep.subr.bf16.mxu1 %v13686_v50  ;;  %v13725_v48 = vld [vmem:[#allocation2 + $0x60c] ss:$16 sps:$4 sm:$0xff]   ;;  %v13726_v50 = vld [vmem:[#allocation2 + $0x828] ss:$16 sps:$4 sm:$0xff]  }
 0x1ec   :  { %v1149_v55 = vpop.f32.mrf.mxu1 }
 0x1ed   :  { %2810 = vmatmul.mubr.bf16.vlgmr.msra.gmra.mxu1 %v14820_v29  ;;  %2755 = vmatpush2.bf16.msra.mxu0 %v13681_v51  ;;  %v13723_v51 = vld [vmem:[#allocation2 + $0x608] ss:$16 sps:$4 sm:$0xff]  }
 0x1ee   :  { %2831 = vmatpush1.bf16.msra.mxu1 %v13684_v52  ;;  %v1151_v56 = vpop.f32.mrf.mxu1  ;;  %2883 = vmatprep.subr.bf16.mxu0 %v13692_v53  ;;  %v13734_v52 = vld [vmem:[#allocation2 + $0x80c] ss:$16 sps:$4 sm:$0xff]  }
 0x1ef   :  { %2832 = vmatprep.subr.bf16.mxu1 %v13689_v54  ;;  %2819 = vmatprep.mubr.bf16.mxu1 %v17581_v0  ;;  %v13731_v53 = vld [vmem:[#allocation2 + $0x7ec] ss:$16 sps:$4 sm:$0xff]   ;;  %v13732_v54 = vld [vmem:[#allocation2 + $0x808] ss:$16 sps:$4 sm:$0xff]  }
 0x1f0   :  { %2757 = vmatmul.mubr.bf16.vlgmr.msra.gmra.mxu0 %v14826_v49  ;;  %v1096_v60 = vpop.f32.mrf.mxu0  ;;  %v14901_v61 = vpop.f32.mrf.mxu1 }
 0x1f1   :  { %v14903_v1 = vadd.f32 %v1149_v55, %v1096_v60  ;;  %2766 = vmatprep.mubr.bf16.mxu0 %v14854_v46  ;;  %2884 = vmatpush1.bf16.msra.mxu0 %v13690_v40  ;;  %v13729_v55 = vld [vmem:[#allocation2 + $0x7e8] ss:$16 sps:$4 sm:$0xff]   ;;  %v13758_v40 = vld [vmem:[%s17564_s3 + $0xe4] ss:$16 sps:$4 sm:$0xff]   ;;  %v13740_v60 = vld [vmem:[#allocation2 + $0x7ac] ss:$16 sps:$4 sm:$0xff]  }
 0x1f2   :  { %2833 = vmatpush1.bf16.msra.mxu1 %v13687_v57  ;;  %v1098_v3 = vpop.f32.mrf.mxu0  ;;  %v14906_v4 = vpop.f32.mrf.mxu1  ;;  %2885 = vmatprep.subr.bf16.mxu0 %v13698_v59  ;;  %v13756_v57 = vld [vmem:[%s17564_s3 + $0xe0] ss:$16 sps:$4 sm:$0xff]   ;;  %v13735_v59 = vld [vmem:[#allocation2 + $0x7c8] ss:$16 sps:$4 sm:$0xff]  }
 0x1f3   :  { %v14908_v6 = vadd.f32 %v1151_v56, %v1098_v3  ;;  %2834 = vmatprep.subr.bf16.mxu1 %v13695_v39  ;;  %v13737_v56 = vld [vmem:[#allocation2 + $0x7cc] ss:$16 sps:$4 sm:$0xff]   ;;  %v13761_v39 = vld [vmem:[%s17564_s3 + $0xc4] ss:$16 sps:$4 sm:$0xff]   ;;  %v13738_v3 = vld [vmem:[#allocation2 + $0x7a8] ss:$16 sps:$4 sm:$0xff]  }
 0x1f4   :  { %v14910_v9 = vpop.f32.mrf.mxu0  ;;  %v1159_v10 = vpop.f32.mrf.mxu1 }
 0x1f5   :  { %2820 = vmatmul.mubr.bf16.gmra.mxu1 %v14832_v58  ;;  %2886 = vmatpush1.bf16.msra.mxu0 %v13696_v2  ;;  %v13759_v2 = vld [vmem:[%s17564_s3 + $0xc0] ss:$16 sps:$4 sm:$0xff]  }
 0x1f6   :  { %2835 = vmatpush1.bf16.msra.mxu1 %v13693_v5  ;;  %2862 = vmatprep.mubr.bf16.mxu1 %v14824_v45  ;;  %v14919_v15 = vpop.f32.mrf.mxu0  ;;  %v1161_v19 = vpop.f32.mrf.mxu1  ;;  %v13764_v5 = vld [vmem:[%s17564_s3 + $0xa4] ss:$16 sps:$4 sm:$0xff]  }
 0x1f7   :  { %2836 = vmatprep.subr.bf16.mxu1 %v13701_v7  ;;  %2887 = vmatprep.subr.bf16.mxu0 %v13704_v25  ;;  %v13743_v7 = vld [vmem:[#allocation2 + $0x78c] ss:$16 sps:$4 sm:$0xff]   ;;  %v13741_v25 = vld [vmem:[#allocation2 + $0x788] ss:$16 sps:$4 sm:$0xff]  }
 0x1f8   :  { %2767 = vmatmul.mubr.bf16.gmra.mxu0 %v14865_v63  ;;  %v1106_v18 = vpop.f32.mrf.mxu0  ;;  %v1163_v30 = vpop.f32.mrf.mxu1 }
 0x1f9   :  { %2888 = vmatpush1.bf16.msra.mxu0 %v13702_v13  ;;  %2915 = vmatprep.mubr.bf16.mxu0 %v17581_v0  ;;  %v1160_v45 = vadd.f32 %v1159_v10, %v1106_v18  ;;  %v13767_v10 = vld [vmem:[%s17564_s3 + $0x84] ss:$16 sps:$4 sm:$0xff]   ;;  %v13746_v13 = vld [vmem:[#allocation2 + $0x76c] ss:$16 sps:$4 sm:$0xff]  }
 0x1fa   :  { %2837 = vmatpush1.bf16.msra.mxu1 %v13699_v16  ;;  %2889 = vmatprep.subr.bf16.mxu0 %v13710_v31  ;;  %v1108_v62 = vpop.f32.mrf.mxu0  ;;  %v13765_v16 = vld [vmem:[%s17564_s3 + $0x80] ss:$16 sps:$4 sm:$0xff]   ;;  %v13744_v31 = vld [vmem:[#allocation2 + $0x768] ss:$16 sps:$4 sm:$0xff]   ;;  %v13749_v18 = vld [vmem:[#allocation2 + $0x74c] ss:$16 sps:$4 sm:$0xff]  }
 0x1fb   :  { %2838 = vmatprep.subr.bf16.mxu1 %v13707_v17  ;;  %v14932_v26 = vadd.f32 %v14924_v20, %v1160_v45  ;;  %v1162_v27 = vadd.f32 %v1161_v19, %v1108_v62  ;;  %v13770_v17 = vld [vmem:[%s17564_s3 + $0x64] ss:$16 sps:$4 sm:$0xff]   ;;  %v13768_v19 = vld [vmem:[%s17564_s3 + $0x60] ss:$16 sps:$4 sm:$0xff]  }
 0x1fc   :  { %v1110_v28 = vpop.f32.mrf.mxu0  ;;  %v13773_v45 = vld [vmem:[%s17564_s3 + $0x44] ss:$16 sps:$4 sm:$0xff]  }
 0x1fd   :  { %2890 = vmatpush1.bf16.msra.mxu0 %v13708_v21  ;;  %v14935_v11 = vadd.f32 %v14929_v23, %v1162_v27  ;;  %v1164_v32 = vadd.f32 %v1163_v30, %v1110_v28  ;;  %v13747_v21 = vld [vmem:[#allocation2 + $0x748] ss:$16 sps:$4 sm:$0xff]   ;;  %v13776_v27 = vld [vmem:[%s17564_s3 + $0x24] ss:$16 sps:$4 sm:$0xff]   ;;  %v13755_v28 = vld [vmem:[#allocation2 + $0x70c] ss:$16 sps:$4 sm:$0xff]  }
 0x1fe   :  { %2839 = vmatpush1.bf16.msra.mxu1 %v13705_v22  ;;  %2891 = vmatprep.subr.bf16.mxu0 %v13716_v8  ;;  %v13752_v22 = vld [vmem:[#allocation2 + $0x72c] ss:$16 sps:$4 sm:$0xff]   ;;  %v13771_v8 = vld [vmem:[%s17564_s3 + $0x40] ss:$16 sps:$4 sm:$0xff]  }
 0x1ff   :  { %2840 = vmatprep.subr.bf16.mxu1 %v13713_v24  ;;  %v14938_v43 = vadd.f32 %v14924_v20, %v1164_v32  ;;  %v13750_v24 = vld [vmem:[#allocation2 + $0x728] ss:$16 sps:$4 sm:$0xff]   ;;  %v13774_v30 = vld [vmem:[%s17564_s3 + $0x20] ss:$16 sps:$4 sm:$0xff]  }
 0x200   :  { %v13753_v32 = vld [vmem:[#allocation2 + $0x708] ss:$16 sps:$4 sm:$0xff]  }
 0x201   :  { %2892 = vmatpush1.bf16.msra.mxu0 %v13714_v12 }
 0x202   :  { %2841 = vmatpush1.bf16.msra.mxu1 %v13711_v33  ;;  %2893 = vmatprep.subr.bf16.mxu0 %v13722_v35  ;;  %v13779_v33 = vld [vmem:[%s17564_s3 + $0x4] ss:$16 sps:$4 sm:$0xff]   ;;  %v13777_v35 = vld [vmem:[%s17564_s3] ss:$16 sps:$4 sm:$0xff]  }
 0x203   :  { %2842 = vmatprep.subr.bf16.mxu1 %v13719_v41 }
 0x205   :  { %2894 = vmatpush1.bf16.msra.mxu0 %v13720_v42  ;;  %v14993_v42 = vpop.f32.mrf.mxu1 }
 0x206   :  { %2843 = vmatpush1.bf16.msra.mxu1 %v13717_v44  ;;  %2895 = vmatprep.subr.bf16.mxu0 %v13728_v47  ;;  %v13782_v44 = vld [vmem:[%s17564_s3 + $0x1e4] ss:$16 sps:$4 sm:$0xff]  }
 0x207   :  { %2844 = vmatprep.subr.bf16.mxu1 %v13725_v48 }
 0x209   :  { %2896 = vmatpush1.bf16.msra.mxu0 %v13726_v50  ;;  %v13780_v50 = vld [vmem:[%s17564_s3 + $0x1e0] ss:$16 sps:$4 sm:$0xff]  }
 0x20a   :  { %2845 = vmatpush1.bf16.msra.mxu1 %v13723_v51  ;;  %2897 = vmatprep.subr.bf16.mxu0 %v13734_v52 }
 0x20b   :  { %2846 = vmatprep.subr.bf16.mxu1 %v13731_v53  ;;  %v13785_v53 = vld [vmem:[%s17564_s3 + $0x1c4] ss:$16 sps:$4 sm:$0xff]  }
 0x20d   :  { %2898 = vmatpush1.bf16.msra.mxu0 %v13732_v54 }
 0x20e   :  { %2847 = vmatpush2.bf16.msra.mxu1 %v13729_v55  ;;  %3745 = vmatprep.subr.bf16.mxu0 %v13758_v40 }
 0x20f   :  { %2848 = vmatprep.subr.bf16.mxu1 %v13737_v56  ;;  %v13783_v56 = vld [vmem:[%s17564_s3 + $0x1c0] ss:$16 sps:$4 sm:$0xff]  }
 0x210   :  { %2916 = vmatmul.mubr.bf16.vlgmr.msra.gmra.mxu0 %v14820_v29  ;;  %v13762_v29 = vld [vmem:[%s17564_s3 + $0xa0] ss:$16 sps:$4 sm:$0xff]  }
 0x211   :  { %2925 = vmatprep.mubr.bf16.mxu0 %v17581_v0  ;;  %3746 = vmatpush1.bf16.msra.mxu0 %v13756_v57 }
 0x212   :  { %2849 = vmatpush2.bf16.msra.mxu1 %v13735_v59  ;;  %3747 = vmatprep.subr.bf16.mxu0 %v13761_v39  ;;  %v15023_v59 = vsub.s32 3, %v14775_v34 }
 0x213   :  { %2850 = vmatprep.subr.bf16.mxu1 %v13740_v60 }
 0x214   :  { %17835 = vst [vmem:[#allocation19_spill] sm:$0xff] %v15023_v59 }
 0x215   :  { %3748 = vmatpush1.bf16.msra.mxu0 %v13759_v2  ;;  %v15027_v2 = vrot.slane %v14916_v14, %v14781_v36 }
 0x216   :  { %2851 = vmatpush2.bf16.msra.mxu1 %v13738_v3  ;;  %3749 = vmatprep.subr.bf16.mxu0 %v13764_v5  ;;  %v13786_v5 = vld [vmem:[%s17564_s3 + $0x1a0] ss:$16 sps:$4 sm:$0xff]  }
 0x217   :  { %2852 = vmatprep.subr.bf16.mxu1 %v13743_v7 }
 0x218   :  { %2926 = vmatmul.mubr.bf16.gmra.mxu0 %v14832_v58  ;;  %v14973_v58 = vpop.f32.mrf.mxu0 }
 0x219   :  { %3750 = vmatpush1.bf16.msra.mxu0 %v13762_v29  ;;  %v13791_v29 = vld [vmem:[%s17564_s3 + $0x184] ss:$16 sps:$4 sm:$0xff]  }
 0x21a   :  { %2853 = vmatpush2.bf16.msra.mxu1 %v13741_v25  ;;  %3751 = vmatprep.subr.bf16.mxu0 %v13767_v10  ;;  %v1255_v62 = vpop.f32.mrf.mxu0  ;;  %v15038_v25 = vrot.slane %v14916_v14, %v15023_v59  ;;  %v13794_v14 = vld [vmem:[%s17564_s3 + $0x164] ss:$16 sps:$4 sm:$0xff]  }
 0x21b   :  { %2854 = vmatprep.subr.bf16.mxu1 %v13746_v13 }
 0x21c   :  { %v1257_v12 = vpop.f32.mrf.mxu0 }
 0x21d   :  { %3752 = vmatpush1.bf16.msra.mxu0 %v13765_v16 }
 0x21e   :  { %2855 = vmatpush2.bf16.msra.mxu1 %v13744_v31  ;;  %3753 = vmatprep.subr.bf16.mxu0 %v13770_v17  ;;  %v1259_v41 = vpop.f32.mrf.mxu0 }
 0x21f   :  { %2856 = vmatprep.subr.bf16.mxu1 %v13749_v18  ;;  %v13789_v18 = vld [vmem:[%s17564_s3 + $0x180] ss:$16 sps:$4 sm:$0xff]  }
 0x220   :  { %v15004_v51 = vpop.f32.mrf.mxu0 }
 0x221   :  { %3754 = vmatpush1.bf16.msra.mxu0 %v13768_v19  ;;  %v13806_v19 = vld [vmem:[%s17564_s3 + $0x2e4] ss:$16 sps:$4 sm:$0xff]  }
 0x222   :  { %2857 = vmatpush2.bf16.msra.mxu1 %v13747_v21  ;;  %3755 = vmatprep.subr.bf16.mxu0 %v13773_v45  ;;  %v1265_v55 = vpop.f32.mrf.mxu0  ;;  %v13804_v45 = vld [vmem:[%s17564_s3 + $0x2e0] ss:$16 sps:$4 sm:$0xff]  }
 0x223   :  { %2858 = vmatprep.subr.bf16.mxu1 %v13752_v22  ;;  %v13792_v22 = vld [vmem:[%s17564_s3 + $0x160] ss:$16 sps:$4 sm:$0xff]  }
 0x224   :  { %v1267_v39 = vpop.f32.mrf.mxu0 }
 0x225   :  { %3756 = vmatpush1.bf16.msra.mxu0 %v13771_v8  ;;  %v13797_v8 = vld [vmem:[%s17564_s3 + $0x144] ss:$16 sps:$4 sm:$0xff]  }
 0x226   :  { %2859 = vmatpush2.bf16.msra.mxu1 %v13750_v24  ;;  %3757 = vmatprep.subr.bf16.mxu0 %v13776_v27  ;;  %v13807_v24 = vld [vmem:[%s17564_s3 + $0x2c0] ss:$16 sps:$4 sm:$0xff]  }
 0x227   :  { %2860 = vmatprep.subr.bf16.mxu1 %v13755_v28  ;;  %v13795_v27 = vld [vmem:[%s17564_s3 + $0x140] ss:$16 sps:$4 sm:$0xff]   ;;  %v13800_v28 = vld [vmem:[%s17564_s3 + $0x124] ss:$16 sps:$4 sm:$0xff]  }
 0x229   :  { %3758 = vmatpush1.bf16.msra.mxu0 %v13774_v30  ;;  %v13815_v30 = vld [vmem:[%s17564_s3 + $0x2a4] ss:$16 sps:$4 sm:$0xff]  }
 0x22a   :  { %2861 = vmatpush2.bf16.msra.mxu1 %v13753_v32  ;;  %3759 = vmatprep.subr.bf16.mxu0 %v13779_v33  ;;  %v13798_v32 = vld [vmem:[%s17564_s3 + $0x120] ss:$16 sps:$4 sm:$0xff]  }
 0x22b   :  { %3788 = vmatprep.subr.bf16.mxu1 %v13806_v19  ;;  %v13819_v33 = vld [vmem:[%s17564_s3 + $0x280] ss:$16 sps:$4 sm:$0xff]  }
 0x22c   :  { %v1202_v47 = vpop.f32.mrf.mxu1 }
 0x22d   :  { %v14998_v48 = vadd.f32 %v1255_v62, %v1202_v47  ;;  %2863 = vmatmul.mubr.bf16.vlgmr.msra.gmra.mxu1 %v14826_v49  ;;  %3760 = vmatpush1.bf16.msra.mxu0 %v13777_v35  ;;  %v13809_v62 = vld [vmem:[%s17564_s3 + $0x2c4] ss:$16 sps:$4 sm:$0xff]   ;;  %v13825_v47 = vld [vmem:[%s17564_s3 + $0x260] ss:$16 sps:$4 sm:$0xff]  }
 0x22e   :  { %2872 = vmatprep.mubr.bf16.mxu1 %v14854_v46  ;;  %v1204_v52 = vpop.f32.mrf.mxu1  ;;  %3761 = vmatprep.subr.bf16.mxu0 %v13782_v44  ;;  %v13788_v46 = vld [vmem:[%s17564_s3 + $0x1a4] ss:$16 sps:$4 sm:$0xff]   ;;  %v13801_v44 = vld [vmem:[%s17564_s3 + $0x100] ss:$16 sps:$4 sm:$0xff]  }
 0x22f   :  { %v15010_v54 = vadd.f32 %v1257_v12, %v1204_v52  ;;  %3789 = vmatpush1.bf16.msra.mxu1 %v13804_v45  ;;  %v13813_v12 = vld [vmem:[%s17564_s3 + $0x2a0] ss:$16 sps:$4 sm:$0xff]   ;;  %v13821_v35 = vld [vmem:[%s17564_s3 + $0x284] ss:$16 sps:$4 sm:$0xff]   ;;  %v13812_v52 = vld [vmem:[%s17564_s3 + $0xec] ss:$16 sps:$4 sm:$0xff]  }
 0x230   :  { %v1206_v40 = vpop.f32.mrf.mxu1  ;;  %3790 = vmatprep.subr.bf16.mxu1 %v13809_v62  ;;  %v13849_v62 = vld [vmem:[%s17564_s3 + $0x3e0] ss:$16 sps:$4 sm:$0xff]  }
 0x231   :  { %v15012_v49 = vadd.f32 %v1259_v41, %v1206_v40  ;;  %3762 = vmatpush2.bf16.msra.mxu0 %v13780_v50  ;;  %v13803_v41 = vld [vmem:[%s17564_s3 + $0x104] ss:$16 sps:$4 sm:$0xff]   ;;  %v13831_v40 = vld [vmem:[%s17564_s3 + $0x240] ss:$16 sps:$4 sm:$0xff]  }
 0x232   :  { %v15017_v57 = vpop.f32.mrf.mxu1  ;;  %3763 = vmatprep.subr.bf16.mxu0 %v13785_v53  ;;  %v13827_v50 = vld [vmem:[%s17564_s3 + $0x264] ss:$16 sps:$4 sm:$0xff]  }
 0x233   :  { %3791 = vmatpush1.bf16.msra.mxu1 %v13807_v24  ;;  %v13851_v24 = vld [vmem:[%s17564_s3 + $0x3e4] ss:$16 sps:$4 sm:$0xff]  }
 0x234   :  { %v1212_v60 = vpop.f32.mrf.mxu1  ;;  %3792 = vmatprep.subr.bf16.mxu1 %v13815_v30 }
 0x235   :  { %v1266_v3 = vadd.f32 %v1265_v55, %v1212_v60  ;;  %2873 = vmatmul.mubr.bf16.gmra.mxu1 %v14865_v63  ;;  %3764 = vmatpush2.bf16.msra.mxu0 %v13783_v56  ;;  %v1269_v63 = vpop.f32.mrf.mxu0  ;;  %v13833_v56 = vld [vmem:[%s17564_s3 + $0x244] ss:$16 sps:$4 sm:$0xff]  }
 0x236   :  { %v1214_v7 = vpop.f32.mrf.mxu1  ;;  %3765 = vmatprep.subr.bf16.mxu0 %v13788_v46 }
 0x237   :  { %v15041_v10 = vadd.f32 %v15027_v2, %v1266_v3  ;;  %v1268_v13 = vadd.f32 %v1267_v39, %v1214_v7  ;;  %3793 = vmatpush1.bf16.msra.mxu1 %v13813_v12  ;;  %v15119_v46 = vpop.f32.mrf.mxu0  ;;  %v13837_v7 = vld [vmem:[%s17564_s3 + $0x220] ss:$16 sps:$4 sm:$0xff]  }
 0x238   :  { %v1216_v16 = vpop.f32.mrf.mxu1  ;;  %3794 = vmatprep.subr.bf16.mxu1 %v13821_v35  ;;  %v13855_v35 = vld [vmem:[%s17564_s3 + $0x3c0] ss:$16 sps:$4 sm:$0xff]  }
 0x239   :  { %v15044_v31 = vadd.f32 %v15038_v25, %v1268_v13  ;;  %v1270_v17 = vadd.f32 %v1269_v63, %v1216_v16  ;;  %3766 = vmatpush2.bf16.msra.mxu0 %v13786_v5 }
 0x23a   :  { %3767 = vmatprep.subr.bf16.mxu0 %v13791_v29  ;;  %v15109_v53 = vpop.f32.mrf.mxu1  ;;  %v13839_v29 = vld [vmem:[%s17564_s3 + $0x224] ss:$16 sps:$4 sm:$0xff]  }
 0x23b   :  { %v15056_v21 = vadd.f32 %v15027_v2, %v1270_v17  ;;  %3795 = vmatpush1.bf16.msra.mxu1 %v13819_v33 }
 0x23c   :  { %3796 = vmatprep.subr.bf16.mxu1 %v13827_v50  ;;  %v13873_v50 = vld [vmem:[%s17564_s3 + $0x360] ss:$16 sps:$4 sm:$0xff]  }
 0x23d   :  { %3768 = vmatpush2.bf16.msra.mxu0 %v13789_v18  ;;  %v13843_v18 = vld [vmem:[%s17564_s3 + $0x200] ss:$16 sps:$4 sm:$0xff]  }
 0x23e   :  { %3769 = vmatprep.subr.bf16.mxu0 %v13794_v14  ;;  %v13845_v14 = vld [vmem:[%s17564_s3 + $0x204] ss:$16 sps:$4 sm:$0xff]  }
 0x23f   :  { %3797 = vmatpush1.bf16.msra.mxu1 %v13825_v47  ;;  %v13867_v47 = vld [vmem:[%s17564_s3 + $0x380] ss:$16 sps:$4 sm:$0xff]  }
 0x240   :  { %3798 = vmatprep.subr.bf16.mxu1 %v13833_v56  ;;  %v13879_v56 = vld [vmem:[%s17564_s3 + $0x340] ss:$16 sps:$4 sm:$0xff]  }
 0x241   :  { %3770 = vmatpush2.bf16.msra.mxu0 %v13792_v22 }
 0x242   :  { %3771 = vmatprep.subr.bf16.mxu0 %v13797_v8 }
 0x243   :  { %3799 = vmatpush1.bf16.msra.mxu1 %v13831_v40  ;;  %v13881_v40 = vld [vmem:[%s17564_s3 + $0x344] ss:$16 sps:$4 sm:$0xff]  }
 0x244   :  { %3800 = vmatprep.subr.bf16.mxu1 %v13839_v29  ;;  %v13885_v29 = vld [vmem:[%s17564_s3 + $0x320] ss:$16 sps:$4 sm:$0xff]  }
 0x245   :  { %3772 = vmatpush2.bf16.msra.mxu0 %v13795_v27 }
 0x246   :  { %3773 = vmatprep.subr.bf16.mxu0 %v13800_v28 }
 0x247   :  { %3801 = vmatpush1.bf16.msra.mxu1 %v13837_v7  ;;  %v13887_v7 = vld [vmem:[%s17564_s3 + $0x324] ss:$16 sps:$4 sm:$0xff]  }
 0x248   :  { %3802 = vmatprep.subr.bf16.mxu1 %v13845_v14  ;;  %v13902_v14 = vld [vmem:[%s17564_s3 + $0x2ec] ss:$16 sps:$4 sm:$0xff]  }
 0x249   :  { %3774 = vmatpush2.bf16.msra.mxu0 %v13798_v32 }
 0x24a   :  { %3775 = vmatprep.subr.bf16.mxu0 %v13803_v41  ;;  %v13857_v41 = vld [vmem:[%s17564_s3 + $0x3c4] ss:$16 sps:$4 sm:$0xff]  }
 0x24b   :  { %3803 = vmatpush1.bf16.msra.mxu1 %v13843_v18  ;;  %v13891_v18 = vld [vmem:[%s17564_s3 + $0x300] ss:$16 sps:$4 sm:$0xff]  }
 0x24c   :  { %3804 = vmatprep.subr.bf16.mxu1 %v13851_v24 }
 0x24d   :  { %v15111_v55 = vpop.f32.mrf.mxu1  ;;  %3776 = vmatpush2.bf16.msra.mxu0 %v13801_v44  ;;  %v13863_v44 = vld [vmem:[%s17564_s3 + $0x3a4] ss:$16 sps:$4 sm:$0xff]  }
 0x24e   :  { %3831 = vmatprep.subr.bf16.mxu0 %v13812_v52  ;;  %v13875_v52 = vld [vmem:[%s17564_s3 + $0x364] ss:$16 sps:$4 sm:$0xff]  }
 0x24f   :  { %v15121_v39 = vpop.f32.mrf.mxu1  ;;  %3805 = vmatpush2.bf16.msra.mxu1 %v13849_v62 }
 0x250   :  { %v15123_v60 = vpop.f32.mrf.mxu0  ;;  %3806 = vmatprep.subr.bf16.mxu1 %v13857_v41  ;;  %v1298_v41 = vadd.f32 %v15038_v25, %v15010_v54 }
 0x251   :  { %v15125_v3 = vpop.f32.mrf.mxu1 }
 0x252   :  { %v15127_v5 = vpop.f32.mrf.mxu0 }
 0x253   :  { %v15135_v13 = vpop.f32.mrf.mxu1  ;;  %3807 = vmatpush2.bf16.msra.mxu1 %v13855_v35 }
 0x254   :  { %v15137_v63 = vpop.f32.mrf.mxu0  ;;  %3808 = vmatprep.subr.bf16.mxu1 %v13863_v44 }
 0x255   :  { %v2016_v16 = vpop.f32.mrf.mxu1 }
 0x256   :  { %v15139_v17 = vpop.f32.mrf.mxu0 }
 0x257   :  { %v2018_v19 = vpop.f32.mrf.mxu1 }
 0x258   :  { %v1963_v45 = vpop.f32.mrf.mxu0 }
 0x259   :  { %v2017_v22 = vadd.f32 %v2016_v16, %v1963_v45  ;;  %v2020_v30 = vpop.f32.mrf.mxu1  ;;  %v13893_v16 = vld [vmem:[%s17564_s3 + $0x304] ss:$16 sps:$4 sm:$0xff]  }
 0x25a   :  { %v1965_v8 = vpop.f32.mrf.mxu0 }
 0x25b   :  { %v15154_v27 = vadd.f32 %v2017_v22, %v14932_v26  ;;  %v2019_v28 = vadd.f32 %v2018_v19, %v1965_v8  ;;  %v15209_v62 = vpop.f32.mrf.mxu1 }
 0x25c   :  { %v1967_v12 = vpop.f32.mrf.mxu0 }
 0x25d   :  { %v15157_v32 = vadd.f32 %v2019_v28, %v14935_v11  ;;  %v2021_v33 = vadd.f32 %v2020_v30, %v1967_v12  ;;  %v13861_v11 = vld [vmem:[%s17564_s3 + $0x3a0] ss:$16 sps:$4 sm:$0xff]   ;;  %v1297_v30 = vadd.f32 %v15027_v2, %v14998_v48 }
 0x25e   :  { %3809 = vmatpush2.bf16.msra.mxu1 %v13861_v11  ;;  %v15207_v19 = vpop.f32.mrf.mxu0 }
 0x25f   :  { %v15166_v26 = vadd.f32 %v2021_v33, %v14938_v43  ;;  %v13869_v43 = vld [vmem:[%s17564_s3 + $0x384] ss:$16 sps:$4 sm:$0xff]  }
 0x260   :  { %3810 = vmatprep.subr.bf16.mxu1 %v13869_v43  ;;  %v1301_v43 = vadd.f32 %v15027_v2, %v15012_v49 }
 0x262   :  { %3811 = vmatpush2.bf16.msra.mxu1 %v13867_v47 }
 0x263   :  { %3812 = vmatprep.subr.bf16.mxu1 %v13875_v52 }
 0x266   :  { %3813 = vmatpush2.bf16.msra.mxu1 %v13873_v50 }
 0x267   :  { %3814 = vmatprep.subr.bf16.mxu1 %v13881_v40 }
 0x26a   :  { %3815 = vmatpush2.bf16.msra.mxu1 %v13879_v56 }
 0x26b   :  { %3816 = vmatprep.subr.bf16.mxu1 %v13887_v7 }
 0x26e   :  { %3817 = vmatpush2.bf16.msra.mxu1 %v13885_v29 }
 0x26f   :  { %3818 = vmatprep.subr.bf16.mxu1 %v13893_v16 }
 0x270   :  { %v2112_v45 = vpop.f32.mrf.mxu0 }
 0x272   :  { %3819 = vmatpush2.bf16.msra.mxu1 %v13891_v18  ;;  %v2114_v22 = vpop.f32.mrf.mxu0 }
 0x273   :  { %3874 = vmatprep.subr.bf16.mxu1 %v13902_v14  ;;  %v1272_v14 = vadd.f32 %v15119_v46, %v15109_v53 }
 0x274   :  { %v2116_v8 = vpop.f32.mrf.mxu0 }
 0x276   :  { %v2118_v24 = vpop.f32.mrf.mxu0 }
 0x278   :  { %v2122_v33 = vpop.f32.mrf.mxu0 }
 0x27a   :  { %v2124_v40 = vpop.f32.mrf.mxu0 }
 0x27c   :  { %v2126_v18 = vpop.f32.mrf.mxu0 }
 0x28d   :  { %v2059_v28 = vpop.f32.mrf.mxu1 }
 0x28e   :  { %v2113_v12 = vadd.f32 %v2112_v45, %v2059_v28  ;;  %v2128_v28 = vpop.f32.mrf.mxu0 }
 0x28f   :  { %v2061_v35 = vpop.f32.mrf.mxu1 }
 0x290   :  { %v15215_v11 = vadd.f32 %v2113_v12, %v1297_v30  ;;  %v2115_v44 = vadd.f32 %v2114_v22, %v2061_v35 }
 0x291   :  { %v2063_v47 = vpop.f32.mrf.mxu1 }
 0x292   :  { %v15219_v50 = vadd.f32 %v2115_v44, %v1298_v41  ;;  %v2117_v52 = vadd.f32 %v2116_v8, %v2063_v47  ;;  %v2009_v44 = vadd.f32 %v15121_v39, %v15127_v5  ;;  %v2011_v47 = vadd.f32 %v15125_v3, %v15137_v63 }
 0x293   :  { %v2065_v56 = vpop.f32.mrf.mxu1  ;;  %v1295_v39 = vadd.f32 %v14924_v20, %v14903_v1  ;;  %v1166_v1 = vadd.f32 %v14993_v42, %v14973_v58  ;;  %v13810_v58 = vld [vmem:[%s17564_s3 + $0xe8] ss:$16 sps:$4 sm:$0xff]  }
 0x294   :  { %v15221_v7 = vadd.f32 %v2117_v52, %v1301_v43  ;;  %v15223_v48 = vadd.f32 %v2118_v24, %v2065_v56  ;;  %v1310_v24 = vadd.f32 %v15038_v25, %v1272_v14  ;;  %v2007_v43 = vadd.f32 %v15111_v55, %v15123_v60 }
 0x295   :  { %v2069_v29 = vpop.f32.mrf.mxu1 }
 0x296   :  { %v2123_v16 = vadd.f32 %v2122_v33, %v2069_v29 }
 0x297   :  { %v2071_v54 = vpop.f32.mrf.mxu1 }
 0x298   :  { %v15228_v45 = vadd.f32 %v2123_v16, %v15041_v10  ;;  %v2125_v49 = vadd.f32 %v2124_v40, %v2071_v54  ;;  %v1154_v10 = vadd.f32 %v14901_v61, %v14910_v9  ;;  %v1296_v40 = vadd.f32 %v14929_v23, %v14908_v6 }
 0x299   :  { %v2073_v2 = vpop.f32.mrf.mxu1  ;;  %v2013_v9 = vadd.f32 %v15135_v13, %v15139_v17  ;;  %v2131_v16 = vadd.f32 %v2007_v43, %v1295_v39  ;;  %v13816_v39 = vld [vmem:[%s17564_s3 + $0xc8] ss:$16 sps:$4 sm:$0xff]  }
 0x29a   :  { %v15231_v22 = vadd.f32 %v2125_v49, %v15044_v31  ;;  %v2127_v8 = vadd.f32 %v2126_v18, %v2073_v2  ;;  %v1156_v31 = vadd.f32 %v14906_v4, %v14919_v15  ;;  %v1299_v61 = vadd.f32 %v14924_v20, %v1154_v10 }
 0x29b   :  { %v2075_v30 = vpop.f32.mrf.mxu1  ;;  %v2132_v56 = vadd.f32 %v2009_v44, %v1296_v40 }
 0x29c   :  { %v15235_v12 = vadd.f32 %v2127_v8, %v15056_v21  ;;  %v2129_v33 = vadd.f32 %v2128_v28, %v2075_v30  ;;  %v1300_v63 = vadd.f32 %v14929_v23, %v1156_v31  ;;  %v2135_v55 = vadd.f32 %v2011_v47, %v1299_v61 }
 0x29d   :  { %v2023_v28 = vadd.f32 %v15209_v62, %v15207_v19  ;;  %v1308_v47 = vadd.f32 %v14929_v23, %v1166_v1  ;;  %v13866_v1 = vld [vmem:[%s17564_s3 + $0x1cc] ss:$16 sps:$4 sm:$0xff]  }
 0x29e   :  { %v15237_v35 = vadd.f32 %v2129_v33, %v1310_v24  ;;  %v2136_v18 = vadd.f32 %v2013_v9, %v1300_v63 }
 0x2ad   :  { %v2811_v53 = vpop.f32.mrf.mxu1 }
 0x2af   :  { %v2813_v46 = vpop.f32.mrf.mxu1 }
 0x2b0   :  { %v2758_v41 = vpop.f32.mrf.mxu0 }
 0x2b1   :  { %v2815_v21 = vpop.f32.mrf.mxu1  ;;  %v2812_v5 = vadd.f32 %v2811_v53, %v2758_v41 }
 0x2b2   :  { %v2760_v52 = vpop.f32.mrf.mxu0 }
 0x2b3   :  { %v2814_v4 = vadd.f32 %v2813_v46, %v2760_v52  ;;  %v2817_v15 = vpop.f32.mrf.mxu1  ;;  %v2936_v17 = vadd.f32 %v2812_v5, %v2131_v16  ;;  %v2144_v52 = vadd.f32 %v2023_v28, %v1308_v47  ;;  %v13834_v16 = vld [vmem:[%s17564_s3 + $0x68] ss:$16 sps:$4 sm:$0xff]   ;;  %v13872_v28 = vld [vmem:[%s17564_s3 + $0x1ac] ss:$16 sps:$4 sm:$0xff]   ;;  %v1262_v47 = vadd.f32 %v15004_v51, %v15017_v57 }
 0x2b4   :  { %v2762_v3 = vpop.f32.mrf.mxu0  ;;  %v13896_v57 = vld [vmem:[%s17564_s3 + $0x12c] ss:$16 sps:$4 sm:$0xff]  }
 0x2b5   :  { %v2816_v60 = vadd.f32 %v2815_v21, %v2762_v3  ;;  %v2821_v29 = vpop.f32.mrf.mxu1  ;;  %v2937_v54 = vadd.f32 %v2814_v4, %v2132_v56  ;;  %v2952_v31 = vmax.f32 %v2936_v17, 0.0  ;;  %v13822_v56 = vld [vmem:[%s17564_s3 + $0xa8] ss:$16 sps:$4 sm:$0xff]   ;;  %v13860_v17 = vld [vmem:[%s17564_s3 + $0x1ec] ss:$16 sps:$4 sm:$0xff]  }
 0x2b6   :  { %v2764_v6 = vpop.f32.mrf.mxu0 }
 0x2b7   :  { %v2940_v14 = vadd.f32 %v2816_v60, %v2135_v55  ;;  %v2818_v49 = vadd.f32 %v2817_v15, %v2764_v6  ;;  %v2823_v13 = vpop.f32.mrf.mxu1  ;;  %v2953_v53 = vmax.f32 %v2937_v54, 0.0  ;;  %v13830_v55 = vld [vmem:[%s17564_s3 + $0x8c] ss:$16 sps:$4 sm:$0xff]   ;;  %v13828_v60 = vld [vmem:[%s17564_s3 + $0x88] ss:$16 sps:$4 sm:$0xff]  }
 0x2b8   :  { %v2768_v2 = vpop.f32.mrf.mxu0  ;;  %v13842_v6 = vld [vmem:[%s17564_s3 + $0x4c] ss:$16 sps:$4 sm:$0xff]  }
 0x2b9   :  { %v2941_v20 = vadd.f32 %v2818_v49, %v2136_v18  ;;  %v2822_v8 = vadd.f32 %v2821_v29, %v2768_v2  ;;  %v2956_v30 = vmax.f32 %v2940_v14, 0.0  ;;  %v2825_v24 = vpop.f32.mrf.mxu1  ;;  %v13836_v29 = vld [vmem:[%s17564_s3 + $0x6c] ss:$16 sps:$4 sm:$0xff]   ;;  %v13840_v18 = vld [vmem:[%s17564_s3 + $0x48] ss:$16 sps:$4 sm:$0xff]  }
 0x2ba   :  { %v2770_v33 = vpop.f32.mrf.mxu0  ;;  %v13848_v54 = vld [vmem:[%s17564_s3 + $0x2c] ss:$16 sps:$4 sm:$0xff]   ;;  %v13846_v14 = vld [vmem:[%s17564_s3 + $0x28] ss:$16 sps:$4 sm:$0xff]  }
 0x2bb   :  { %v2957_v10 = vmax.f32 %v2941_v20, 0.0  ;;  %v2944_v46 = vadd.f32 %v2822_v8, %v15154_v27  ;;  %v2824_v41 = vadd.f32 %v2823_v13, %v2770_v33  ;;  %v15268_v42 = vpack.c.bf16 %v2956_v30, %v2952_v31  ;;  %v2827_v19 = vpop.f32.mrf.mxu1  ;;  %v13818_v27 = vld [vmem:[%s17564_s3 + $0xcc] ss:$16 sps:$4 sm:$0xff]   ;;  %v13852_v13 = vld [vmem:[%s17564_s3 + $0x8] ss:$16 sps:$4 sm:$0xff]  }
 0x2bc   :  { %v2772_v44 = vpop.f32.mrf.mxu0  ;;  %v13854_v49 = vld [vmem:[%s17564_s3 + $0xc] ss:$16 sps:$4 sm:$0xff]   ;;  %v13858_v2 = vld [vmem:[%s17564_s3 + $0x1e8] ss:$16 sps:$4 sm:$0xff]  }
 0x2bd   :  { %v2826_v21 = vadd.f32 %v2825_v24, %v2772_v44  ;;  %v15263_v43 = vpack.c.bf16 %v2957_v10, %v2953_v53  ;;  %v2945_v40 = vadd.f32 %v2824_v41, %v15157_v32  ;;  %v2960_v9 = vmax.f32 %v2944_v46, 0.0  ;;  %v13824_v32 = vld [vmem:[%s17564_s3 + $0xac] ss:$16 sps:$4 sm:$0xff]   ;;  %v13864_v8 = vld [vmem:[%s17564_s3 + $0x1c8] ss:$16 sps:$4 sm:$0xff]  }
 0x2be   :  { %v2774_v62 = vpop.f32.mrf.mxu0  ;;  %v13870_v24 = vld [vmem:[%s17564_s3 + $0x1a8] ss:$16 sps:$4 sm:$0xff]   ;;  %v13878_v33 = vld [vmem:[%s17564_s3 + $0x18c] ss:$16 sps:$4 sm:$0xff]  }
 0x2bf   :  { %v2948_v23 = vadd.f32 %v2826_v21, %v15166_v26  ;;  %v2828_v61 = vadd.f32 %v2827_v19, %v2774_v62  ;;  %3777 = vmatprep.mubr.bf16.mxu0 %v15263_v43  ;;  %v2961_v26 = vmax.f32 %v2945_v40, 0.0  ;;  %v13876_v10 = vld [vmem:[%s17564_s3 + $0x188] ss:$16 sps:$4 sm:$0xff]   ;;  %v13884_v46 = vld [vmem:[%s17564_s3 + $0x16c] ss:$16 sps:$4 sm:$0xff]  }
 0x2c0   :  { %3778 = vmatmul.mubr.bf16.vlgmr.msra.gmra.mxu0 %v15268_v42  ;;  %v13882_v44 = vld [vmem:[%s17564_s3 + $0x168] ss:$16 sps:$4 sm:$0xff]  }
 0x2c1   :  { %v2964_v4 = vmax.f32 %v2948_v23, 0.0  ;;  %v2949_v15 = vadd.f32 %v2828_v61, %v2144_v52  ;;  %3832 = vmatpush1.bf16.msra.mxu0 %v13810_v58  ;;  %3863 = vmatprep.mubr.bf16.mxu0 %v15263_v43  ;;  %v13890_v58 = vld [vmem:[%s17564_s3 + $0x14c] ss:$16 sps:$4 sm:$0xff]   ;;  %v13888_v40 = vld [vmem:[%s17564_s3 + $0x148] ss:$16 sps:$4 sm:$0xff]   ;;  %v1302_v23 = vadd.f32 %v15038_v25, %v1262_v47 }
 0x2c2   :  { %3833 = vmatprep.subr.bf16.mxu0 %v13818_v27  ;;  %v13894_v25 = vld [vmem:[%s17564_s3 + $0x128] ss:$16 sps:$4 sm:$0xff]  }
 0x2c3   :  { %v15284_v5 = vpack.c.bf16 %v2964_v4, %v2960_v9  ;;  %v2965_v3 = vmax.f32 %v2949_v15, 0.0 }
 0x2c5   :  { %v15286_v63 = vpack.c.bf16 %v2965_v3, %v2961_v26  ;;  %3834 = vmatpush1.bf16.msra.mxu0 %v13816_v39  ;;  %v2138_v39 = vadd.f32 %v15223_v48, %v1302_v23  ;;  %v13915_v23 = vld [vmem:[%s17564_s3 + $0x288] ss:$16 sps:$4 sm:$0xff]  }
 0x2c6   :  { %3835 = vmatprep.subr.bf16.mxu0 %v13824_v32 }
 0x2c9   :  { %3836 = vmatpush1.bf16.msra.mxu0 %v13822_v56 }
 0x2ca   :  { %3837 = vmatprep.subr.bf16.mxu0 %v13830_v55 }
 0x2cd   :  { %3838 = vmatpush1.bf16.msra.mxu0 %v13828_v60 }
 0x2ce   :  { %3839 = vmatprep.subr.bf16.mxu0 %v13836_v29 }
 0x2d0   :  { %v2917_v20 = vpop.f32.mrf.mxu0 }
 0x2d1   :  { %3840 = vmatpush1.bf16.msra.mxu0 %v13834_v16 }
 0x2d2   :  { %3841 = vmatprep.subr.bf16.mxu0 %v13842_v6  ;;  %v2919_v30 = vpop.f32.mrf.mxu0 }
 0x2d4   :  { %v2921_v53 = vpop.f32.mrf.mxu0 }
 0x2d5   :  { %3842 = vmatpush1.bf16.msra.mxu0 %v13840_v18 }
 0x2d6   :  { %3843 = vmatprep.subr.bf16.mxu0 %v13848_v54  ;;  %v2923_v41 = vpop.f32.mrf.mxu0 }
 0x2d8   :  { %v2927_v19 = vpop.f32.mrf.mxu0 }
 0x2d9   :  { %3844 = vmatpush1.bf16.msra.mxu0 %v13846_v14 }
 0x2da   :  { %3845 = vmatprep.subr.bf16.mxu0 %v13854_v49  ;;  %v2929_v9 = vpop.f32.mrf.mxu0  ;;  %v13897_v49 = vld [vmem:[%s17564_s3 + $0x108] ss:$16 sps:$4 sm:$0xff]  }
 0x2dc   :  { %v2931_v29 = vpop.f32.mrf.mxu0 }
 0x2dd   :  { %3846 = vmatpush1.bf16.msra.mxu0 %v13852_v13 }
 0x2de   :  { %3847 = vmatprep.subr.bf16.mxu0 %v13860_v17 }
 0x2e1   :  { %3848 = vmatpush2.bf16.msra.mxu0 %v13858_v2  ;;  %v13900_v2 = vld [vmem:[%s17564_s3 + $0x2e8] ss:$16 sps:$4 sm:$0xff]  }
 0x2e2   :  { %3849 = vmatprep.subr.bf16.mxu0 %v13866_v1  ;;  %v2933_v1 = vpop.f32.mrf.mxu0 }
 0x2e5   :  { %3850 = vmatpush2.bf16.msra.mxu0 %v13864_v8  ;;  %v13908_v8 = vld [vmem:[%s17564_s3 + $0x4e4] ss:$16 sps:$4 sm:$0xff]  }
 0x2e6   :  { %3851 = vmatprep.subr.bf16.mxu0 %v13872_v28 }
 0x2e9   :  { %3852 = vmatpush2.bf16.msra.mxu0 %v13870_v24 }
 0x2ea   :  { %3853 = vmatprep.subr.bf16.mxu0 %v13878_v33  ;;  %v4087_v33 = vrot.slane %v15286_v63, 4 }
 0x2ed   :  { %v2864_v31 = vpop.f32.mrf.mxu1  ;;  %3854 = vmatpush2.bf16.msra.mxu0 %v13876_v10  ;;  %v13906_v10 = vld [vmem:[%s17564_s3 + $0x4e0] ss:$16 sps:$4 sm:$0xff]  }
 0x2ee   :  { %v2918_v21 = vadd.f32 %v2917_v20, %v2864_v31  ;;  %3855 = vmatprep.subr.bf16.mxu0 %v13884_v46  ;;  %v13914_v31 = vld [vmem:[%s17564_s3 + $0x4c4] ss:$16 sps:$4 sm:$0xff]  }
 0x2ef   :  { %v2866_v62 = vpop.f32.mrf.mxu1 }
 0x2f0   :  { %v2920_v27 = vadd.f32 %v2919_v30, %v2866_v62  ;;  %v2938_v61 = vadd.f32 %v2918_v21, %v15215_v11  ;;  %v13909_v62 = vld [vmem:[%s17564_s3 + $0x2a8] ss:$16 sps:$4 sm:$0xff]  }
 0x2f1   :  { %v2868_v52 = vpop.f32.mrf.mxu1  ;;  %3856 = vmatpush2.bf16.msra.mxu0 %v13882_v44  ;;  %v13911_v44 = vld [vmem:[%s17564_s3 + $0x2ac] ss:$16 sps:$4 sm:$0xff]  }
 0x2f2   :  { %v2922_v51 = vadd.f32 %v2921_v53, %v2868_v52  ;;  %3857 = vmatprep.subr.bf16.mxu0 %v13890_v58  ;;  %v2939_v4 = vadd.f32 %v2920_v27, %v15219_v50  ;;  %v2954_v11 = vmax.f32 %v2938_v61, 0.0  ;;  %v13899_v50 = vld [vmem:[%s17564_s3 + $0x10c] ss:$16 sps:$4 sm:$0xff]   ;;  %v13903_v53 = vld [vmem:[%s17564_s3 + $0x2c8] ss:$16 sps:$4 sm:$0xff]  }
 0x2f3   :  { %v2870_v15 = vpop.f32.mrf.mxu1  ;;  %v13920_v27 = vld [vmem:[%s17564_s3 + $0x4a4] ss:$16 sps:$4 sm:$0xff]   ;;  %v13917_v52 = vld [vmem:[%s17564_s3 + $0x28c] ss:$16 sps:$4 sm:$0xff]  }
 0x2f4   :  { %v2942_v32 = vadd.f32 %v2922_v51, %v15221_v7  ;;  %v2924_v26 = vadd.f32 %v2923_v41, %v2870_v15  ;;  %v2955_v48 = vmax.f32 %v2939_v4, 0.0  ;;  %v4086_v41 = vrot.slane %v15263_v43, 4  ;;  %v13912_v43 = vld [vmem:[%s17564_s3 + $0x4c0] ss:$16 sps:$4 sm:$0xff]   ;;  %v13926_v61 = vld [vmem:[%s17564_s3 + $0x484] ss:$16 sps:$4 sm:$0xff]  }
 0x2f5   :  { %v2874_v3 = vpop.f32.mrf.mxu1  ;;  %3858 = vmatpush2.bf16.msra.mxu0 %v13888_v40  ;;  %v13918_v40 = vld [vmem:[%s17564_s3 + $0x4a0] ss:$16 sps:$4 sm:$0xff]   ;;  %v13923_v51 = vld [vmem:[%s17564_s3 + $0x26c] ss:$16 sps:$4 sm:$0xff]   ;;  %v13932_v4 = vld [vmem:[%s17564_s3 + $0x464] ss:$16 sps:$4 sm:$0xff]  }
 0x2f6   :  { %v2958_v56 = vmax.f32 %v2942_v32, 0.0  ;;  %v2943_v55 = vadd.f32 %v2924_v26, %v2138_v39  ;;  %v2928_v60 = vadd.f32 %v2927_v19, %v2874_v3  ;;  %3859 = vmatprep.subr.bf16.mxu0 %v13896_v57  ;;  %v13924_v57 = vld [vmem:[%s17564_s3 + $0x480] ss:$16 sps:$4 sm:$0xff]   ;;  %v13929_v15 = vld [vmem:[%s17564_s3 + $0x24c] ss:$16 sps:$4 sm:$0xff]  }
 0x2f7   :  { %v2876_v16 = vpop.f32.mrf.mxu1  ;;  %v13930_v39 = vld [vmem:[%s17564_s3 + $0x460] ss:$16 sps:$4 sm:$0xff]   ;;  %v13927_v32 = vld [vmem:[%s17564_s3 + $0x248] ss:$16 sps:$4 sm:$0xff]   ;;  %v13938_v26 = vld [vmem:[%s17564_s3 + $0x444] ss:$16 sps:$4 sm:$0xff]  }
 0x2f8   :  { %v15373_v7 = vpack.c.bf16 %v2958_v56, %v2954_v11  ;;  %v2959_v6 = vmax.f32 %v2943_v55, 0.0  ;;  %v2946_v18 = vadd.f32 %v2928_v60, %v15228_v45  ;;  %v2930_v54 = vadd.f32 %v2929_v9, %v2876_v16  ;;  %v13905_v45 = vld [vmem:[%s17564_s3 + $0x2cc] ss:$16 sps:$4 sm:$0xff]   ;;  %v13921_v9 = vld [vmem:[%s17564_s3 + $0x268] ss:$16 sps:$4 sm:$0xff]  }
 0x2f9   :  { %v2878_v14 = vpop.f32.mrf.mxu1  ;;  %3860 = vmatpush2.bf16.msra.mxu0 %v13894_v25  ;;  %v13935_v3 = vld [vmem:[%s17564_s3 + $0x22c] ss:$16 sps:$4 sm:$0xff]   ;;  %v13936_v25 = vld [vmem:[%s17564_s3 + $0x440] ss:$16 sps:$4 sm:$0xff]   ;;  %v13933_v11 = vld [vmem:[%s17564_s3 + $0x228] ss:$16 sps:$4 sm:$0xff]  }
 0x2fa   :  { %v2932_v13 = vadd.f32 %v2931_v29, %v2878_v14  ;;  %v15379_v17 = vpack.c.bf16 %v2959_v6, %v2955_v48  ;;  %3861 = vmatprep.subr.bf16.mxu0 %v13899_v50  ;;  %v2947_v28 = vadd.f32 %v2930_v54, %v15231_v22  ;;  %v2962_v46 = vmax.f32 %v2946_v18, 0.0  ;;  %v13944_v56 = vld [vmem:[%s17564_s3 + $0x424] ss:$16 sps:$4 sm:$0xff]   ;;  %v13941_v55 = vld [vmem:[%s17564_s3 + $0x20c] ss:$16 sps:$4 sm:$0xff]  }
 0x2fb   :  { %v2880_v20 = vpop.f32.mrf.mxu1  ;;  %v13942_v60 = vld [vmem:[%s17564_s3 + $0x420] ss:$16 sps:$4 sm:$0xff]   ;;  %v13939_v50 = vld [vmem:[%s17564_s3 + $0x208] ss:$16 sps:$4 sm:$0xff]   ;;  %v13950_v29 = vld [vmem:[%s17564_s3 + $0x404] ss:$16 sps:$4 sm:$0xff]  }
 0x2fc   :  { %v2950_v30 = vadd.f32 %v2932_v13, %v15235_v12  ;;  %v2934_v24 = vadd.f32 %v2933_v1, %v2880_v20  ;;  %3820 = vmatprep.mubr.bf16.mxu1 %v15379_v17  ;;  %v2963_v47 = vmax.f32 %v2947_v28, 0.0  ;;  %v13947_v48 = vld [vmem:[%s17564_s3 + $0x3ec] ss:$16 sps:$4 sm:$0xff]   ;;  %v13948_v16 = vld [vmem:[%s17564_s3 + $0x400] ss:$16 sps:$4 sm:$0xff]  }
 0x2fd   :  { %3821 = vmatmul.mubr.bf16.vlgmr.msra.gmra.mxu1 %v15373_v7  ;;  %3862 = vmatpush2.bf16.msra.mxu0 %v13897_v49  ;;  %v13945_v6 = vld [vmem:[%s17564_s3 + $0x3e8] ss:$16 sps:$4 sm:$0xff]   ;;  %v13956_v18 = vld [vmem:[%s17564_s3 + $0x5e4] ss:$16 sps:$4 sm:$0xff]   ;;  %v13953_v54 = vld [vmem:[%s17564_s3 + $0x3cc] ss:$16 sps:$4 sm:$0xff]  }
 0x2fe   :  { %v2966_v22 = vmax.f32 %v2950_v30, 0.0  ;;  %v2951_v12 = vadd.f32 %v2934_v24, %v15237_v35  ;;  %3875 = vmatpush1.bf16.msra.mxu1 %v13900_v2  ;;  %3906 = vmatprep.mubr.bf16.mxu1 %v15379_v17  ;;  %v15414_v35 = vsel %vm1417_vm1, %v4086_v41, %v4087_v33  ;;  %v13954_v14 = vld [vmem:[%s17564_s3 + $0x5e0] ss:$16 sps:$4 sm:$0xff]   ;;  %v13951_v49 = vld [vmem:[%s17564_s3 + $0x3c8] ss:$16 sps:$4 sm:$0xff]  }
 0x2ff   :  { %3876 = vmatprep.subr.bf16.mxu1 %v13905_v45  ;;  %4739 = vmatprep.subr.bf16.mxu0 %v13908_v8  ;;  %v13962_v13 = vld [vmem:[%s17564_s3 + $0x5c4] ss:$16 sps:$4 sm:$0xff]   ;;  %v13959_v2 = vld [vmem:[%s17564_s3 + $0x3ac] ss:$16 sps:$4 sm:$0xff]   ;;  %v13960_v1 = vld [vmem:[%s17564_s3 + $0x5c0] ss:$16 sps:$4 sm:$0xff]  }
 0x300   :  { %v15410_v21 = vpack.c.bf16 %v2966_v22, %v2962_v46  ;;  %v2967_v58 = vmax.f32 %v2951_v12, 0.0  ;;  %3864 = vmatmul.mubr.bf16.vlgmr.msra.gmra.mxu0 %v15268_v42  ;;  %v13957_v20 = vld [vmem:[%s17564_s3 + $0x3a8] ss:$16 sps:$4 sm:$0xff]   ;;  %v13968_v45 = vld [vmem:[%s17564_s3 + $0x5a4] ss:$16 sps:$4 sm:$0xff]  }
 0x301   :  { %4740 = vmatpush1.bf16.msra.mxu0 %v13906_v10  ;;  %4771 = vmatprep.mubr.bf16.mxu0 %v15414_v35  ;;  %v13965_v8 = vld [vmem:[%s17564_s3 + $0x38c] ss:$16 sps:$4 sm:$0xff]   ;;  %v13966_v28 = vld [vmem:[%s17564_s3 + $0x5a0] ss:$16 sps:$4 sm:$0xff]   ;;  %v13963_v30 = vld [vmem:[%s17564_s3 + $0x388] ss:$16 sps:$4 sm:$0xff]  }
 0x302   :  { %v15420_v19 = vpack.c.bf16 %v2967_v58, %v2963_v47  ;;  %3877 = vmatpush1.bf16.msra.mxu1 %v13903_v53  ;;  %4741 = vmatprep.subr.bf16.mxu0 %v13914_v31  ;;  %v13974_v24 = vld [vmem:[%s17564_s3 + $0x584] ss:$16 sps:$4 sm:$0xff]   ;;  %v13971_v33 = vld [vmem:[%s17564_s3 + $0x36c] ss:$16 sps:$4 sm:$0xff]   ;;  %v13972_v53 = vld [vmem:[%s17564_s3 + $0x580] ss:$16 sps:$4 sm:$0xff]  }
 0x303   :  { %3878 = vmatprep.subr.bf16.mxu1 %v13911_v44  ;;  %v13969_v10 = vld [vmem:[%s17564_s3 + $0x368] ss:$16 sps:$4 sm:$0xff]   ;;  %v13980_v46 = vld [vmem:[%s17564_s3 + $0x564] ss:$16 sps:$4 sm:$0xff]   ;;  %v13977_v22 = vld [vmem:[%s17564_s3 + $0x34c] ss:$16 sps:$4 sm:$0xff]  }
 0x304   :  { %v13978_v12 = vld [vmem:[%s17564_s3 + $0x560] ss:$16 sps:$4 sm:$0xff]   ;;  %v13975_v41 = vld [vmem:[%s17564_s3 + $0x348] ss:$16 sps:$4 sm:$0xff]   ;;  %v13986_v31 = vld [vmem:[%s17564_s3 + $0x544] ss:$16 sps:$4 sm:$0xff]  }
 0x305   :  { %4742 = vmatpush1.bf16.msra.mxu0 %v13912_v43  ;;  %v13983_v44 = vld [vmem:[%s17564_s3 + $0x32c] ss:$16 sps:$4 sm:$0xff]   ;;  %v13984_v47 = vld [vmem:[%s17564_s3 + $0x540] ss:$16 sps:$4 sm:$0xff]   ;;  %v13981_v58 = vld [vmem:[%s17564_s3 + $0x328] ss:$16 sps:$4 sm:$0xff]  }
 0x306   :  { %3879 = vmatpush1.bf16.msra.mxu1 %v13909_v62  ;;  %4743 = vmatprep.subr.bf16.mxu0 %v13920_v27  ;;  %v13992_v43 = vld [vmem:[%s17564_s3 + $0x524] ss:$16 sps:$4 sm:$0xff]   ;;  %v13989_v62 = vld [vmem:[%s17564_s3 + $0x30c] ss:$16 sps:$4 sm:$0xff]   ;;  %v13990_v27 = vld [vmem:[%s17564_s3 + $0x520] ss:$16 sps:$4 sm:$0xff]  }
 0x307   :  { %3880 = vmatprep.subr.bf16.mxu1 %v13917_v52  ;;  %v13987_v52 = vld [vmem:[%s17564_s3 + $0x308] ss:$16 sps:$4 sm:$0xff]  }
 0x309   :  { %4744 = vmatpush1.bf16.msra.mxu0 %v13918_v40  ;;  %v13995_v40 = vld [vmem:[%s17564_s3 + $0x504] ss:$16 sps:$4 sm:$0xff]  }
 0x30a   :  { %3881 = vmatpush1.bf16.msra.mxu1 %v13915_v23  ;;  %4745 = vmatprep.subr.bf16.mxu0 %v13926_v61  ;;  %v13998_v23 = vld [vmem:[%s17564_s3 + $0x6e4] ss:$16 sps:$4 sm:$0xff]   ;;  %v13993_v61 = vld [vmem:[%s17564_s3 + $0x500] ss:$16 sps:$4 sm:$0xff]  }
 0x30b   :  { %3882 = vmatprep.subr.bf16.mxu1 %v13923_v51  ;;  %v4093_v51 = vrot.slane %v15420_v19, 4 }
 0x30d   :  { %4746 = vmatpush1.bf16.msra.mxu0 %v13924_v57  ;;  %v13996_v57 = vld [vmem:[%s17564_s3 + $0x6e0] ss:$16 sps:$4 sm:$0xff]  }
 0x30e   :  { %3883 = vmatpush1.bf16.msra.mxu1 %v13921_v9  ;;  %4747 = vmatprep.subr.bf16.mxu0 %v13932_v4  ;;  %v4092_v9 = vrot.slane %v15379_v17, 4  ;;  %v4084_v4 = vrot.slane %v15284_v5, 4  ;;  %v14002_v17 = vld [vmem:[%s17564_s3 + $0x4e8] ss:$16 sps:$4 sm:$0xff]  }
 0x30f   :  { %3884 = vmatprep.subr.bf16.mxu1 %v13929_v15  ;;  %v14001_v15 = vld [vmem:[%s17564_s3 + $0x6c4] ss:$16 sps:$4 sm:$0xff]  }
 0x311   :  { %4748 = vmatpush1.bf16.msra.mxu0 %v13930_v39  ;;  %v14004_v39 = vld [vmem:[%s17564_s3 + $0x4ec] ss:$16 sps:$4 sm:$0xff]  }
 0x312   :  { %3885 = vmatpush1.bf16.msra.mxu1 %v13927_v32  ;;  %4749 = vmatprep.subr.bf16.mxu0 %v13938_v26  ;;  %v15604_v32 = vsel %vm1417_vm1, %v4092_v9, %v4093_v51  ;;  %v4083_v26 = vrot.slane %v15268_v42, 4  ;;  %v14007_v42 = vld [vmem:[%s17564_s3 + $0x6a4] ss:$16 sps:$4 sm:$0xff]   ;;  %v14068_v51 = vld [vmem:[%s17564_s3 + $0x588] ss:$16 sps:$4 sm:$0xff]  }
 0x313   :  { %3886 = vmatprep.subr.bf16.mxu1 %v13935_v3  ;;  %v13999_v3 = vld [vmem:[%s17564_s3 + $0x6c0] ss:$16 sps:$4 sm:$0xff]   ;;  %v14076_v9 = vld [vmem:[%s17564_s3 + $0x56c] ss:$16 sps:$4 sm:$0xff]  }
 0x315   :  { %4750 = vmatpush1.bf16.msra.mxu0 %v13936_v25  ;;  %v14010_v25 = vld [vmem:[%s17564_s3 + $0x4cc] ss:$16 sps:$4 sm:$0xff]  }
 0x316   :  { %3887 = vmatpush1.bf16.msra.mxu1 %v13933_v11  ;;  %4751 = vmatprep.subr.bf16.mxu0 %v13944_v56  ;;  %v15618_v11 = vsel %vm1417_vm1, %v4083_v26, %v4084_v4  ;;  %v14008_v56 = vld [vmem:[%s17564_s3 + $0x4c8] ss:$16 sps:$4 sm:$0xff]   ;;  %v14073_v4 = vld [vmem:[%s17564_s3 + $0x744] ss:$16 sps:$4 sm:$0xff]   ;;  %v14082_v26 = vld [vmem:[%s17564_s3 + $0x54c] ss:$16 sps:$4 sm:$0xff]  }
 0x317   :  { %3888 = vmatprep.subr.bf16.mxu1 %v13941_v55  ;;  %v14005_v55 = vld [vmem:[%s17564_s3 + $0x6a0] ss:$16 sps:$4 sm:$0xff]  }
 0x319   :  { %4752 = vmatpush1.bf16.msra.mxu0 %v13942_v60  ;;  %v14016_v60 = vld [vmem:[%s17564_s3 + $0x4ac] ss:$16 sps:$4 sm:$0xff]  }
 0x31a   :  { %3889 = vmatpush1.bf16.msra.mxu1 %v13939_v50  ;;  %4753 = vmatprep.subr.bf16.mxu0 %v13950_v29  ;;  %v14013_v50 = vld [vmem:[%s17564_s3 + $0x684] ss:$16 sps:$4 sm:$0xff]   ;;  %v14011_v29 = vld [vmem:[%s17564_s3 + $0x680] ss:$16 sps:$4 sm:$0xff]  }
 0x31b   :  { %3890 = vmatprep.subr.bf16.mxu1 %v13947_v48  ;;  %v14022_v48 = vld [vmem:[%s17564_s3 + $0x48c] ss:$16 sps:$4 sm:$0xff]  }
 0x31d   :  { %4754 = vmatpush1.bf16.msra.mxu0 %v13948_v16  ;;  %v14019_v16 = vld [vmem:[%s17564_s3 + $0x664] ss:$16 sps:$4 sm:$0xff]  }
 0x31e   :  { %3891 = vmatpush2.bf16.msra.mxu1 %v13945_v6  ;;  %4755 = vmatprep.subr.bf16.mxu0 %v13956_v18  ;;  %v14020_v6 = vld [vmem:[%s17564_s3 + $0x488] ss:$16 sps:$4 sm:$0xff]   ;;  %v14017_v18 = vld [vmem:[%s17564_s3 + $0x660] ss:$16 sps:$4 sm:$0xff]  }
 0x31f   :  { %3892 = vmatprep.subr.bf16.mxu1 %v13953_v54  ;;  %v14028_v54 = vld [vmem:[%s17564_s3 + $0x46c] ss:$16 sps:$4 sm:$0xff]  }
 0x321   :  { %4756 = vmatpush2.bf16.msra.mxu0 %v13954_v14  ;;  %v14025_v14 = vld [vmem:[%s17564_s3 + $0x644] ss:$16 sps:$4 sm:$0xff]  }
 0x322   :  { %3893 = vmatpush2.bf16.msra.mxu1 %v13951_v49  ;;  %4757 = vmatprep.subr.bf16.mxu0 %v13962_v13  ;;  %v14026_v49 = vld [vmem:[%s17564_s3 + $0x468] ss:$16 sps:$4 sm:$0xff]   ;;  %v14023_v13 = vld [vmem:[%s17564_s3 + $0x640] ss:$16 sps:$4 sm:$0xff]  }
 0x323   :  { %3894 = vmatprep.subr.bf16.mxu1 %v13959_v2  ;;  %v14034_v2 = vld [vmem:[%s17564_s3 + $0x44c] ss:$16 sps:$4 sm:$0xff]  }
 0x325   :  { %4758 = vmatpush2.bf16.msra.mxu0 %v13960_v1  ;;  %v14031_v1 = vld [vmem:[%s17564_s3 + $0x624] ss:$16 sps:$4 sm:$0xff]  }
 0x326   :  { %3895 = vmatpush2.bf16.msra.mxu1 %v13957_v20  ;;  %4759 = vmatprep.subr.bf16.mxu0 %v13968_v45  ;;  %v14032_v20 = vld [vmem:[%s17564_s3 + $0x448] ss:$16 sps:$4 sm:$0xff]   ;;  %v14029_v45 = vld [vmem:[%s17564_s3 + $0x620] ss:$16 sps:$4 sm:$0xff]  }
 0x327   :  { %3896 = vmatprep.subr.bf16.mxu1 %v13965_v8  ;;  %v14040_v8 = vld [vmem:[%s17564_s3 + $0x42c] ss:$16 sps:$4 sm:$0xff]  }
 0x329   :  { %4760 = vmatpush2.bf16.msra.mxu0 %v13966_v28  ;;  %v14037_v28 = vld [vmem:[%s17564_s3 + $0x604] ss:$16 sps:$4 sm:$0xff]  }
 0x32a   :  { %3897 = vmatpush2.bf16.msra.mxu1 %v13963_v30  ;;  %4761 = vmatprep.subr.bf16.mxu0 %v13974_v24  ;;  %v14038_v30 = vld [vmem:[%s17564_s3 + $0x428] ss:$16 sps:$4 sm:$0xff]   ;;  %v14035_v24 = vld [vmem:[%s17564_s3 + $0x600] ss:$16 sps:$4 sm:$0xff]  }
 0x32b   :  { %3898 = vmatprep.subr.bf16.mxu1 %v13971_v33  ;;  %v14046_v33 = vld [vmem:[%s17564_s3 + $0x40c] ss:$16 sps:$4 sm:$0xff]  }
 0x32d   :  { %4762 = vmatpush2.bf16.msra.mxu0 %v13972_v53  ;;  %v14043_v53 = vld [vmem:[%s17564_s3 + $0x7e4] ss:$16 sps:$4 sm:$0xff]  }
 0x32e   :  { %3899 = vmatpush2.bf16.msra.mxu1 %v13969_v10  ;;  %4763 = vmatprep.subr.bf16.mxu0 %v13980_v46  ;;  %v14044_v10 = vld [vmem:[%s17564_s3 + $0x408] ss:$16 sps:$4 sm:$0xff]   ;;  %v14041_v46 = vld [vmem:[%s17564_s3 + $0x7e0] ss:$16 sps:$4 sm:$0xff]  }
 0x32f   :  { %3900 = vmatprep.subr.bf16.mxu1 %v13977_v22  ;;  %v14052_v22 = vld [vmem:[%s17564_s3 + $0x5ec] ss:$16 sps:$4 sm:$0xff]  }
 0x331   :  { %4764 = vmatpush2.bf16.msra.mxu0 %v13978_v12  ;;  %v14049_v12 = vld [vmem:[%s17564_s3 + $0x7c4] ss:$16 sps:$4 sm:$0xff]  }
 0x332   :  { %3901 = vmatpush2.bf16.msra.mxu1 %v13975_v41  ;;  %4765 = vmatprep.subr.bf16.mxu0 %v13986_v31  ;;  %v14050_v41 = vld [vmem:[%s17564_s3 + $0x5e8] ss:$16 sps:$4 sm:$0xff]   ;;  %v14047_v31 = vld [vmem:[%s17564_s3 + $0x7c0] ss:$16 sps:$4 sm:$0xff]  }
 0x333   :  { %3902 = vmatprep.subr.bf16.mxu1 %v13983_v44  ;;  %v14058_v44 = vld [vmem:[%s17564_s3 + $0x5cc] ss:$16 sps:$4 sm:$0xff]  }
 0x335   :  { %4766 = vmatpush2.bf16.msra.mxu0 %v13984_v47  ;;  %v14055_v47 = vld [vmem:[%s17564_s3 + $0x7a4] ss:$16 sps:$4 sm:$0xff]  }
 0x336   :  { %3903 = vmatpush2.bf16.msra.mxu1 %v13981_v58  ;;  %4767 = vmatprep.subr.bf16.mxu0 %v13992_v43  ;;  %v14056_v58 = vld [vmem:[%s17564_s3 + $0x5c8] ss:$16 sps:$4 sm:$0xff]   ;;  %v14053_v43 = vld [vmem:[%s17564_s3 + $0x7a0] ss:$16 sps:$4 sm:$0xff]  }
 0x337   :  { %3904 = vmatprep.subr.bf16.mxu1 %v13989_v62  ;;  %v14064_v62 = vld [vmem:[%s17564_s3 + $0x5ac] ss:$16 sps:$4 sm:$0xff]  }
 0x339   :  { %4768 = vmatpush2.bf16.msra.mxu0 %v13990_v27  ;;  %v14061_v27 = vld [vmem:[%s17564_s3 + $0x784] ss:$16 sps:$4 sm:$0xff]  }
 0x33a   :  { %3905 = vmatpush2.bf16.msra.mxu1 %v13987_v52  ;;  %4769 = vmatprep.subr.bf16.mxu0 %v13995_v40  ;;  %v14062_v52 = vld [vmem:[%s17564_s3 + $0x5a8] ss:$16 sps:$4 sm:$0xff]   ;;  %v14059_v40 = vld [vmem:[%s17564_s3 + $0x780] ss:$16 sps:$4 sm:$0xff]  }
 0x33b   :  { %4782 = vmatprep.subr.bf16.mxu1 %v13998_v23  ;;  %v14070_v23 = vld [vmem:[%s17564_s3 + $0x58c] ss:$16 sps:$4 sm:$0xff]  }
 0x33d   :  { %3907 = vmatmul.mubr.bf16.vlgmr.msra.gmra.mxu1 %v15373_v7  ;;  %4770 = vmatpush2.bf16.msra.mxu0 %v13993_v61  ;;  %v14067_v61 = vld [vmem:[%s17564_s3 + $0x764] ss:$16 sps:$4 sm:$0xff]  }
 0x33e   :  { %4783 = vmatpush1.bf16.msra.mxu1 %v13996_v57  ;;  %4814 = vmatprep.mubr.bf16.mxu1 %v15604_v32  ;;  %v14065_v57 = vld [vmem:[%s17564_s3 + $0x760] ss:$16 sps:$4 sm:$0xff]  }
 0x33f   :  { %4784 = vmatprep.subr.bf16.mxu1 %v14001_v15  ;;  %4825 = vmatprep.subr.bf16.mxu0 %v14004_v39  ;;  %v14074_v15 = vld [vmem:[%s17564_s3 + $0x568] ss:$16 sps:$4 sm:$0xff]   ;;  %v14071_v39 = vld [vmem:[%s17564_s3 + $0x740] ss:$16 sps:$4 sm:$0xff]  }
 0x340   :  { %4772 = vmatmul.mubr.bf16.vlgmr.msra.gmra.mxu0 %v15618_v11 }
 0x341   :  { %4826 = vmatpush1.bf16.msra.mxu0 %v14002_v17  ;;  %4857 = vmatprep.mubr.bf16.mxu0 %v15414_v35  ;;  %v14014_v35 = vld [vmem:[%s17564_s3 + $0x4a8] ss:$16 sps:$4 sm:$0xff]   ;;  %v14079_v17 = vld [vmem:[%s17564_s3 + $0x724] ss:$16 sps:$4 sm:$0xff]  }
 0x342   :  { %4785 = vmatpush1.bf16.msra.mxu1 %v13999_v3  ;;  %4827 = vmatprep.subr.bf16.mxu0 %v14010_v25  ;;  %v14080_v3 = vld [vmem:[%s17564_s3 + $0x548] ss:$16 sps:$4 sm:$0xff]   ;;  %v14077_v25 = vld [vmem:[%s17564_s3 + $0x720] ss:$16 sps:$4 sm:$0xff]  }
 0x343   :  { %4786 = vmatprep.subr.bf16.mxu1 %v14007_v42  ;;  %v14088_v42 = vld [vmem:[%s17564_s3 + $0x52c] ss:$16 sps:$4 sm:$0xff]  }
 0x345   :  { %4828 = vmatpush1.bf16.msra.mxu0 %v14008_v56  ;;  %v14085_v56 = vld [vmem:[%s17564_s3 + $0x704] ss:$16 sps:$4 sm:$0xff]  }
 0x346   :  { %4787 = vmatpush1.bf16.msra.mxu1 %v14005_v55  ;;  %4829 = vmatprep.subr.bf16.mxu0 %v14016_v60  ;;  %v14086_v55 = vld [vmem:[%s17564_s3 + $0x528] ss:$16 sps:$4 sm:$0xff]   ;;  %v14083_v60 = vld [vmem:[%s17564_s3 + $0x700] ss:$16 sps:$4 sm:$0xff]  }
 0x347   :  { %4788 = vmatprep.subr.bf16.mxu1 %v14013_v50  ;;  %v14091_v50 = vld [vmem:[%s17564_s3 + $0x50c] ss:$16 sps:$4 sm:$0xff]  }
 0x349   :  { %4830 = vmatpush1.bf16.msra.mxu0 %v14014_v35  ;;  %v14094_v35 = vld [vmem:[%s17564_s3 + $0x6ec] ss:$16 sps:$4 sm:$0xff]  }
 0x34a   :  { %4789 = vmatpush1.bf16.msra.mxu1 %v14011_v29  ;;  %4831 = vmatprep.subr.bf16.mxu0 %v14022_v48  ;;  %v4090_v29 = vrot.slane %v15410_v21, 4  ;;  %v14089_v48 = vld [vmem:[%s17564_s3 + $0x508] ss:$16 sps:$4 sm:$0xff]  }
 0x34b   :  { %4790 = vmatprep.subr.bf16.mxu1 %v14019_v16  ;;  %v4089_v16 = vrot.slane %v15373_v7, 4  ;;  %v14098_v7 = vld [vmem:[%s17564_s3 + $0x8e0] ss:$16 sps:$4 sm:$0xff]  }
 0x34d   :  { %4832 = vmatpush1.bf16.msra.mxu0 %v14020_v6  ;;  %v14092_v6 = vld [vmem:[%s17564_s3 + $0x6e8] ss:$16 sps:$4 sm:$0xff]  }
 0x34e   :  { %4791 = vmatpush1.bf16.msra.mxu1 %v14017_v18  ;;  %4833 = vmatprep.subr.bf16.mxu0 %v14028_v54  ;;  %v14097_v18 = vld [vmem:[%s17564_s3 + $0x6cc] ss:$16 sps:$4 sm:$0xff]   ;;  %v14100_v54 = vld [vmem:[%s17564_s3 + $0x8e4] ss:$16 sps:$4 sm:$0xff]  }
 0x34f   :  { %4792 = vmatprep.subr.bf16.mxu1 %v14025_v14  ;;  %v15808_v14 = vsel %vm1417_vm1, %v4089_v16, %v4090_v29  ;;  %v14169_v29 = vld [vmem:[%s17564_s3 + $0x74c] ss:$16 sps:$4 sm:$0xff]   ;;  %v14167_v16 = vld [vmem:[%s17564_s3 + $0x748] ss:$16 sps:$4 sm:$0xff]  }
 0x351   :  { %4834 = vmatpush1.bf16.msra.mxu0 %v14026_v49  ;;  %v14095_v49 = vld [vmem:[%s17564_s3 + $0x6c8] ss:$16 sps:$4 sm:$0xff]  }
 0x352   :  { %4793 = vmatpush1.bf16.msra.mxu1 %v14023_v13  ;;  %4835 = vmatprep.subr.bf16.mxu0 %v14034_v2  ;;  %v14106_v13 = vld [vmem:[%s17564_s3 + $0x8c4] ss:$16 sps:$4 sm:$0xff]   ;;  %v14103_v2 = vld [vmem:[%s17564_s3 + $0x6ac] ss:$16 sps:$4 sm:$0xff]  }
 0x353   :  { %4794 = vmatprep.subr.bf16.mxu1 %v14031_v1  ;;  %v14101_v1 = vld [vmem:[%s17564_s3 + $0x6a8] ss:$16 sps:$4 sm:$0xff]  }
 0x355   :  { %4836 = vmatpush1.bf16.msra.mxu0 %v14032_v20  ;;  %v14112_v20 = vld [vmem:[%s17564_s3 + $0x8a4] ss:$16 sps:$4 sm:$0xff]  }
 0x356   :  { %4795 = vmatpush1.bf16.msra.mxu1 %v14029_v45  ;;  %4837 = vmatprep.subr.bf16.mxu0 %v14040_v8  ;;  %v14110_v45 = vld [vmem:[%s17564_s3 + $0x8a0] ss:$16 sps:$4 sm:$0xff]   ;;  %v14107_v8 = vld [vmem:[%s17564_s3 + $0x688] ss:$16 sps:$4 sm:$0xff]  }
 0x357   :  { %4796 = vmatprep.subr.bf16.mxu1 %v14037_v28  ;;  %v14118_v28 = vld [vmem:[%s17564_s3 + $0x884] ss:$16 sps:$4 sm:$0xff]  }
 0x359   :  { %4838 = vmatpush1.bf16.msra.mxu0 %v14038_v30  ;;  %v14115_v30 = vld [vmem:[%s17564_s3 + $0x66c] ss:$16 sps:$4 sm:$0xff]  }
 0x35a   :  { %4797 = vmatpush1.bf16.msra.mxu1 %v14035_v24  ;;  %4839 = vmatprep.subr.bf16.mxu0 %v14046_v33  ;;  %v14116_v24 = vld [vmem:[%s17564_s3 + $0x880] ss:$16 sps:$4 sm:$0xff]   ;;  %v14113_v33 = vld [vmem:[%s17564_s3 + $0x668] ss:$16 sps:$4 sm:$0xff]  }
 0x35b   :  { %4798 = vmatprep.subr.bf16.mxu1 %v14043_v53  ;;  %v14124_v53 = vld [vmem:[%s17564_s3 + $0x864] ss:$16 sps:$4 sm:$0xff]  }
 0x35d   :  { %4840 = vmatpush1.bf16.msra.mxu0 %v14044_v10  ;;  %v14121_v10 = vld [vmem:[%s17564_s3 + $0x64c] ss:$16 sps:$4 sm:$0xff]  }
 0x35e   :  { %4799 = vmatpush2.bf16.msra.mxu1 %v14041_v46  ;;  %4841 = vmatprep.subr.bf16.mxu0 %v14052_v22  ;;  %v14122_v46 = vld [vmem:[%s17564_s3 + $0x860] ss:$16 sps:$4 sm:$0xff]   ;;  %v14119_v22 = vld [vmem:[%s17564_s3 + $0x648] ss:$16 sps:$4 sm:$0xff]  }
 0x35f   :  { %4800 = vmatprep.subr.bf16.mxu1 %v14049_v12  ;;  %v14130_v12 = vld [vmem:[%s17564_s3 + $0x844] ss:$16 sps:$4 sm:$0xff]  }
 0x361   :  { %4842 = vmatpush2.bf16.msra.mxu0 %v14050_v41  ;;  %v14127_v41 = vld [vmem:[%s17564_s3 + $0x62c] ss:$16 sps:$4 sm:$0xff]  }
 0x362   :  { %4801 = vmatpush2.bf16.msra.mxu1 %v14047_v31  ;;  %4843 = vmatprep.subr.bf16.mxu0 %v14058_v44  ;;  %v14128_v31 = vld [vmem:[%s17564_s3 + $0x840] ss:$16 sps:$4 sm:$0xff]   ;;  %v14125_v44 = vld [vmem:[%s17564_s3 + $0x628] ss:$16 sps:$4 sm:$0xff]  }
 0x363   :  { %4802 = vmatprep.subr.bf16.mxu1 %v14055_v47  ;;  %v14136_v47 = vld [vmem:[%s17564_s3 + $0x824] ss:$16 sps:$4 sm:$0xff]  }
 0x365   :  { %4844 = vmatpush2.bf16.msra.mxu0 %v14056_v58  ;;  %v14133_v58 = vld [vmem:[%s17564_s3 + $0x60c] ss:$16 sps:$4 sm:$0xff]  }
 0x366   :  { %4803 = vmatpush2.bf16.msra.mxu1 %v14053_v43  ;;  %4845 = vmatprep.subr.bf16.mxu0 %v14064_v62  ;;  %v14134_v43 = vld [vmem:[%s17564_s3 + $0x820] ss:$16 sps:$4 sm:$0xff]   ;;  %v14131_v62 = vld [vmem:[%s17564_s3 + $0x608] ss:$16 sps:$4 sm:$0xff]  }
 0x367   :  { %4804 = vmatprep.subr.bf16.mxu1 %v14061_v27  ;;  %v14142_v27 = vld [vmem:[%s17564_s3 + $0x804] ss:$16 sps:$4 sm:$0xff]  }
 0x369   :  { %4846 = vmatpush2.bf16.msra.mxu0 %v14062_v52  ;;  %v14139_v52 = vld [vmem:[%s17564_s3 + $0x7ec] ss:$16 sps:$4 sm:$0xff]  }
 0x36a   :  { %4805 = vmatpush2.bf16.msra.mxu1 %v14059_v40  ;;  %4847 = vmatprep.subr.bf16.mxu0 %v14070_v23  ;;  %v14140_v40 = vld [vmem:[%s17564_s3 + $0x800] ss:$16 sps:$4 sm:$0xff]   ;;  %v14137_v23 = vld [vmem:[%s17564_s3 + $0x7e8] ss:$16 sps:$4 sm:$0xff]  }
 0x36b   :  { %4806 = vmatprep.subr.bf16.mxu1 %v14067_v61  ;;  %v14148_v61 = vld [vmem:[%s17564_s3 + $0x9e4] ss:$16 sps:$4 sm:$0xff]  }
 0x36d   :  { %4848 = vmatpush2.bf16.msra.mxu0 %v14068_v51  ;;  %v14145_v51 = vld [vmem:[%s17564_s3 + $0x7cc] ss:$16 sps:$4 sm:$0xff]  }
 0x36e   :  { %4807 = vmatpush2.bf16.msra.mxu1 %v14065_v57  ;;  %4849 = vmatprep.subr.bf16.mxu0 %v14076_v9  ;;  %v14146_v57 = vld [vmem:[%s17564_s3 + $0x9e0] ss:$16 sps:$4 sm:$0xff]   ;;  %v14143_v9 = vld [vmem:[%s17564_s3 + $0x7c8] ss:$16 sps:$4 sm:$0xff]  }
 0x36f   :  { %4808 = vmatprep.subr.bf16.mxu1 %v14073_v4  ;;  %v14154_v4 = vld [vmem:[%s17564_s3 + $0x9c4] ss:$16 sps:$4 sm:$0xff]  }
 0x371   :  { %4850 = vmatpush2.bf16.msra.mxu0 %v14074_v15  ;;  %v14151_v15 = vld [vmem:[%s17564_s3 + $0x7ac] ss:$16 sps:$4 sm:$0xff]  }
 0x372   :  { %4809 = vmatpush2.bf16.msra.mxu1 %v14071_v39  ;;  %4851 = vmatprep.subr.bf16.mxu0 %v14082_v26  ;;  %v14152_v39 = vld [vmem:[%s17564_s3 + $0x9c0] ss:$16 sps:$4 sm:$0xff]   ;;  %v14149_v26 = vld [vmem:[%s17564_s3 + $0x7a8] ss:$16 sps:$4 sm:$0xff]  }
 0x373   :  { %4810 = vmatprep.subr.bf16.mxu1 %v14079_v17  ;;  %v14160_v17 = vld [vmem:[%s17564_s3 + $0x9a4] ss:$16 sps:$4 sm:$0xff]  }
 0x375   :  { %4852 = vmatpush2.bf16.msra.mxu0 %v14080_v3  ;;  %v14157_v3 = vld [vmem:[%s17564_s3 + $0x78c] ss:$16 sps:$4 sm:$0xff]  }
 0x376   :  { %4811 = vmatpush2.bf16.msra.mxu1 %v14077_v25  ;;  %4853 = vmatprep.subr.bf16.mxu0 %v14088_v42  ;;  %v14158_v25 = vld [vmem:[%s17564_s3 + $0x9a0] ss:$16 sps:$4 sm:$0xff]   ;;  %v14155_v42 = vld [vmem:[%s17564_s3 + $0x788] ss:$16 sps:$4 sm:$0xff]  }
 0x377   :  { %4812 = vmatprep.subr.bf16.mxu1 %v14085_v56  ;;  %v14166_v56 = vld [vmem:[%s17564_s3 + $0x984] ss:$16 sps:$4 sm:$0xff]  }
 0x379   :  { %4854 = vmatpush2.bf16.msra.mxu0 %v14086_v55  ;;  %v14163_v55 = vld [vmem:[%s17564_s3 + $0x76c] ss:$16 sps:$4 sm:$0xff]  }
 0x37a   :  { %4813 = vmatpush2.bf16.msra.mxu1 %v14083_v60  ;;  %4855 = vmatprep.subr.bf16.mxu0 %v14091_v50  ;;  %v14164_v60 = vld [vmem:[%s17564_s3 + $0x980] ss:$16 sps:$4 sm:$0xff]   ;;  %v14161_v50 = vld [vmem:[%s17564_s3 + $0x768] ss:$16 sps:$4 sm:$0xff]  }
 0x37b   :  { %4868 = vmatprep.subr.bf16.mxu1 %v14094_v35  ;;  %v14172_v35 = vld [vmem:[%s17564_s3 + $0x964] ss:$16 sps:$4 sm:$0xff]  }
 0x37d   :  { %4815 = vmatmul.mubr.bf16.vlgmr.msra.gmra.mxu1 %v15808_v14  ;;  %4856 = vmatpush2.bf16.msra.mxu0 %v14089_v48  ;;  %v14170_v48 = vld [vmem:[%s17564_s3 + $0x960] ss:$16 sps:$4 sm:$0xff]  }
 0x37e   :  { %4869 = vmatpush1.bf16.msra.mxu1 %v14092_v6  ;;  %4900 = vmatprep.mubr.bf16.mxu1 %v15604_v32  ;;  %v14104_v32 = vld [vmem:[%s17564_s3 + $0x8c0] ss:$16 sps:$4 sm:$0xff]   ;;  %v14178_v6 = vld [vmem:[%s17564_s3 + $0x944] ss:$16 sps:$4 sm:$0xff]  }
 0x37f   :  { %4870 = vmatprep.subr.bf16.mxu1 %v14097_v18  ;;  %5688 = vmatprep.subr.bf16.mxu0 %v14100_v54  ;;  %v14175_v18 = vld [vmem:[%s17564_s3 + $0x72c] ss:$16 sps:$4 sm:$0xff]   ;;  %v14176_v54 = vld [vmem:[%s17564_s3 + $0x940] ss:$16 sps:$4 sm:$0xff]  }
 0x380   :  { %4858 = vmatmul.mubr.bf16.vlgmr.msra.gmra.mxu0 %v15618_v11  ;;  %v14109_v11 = vld [vmem:[%s17564_s3 + $0x68c] ss:$16 sps:$4 sm:$0xff]  }
 0x381   :  { %5689 = vmatpush1.bf16.msra.mxu0 %v14098_v7  ;;  %5720 = vmatprep.mubr.bf16.mxu0 %v15286_v63  ;;  %v14173_v7 = vld [vmem:[%s17564_s3 + $0x728] ss:$16 sps:$4 sm:$0xff]  }
 0x382   :  { %4871 = vmatpush1.bf16.msra.mxu1 %v14095_v49  ;;  %5690 = vmatprep.subr.bf16.mxu0 %v14106_v13  ;;  %v14184_v49 = vld [vmem:[%s17564_s3 + $0x924] ss:$16 sps:$4 sm:$0xff]   ;;  %v14181_v13 = vld [vmem:[%s17564_s3 + $0x70c] ss:$16 sps:$4 sm:$0xff]  }
 0x383   :  { %4872 = vmatprep.subr.bf16.mxu1 %v14103_v2  ;;  %v14182_v2 = vld [vmem:[%s17564_s3 + $0x920] ss:$16 sps:$4 sm:$0xff]  }
 0x385   :  { %5691 = vmatpush1.bf16.msra.mxu0 %v14104_v32  ;;  %v14179_v32 = vld [vmem:[%s17564_s3 + $0x708] ss:$16 sps:$4 sm:$0xff]  }
 0x386   :  { %4873 = vmatpush1.bf16.msra.mxu1 %v14101_v1  ;;  %5692 = vmatprep.subr.bf16.mxu0 %v14112_v20  ;;  %v14187_v1 = vld [vmem:[%s17564_s3 + $0x904] ss:$16 sps:$4 sm:$0xff]  }
 0x387   :  { %4874 = vmatprep.subr.bf16.mxu1 %v14109_v11  ;;  %v14190_v20 = vld [vmem:[%s17564_s3 + $0xae4] ss:$16 sps:$4 sm:$0xff]   ;;  %v14185_v11 = vld [vmem:[%s17564_s3 + $0x900] ss:$16 sps:$4 sm:$0xff]  }
 0x389   :  { %5693 = vmatpush1.bf16.msra.mxu0 %v14110_v45  ;;  %v14188_v45 = vld [vmem:[%s17564_s3 + $0xae0] ss:$16 sps:$4 sm:$0xff]  }
 0x38a   :  { %4875 = vmatpush1.bf16.msra.mxu1 %v14107_v8  ;;  %5694 = vmatprep.subr.bf16.mxu0 %v14118_v28  ;;  %v14193_v8 = vld [vmem:[%s17564_s3 + $0xac4] ss:$16 sps:$4 sm:$0xff]   ;;  %v14196_v28 = vld [vmem:[%s17564_s3 + $0x8ec] ss:$16 sps:$4 sm:$0xff]  }
 0x38b   :  { %4876 = vmatprep.subr.bf16.mxu1 %v14115_v30  ;;  %v14194_v30 = vld [vmem:[%s17564_s3 + $0x8e8] ss:$16 sps:$4 sm:$0xff]  }
 0x38d   :  { %5695 = vmatpush1.bf16.msra.mxu0 %v14116_v24  ;;  %v14191_v24 = vld [vmem:[%s17564_s3 + $0xac0] ss:$16 sps:$4 sm:$0xff]  }
 0x38e   :  { %4877 = vmatpush1.bf16.msra.mxu1 %v14113_v33  ;;  %5696 = vmatprep.subr.bf16.mxu0 %v14124_v53  ;;  %v14202_v33 = vld [vmem:[%s17564_s3 + $0x8cc] ss:$16 sps:$4 sm:$0xff]   ;;  %v14200_v53 = vld [vmem:[%s17564_s3 + $0x8c8] ss:$16 sps:$4 sm:$0xff]  }
 0x38f   :  { %4878 = vmatprep.subr.bf16.mxu1 %v14121_v10  ;;  %v14197_v10 = vld [vmem:[%s17564_s3 + $0xaa0] ss:$16 sps:$4 sm:$0xff]  }
 0x391   :  { %5697 = vmatpush1.bf16.msra.mxu0 %v14122_v46  ;;  %v14208_v46 = vld [vmem:[%s17564_s3 + $0x8ac] ss:$16 sps:$4 sm:$0xff]  }
 0x392   :  { %4879 = vmatpush1.bf16.msra.mxu1 %v14119_v22  ;;  %5698 = vmatprep.subr.bf16.mxu0 %v14130_v12  ;;  %v14205_v22 = vld [vmem:[%s17564_s3 + $0xa84] ss:$16 sps:$4 sm:$0xff]   ;;  %v14203_v12 = vld [vmem:[%s17564_s3 + $0xa80] ss:$16 sps:$4 sm:$0xff]  }
 0x393   :  { %4880 = vmatprep.subr.bf16.mxu1 %v14127_v41  ;;  %v14214_v41 = vld [vmem:[%s17564_s3 + $0x88c] ss:$16 sps:$4 sm:$0xff]  }
 0x395   :  { %5699 = vmatpush1.bf16.msra.mxu0 %v14128_v31  ;;  %v14211_v31 = vld [vmem:[%s17564_s3 + $0xa64] ss:$16 sps:$4 sm:$0xff]  }
 0x396   :  { %4881 = vmatpush1.bf16.msra.mxu1 %v14125_v44  ;;  %5700 = vmatprep.subr.bf16.mxu0 %v14136_v47  ;;  %v14212_v44 = vld [vmem:[%s17564_s3 + $0x888] ss:$16 sps:$4 sm:$0xff]   ;;  %v14209_v47 = vld [vmem:[%s17564_s3 + $0xa60] ss:$16 sps:$4 sm:$0xff]  }
 0x397   :  { %4882 = vmatprep.subr.bf16.mxu1 %v14133_v58  ;;  %v14220_v58 = vld [vmem:[%s17564_s3 + $0x86c] ss:$16 sps:$4 sm:$0xff]  }
 0x399   :  { %5701 = vmatpush1.bf16.msra.mxu0 %v14134_v43  ;;  %v14217_v43 = vld [vmem:[%s17564_s3 + $0xa44] ss:$16 sps:$4 sm:$0xff]  }
 0x39a   :  { %4883 = vmatpush1.bf16.msra.mxu1 %v14131_v62  ;;  %5702 = vmatprep.subr.bf16.mxu0 %v14142_v27  ;;  %v14218_v62 = vld [vmem:[%s17564_s3 + $0x868] ss:$16 sps:$4 sm:$0xff]   ;;  %v14215_v27 = vld [vmem:[%s17564_s3 + $0xa40] ss:$16 sps:$4 sm:$0xff]  }
 0x39b   :  { %4884 = vmatprep.subr.bf16.mxu1 %v14139_v52  ;;  %v14226_v52 = vld [vmem:[%s17564_s3 + $0x84c] ss:$16 sps:$4 sm:$0xff]  }
 0x39d   :  { %5703 = vmatpush1.bf16.msra.mxu0 %v14140_v40  ;;  %v14223_v40 = vld [vmem:[%s17564_s3 + $0xa24] ss:$16 sps:$4 sm:$0xff]  }
 0x39e   :  { %4885 = vmatpush2.bf16.msra.mxu1 %v14137_v23  ;;  %5704 = vmatprep.subr.bf16.mxu0 %v14148_v61  ;;  %v14224_v23 = vld [vmem:[%s17564_s3 + $0x848] ss:$16 sps:$4 sm:$0xff]   ;;  %v14221_v61 = vld [vmem:[%s17564_s3 + $0xa20] ss:$16 sps:$4 sm:$0xff]  }
 0x39f   :  { %4886 = vmatprep.subr.bf16.mxu1 %v14145_v51  ;;  %v14232_v51 = vld [vmem:[%s17564_s3 + $0x82c] ss:$16 sps:$4 sm:$0xff]  }
 0x3a1   :  { %5705 = vmatpush2.bf16.msra.mxu0 %v14146_v57  ;;  %v14229_v57 = vld [vmem:[%s17564_s3 + $0xa04] ss:$16 sps:$4 sm:$0xff]  }
 0x3a2   :  { %4887 = vmatpush2.bf16.msra.mxu1 %v14143_v9  ;;  %5706 = vmatprep.subr.bf16.mxu0 %v14154_v4  ;;  %v14230_v9 = vld [vmem:[%s17564_s3 + $0x828] ss:$16 sps:$4 sm:$0xff]   ;;  %v14227_v4 = vld [vmem:[%s17564_s3 + $0xa00] ss:$16 sps:$4 sm:$0xff]  }
 0x3a3   :  { %4888 = vmatprep.subr.bf16.mxu1 %v14151_v15  ;;  %v14238_v15 = vld [vmem:[%s17564_s3 + $0x80c] ss:$16 sps:$4 sm:$0xff]  }
 0x3a5   :  { %5707 = vmatpush2.bf16.msra.mxu0 %v14152_v39  ;;  %v14235_v39 = vld [vmem:[%s17564_s3 + $0xbe4] ss:$16 sps:$4 sm:$0xff]  }
 0x3a6   :  { %4889 = vmatpush2.bf16.msra.mxu1 %v14149_v26  ;;  %5708 = vmatprep.subr.bf16.mxu0 %v14160_v17  ;;  %v14236_v26 = vld [vmem:[%s17564_s3 + $0x808] ss:$16 sps:$4 sm:$0xff]   ;;  %v14233_v17 = vld [vmem:[%s17564_s3 + $0xbe0] ss:$16 sps:$4 sm:$0xff]  }
 0x3a7   :  { %4890 = vmatprep.subr.bf16.mxu1 %v14157_v3  ;;  %v14244_v3 = vld [vmem:[%s17564_s3 + $0x9ec] ss:$16 sps:$4 sm:$0xff]  }
 0x3a9   :  { %5709 = vmatpush2.bf16.msra.mxu0 %v14158_v25  ;;  %v14241_v25 = vld [vmem:[%s17564_s3 + $0xbc4] ss:$16 sps:$4 sm:$0xff]  }
 0x3aa   :  { %4891 = vmatpush2.bf16.msra.mxu1 %v14155_v42  ;;  %5710 = vmatprep.subr.bf16.mxu0 %v14166_v56  ;;  %v14242_v42 = vld [vmem:[%s17564_s3 + $0x9e8] ss:$16 sps:$4 sm:$0xff]   ;;  %v14239_v56 = vld [vmem:[%s17564_s3 + $0xbc0] ss:$16 sps:$4 sm:$0xff]  }
 0x3ab   :  { %4892 = vmatprep.subr.bf16.mxu1 %v14163_v55  ;;  %v14250_v55 = vld [vmem:[%s17564_s3 + $0x9cc] ss:$16 sps:$4 sm:$0xff]  }
 0x3ad   :  { %5711 = vmatpush2.bf16.msra.mxu0 %v14164_v60  ;;  %v14247_v60 = vld [vmem:[%s17564_s3 + $0xba4] ss:$16 sps:$4 sm:$0xff]  }
 0x3ae   :  { %4893 = vmatpush2.bf16.msra.mxu1 %v14161_v50  ;;  %5712 = vmatprep.subr.bf16.mxu0 %v14172_v35  ;;  %v14248_v50 = vld [vmem:[%s17564_s3 + $0x9c8] ss:$16 sps:$4 sm:$0xff]   ;;  %v14245_v35 = vld [vmem:[%s17564_s3 + $0xba0] ss:$16 sps:$4 sm:$0xff]  }
 0x3af   :  { %4894 = vmatprep.subr.bf16.mxu1 %v14169_v29  ;;  %v14256_v29 = vld [vmem:[%s17564_s3 + $0x9ac] ss:$16 sps:$4 sm:$0xff]  }
 0x3b1   :  { %5713 = vmatpush2.bf16.msra.mxu0 %v14170_v48  ;;  %v14253_v48 = vld [vmem:[%s17564_s3 + $0xb84] ss:$16 sps:$4 sm:$0xff]  }
 0x3b2   :  { %4895 = vmatpush2.bf16.msra.mxu1 %v14167_v16  ;;  %5714 = vmatprep.subr.bf16.mxu0 %v14178_v6  ;;  %v14254_v16 = vld [vmem:[%s17564_s3 + $0x9a8] ss:$16 sps:$4 sm:$0xff]   ;;  %v14251_v6 = vld [vmem:[%s17564_s3 + $0xb80] ss:$16 sps:$4 sm:$0xff]  }
 0x3b3   :  { %4896 = vmatprep.subr.bf16.mxu1 %v14175_v18  ;;  %v14262_v18 = vld [vmem:[%s17564_s3 + $0x98c] ss:$16 sps:$4 sm:$0xff]  }
 0x3b5   :  { %5715 = vmatpush2.bf16.msra.mxu0 %v14176_v54  ;;  %v14259_v54 = vld [vmem:[%s17564_s3 + $0xb64] ss:$16 sps:$4 sm:$0xff]  }
 0x3b6   :  { %4897 = vmatpush2.bf16.msra.mxu1 %v14173_v7  ;;  %5716 = vmatprep.subr.bf16.mxu0 %v14184_v49  ;;  %v16142_v7 = vpop.f32.mrf.mxu0  ;;  %v14260_v49 = vld [vmem:[%s17564_s3 + $0x988] ss:$16 sps:$4 sm:$0xff]  }
 0x3b7   :  { %4898 = vmatprep.subr.bf16.mxu1 %v14181_v13  ;;  %v14257_v13 = vld [vmem:[%s17564_s3 + $0xb60] ss:$16 sps:$4 sm:$0xff]  }
 0x3b9   :  { %5717 = vmatpush2.bf16.msra.mxu0 %v14182_v2  ;;  %v14268_v2 = vld [vmem:[%s17564_s3 + $0x96c] ss:$16 sps:$4 sm:$0xff]  }
 0x3ba   :  { %4899 = vmatpush2.bf16.msra.mxu1 %v14179_v32  ;;  %5718 = vmatprep.subr.bf16.mxu0 %v14187_v1  ;;  %v14265_v32 = vld [vmem:[%s17564_s3 + $0xb44] ss:$16 sps:$4 sm:$0xff]   ;;  %v16156_v1 = vpop.f32.mrf.mxu0 }
 0x3bb   :  { %5731 = vmatprep.subr.bf16.mxu1 %v14190_v20  ;;  %v14266_v20 = vld [vmem:[%s17564_s3 + $0x968] ss:$16 sps:$4 sm:$0xff]  }
 0x3bd   :  { %4901 = vmatmul.mubr.bf16.vlgmr.msra.gmra.mxu1 %v15808_v14  ;;  %5719 = vmatpush2.bf16.msra.mxu0 %v14185_v11  ;;  %v14199_v14 = vld [vmem:[%s17564_s3 + $0xaa4] ss:$16 sps:$4 sm:$0xff]   ;;  %v14263_v11 = vld [vmem:[%s17564_s3 + $0xb40] ss:$16 sps:$4 sm:$0xff]  }
 0x3be   :  { %5732 = vmatpush1.bf16.msra.mxu1 %v14188_v45  ;;  %5763 = vmatprep.mubr.bf16.mxu1 %v15420_v19  ;;  %v14274_v45 = vld [vmem:[%s17564_s3 + $0x94c] ss:$16 sps:$4 sm:$0xff]  }
 0x3bf   :  { %5733 = vmatprep.subr.bf16.mxu1 %v14193_v8  ;;  %5774 = vmatprep.subr.bf16.mxu0 %v14196_v28  ;;  %v16167_v8 = vpop.f32.mrf.mxu1  ;;  %v14271_v28 = vld [vmem:[%s17564_s3 + $0xb24] ss:$16 sps:$4 sm:$0xff]  }
 0x3c0   :  { %5721 = vmatmul.mubr.bf16.vlgmr.msra.gmra.mxu0 %v15284_v5 }
 0x3c1   :  { %5775 = vmatpush1.bf16.msra.mxu0 %v14194_v30  ;;  %5806 = vmatprep.mubr.bf16.mxu0 %v15286_v63  ;;  %v14206_v63 = vld [vmem:[%s17564_s3 + $0x8a8] ss:$16 sps:$4 sm:$0xff]   ;;  %v16172_v30 = vpop.f32.mrf.mxu0 }
 0x3c2   :  { %5734 = vmatpush1.bf16.msra.mxu1 %v14191_v24  ;;  %5776 = vmatprep.subr.bf16.mxu0 %v14202_v33  ;;  %v14272_v24 = vld [vmem:[%s17564_s3 + $0x948] ss:$16 sps:$4 sm:$0xff]   ;;  %v14269_v33 = vld [vmem:[%s17564_s3 + $0xb20] ss:$16 sps:$4 sm:$0xff]  }
 0x3c3   :  { %5735 = vmatprep.subr.bf16.mxu1 %v14199_v14  ;;  %v14280_v14 = vld [vmem:[%s17564_s3 + $0x92c] ss:$16 sps:$4 sm:$0xff]  }
 0x3c5   :  { %5777 = vmatpush1.bf16.msra.mxu0 %v14200_v53  ;;  %v16183_v53 = vpop.f32.mrf.mxu1 }
 0x3c6   :  { %5736 = vmatpush1.bf16.msra.mxu1 %v14197_v10  ;;  %5778 = vmatprep.subr.bf16.mxu0 %v14208_v46  ;;  %v14277_v10 = vld [vmem:[%s17564_s3 + $0xb04] ss:$16 sps:$4 sm:$0xff]   ;;  %v16188_v46 = vpop.f32.mrf.mxu0 }
 0x3c7   :  { %5737 = vmatprep.subr.bf16.mxu1 %v14205_v22  ;;  %v14278_v22 = vld [vmem:[%s17564_s3 + $0x928] ss:$16 sps:$4 sm:$0xff]  }
 0x3c9   :  { %5779 = vmatpush1.bf16.msra.mxu0 %v14206_v63  ;;  %v14275_v63 = vld [vmem:[%s17564_s3 + $0xb00] ss:$16 sps:$4 sm:$0xff]  }
 0x3ca   :  { %5738 = vmatpush1.bf16.msra.mxu1 %v14203_v12  ;;  %5780 = vmatprep.subr.bf16.mxu0 %v14214_v41  ;;  %v14283_v12 = vld [vmem:[%s17564_s3 + $0x90c] ss:$16 sps:$4 sm:$0xff]   ;;  %v3865_v41 = vpop.f32.mrf.mxu0 }
 0x3cb   :  { %5739 = vmatprep.subr.bf16.mxu1 %v14211_v31  ;;  %v16199_v31 = vpop.f32.mrf.mxu1 }
 0x3cd   :  { %5781 = vmatpush1.bf16.msra.mxu0 %v14212_v44  ;;  %v14286_v44 = vld [vmem:[%s17564_s3 + $0xaec] ss:$16 sps:$4 sm:$0xff]  }
 0x3ce   :  { %5740 = vmatpush1.bf16.msra.mxu1 %v14209_v47  ;;  %5782 = vmatprep.subr.bf16.mxu0 %v14220_v58  ;;  %v14281_v47 = vld [vmem:[%s17564_s3 + $0x908] ss:$16 sps:$4 sm:$0xff]  }
 0x3cf   :  { %5741 = vmatprep.subr.bf16.mxu1 %v14217_v43  ;;  %v14284_v58 = vld [vmem:[%s17564_s3 + $0xae8] ss:$16 sps:$4 sm:$0xff]   ;;  %v3867_v43 = vpop.f32.mrf.mxu0 }
 0x3d1   :  { %5783 = vmatpush1.bf16.msra.mxu0 %v14218_v62  ;;  %v16210_v62 = vpop.f32.mrf.mxu1 }
 0x3d2   :  { %5742 = vmatpush1.bf16.msra.mxu1 %v14215_v27  ;;  %5784 = vmatprep.subr.bf16.mxu0 %v14226_v52  ;;  %v14289_v27 = vld [vmem:[%s17564_s3 + $0xacc] ss:$16 sps:$4 sm:$0xff]  }
 0x3d3   :  { %5743 = vmatprep.subr.bf16.mxu1 %v14223_v40 }
 0x3d5   :  { %5785 = vmatpush1.bf16.msra.mxu0 %v14224_v23  ;;  %v14287_v23 = vld [vmem:[%s17564_s3 + $0xac8] ss:$16 sps:$4 sm:$0xff]  }
 0x3d6   :  { %5744 = vmatpush1.bf16.msra.mxu1 %v14221_v61  ;;  %5786 = vmatprep.subr.bf16.mxu0 %v14232_v51  ;;  %v3869_v61 = vpop.f32.mrf.mxu0 }
 0x3d7   :  { %5745 = vmatprep.subr.bf16.mxu1 %v14229_v57  ;;  %v14292_v57 = vld [vmem:[%s17564_s3 + $0xaac] ss:$16 sps:$4 sm:$0xff]  }
 0x3d9   :  { %5787 = vmatpush1.bf16.msra.mxu0 %v14230_v9 }
 0x3da   :  { %5746 = vmatpush1.bf16.msra.mxu1 %v14227_v4  ;;  %5788 = vmatprep.subr.bf16.mxu0 %v14238_v15 }
 0x3db   :  { %5747 = vmatprep.subr.bf16.mxu1 %v14235_v39  ;;  %v3871_v39 = vpop.f32.mrf.mxu0 }
 0x3dd   :  { %5789 = vmatpush1.bf16.msra.mxu0 %v14236_v26 }
 0x3de   :  { %5748 = vmatpush2.bf16.msra.mxu1 %v14233_v17  ;;  %5790 = vmatprep.subr.bf16.mxu0 %v14244_v3  ;;  %v14295_v17 = vld [vmem:[%s17564_s3 + $0xa8c] ss:$16 sps:$4 sm:$0xff]  }
 0x3df   :  { %5749 = vmatprep.subr.bf16.mxu1 %v14241_v25  ;;  %v6192_v25 = vld [vmem:[#allocation7 + $0x1c0] sm:$0xff] }
 0x3e1   :  { %5791 = vmatpush2.bf16.msra.mxu0 %v14242_v42  ;;  %v6196_v42 = vld [vmem:[#allocation7 + $0x1e0] sm:$0xff] }
 0x3e2   :  { %5750 = vmatpush2.bf16.msra.mxu1 %v14239_v56  ;;  %5792 = vmatprep.subr.bf16.mxu0 %v14250_v55  ;;  %v6184_v56 = vld [vmem:[#allocation7 + $0x180] sm:$0xff]  ;;  %v14298_v55 = vld [vmem:[%s17564_s3 + $0xa6c] ss:$16 sps:$4 sm:$0xff]  }
 0x3e3   :  { %5751 = vmatprep.subr.bf16.mxu1 %v14247_v60  ;;  %v12657_v60 = vcombine.low %v6192_v25, %v6196_v42 }
 0x3e5   :  { %5793 = vmatpush2.bf16.msra.mxu0 %v14248_v50  ;;  %v12658_v50 = vcombine.high %v6192_v25, %v6196_v42  ;;  %v6260_v25 = vld [vmem:[#allocation7 + $0x3e0] sm:$0xff]  ;;  %v14314_v42 = vld [vmem:[%s17564_s3 + $0xba8] ss:$16 sps:$4 sm:$0xff]  }
 0x3e6   :  { %5752 = vmatpush2.bf16.msra.mxu1 %v14245_v35  ;;  %5794 = vmatprep.subr.bf16.mxu0 %v14256_v29  ;;  %v6188_v35 = vld [vmem:[#allocation7 + $0x1a0] sm:$0xff] }
 0x3e7   :  { %5753 = vmatprep.subr.bf16.mxu1 %v14253_v48  ;;  %v12650_v29 = vcombine.high %v6184_v56, %v6188_v35  ;;  %v6176_v48 = vld [vmem:[#allocation7 + $0x140] sm:$0xff] }
 0x3e9   :  { %5795 = vmatpush2.bf16.msra.mxu0 %v14254_v16  ;;  %v6180_v16 = vld [vmem:[#allocation7 + $0x160] sm:$0xff] }
 0x3ea   :  { %5754 = vmatpush2.bf16.msra.mxu1 %v14251_v6  ;;  %5796 = vmatprep.subr.bf16.mxu0 %v14262_v18  ;;  %v14296_v6 = vld [vmem:[%s17564_s3 + $0xa68] ss:$16 sps:$4 sm:$0xff]   ;;  %v12649_v18 = vcombine.low %v6184_v56, %v6188_v35  ;;  %v6252_v35 = vld [vmem:[#allocation7 + $0x3a0] sm:$0xff] }
 0x3eb   :  { %5755 = vmatprep.subr.bf16.mxu1 %v14259_v54  ;;  %v14301_v54 = vld [vmem:[%s17564_s3 + $0xa4c] ss:$16 sps:$4 sm:$0xff]  }
 0x3ed   :  { %5797 = vmatpush2.bf16.msra.mxu0 %v14260_v49  ;;  %v12642_v49 = vcombine.high %v6176_v48, %v6180_v16 }
 0x3ee   :  { %5756 = vmatpush2.bf16.msra.mxu1 %v14257_v13  ;;  %5798 = vmatprep.subr.bf16.mxu0 %v14268_v2  ;;  %v6168_v13 = vld [vmem:[#allocation7 + $0x100] sm:$0xff] }
 0x3ef   :  { %5757 = vmatprep.subr.bf16.mxu1 %v14265_v32  ;;  %v6172_v2 = vld [vmem:[#allocation7 + $0x120] sm:$0xff]  ;;  %v14299_v32 = vld [vmem:[%s17564_s3 + $0xa48] ss:$16 sps:$4 sm:$0xff]  }
 0x3f1   :  { %5799 = vmatpush2.bf16.msra.mxu0 %v14266_v20  ;;  %v12641_v20 = vcombine.low %v6176_v48, %v6180_v16  ;;  %v14322_v16 = vld [vmem:[%s17564_s3 + $0xb6c] ss:$16 sps:$4 sm:$0xff]  }
 0x3f2   :  { %5758 = vmatpush2.bf16.msra.mxu1 %v14263_v11  ;;  %5800 = vmatprep.subr.bf16.mxu0 %v14274_v45  ;;  %v14304_v11 = vld [vmem:[%s17564_s3 + $0xa2c] ss:$16 sps:$4 sm:$0xff]   ;;  %v12634_v45 = vcombine.high %v6168_v13, %v6172_v2 }
 0x3f3   :  { %5759 = vmatprep.subr.bf16.mxu1 %v14271_v28  ;;  %v6160_v28 = vld [vmem:[#allocation7 + $0xc0] sm:$0xff] }
 0x3f5   :  { %5801 = vmatpush2.bf16.msra.mxu0 %v14272_v24  ;;  %v6164_v24 = vld [vmem:[#allocation7 + $0xe0] sm:$0xff] }
 0x3f6   :  { %5760 = vmatpush2.bf16.msra.mxu1 %v14269_v33  ;;  %5802 = vmatprep.subr.bf16.mxu0 %v14280_v14  ;;  %v14302_v33 = vld [vmem:[%s17564_s3 + $0xa28] ss:$16 sps:$4 sm:$0xff]   ;;  %v12633_v14 = vcombine.low %v6168_v13, %v6172_v2  ;;  %v14325_v2 = vld [vmem:[%s17564_s3 + $0xb4c] ss:$16 sps:$4 sm:$0xff]  }
 0x3f7   :  { %5761 = vmatprep.subr.bf16.mxu1 %v14277_v10  ;;  %v14307_v10 = vld [vmem:[%s17564_s3 + $0xa0c] ss:$16 sps:$4 sm:$0xff]  }
 0x3f9   :  { %5803 = vmatpush2.bf16.msra.mxu0 %v14278_v22  ;;  %v12626_v22 = vcombine.high %v6160_v28, %v6164_v24 }
 0x3fa   :  { %5762 = vmatpush2.bf16.msra.mxu1 %v14275_v63  ;;  %5804 = vmatprep.subr.bf16.mxu0 %v14283_v12  ;;  %v6152_v63 = vld [vmem:[#allocation7 + $0x80] sm:$0xff] }
 0x3fb   :  { %5817 = vmatprep.subr.bf16.mxu1 %v14286_v44  ;;  %v6156_v12 = vld [vmem:[#allocation7 + $0xa0] sm:$0xff]  ;;  %v12625_v44 = vcombine.low %v6160_v28, %v6164_v24  ;;  %v14328_v24 = vld [vmem:[%s17564_s3 + $0xb2c] ss:$16 sps:$4 sm:$0xff]  }
 0x3fd   :  { %v3908_v52 = vpop.f32.mrf.mxu1  ;;  %5764 = vmatmul.mubr.bf16.vlgmr.msra.gmra.mxu1 %v15410_v21  ;;  %5805 = vmatpush2.bf16.msra.mxu0 %v14281_v47  ;;  %v14310_v47 = vld [vmem:[%s17564_s3 + $0xbec] ss:$16 sps:$4 sm:$0xff]  }
 0x3fe   :  { %v16216_v40 = vadd.f32 %v3908_v52, %v3865_v41  ;;  %5818 = vmatpush1.bf16.msra.mxu1 %v14284_v58  ;;  %5849 = vmatprep.mubr.bf16.mxu1 %v15420_v19  ;;  %v14290_v19 = vld [vmem:[%s17564_s3 + $0xaa8] ss:$16 sps:$4 sm:$0xff]   ;;  %v12618_v58 = vcombine.high %v6152_v63, %v6156_v12 }
 0x3ff   :  { %v3910_v51 = vpop.f32.mrf.mxu1  ;;  %5819 = vmatprep.subr.bf16.mxu1 %v14289_v27  ;;  %7684 = vmatprep.subr.bf16.mxu0 %v12658_v50  ;;  %v14305_v41 = vld [vmem:[%s17564_s3 + $0xa08] ss:$16 sps:$4 sm:$0xff]   ;;  %v6148_v27 = vld [vmem:[#allocation7 + $0x60] sm:$0xff] }
 0x400   :  { %v16225_v9 = vadd.f32 %v3910_v51, %v3867_v43  ;;  %5807 = vmatmul.mubr.bf16.vlgmr.msra.gmra.mxu0 %v15284_v5  ;;  %v14293_v5 = vld [vmem:[%s17564_s3 + $0xa88] ss:$16 sps:$4 sm:$0xff]   ;;  %v6144_v43 = vld [vmem:[#allocation7 + $0x40] sm:$0xff] }
 0x401   :  { %v3912_v4 = vpop.f32.mrf.mxu1  ;;  %7685 = vmatpush1.bf16.msra.mxu0 %v12657_v60  ;;  %v14308_v52 = vld [vmem:[%s17564_s3 + $0xbe8] ss:$16 sps:$4 sm:$0xff]   ;;  %v12610_v51 = vcombine.high %v6144_v43, %v6148_v27  ;;  %v6248_v50 = vld [vmem:[#allocation7 + $0x380] sm:$0xff] }
 0x402   :  { %v16228_v15 = vadd.f32 %v3912_v4, %v3869_v61  ;;  %5820 = vmatpush1.bf16.msra.mxu1 %v14287_v23  ;;  %7686 = vmatprep.subr.bf16.mxu0 %v12650_v29  ;;  %v12617_v23 = vcombine.low %v6152_v63, %v6156_v12  ;;  %v14313_v61 = vld [vmem:[%s17564_s3 + $0xbcc] ss:$16 sps:$4 sm:$0xff]   ;;  %v6140_v4 = vld [vmem:[#allocation7 + $0x20] sm:$0xff]  ;;  %v14317_v29 = vld [vmem:[%s17564_s3 + $0xb88] ss:$16 sps:$4 sm:$0xff]   ;;  %v12713_v13 = vcombine.low %v6248_v50, %v6252_v35 }
 0x403   :  { %v3914_v26 = vpop.f32.mrf.mxu1  ;;  %5821 = vmatprep.subr.bf16.mxu1 %v14292_v57  ;;  %v6136_v57 = vld [vmem:[#allocation7] sm:$0xff]  ;;  %v14329_v63 = vld [vmem:[%s17564_s3 + $0xb08] ss:$16 sps:$4 sm:$0xff]  }
 0x404   :  { %v16236_v3 = vadd.f32 %v3914_v26, %v3871_v39  ;;  %v12609_v39 = vcombine.low %v6144_v43, %v6148_v27  ;;  %v14316_v26 = vld [vmem:[%s17564_s3 + $0xbac] ss:$16 sps:$4 sm:$0xff]   ;;  %v12601_v56 = vcombine.low %v6136_v57, %v6140_v4  ;;  %v6224_v12 = vld [vmem:[#allocation7 + $0x2c0] sm:$0xff] }
 0x405   :  { %7687 = vmatpush1.bf16.msra.mxu0 %v12649_v18  ;;  %v6240_v18 = vld [vmem:[#allocation7 + $0x340] sm:$0xff] }
 0x406   :  { %5822 = vmatpush1.bf16.msra.mxu1 %v14290_v19  ;;  %7688 = vmatprep.subr.bf16.mxu0 %v12642_v49  ;;  %v14311_v19 = vld [vmem:[%s17564_s3 + $0xbc8] ss:$16 sps:$4 sm:$0xff]   ;;  %v6220_v43 = vld [vmem:[#allocation7 + $0x2a0] sm:$0xff] }
 0x407   :  { %5823 = vmatprep.subr.bf16.mxu1 %v14295_v17  ;;  %v12602_v17 = vcombine.high %v6136_v57, %v6140_v4  ;;  %v14320_v49 = vld [vmem:[%s17564_s3 + $0xb68] ss:$16 sps:$4 sm:$0xff]   ;;  %v6200_v4 = vld [vmem:[#allocation7 + $0x200] sm:$0xff] }
 0x409   :  { %7689 = vmatpush1.bf16.msra.mxu0 %v12641_v20  ;;  %v6232_v20 = vld [vmem:[#allocation7 + $0x300] sm:$0xff] }
 0x40a   :  { %5824 = vmatpush1.bf16.msra.mxu1 %v14293_v5  ;;  %7690 = vmatprep.subr.bf16.mxu0 %v12634_v45  ;;  %v6256_v5 = vld [vmem:[#allocation7 + $0x3c0] sm:$0xff]  ;;  %v14323_v45 = vld [vmem:[%s17564_s3 + $0xb48] ss:$16 sps:$4 sm:$0xff]  }
 0x40b   :  { %5825 = vmatprep.subr.bf16.mxu1 %v14298_v55  ;;  %v14319_v55 = vld [vmem:[%s17564_s3 + $0xb8c] ss:$16 sps:$4 sm:$0xff]   ;;  %v12722_v60 = vcombine.high %v6256_v5, %v6260_v25  ;;  %v12721_v48 = vcombine.low %v6256_v5, %v6260_v25 }
 0x40c   :  { %v16314_v5 = vld [vmem:[#allocation7 + $0x1c8] sm:$0xff] }
 0x40d   :  { %7691 = vmatpush1.bf16.msra.mxu0 %v12633_v14  ;;  %v14326_v14 = vld [vmem:[%s17564_s3 + $0xb28] ss:$16 sps:$4 sm:$0xff]  }
 0x40e   :  { %5826 = vmatpush1.bf16.msra.mxu1 %v14296_v6  ;;  %7692 = vmatprep.subr.bf16.mxu0 %v12626_v22  ;;  %v12714_v6 = vcombine.high %v6248_v50, %v6252_v35  ;;  %v14331_v22 = vld [vmem:[%s17564_s3 + $0xb0c] ss:$16 sps:$4 sm:$0xff]   ;;  %v6312_v50 = vld [vmem:[#allocation7 + $0x580] sm:$0xff] }
 0x40f   :  { %5827 = vmatprep.subr.bf16.mxu1 %v14301_v54  ;;  %v6244_v54 = vld [vmem:[#allocation7 + $0x360] sm:$0xff] }
 0x410   :  { %v12705_v28 = vcombine.low %v6240_v18, %v6244_v54  ;;  %v6316_v35 = vld [vmem:[#allocation7 + $0x5a0] sm:$0xff] }
 0x411   :  { %7693 = vmatpush1.bf16.msra.mxu0 %v12625_v44 }
 0x412   :  { %5828 = vmatpush1.bf16.msra.mxu1 %v14299_v32  ;;  %7694 = vmatprep.subr.bf16.mxu0 %v12618_v58  ;;  %v12706_v32 = vcombine.high %v6240_v18, %v6244_v54  ;;  %v6216_v58 = vld [vmem:[#allocation7 + $0x280] sm:$0xff] }
 0x413   :  { %5829 = vmatprep.subr.bf16.mxu1 %v14304_v11  ;;  %v6236_v11 = vld [vmem:[#allocation7 + $0x320] sm:$0xff]  ;;  %v12682_v27 = vcombine.high %v6216_v58, %v6220_v43 }
 0x415   :  { %7695 = vmatpush1.bf16.msra.mxu0 %v12617_v23  ;;  %v6208_v23 = vld [vmem:[#allocation7 + $0x240] sm:$0xff] }
 0x416   :  { %5830 = vmatpush1.bf16.msra.mxu1 %v14302_v33  ;;  %7696 = vmatprep.subr.bf16.mxu0 %v12610_v51  ;;  %v12698_v33 = vcombine.high %v6232_v20, %v6236_v11 }
 0x417   :  { %5831 = vmatprep.subr.bf16.mxu1 %v14307_v10  ;;  %v12697_v10 = vcombine.low %v6232_v20, %v6236_v11  ;;  %v6288_v20 = vld [vmem:[#allocation7 + $0x4c0] sm:$0xff] }
 0x418   :  { %v6292_v11 = vld [vmem:[#allocation7 + $0x4e0] sm:$0xff] }
 0x419   :  { %7697 = vmatpush1.bf16.msra.mxu0 %v12609_v39 }
 0x41a   :  { %5832 = vmatpush1.bf16.msra.mxu1 %v14305_v41  ;;  %7698 = vmatprep.subr.bf16.mxu0 %v12602_v17  ;;  %v6228_v41 = vld [vmem:[#allocation7 + $0x2e0] sm:$0xff] }
 0x41b   :  { %5833 = vmatprep.subr.bf16.mxu1 %v14310_v47  ;;  %v12690_v44 = vcombine.high %v6224_v12, %v6228_v41  ;;  %v12689_v47 = vcombine.low %v6224_v12, %v6228_v41  ;;  %v6324_v17 = vld [vmem:[#allocation7 + $0x5e0] sm:$0xff] }
 0x41d   :  { %7699 = vmatpush1.bf16.msra.mxu0 %v12601_v56 }
 0x41e   :  { %5834 = vmatpush2.bf16.msra.mxu1 %v14308_v52  ;;  %7700 = vmatprep.subr.bf16.mxu0 %v12722_v60  ;;  %v12681_v52 = vcombine.low %v6216_v58, %v6220_v43  ;;  %v16322_v58 = vpop.f32.mrf.mxu0 }
 0x41f   :  { %5835 = vmatprep.subr.bf16.mxu1 %v14313_v61  ;;  %v6212_v61 = vld [vmem:[#allocation7 + $0x260] sm:$0xff] }
 0x420   :  { %v12674_v51 = vcombine.high %v6208_v23, %v6212_v61  ;;  %v12673_v57 = vcombine.low %v6208_v23, %v6212_v61  ;;  %v6388_v23 = vld [vmem:[#allocation7 + $0x7e0] sm:$0xff]  ;;  %v16324_v61 = vpop.f32.mrf.mxu0 }
 0x421   :  { %7701 = vmatpush2.bf16.msra.mxu0 %v12721_v48  ;;  %v12778_v48 = vcombine.high %v6312_v50, %v6316_v35 }
 0x422   :  { %5836 = vmatpush2.bf16.msra.mxu1 %v14311_v19  ;;  %7702 = vmatprep.subr.bf16.mxu0 %v12714_v6  ;;  %v6204_v19 = vld [vmem:[#allocation7 + $0x220] sm:$0xff] }
 0x423   :  { %5837 = vmatprep.subr.bf16.mxu1 %v14316_v26  ;;  %v12666_v39 = vcombine.high %v6200_v4, %v6204_v19  ;;  %v12665_v26 = vcombine.low %v6200_v4, %v6204_v19  ;;  %v6308_v6 = vld [vmem:[#allocation7 + $0x560] sm:$0xff] }
 0x424   :  { %v6376_v19 = vld [vmem:[#allocation7 + $0x780] sm:$0xff] }
 0x425   :  { %7703 = vmatpush2.bf16.msra.mxu0 %v12713_v13  ;;  %v6300_v13 = vld [vmem:[#allocation7 + $0x520] sm:$0xff] }
 0x426   :  { %5838 = vmatpush2.bf16.msra.mxu1 %v14314_v42  ;;  %7704 = vmatprep.subr.bf16.mxu0 %v12706_v32  ;;  %v16316_v42 = vld [vmem:[#allocation7 + $0x1e8] sm:$0xff] }
 0x427   :  { %5839 = vmatprep.subr.bf16.mxu1 %v14319_v55  ;;  %v12659_v55 = vcombine.low %v16314_v5, %v16316_v42  ;;  %v12660_v60 = vcombine.high %v16314_v5, %v16316_v42  ;;  %v6157_v5 = vld [vmem:[#allocation7 + $0xa8] sm:$0xff] }
 0x429   :  { %7705 = vmatpush2.bf16.msra.mxu0 %v12705_v28  ;;  %v12754_v28 = vcombine.high %v6288_v20, %v6292_v11 }
 0x42a   :  { %5840 = vmatpush2.bf16.msra.mxu1 %v14317_v29  ;;  %7706 = vmatprep.subr.bf16.mxu0 %v12698_v33  ;;  %v12777_v29 = vcombine.low %v6312_v50, %v6316_v35  ;;  %v6284_v33 = vld [vmem:[#allocation7 + $0x4a0] sm:$0xff] }
 0x42b   :  { %5841 = vmatprep.subr.bf16.mxu1 %v14322_v16  ;;  %v6304_v16 = vld [vmem:[#allocation7 + $0x540] sm:$0xff] }
 0x42c   :  { %v12769_v18 = vcombine.low %v6304_v16, %v6308_v6  ;;  %v12770_v54 = vcombine.high %v6304_v16, %v6308_v6  ;;  %v6360_v6 = vld [vmem:[#allocation7 + $0x700] sm:$0xff] }
 0x42d   :  { %7707 = vmatpush2.bf16.msra.mxu0 %v12697_v10 }
 0x42e   :  { %5842 = vmatpush2.bf16.msra.mxu1 %v14320_v49  ;;  %7708 = vmatprep.subr.bf16.mxu0 %v12690_v44  ;;  %v6296_v49 = vld [vmem:[#allocation7 + $0x500] sm:$0xff] }
 0x42f   :  { %5843 = vmatprep.subr.bf16.mxu1 %v14325_v2  ;;  %v12761_v2 = vcombine.low %v6296_v49, %v6300_v13  ;;  %v12762_v32 = vcombine.high %v6296_v49, %v6300_v13  ;;  %v6264_v44 = vld [vmem:[#allocation7 + $0x400] sm:$0xff] }
 0x431   :  { %7709 = vmatpush2.bf16.msra.mxu0 %v12689_v47  ;;  %v6268_v47 = vld [vmem:[#allocation7 + $0x420] sm:$0xff] }
 0x432   :  { %5844 = vmatpush2.bf16.msra.mxu1 %v14323_v45  ;;  %7710 = vmatprep.subr.bf16.mxu0 %v12682_v27  ;;  %v12753_v45 = vcombine.low %v6288_v20, %v6292_v11  ;;  %v12729_v43 = vcombine.low %v6264_v44, %v6268_v47  ;;  %v12730_v27 = vcombine.high %v6264_v44, %v6268_v47 }
 0x433   :  { %5845 = vmatprep.subr.bf16.mxu1 %v14328_v24  ;;  %v6280_v24 = vld [vmem:[#allocation7 + $0x480] sm:$0xff] }
 0x434   :  { %v12746_v10 = vcombine.high %v6280_v24, %v6284_v33 }
 0x435   :  { %7711 = vmatpush2.bf16.msra.mxu0 %v12681_v52  ;;  %v6384_v52 = vld [vmem:[#allocation7 + $0x7c0] sm:$0xff] }
 0x436   :  { %5846 = vmatpush2.bf16.msra.mxu1 %v14326_v14  ;;  %7712 = vmatprep.subr.bf16.mxu0 %v12674_v51  ;;  %v12745_v14 = vcombine.low %v6280_v24, %v6284_v33  ;;  %v12849_v51 = vcombine.low %v6384_v52, %v6388_v23 }
 0x437   :  { %5847 = vmatprep.subr.bf16.mxu1 %v14331_v22  ;;  %v6272_v22 = vld [vmem:[#allocation7 + $0x440] sm:$0xff] }
 0x439   :  { %7713 = vmatpush2.bf16.msra.mxu0 %v12673_v57  ;;  %v12850_v57 = vcombine.high %v6384_v52, %v6388_v23 }
 0x43a   :  { %5848 = vmatpush2.bf16.msra.mxu1 %v14329_v63  ;;  %7714 = vmatprep.subr.bf16.mxu0 %v12666_v39  ;;  %v6276_v63 = vld [vmem:[#allocation7 + $0x460] sm:$0xff] }
 0x43b   :  { %v12737_v12 = vcombine.low %v6272_v22, %v6276_v63  ;;  %v12738_v41 = vcombine.high %v6272_v22, %v6276_v63  ;;  %v6380_v39 = vld [vmem:[#allocation7 + $0x7a0] sm:$0xff] }
 0x43d   :  { %5850 = vmatmul.mubr.bf16.vlgmr.msra.gmra.mxu1 %v15410_v21  ;;  %7715 = vmatpush2.bf16.msra.mxu0 %v12665_v26  ;;  %v6320_v21 = vld [vmem:[#allocation7 + $0x5c0] sm:$0xff]  ;;  %v16326_v4 = vpop.f32.mrf.mxu1  ;;  %v16328_v26 = vpop.f32.mrf.mxu0 }
 0x43e   :  { %v12786_v25 = vcombine.high %v6320_v21, %v6324_v17  ;;  %v12785_v56 = vcombine.low %v6320_v21, %v6324_v17  ;;  %7766 = vmatprep.subr.bf16.mxu0 %v12660_v60  ;;  %v12841_v21 = vcombine.low %v6376_v19, %v6380_v39  ;;  %v12842_v17 = vcombine.high %v6376_v19, %v6380_v39  ;;  %v6372_v60 = vld [vmem:[#allocation7 + $0x760] sm:$0xff] }
 0x43f   :  { %v16332_v50 = vpop.f32.mrf.mxu0 }
 0x440   :  { %7725 = vmatprep.subr.bf16.mxu1 %v12786_v25  ;;  %v16330_v25 = vpop.f32.mrf.mxu1 }
 0x441   :  { %7726 = vmatpush1.bf16.msra.mxu1 %v12785_v56  ;;  %v6368_v56 = vld [vmem:[#allocation7 + $0x740] sm:$0xff]  ;;  %v4859_v16 = vpop.f32.mrf.mxu0 }
 0x442   :  { %7727 = vmatprep.subr.bf16.mxu1 %v12778_v48  ;;  %v12833_v35 = vcombine.low %v6368_v56, %v6372_v60  ;;  %v16334_v48 = vpop.f32.mrf.mxu1 }
 0x443   :  { %v4861_v20 = vpop.f32.mrf.mxu0 }
 0x445   :  { %7728 = vmatpush1.bf16.msra.mxu1 %v12777_v29  ;;  %v12834_v29 = vcombine.high %v6368_v56, %v6372_v60  ;;  %v4863_v63 = vpop.f32.mrf.mxu0  ;;  %v6336_v60 = vld [vmem:[#allocation7 + $0x640] sm:$0xff] }
 0x446   :  { %7729 = vmatprep.subr.bf16.mxu1 %v12770_v54  ;;  %v2976_v54 = vld [vmem:[%s17567_s6] sm:$0xf] }
 0x447   :  { %v3933_v11 = vrot.slane %v2976_v54, %v15023_v59  ;;  %v4865_v39 = vpop.f32.mrf.mxu0 }
 0x449   :  { %7730 = vmatpush1.bf16.msra.mxu1 %v12769_v18  ;;  %v6364_v18 = vld [vmem:[#allocation7 + $0x720] sm:$0xff] }
 0x44a   :  { %7731 = vmatprep.subr.bf16.mxu1 %v12762_v32  ;;  %v12825_v49 = vcombine.low %v6360_v6, %v6364_v18  ;;  %v12826_v13 = vcombine.high %v6360_v6, %v6364_v18  ;;  %v16340_v32 = vpop.f32.mrf.mxu1  ;;  %v6332_v18 = vld [vmem:[#allocation7 + $0x620] sm:$0xff] }
 0x44d   :  { %7732 = vmatpush1.bf16.msra.mxu1 %v12761_v2  ;;  %v3929_v2 = vrot.slane %v2976_v54, %v14781_v36  ;;  %v9824_v36 = vld [vmem:[#allocation8 + $0xd0] sm:$0xff] }
 0x44e   :  { %7733 = vmatprep.subr.bf16.mxu1 %v12754_v28  ;;  %v6356_v28 = vld [vmem:[#allocation7 + $0x6e0] sm:$0xff] }
 0x451   :  { %7734 = vmatpush1.bf16.msra.mxu1 %v12753_v45  ;;  %v6352_v45 = vld [vmem:[#allocation7 + $0x6c0] sm:$0xff] }
 0x452   :  { %7735 = vmatprep.subr.bf16.mxu1 %v12746_v10  ;;  %v12818_v33 = vcombine.high %v6352_v45, %v6356_v28  ;;  %v12817_v22 = vcombine.low %v6352_v45, %v6356_v28  ;;  %v3823_v28 = vadd.f32 %v16167_v8, %v16142_v7  ;;  %v4819_v7 = vadd.f32 %v16330_v25, %v16324_v61 }
 0x453   :  { %v4821_v8 = vadd.f32 %v16334_v48, %v16328_v26 }
 0x455   :  { %7736 = vmatpush1.bf16.msra.mxu1 %v12745_v14  ;;  %v3940_v14 = vadd.f32 %v3929_v2, %v16216_v40 }
 0x456   :  { %7737 = vmatprep.subr.bf16.mxu1 %v12738_v41  ;;  %v3941_v41 = vadd.f32 %v3933_v11, %v16225_v9 }
 0x459   :  { %7738 = vmatpush1.bf16.msra.mxu1 %v12737_v12 }
 0x45a   :  { %7739 = vmatprep.subr.bf16.mxu1 %v12730_v27  ;;  %v6348_v27 = vld [vmem:[#allocation7 + $0x6a0] sm:$0xff] }
 0x45d   :  { %7740 = vmatpush1.bf16.msra.mxu1 %v12729_v43  ;;  %v6344_v43 = vld [vmem:[#allocation7 + $0x680] sm:$0xff] }
 0x45e   :  { %7741 = vmatprep.subr.bf16.mxu1 %v12850_v57  ;;  %v12810_v23 = vcombine.high %v6344_v43, %v6348_v27  ;;  %v12809_v19 = vcombine.low %v6344_v43, %v6348_v27 }
 0x461   :  { %7742 = vmatpush2.bf16.msra.mxu1 %v12849_v51  ;;  %v3944_v51 = vadd.f32 %v3929_v2, %v16228_v15  ;;  %v6328_v15 = vld [vmem:[#allocation7 + $0x600] sm:$0xff]  ;;  %v16355_v2 = vld [vmem:[#allocation7 + $0x5c8] sm:$0xff] }
 0x462   :  { %7743 = vmatprep.subr.bf16.mxu1 %v12842_v17  ;;  %v3945_v17 = vadd.f32 %v3933_v11, %v16236_v3  ;;  %v16357_v3 = vld [vmem:[#allocation7 + $0x5e8] sm:$0xff] }
 0x463   :  { %v12787_v11 = vcombine.low %v16355_v2, %v16357_v3 }
 0x465   :  { %7744 = vmatpush2.bf16.msra.mxu1 %v12841_v21 }
 0x466   :  { %7745 = vmatprep.subr.bf16.mxu1 %v12834_v29 }
 0x469   :  { %7746 = vmatpush2.bf16.msra.mxu1 %v12833_v35  ;;  %v6340_v35 = vld [vmem:[#allocation7 + $0x660] sm:$0xff] }
 0x46a   :  { %7747 = vmatprep.subr.bf16.mxu1 %v12826_v13  ;;  %v12802_v29 = vcombine.high %v6336_v60, %v6340_v35  ;;  %v12801_v6 = vcombine.low %v6336_v60, %v6340_v35  ;;  %v12793_v13 = vcombine.low %v6328_v15, %v6332_v18  ;;  %v6185_v35 = vld [vmem:[#allocation7 + $0x188] sm:$0xff] }
 0x46d   :  { %7748 = vmatpush2.bf16.msra.mxu1 %v12825_v49  ;;  %v12794_v49 = vcombine.high %v6328_v15, %v6332_v18 }
 0x46e   :  { %7749 = vmatprep.subr.bf16.mxu1 %v12818_v33 }
 0x471   :  { %7750 = vmatpush2.bf16.msra.mxu1 %v12817_v22  ;;  %v3827_v22 = vadd.f32 %v16199_v31, %v16172_v30  ;;  %v4823_v30 = vadd.f32 %v16340_v32, %v16332_v50 }
 0x472   :  { %7751 = vmatprep.subr.bf16.mxu1 %v12810_v23 }
 0x475   :  { %7752 = vmatpush2.bf16.msra.mxu1 %v12809_v19 }
 0x476   :  { %7753 = vmatprep.subr.bf16.mxu1 %v12802_v29  ;;  %v6189_v29 = vld [vmem:[#allocation7 + $0x1a8] sm:$0xff] }
 0x477   :  { %v12652_v18 = vcombine.high %v6185_v35, %v6189_v29 }
 0x479   :  { %7754 = vmatpush2.bf16.msra.mxu1 %v12801_v6 }
 0x47a   :  { %7755 = vmatprep.subr.bf16.mxu1 %v12794_v49  ;;  %v6177_v49 = vld [vmem:[#allocation7 + $0x148] sm:$0xff] }
 0x47d   :  { %v4902_v24 = vpop.f32.mrf.mxu1  ;;  %7756 = vmatpush2.bf16.msra.mxu1 %v12793_v13  ;;  %v6181_v13 = vld [vmem:[#allocation7 + $0x168] sm:$0xff] }
 0x47e   :  { %v4903_v10 = vadd.f32 %v4902_v24, %v4859_v16  ;;  %v3921_v24 = vrot.slane %v2976_v54, %v14784_v37 }
 0x47f   :  { %v4904_v12 = vpop.f32.mrf.mxu1 }
 0x480   :  { %v16345_v44 = vadd.f32 %v4903_v10, %v3940_v14  ;;  %v4905_v47 = vadd.f32 %v4904_v12, %v4861_v20  ;;  %v12788_v20 = vcombine.high %v16355_v2, %v16357_v3  ;;  %v5722_v45 = vpop.f32.mrf.mxu0  ;;  %v3825_v14 = vadd.f32 %v16183_v53, %v16156_v1 }
 0x481   :  { %v4906_v52 = vpop.f32.mrf.mxu1  ;;  %v3925_v10 = vrot.slane %v2976_v54, %v14787_v38  ;;  %v3942_v27 = vadd.f32 %v3921_v24, %v3827_v22  ;;  %v6165_v22 = vld [vmem:[#allocation7 + $0xe8] sm:$0xff]  ;;  %v17875_v38 = vmov 0  }
 0x482   :  { %v16348_v57 = vadd.f32 %v4905_v47, %v3941_v41  ;;  %v4907_v40 = vadd.f32 %v4906_v52, %v4863_v63  ;;  %7807 = vmatprep.subr.bf16.mxu1 %v12788_v20  ;;  %v5724_v33 = vpop.f32.mrf.mxu0  ;;  %v4817_v63 = vadd.f32 %v16326_v4, %v16322_v58  ;;  %v3829_v41 = vadd.f32 %v16210_v62, %v16188_v46 }
 0x483   :  { %v4908_v21 = vpop.f32.mrf.mxu1  ;;  %v3938_v47 = vadd.f32 %v3921_v24, %v3823_v28  ;;  %v3939_v43 = vadd.f32 %v3925_v10, %v3825_v14  ;;  %v4915_v62 = vadd.f32 %v4821_v8, %v3942_v27  ;;  %v12651_v20 = vcombine.low %v6185_v35, %v6189_v29  ;;  %v6169_v28 = vld [vmem:[#allocation7 + $0x108] sm:$0xff] }
 0x484   :  { %v16351_v9 = vadd.f32 %v4907_v40, %v3944_v51  ;;  %v4909_v56 = vadd.f32 %v4908_v21, %v4865_v39  ;;  %v5726_v1 = vpop.f32.mrf.mxu0  ;;  %v3943_v52 = vadd.f32 %v3925_v10, %v3829_v41  ;;  %v6173_v24 = vld [vmem:[#allocation7 + $0x128] sm:$0xff] }
 0x485   :  { %v4911_v58 = vadd.f32 %v4817_v63, %v3938_v47  ;;  %v4912_v46 = vadd.f32 %v4819_v7, %v3939_v43  ;;  %v12636_v14 = vcombine.high %v6169_v28, %v6173_v24  ;;  %v6161_v10 = vld [vmem:[#allocation7 + $0xc8] sm:$0xff]  ;;  %v12635_v63 = vcombine.low %v6169_v28, %v6173_v24 }
 0x486   :  { %v16353_v16 = vadd.f32 %v4909_v56, %v3945_v17  ;;  %v5728_v61 = vpop.f32.mrf.mxu0  ;;  %v4916_v26 = vadd.f32 %v4823_v30, %v3943_v52  ;;  %v6153_v41 = vld [vmem:[#allocation7 + $0x88] sm:$0xff]  ;;  %v12627_v42 = vcombine.low %v6161_v10, %v6165_v22 }
 0x487   :  { %v6145_v7 = vld [vmem:[#allocation7 + $0x48] sm:$0xff]  ;;  %v12619_v47 = vcombine.low %v6153_v41, %v6157_v5 }
 0x488   :  { %v6149_v8 = vld [vmem:[#allocation7 + $0x68] sm:$0xff] }
 0x489   :  { %v12611_v43 = vcombine.low %v6145_v7, %v6149_v8  ;;  %v6257_v30 = vld [vmem:[#allocation7 + $0x3c8] sm:$0xff] }
 0x48a   :  { %v6249_v52 = vld [vmem:[#allocation7 + $0x388] sm:$0xff] }
 0x48b   :  { %v6217_v29 = vld [vmem:[#allocation7 + $0x288] sm:$0xff] }
 0x48c   :  { %v6209_v24 = vld [vmem:[#allocation7 + $0x248] sm:$0xff] }
 0x4bd   :  { %v5765_v12 = vpop.f32.mrf.mxu1 }
 0x4be   :  { %v5766_v53 = vadd.f32 %v5765_v12, %v5722_v45  ;;  %v12644_v45 = vcombine.high %v6177_v49, %v6181_v13  ;;  %v12628_v12 = vcombine.high %v6161_v10, %v6165_v22 }
 0x4bf   :  { %v5767_v54 = vpop.f32.mrf.mxu1 }
 0x4c0   :  { %v5768_v31 = vadd.f32 %v5767_v54, %v5724_v33  ;;  %v5860_v25 = vadd.f32 %v5766_v53, %v4911_v58  ;;  %v12643_v33 = vcombine.low %v6177_v49, %v6181_v13  ;;  %v6137_v53 = vld [vmem:[#allocation7 + $0x8] sm:$0xff] }
 0x4c1   :  { %v5769_v4 = vpop.f32.mrf.mxu1  ;;  %v6141_v54 = vld [vmem:[#allocation7 + $0x28] sm:$0xff] }
 0x4c2   :  { %v5770_v23 = vadd.f32 %v5769_v4, %v5726_v1  ;;  %v5861_v48 = vadd.f32 %v5768_v31, %v4912_v46  ;;  %v5868_v17 = vmax.f32 %v5860_v25, 0.0  ;;  %v12612_v1 = vcombine.high %v6145_v7, %v6149_v8  ;;  %v6261_v31 = vld [vmem:[#allocation7 + $0x3e8] sm:$0xff] }
 0x4c3   :  { %v5771_v51 = vpop.f32.mrf.mxu1  ;;  %v12604_v27 = vcombine.high %v6137_v53, %v6141_v54  ;;  %v12603_v58 = vcombine.low %v6137_v53, %v6141_v54  ;;  %v12724_v4 = vcombine.high %v6257_v30, %v6261_v31  ;;  %v6253_v46 = vld [vmem:[#allocation7 + $0x3a8] sm:$0xff] }
 0x4c4   :  { %v5864_v40 = vadd.f32 %v5770_v23, %v4915_v62  ;;  %v5772_v19 = vadd.f32 %v5771_v51, %v5728_v61  ;;  %v5869_v56 = vmax.f32 %v5861_v48, 0.0  ;;  %v12723_v62 = vcombine.low %v6257_v30, %v6261_v31  ;;  %v6241_v61 = vld [vmem:[#allocation7 + $0x348] sm:$0xff] }
 0x4c5   :  { %v12716_v23 = vcombine.high %v6249_v52, %v6253_v46  ;;  %v6245_v25 = vld [vmem:[#allocation7 + $0x368] sm:$0xff]  ;;  %v12715_v51 = vcombine.low %v6249_v52, %v6253_v46 }
 0x4c6   :  { %v5872_v39 = vmax.f32 %v5864_v40, 0.0  ;;  %v5865_v21 = vadd.f32 %v5772_v19, %v4916_v26  ;;  %v12708_v26 = vcombine.high %v6241_v61, %v6245_v25  ;;  %v6233_v48 = vld [vmem:[#allocation7 + $0x308] sm:$0xff]  ;;  %v12707_v19 = vcombine.low %v6241_v61, %v6245_v25 }
 0x4c7   :  { %v6237_v40 = vld [vmem:[#allocation7 + $0x328] sm:$0xff] }
 0x4c8   :  { %v5873_v60 = vmax.f32 %v5865_v21, 0.0  ;;  %v16381_v50 = vpack.c.bf16 %v5872_v39, %v5868_v17  ;;  %v12700_v39 = vcombine.high %v6233_v48, %v6237_v40  ;;  %v6225_v21 = vld [vmem:[#allocation7 + $0x2c8] sm:$0xff] }
 0x4c9   :  { %v6229_v17 = vld [vmem:[#allocation7 + $0x2e8] sm:$0xff] }
 0x4ca   :  { %v16383_v32 = vpack.c.bf16 %v5873_v60, %v5869_v56  ;;  %v16389_v15 = vrot.slane %v16381_v50, 4  ;;  %v5808_v56 = vpop.f32.mrf.mxu0  ;;  %v12699_v60 = vcombine.low %v6233_v48, %v6237_v40  ;;  %v12692_v35 = vcombine.high %v6225_v21, %v6229_v17  ;;  %v6205_v7 = vld [vmem:[#allocation7 + $0x228] sm:$0xff] }
 0x4cb   :  { %v12691_v13 = vcombine.low %v6225_v21, %v6229_v17  ;;  %v6313_v61 = vld [vmem:[#allocation7 + $0x588] sm:$0xff] }
 0x4cc   :  { %v16386_v6 = vrot.slane %v16383_v32, 4  ;;  %v5810_v49 = vpop.f32.mrf.mxu0  ;;  %v6317_v25 = vld [vmem:[#allocation7 + $0x5a8] sm:$0xff] }
 0x4cd   :  { %v6309_v17 = vld [vmem:[#allocation7 + $0x568] sm:$0xff] }
 0x4ce   :  { %7716 = vmatprep.mubr.bf16.mxu0 %v16386_v6 }
 0x4cf   :  { %7717 = vmatmul.mubr.bf16.vlgmr.msra.gmra.mxu0 %v16389_v15 }
 0x4d0   :  { %7767 = vmatpush1.bf16.msra.mxu0 %v12659_v55  ;;  %7798 = vmatprep.mubr.bf16.mxu0 %v16386_v6  ;;  %v12620_v55 = vcombine.high %v6153_v41, %v6157_v5 }
 0x4d1   :  { %7768 = vmatprep.subr.bf16.mxu0 %v12652_v18  ;;  %v6221_v18 = vld [vmem:[#allocation7 + $0x2a8] sm:$0xff] }
 0x4d4   :  { %7769 = vmatpush1.bf16.msra.mxu0 %v12651_v20 }
 0x4d5   :  { %7770 = vmatprep.subr.bf16.mxu0 %v12644_v45  ;;  %v12684_v45 = vcombine.high %v6217_v29, %v6221_v18 }
 0x4d8   :  { %7771 = vmatpush1.bf16.msra.mxu0 %v12643_v33  ;;  %v6213_v33 = vld [vmem:[#allocation7 + $0x268] sm:$0xff] }
 0x4d9   :  { %7772 = vmatprep.subr.bf16.mxu0 %v12636_v14  ;;  %v5812_v14 = vpop.f32.mrf.mxu0  ;;  %v12676_v41 = vcombine.high %v6209_v24, %v6213_v33 }
 0x4db   :  { %v5814_v8 = vpop.f32.mrf.mxu0 }
 0x4dc   :  { %7773 = vmatpush1.bf16.msra.mxu0 %v12635_v63  ;;  %v12683_v63 = vcombine.low %v6217_v29, %v6221_v18 }
 0x4dd   :  { %7774 = vmatprep.subr.bf16.mxu0 %v12628_v12 }
 0x4e0   :  { %7775 = vmatpush1.bf16.msra.mxu0 %v12627_v42 }
 0x4e1   :  { %7776 = vmatprep.subr.bf16.mxu0 %v12620_v55  ;;  %v6201_v55 = vld [vmem:[#allocation7 + $0x208] sm:$0xff] }
 0x4e4   :  { %7777 = vmatpush1.bf16.msra.mxu0 %v12619_v47 }
 0x4e5   :  { %7778 = vmatprep.subr.bf16.mxu0 %v12612_v1 }
 0x4e8   :  { %7779 = vmatpush1.bf16.msra.mxu0 %v12611_v43  ;;  %v12675_v43 = vcombine.low %v6209_v24, %v6213_v33  ;;  %v6289_v33 = vld [vmem:[#allocation7 + $0x4c8] sm:$0xff] }
 0x4e9   :  { %7780 = vmatprep.subr.bf16.mxu0 %v12604_v27  ;;  %v12668_v27 = vcombine.high %v6201_v55, %v6205_v7 }
 0x4ec   :  { %7781 = vmatpush1.bf16.msra.mxu0 %v12603_v58 }
 0x4ed   :  { %7782 = vmatprep.subr.bf16.mxu0 %v12724_v4  ;;  %v6194_v4 = vld [vmem:[#allocation7 + $0x1d0] sm:$0xff] }
 0x4f0   :  { %7783 = vmatpush2.bf16.msra.mxu0 %v12723_v62 }
 0x4f1   :  { %7784 = vmatprep.subr.bf16.mxu0 %v12716_v23  ;;  %v12667_v23 = vcombine.low %v6201_v55, %v6205_v7  ;;  %v6285_v55 = vld [vmem:[#allocation7 + $0x4a8] sm:$0xff]  ;;  %v6154_v7 = vld [vmem:[#allocation7 + $0x90] sm:$0xff] }
 0x4f4   :  { %7785 = vmatpush2.bf16.msra.mxu0 %v12715_v51  ;;  %v6186_v51 = vld [vmem:[#allocation7 + $0x190] sm:$0xff] }
 0x4f5   :  { %7786 = vmatprep.subr.bf16.mxu0 %v12708_v26  ;;  %v6190_v26 = vld [vmem:[#allocation7 + $0x1b0] sm:$0xff] }
 0x4f6   :  { %v12654_v21 = vcombine.high %v6186_v51, %v6190_v26  ;;  %v12653_v29 = vcombine.low %v6186_v51, %v6190_v26 }
 0x4f8   :  { %7787 = vmatpush2.bf16.msra.mxu0 %v12707_v19  ;;  %v6305_v19 = vld [vmem:[#allocation7 + $0x548] sm:$0xff] }
 0x4f9   :  { %7788 = vmatprep.subr.bf16.mxu0 %v12700_v39  ;;  %v12780_v39 = vcombine.high %v6313_v61, %v6317_v25  ;;  %v12772_v18 = vcombine.high %v6305_v19, %v6309_v17  ;;  %v12771_v24 = vcombine.low %v6305_v19, %v6309_v17  ;;  %v6385_v19 = vld [vmem:[#allocation7 + $0x7c8] sm:$0xff]  ;;  %v6262_v17 = vld [vmem:[#allocation7 + $0x3f0] sm:$0xff] }
 0x4fc   :  { %7789 = vmatpush2.bf16.msra.mxu0 %v12699_v60  ;;  %v6182_v60 = vld [vmem:[#allocation7 + $0x170] sm:$0xff] }
 0x4fd   :  { %v5851_v20 = vpop.f32.mrf.mxu1  ;;  %7790 = vmatprep.subr.bf16.mxu0 %v12692_v35  ;;  %v12779_v35 = vcombine.low %v6313_v61, %v6317_v25  ;;  %v6142_v61 = vld [vmem:[#allocation7 + $0x30] sm:$0xff] }
 0x4fe   :  { %v5852_v28 = vadd.f32 %v5851_v20, %v5808_v56  ;;  %v6178_v56 = vld [vmem:[#allocation7 + $0x150] sm:$0xff]  ;;  %v6301_v20 = vld [vmem:[#allocation7 + $0x528] sm:$0xff] }
 0x4ff   :  { %v5853_v10 = vpop.f32.mrf.mxu1  ;;  %v12645_v2 = vcombine.low %v6178_v56, %v6182_v60 }
 0x500   :  { %v5854_v22 = vadd.f32 %v5853_v10, %v5810_v49  ;;  %7791 = vmatpush2.bf16.msra.mxu0 %v12691_v13  ;;  %v5862_v5 = vadd.f32 %v5852_v28, %v16345_v44  ;;  %v6198_v44 = vld [vmem:[#allocation7 + $0x1f0] sm:$0xff]  ;;  %v12646_v49 = vcombine.high %v6178_v56, %v6182_v60  ;;  %v6297_v13 = vld [vmem:[#allocation7 + $0x508] sm:$0xff] }
 0x501   :  { %v5855_v12 = vpop.f32.mrf.mxu1  ;;  %7792 = vmatprep.subr.bf16.mxu0 %v12684_v45  ;;  %v6170_v45 = vld [vmem:[#allocation7 + $0x110] sm:$0xff]  ;;  %v12764_v3 = vcombine.high %v6297_v13, %v6301_v20 }
 0x502   :  { %v5856_v42 = vadd.f32 %v5855_v12, %v5812_v14  ;;  %v5863_v1 = vadd.f32 %v5854_v22, %v16348_v57  ;;  %v5870_v30 = vmax.f32 %v5862_v5, 0.0  ;;  %v12662_v57 = vcombine.high %v6194_v4, %v6198_v44  ;;  %v6174_v28 = vld [vmem:[#allocation7 + $0x130] sm:$0xff]  ;;  %v6293_v14 = vld [vmem:[#allocation7 + $0x4e8] sm:$0xff] }
 0x503   :  { %v5857_v47 = vpop.f32.mrf.mxu1  ;;  %v6162_v10 = vld [vmem:[#allocation7 + $0xd0] sm:$0xff]  ;;  %v12637_v12 = vcombine.low %v6170_v45, %v6174_v28 }
 0x504   :  { %v5866_v53 = vadd.f32 %v5856_v42, %v16351_v9  ;;  %v5858_v54 = vadd.f32 %v5857_v47, %v5814_v8  ;;  %7793 = vmatpush2.bf16.msra.mxu0 %v12683_v63  ;;  %v5871_v52 = vmax.f32 %v5863_v1, 0.0  ;;  %v6166_v22 = vld [vmem:[#allocation7 + $0xf0] sm:$0xff]  ;;  %v12763_v63 = vcombine.low %v6297_v13, %v6301_v20  ;;  %v6281_v42 = vld [vmem:[#allocation7 + $0x488] sm:$0xff] }
 0x505   :  { %7794 = vmatprep.subr.bf16.mxu0 %v12676_v41  ;;  %v12756_v41 = vcombine.high %v6289_v33, %v6293_v14  ;;  %v12630_v5 = vcombine.high %v6162_v10, %v6166_v22  ;;  %v6158_v8 = vld [vmem:[#allocation7 + $0xb0] sm:$0xff]  ;;  %v12755_v47 = vcombine.low %v6289_v33, %v6293_v14  ;;  %v12629_v1 = vcombine.low %v6162_v10, %v6166_v22 }
 0x506   :  { %v5874_v31 = vmax.f32 %v5866_v53, 0.0  ;;  %v5867_v58 = vadd.f32 %v5858_v54, %v16353_v16  ;;  %v12661_v16 = vcombine.low %v6194_v4, %v6198_v44  ;;  %v12748_v53 = vcombine.high %v6281_v42, %v6285_v55  ;;  %v6250_v13 = vld [vmem:[#allocation7 + $0x390] sm:$0xff] }
 0x507   :  { %v12622_v54 = vcombine.high %v6154_v7, %v6158_v8  ;;  %v12621_v4 = vcombine.low %v6154_v7, %v6158_v8  ;;  %v6254_v20 = vld [vmem:[#allocation7 + $0x3b0] sm:$0xff] }
 0x508   :  { %v16401_v46 = vpack.c.bf16 %v5874_v31, %v5870_v30  ;;  %v5875_v62 = vmax.f32 %v5867_v58, 0.0  ;;  %7795 = vmatpush2.bf16.msra.mxu0 %v12675_v43  ;;  %v6273_v43 = vld [vmem:[#allocation7 + $0x448] sm:$0xff]  ;;  %v6146_v30 = vld [vmem:[#allocation7 + $0x50] sm:$0xff]  ;;  %v12747_v58 = vcombine.low %v6281_v42, %v6285_v55  ;;  %v12717_v22 = vcombine.low %v6250_v13, %v6254_v20 }
 0x509   :  { %7796 = vmatprep.subr.bf16.mxu0 %v12668_v27  ;;  %v6277_v27 = vld [vmem:[#allocation7 + $0x468] sm:$0xff]  ;;  %v6150_v31 = vld [vmem:[#allocation7 + $0x70] sm:$0xff] }
 0x50a   :  { %v16403_v9 = vpack.c.bf16 %v5875_v62, %v5871_v52  ;;  %v16409_v40 = vrot.slane %v16401_v46, 4  ;;  %v12740_v44 = vcombine.high %v6273_v43, %v6277_v27  ;;  %v12614_v52 = vcombine.high %v6146_v30, %v6150_v31  ;;  %v6265_v62 = vld [vmem:[#allocation7 + $0x408] sm:$0xff]  ;;  %v6242_v33 = vld [vmem:[#allocation7 + $0x350] sm:$0xff] }
 0x50b   :  { %v12739_v25 = vcombine.low %v6273_v43, %v6277_v27  ;;  %v12613_v51 = vcombine.low %v6146_v30, %v6150_v31  ;;  %v6246_v14 = vld [vmem:[#allocation7 + $0x370] sm:$0xff] }
 0x50c   :  { %7797 = vmatpush2.bf16.msra.mxu0 %v12667_v23  ;;  %v16406_v48 = vrot.slane %v16403_v9, 4  ;;  %v6269_v23 = vld [vmem:[#allocation7 + $0x428] sm:$0xff]  ;;  %v6234_v42 = vld [vmem:[#allocation7 + $0x310] sm:$0xff]  ;;  %v12709_v8 = vcombine.low %v6242_v33, %v6246_v14 }
 0x50d   :  { %7848 = vmatprep.subr.bf16.mxu0 %v12662_v57  ;;  %v6138_v57 = vld [vmem:[#allocation7 + $0x10] sm:$0xff]  ;;  %v12732_v26 = vcombine.high %v6265_v62, %v6269_v23  ;;  %v12731_v56 = vcombine.low %v6265_v62, %v6269_v23 }
 0x50e   :  { %7757 = vmatprep.mubr.bf16.mxu1 %v16406_v48  ;;  %v12605_v60 = vcombine.low %v6138_v57, %v6142_v61  ;;  %v6238_v55 = vld [vmem:[#allocation7 + $0x330] sm:$0xff] }
 0x50f   :  { %7799 = vmatmul.mubr.bf16.vlgmr.msra.gmra.mxu0 %v16389_v15  ;;  %7758 = vmatmul.mubr.bf16.vlgmr.msra.gmra.mxu1 %v16409_v40  ;;  %v6226_v43 = vld [vmem:[#allocation7 + $0x2d0] sm:$0xff]  ;;  %v12701_v31 = vcombine.low %v6234_v42, %v6238_v55 }
 0x510   :  { %7808 = vmatpush1.bf16.msra.mxu1 %v12787_v11  ;;  %7849 = vmatpush1.bf16.msra.mxu0 %v12661_v16  ;;  %v12638_v11 = vcombine.high %v6170_v45, %v6174_v28  ;;  %v12606_v16 = vcombine.high %v6138_v57, %v6142_v61  ;;  %v6230_v27 = vld [vmem:[#allocation7 + $0x2f0] sm:$0xff] }
 0x511   :  { %7880 = vmatprep.mubr.bf16.mxu0 %v16386_v6  ;;  %7839 = vmatprep.mubr.bf16.mxu1 %v16406_v48  ;;  %v6218_v62 = vld [vmem:[#allocation7 + $0x290] sm:$0xff]  ;;  %v12693_v61 = vcombine.low %v6226_v43, %v6230_v27 }
 0x512   :  { %7809 = vmatprep.subr.bf16.mxu1 %v12780_v39  ;;  %7850 = vmatprep.subr.bf16.mxu0 %v12654_v21  ;;  %v6389_v39 = vld [vmem:[#allocation7 + $0x7e8] sm:$0xff]  ;;  %v6258_v21 = vld [vmem:[#allocation7 + $0x3d0] sm:$0xff] }
 0x513   :  { %v12851_v45 = vcombine.low %v6385_v19, %v6389_v39  ;;  %v12725_v28 = vcombine.low %v6258_v21, %v6262_v17  ;;  %v6222_v23 = vld [vmem:[#allocation7 + $0x2b0] sm:$0xff] }
 0x514   :  { %7810 = vmatpush1.bf16.msra.mxu1 %v12779_v35  ;;  %7851 = vmatpush1.bf16.msra.mxu0 %v12653_v29  ;;  %v12852_v35 = vcombine.high %v6385_v19, %v6389_v39  ;;  %v12726_v29 = vcombine.high %v6258_v21, %v6262_v17  ;;  %v6210_v19 = vld [vmem:[#allocation7 + $0x250] sm:$0xff]  ;;  %v12685_v17 = vcombine.low %v6218_v62, %v6222_v23 }
 0x515   :  { %7811 = vmatprep.subr.bf16.mxu1 %v12772_v18  ;;  %7852 = vmatprep.subr.bf16.mxu0 %v12646_v49  ;;  %v6377_v18 = vld [vmem:[#allocation7 + $0x788] sm:$0xff]  ;;  %v6214_v39 = vld [vmem:[#allocation7 + $0x270] sm:$0xff] }
 0x516   :  { %v6381_v49 = vld [vmem:[#allocation7 + $0x7a8] sm:$0xff] }
 0x517   :  { %v12843_v10 = vcombine.low %v6377_v18, %v6381_v49 }
 0x518   :  { %7812 = vmatpush1.bf16.msra.mxu1 %v12771_v24  ;;  %7853 = vmatpush1.bf16.msra.mxu0 %v12645_v2  ;;  %v12844_v24 = vcombine.high %v6377_v18, %v6381_v49  ;;  %v12718_v2 = vcombine.high %v6250_v13, %v6254_v20  ;;  %v6202_v18 = vld [vmem:[#allocation7 + $0x210] sm:$0xff]  ;;  %v12677_v20 = vcombine.low %v6210_v19, %v6214_v39 }
 0x519   :  { %7813 = vmatprep.subr.bf16.mxu1 %v12764_v3  ;;  %7854 = vmatprep.subr.bf16.mxu0 %v12638_v11  ;;  %v6369_v3 = vld [vmem:[#allocation7 + $0x748] sm:$0xff]  ;;  %v6206_v49 = vld [vmem:[#allocation7 + $0x230] sm:$0xff] }
 0x51a   :  { %v6373_v11 = vld [vmem:[#allocation7 + $0x768] sm:$0xff] }
 0x51b   :  { %v12835_v7 = vcombine.low %v6369_v3, %v6373_v11 }
 0x51c   :  { %7814 = vmatpush1.bf16.msra.mxu1 %v12763_v63  ;;  %7855 = vmatpush1.bf16.msra.mxu0 %v12637_v12  ;;  %v12836_v63 = vcombine.high %v6369_v3, %v6373_v11  ;;  %v12710_v12 = vcombine.high %v6242_v33, %v6246_v14  ;;  %v6195_v3 = vld [vmem:[#allocation7 + $0x1d8] sm:$0xff]  ;;  %v12669_v14 = vcombine.low %v6202_v18, %v6206_v49 }
 0x51d   :  { %7815 = vmatprep.subr.bf16.mxu1 %v12756_v41  ;;  %7856 = vmatprep.subr.bf16.mxu0 %v12630_v5  ;;  %v6361_v41 = vld [vmem:[#allocation7 + $0x708] sm:$0xff]  ;;  %v6199_v11 = vld [vmem:[#allocation7 + $0x1f8] sm:$0xff] }
 0x51e   :  { %v6365_v5 = vld [vmem:[#allocation7 + $0x728] sm:$0xff] }
 0x51f   :  { %v12827_v30 = vcombine.low %v6361_v41, %v6365_v5 }
 0x520   :  { %7816 = vmatpush1.bf16.msra.mxu1 %v12755_v47  ;;  %7857 = vmatpush1.bf16.msra.mxu0 %v12629_v1  ;;  %v12828_v47 = vcombine.high %v6361_v41, %v6365_v5  ;;  %v12702_v1 = vcombine.high %v6234_v42, %v6238_v55  ;;  %v6187_v41 = vld [vmem:[#allocation7 + $0x198] sm:$0xff]  ;;  %v12663_v55 = vcombine.low %v6195_v3, %v6199_v11 }
 0x521   :  { %7817 = vmatprep.subr.bf16.mxu1 %v12748_v53  ;;  %7858 = vmatprep.subr.bf16.mxu0 %v12622_v54  ;;  %v6353_v53 = vld [vmem:[#allocation7 + $0x6c8] sm:$0xff]  ;;  %v6191_v5 = vld [vmem:[#allocation7 + $0x1b8] sm:$0xff] }
 0x522   :  { %v6357_v54 = vld [vmem:[#allocation7 + $0x6e8] sm:$0xff] }
 0x523   :  { %v12819_v57 = vcombine.low %v6353_v53, %v6357_v54 }
 0x524   :  { %7818 = vmatpush1.bf16.msra.mxu1 %v12747_v58  ;;  %7859 = vmatpush1.bf16.msra.mxu0 %v12621_v4  ;;  %v12820_v58 = vcombine.high %v6353_v53, %v6357_v54  ;;  %v12694_v4 = vcombine.high %v6226_v43, %v6230_v27  ;;  %v6179_v53 = vld [vmem:[#allocation7 + $0x158] sm:$0xff]  ;;  %v12655_v27 = vcombine.low %v6187_v41, %v6191_v5 }
 0x525   :  { %7819 = vmatprep.subr.bf16.mxu1 %v12740_v44  ;;  %7860 = vmatprep.subr.bf16.mxu0 %v12614_v52  ;;  %v6345_v44 = vld [vmem:[#allocation7 + $0x688] sm:$0xff]  ;;  %v6183_v54 = vld [vmem:[#allocation7 + $0x178] sm:$0xff] }
 0x526   :  { %v6349_v52 = vld [vmem:[#allocation7 + $0x6a8] sm:$0xff] }
 0x527   :  { %v12811_v21 = vcombine.low %v6345_v44, %v6349_v52 }
 0x528   :  { %7820 = vmatpush1.bf16.msra.mxu1 %v12739_v25  ;;  %7861 = vmatpush1.bf16.msra.mxu0 %v12613_v51  ;;  %v12812_v25 = vcombine.high %v6345_v44, %v6349_v52  ;;  %v12686_v51 = vcombine.high %v6218_v62, %v6222_v23  ;;  %v6171_v44 = vld [vmem:[#allocation7 + $0x118] sm:$0xff]  ;;  %v12647_v23 = vcombine.low %v6179_v53, %v6183_v54 }
 0x529   :  { %7821 = vmatprep.subr.bf16.mxu1 %v12732_v26  ;;  %7862 = vmatprep.subr.bf16.mxu0 %v12606_v16  ;;  %v6337_v26 = vld [vmem:[#allocation7 + $0x648] sm:$0xff]  ;;  %v6175_v52 = vld [vmem:[#allocation7 + $0x138] sm:$0xff] }
 0x52a   :  { %v6341_v16 = vld [vmem:[#allocation7 + $0x668] sm:$0xff] }
 0x52b   :  { %v12803_v13 = vcombine.low %v6337_v26, %v6341_v16 }
 0x52c   :  { %7822 = vmatpush1.bf16.msra.mxu1 %v12731_v56  ;;  %7863 = vmatpush1.bf16.msra.mxu0 %v12605_v60  ;;  %v12804_v56 = vcombine.high %v6337_v26, %v6341_v16  ;;  %v12678_v60 = vcombine.high %v6210_v19, %v6214_v39  ;;  %v6167_v26 = vld [vmem:[#allocation7 + $0xf8] sm:$0xff]  ;;  %v12639_v19 = vcombine.low %v6171_v44, %v6175_v52 }
 0x52d   :  { %7823 = vmatprep.subr.bf16.mxu1 %v12852_v35  ;;  %7864 = vmatprep.subr.bf16.mxu0 %v12726_v29  ;;  %v6329_v35 = vld [vmem:[#allocation7 + $0x608] sm:$0xff] }
 0x52e   :  { %v6333_v29 = vld [vmem:[#allocation7 + $0x628] sm:$0xff] }
 0x52f   :  { %v12795_v33 = vcombine.low %v6329_v35, %v6333_v29 }
 0x530   :  { %7824 = vmatpush2.bf16.msra.mxu1 %v12851_v45  ;;  %7865 = vmatpush2.bf16.msra.mxu0 %v12725_v28  ;;  %v12796_v45 = vcombine.high %v6329_v35, %v6333_v29  ;;  %v12670_v28 = vcombine.high %v6202_v18, %v6206_v49  ;;  %v6159_v35 = vld [vmem:[#allocation7 + $0xb8] sm:$0xff] }
 0x531   :  { %7825 = vmatprep.subr.bf16.mxu1 %v12844_v24  ;;  %7866 = vmatprep.subr.bf16.mxu0 %v12718_v2  ;;  %v6322_v24 = vld [vmem:[#allocation7 + $0x5d0] sm:$0xff] }
 0x532   :  { %v6326_v2 = vld [vmem:[#allocation7 + $0x5f0] sm:$0xff] }
 0x533   :  { %v12789_v42 = vcombine.low %v6322_v24, %v6326_v2 }
 0x534   :  { %7826 = vmatpush2.bf16.msra.mxu1 %v12843_v10  ;;  %7867 = vmatpush2.bf16.msra.mxu0 %v12717_v22  ;;  %v12790_v10 = vcombine.high %v6322_v24, %v6326_v2  ;;  %v12664_v22 = vcombine.high %v6195_v3, %v6199_v11  ;;  %v6151_v24 = vld [vmem:[#allocation7 + $0x78] sm:$0xff] }
 0x535   :  { %7827 = vmatprep.subr.bf16.mxu1 %v12836_v63  ;;  %7868 = vmatprep.subr.bf16.mxu0 %v12710_v12  ;;  %v6314_v63 = vld [vmem:[#allocation7 + $0x590] sm:$0xff] }
 0x536   :  { %v6318_v12 = vld [vmem:[#allocation7 + $0x5b0] sm:$0xff] }
 0x537   :  { %v12781_v43 = vcombine.low %v6314_v63, %v6318_v12 }
 0x538   :  { %7828 = vmatpush2.bf16.msra.mxu1 %v12835_v7  ;;  %7869 = vmatpush2.bf16.msra.mxu0 %v12709_v8  ;;  %v12782_v7 = vcombine.high %v6314_v63, %v6318_v12  ;;  %v12656_v8 = vcombine.high %v6187_v41, %v6191_v5  ;;  %v6143_v63 = vld [vmem:[#allocation7 + $0x38] sm:$0xff] }
 0x539   :  { %7829 = vmatprep.subr.bf16.mxu1 %v12828_v47  ;;  %7870 = vmatprep.subr.bf16.mxu0 %v12702_v1  ;;  %v6306_v47 = vld [vmem:[#allocation7 + $0x550] sm:$0xff] }
 0x53a   :  { %v6310_v1 = vld [vmem:[#allocation7 + $0x570] sm:$0xff] }
 0x53b   :  { %v12773_v62 = vcombine.low %v6306_v47, %v6310_v1 }
 0x53c   :  { %7830 = vmatpush2.bf16.msra.mxu1 %v12827_v30  ;;  %7871 = vmatpush2.bf16.msra.mxu0 %v12701_v31  ;;  %v12774_v30 = vcombine.high %v6306_v47, %v6310_v1  ;;  %v12648_v31 = vcombine.high %v6179_v53, %v6183_v54  ;;  %v6263_v47 = vld [vmem:[#allocation7 + $0x3f8] sm:$0xff] }
 0x53d   :  { %7831 = vmatprep.subr.bf16.mxu1 %v12820_v58  ;;  %7872 = vmatprep.subr.bf16.mxu0 %v12694_v4  ;;  %v6298_v58 = vld [vmem:[#allocation7 + $0x510] sm:$0xff] }
 0x53e   :  { %v6302_v4 = vld [vmem:[#allocation7 + $0x530] sm:$0xff] }
 0x53f   :  { %v12765_v16 = vcombine.low %v6298_v58, %v6302_v4 }
 0x540   :  { %7832 = vmatpush2.bf16.msra.mxu1 %v12819_v57  ;;  %7873 = vmatpush2.bf16.msra.mxu0 %v12693_v61  ;;  %v12766_v57 = vcombine.high %v6298_v58, %v6302_v4  ;;  %v12640_v61 = vcombine.high %v6171_v44, %v6175_v52  ;;  %v6255_v58 = vld [vmem:[#allocation7 + $0x3b8] sm:$0xff] }
 0x541   :  { %7833 = vmatprep.subr.bf16.mxu1 %v12812_v25  ;;  %7874 = vmatprep.subr.bf16.mxu0 %v12686_v51  ;;  %v6290_v25 = vld [vmem:[#allocation7 + $0x4d0] sm:$0xff] }
 0x542   :  { %v6294_v51 = vld [vmem:[#allocation7 + $0x4f0] sm:$0xff] }
 0x543   :  { %v12758_v39 = vcombine.high %v6290_v25, %v6294_v51  ;;  %v12757_v29 = vcombine.low %v6290_v25, %v6294_v51  ;;  %v6247_v25 = vld [vmem:[#allocation7 + $0x378] sm:$0xff] }
 0x544   :  { %7834 = vmatpush2.bf16.msra.mxu1 %v12811_v21  ;;  %7875 = vmatpush2.bf16.msra.mxu0 %v12685_v17  ;;  %v6282_v17 = vld [vmem:[#allocation7 + $0x490] sm:$0xff] }
 0x545   :  { %7835 = vmatprep.subr.bf16.mxu1 %v12804_v56  ;;  %7876 = vmatprep.subr.bf16.mxu0 %v12678_v60  ;;  %v6286_v56 = vld [vmem:[#allocation7 + $0x4b0] sm:$0xff]  ;;  %v6155_v60 = vld [vmem:[#allocation7 + $0x98] sm:$0xff] }
 0x546   :  { %v12750_v49 = vcombine.high %v6282_v17, %v6286_v56  ;;  %v12749_v2 = vcombine.low %v6282_v17, %v6286_v56  ;;  %v12623_v3 = vcombine.low %v6155_v60, %v6159_v35  ;;  %v6239_v17 = vld [vmem:[#allocation7 + $0x338] sm:$0xff] }
 0x548   :  { %7836 = vmatpush2.bf16.msra.mxu1 %v12803_v13  ;;  %7877 = vmatpush2.bf16.msra.mxu0 %v12677_v20  ;;  %v12624_v13 = vcombine.high %v6155_v60, %v6159_v35  ;;  %v6274_v20 = vld [vmem:[#allocation7 + $0x450] sm:$0xff] }
 0x549   :  { %7837 = vmatprep.subr.bf16.mxu1 %v12796_v45  ;;  %7878 = vmatprep.subr.bf16.mxu0 %v12670_v28  ;;  %v6278_v45 = vld [vmem:[#allocation7 + $0x470] sm:$0xff]  ;;  %v6147_v28 = vld [vmem:[#allocation7 + $0x58] sm:$0xff] }
 0x54a   :  { %v12742_v11 = vcombine.high %v6274_v20, %v6278_v45  ;;  %v12741_v12 = vcombine.low %v6274_v20, %v6278_v45  ;;  %v12615_v41 = vcombine.low %v6147_v28, %v6151_v24  ;;  %v6231_v20 = vld [vmem:[#allocation7 + $0x2f8] sm:$0xff] }
 0x54c   :  { %7838 = vmatpush2.bf16.msra.mxu1 %v12795_v33  ;;  %7879 = vmatpush2.bf16.msra.mxu0 %v12669_v14  ;;  %v12616_v33 = vcombine.high %v6147_v28, %v6151_v24  ;;  %v6266_v14 = vld [vmem:[#allocation7 + $0x410] sm:$0xff] }
 0x54d   :  { %7889 = vmatprep.subr.bf16.mxu1 %v12790_v10  ;;  %7930 = vmatprep.subr.bf16.mxu0 %v12664_v22  ;;  %v6270_v10 = vld [vmem:[#allocation7 + $0x430] sm:$0xff]  ;;  %v6139_v22 = vld [vmem:[#allocation7 + $0x18] sm:$0xff] }
 0x54e   :  { %v12734_v5 = vcombine.high %v6266_v14, %v6270_v10  ;;  %v12733_v1 = vcombine.low %v6266_v14, %v6270_v10  ;;  %v12607_v53 = vcombine.low %v6139_v22, %v6143_v63  ;;  %v6223_v14 = vld [vmem:[#allocation7 + $0x2b8] sm:$0xff] }
 0x54f   :  { %7840 = vmatmul.mubr.bf16.vlgmr.msra.gmra.mxu1 %v16409_v40  ;;  %7881 = vmatmul.mubr.bf16.vlgmr.msra.gmra.mxu0 %v16389_v15 }
 0x550   :  { %7890 = vmatpush1.bf16.msra.mxu1 %v12789_v42  ;;  %7921 = vmatprep.mubr.bf16.mxu1 %v16406_v48  ;;  %v12608_v42 = vcombine.high %v6139_v22, %v6143_v63 }
 0x551   :  { %7931 = vmatpush1.bf16.msra.mxu0 %v12663_v55  ;;  %7962 = vmatprep.mubr.bf16.mxu0 %v16386_v6  ;;  %v6163_v6 = vld [vmem:[#allocation7 + $0xd8] sm:$0xff]  ;;  %v6386_v55 = vld [vmem:[#allocation7 + $0x7d0] sm:$0xff] }
 0x552   :  { %7891 = vmatprep.subr.bf16.mxu1 %v12782_v7  ;;  %7932 = vmatprep.subr.bf16.mxu0 %v12656_v8  ;;  %v12632_v21 = vcombine.high %v6163_v6, %v6167_v26  ;;  %v12631_v18 = vcombine.low %v6163_v6, %v6167_v26  ;;  %v6390_v7 = vld [vmem:[#allocation7 + $0x7f0] sm:$0xff]  ;;  %v6259_v8 = vld [vmem:[#allocation7 + $0x3d8] sm:$0xff] }
 0x553   :  { %v12854_v54 = vcombine.high %v6386_v55, %v6390_v7  ;;  %v12853_v4 = vcombine.low %v6386_v55, %v6390_v7  ;;  %v12727_v44 = vcombine.low %v6259_v8, %v6263_v47  ;;  %v6215_v55 = vld [vmem:[#allocation7 + $0x278] sm:$0xff] }
 0x554   :  { %7892 = vmatpush1.bf16.msra.mxu1 %v12781_v43  ;;  %v12728_v43 = vcombine.high %v6259_v8, %v6263_v47 }
 0x555   :  { %7933 = vmatpush1.bf16.msra.mxu0 %v12655_v27  ;;  %7893 = vmatprep.subr.bf16.mxu1 %v12774_v30  ;;  %v6378_v27 = vld [vmem:[#allocation7 + $0x790] sm:$0xff] }
 0x556   :  { %7934 = vmatprep.subr.bf16.mxu0 %v12648_v31  ;;  %v6382_v30 = vld [vmem:[#allocation7 + $0x7b0] sm:$0xff]  ;;  %v6251_v31 = vld [vmem:[#allocation7 + $0x398] sm:$0xff] }
 0x557   :  { %v12846_v52 = vcombine.high %v6378_v27, %v6382_v30  ;;  %v12845_v51 = vcombine.low %v6378_v27, %v6382_v30  ;;  %v12719_v6 = vcombine.low %v6251_v31, %v6255_v58  ;;  %v6207_v27 = vld [vmem:[#allocation7 + $0x238] sm:$0xff] }
 0x558   :  { %7894 = vmatpush1.bf16.msra.mxu1 %v12773_v62  ;;  %v12720_v62 = vcombine.high %v6251_v31, %v6255_v58 }
 0x559   :  { %7935 = vmatpush1.bf16.msra.mxu0 %v12647_v23  ;;  %7895 = vmatprep.subr.bf16.mxu1 %v12766_v57  ;;  %v6370_v23 = vld [vmem:[#allocation7 + $0x750] sm:$0xff] }
 0x55a   :  { %7936 = vmatprep.subr.bf16.mxu0 %v12640_v61  ;;  %v6374_v57 = vld [vmem:[#allocation7 + $0x770] sm:$0xff]  ;;  %v6243_v61 = vld [vmem:[#allocation7 + $0x358] sm:$0xff] }
 0x55b   :  { %v12838_v26 = vcombine.high %v6370_v23, %v6374_v57  ;;  %v12837_v56 = vcombine.low %v6370_v23, %v6374_v57  ;;  %v12711_v60 = vcombine.low %v6243_v61, %v6247_v25  ;;  %v5940_v23 = vld [vmem:[#allocation5 + $0x1e0] sm:$0xff] }
 0x55c   :  { %7896 = vmatpush1.bf16.msra.mxu1 %v12765_v16  ;;  %v12712_v16 = vcombine.high %v6243_v61, %v6247_v25 }
 0x55d   :  { %7937 = vmatpush1.bf16.msra.mxu0 %v12639_v19  ;;  %7897 = vmatprep.subr.bf16.mxu1 %v12758_v39  ;;  %v6362_v19 = vld [vmem:[#allocation7 + $0x710] sm:$0xff] }
 0x55e   :  { %7938 = vmatprep.subr.bf16.mxu0 %v12632_v21  ;;  %v6366_v39 = vld [vmem:[#allocation7 + $0x730] sm:$0xff]  ;;  %v6235_v21 = vld [vmem:[#allocation7 + $0x318] sm:$0xff] }
 0x55f   :  { %v12830_v35 = vcombine.high %v6362_v19, %v6366_v39  ;;  %v12829_v45 = vcombine.low %v6362_v19, %v6366_v39  ;;  %v12703_v28 = vcombine.low %v6235_v21, %v6239_v17  ;;  %v5928_v19 = vld [vmem:[#allocation5 + $0x180] sm:$0xff] }
 0x560   :  { %7898 = vmatpush1.bf16.msra.mxu1 %v12757_v29  ;;  %v12704_v29 = vcombine.high %v6235_v21, %v6239_v17  ;;  %v5932_v39 = vld [vmem:[#allocation5 + $0x1a0] sm:$0xff] }
 0x561   :  { %7939 = vmatpush1.bf16.msra.mxu0 %v12631_v18  ;;  %7899 = vmatprep.subr.bf16.mxu1 %v12750_v49  ;;  %v6354_v18 = vld [vmem:[#allocation7 + $0x6d0] sm:$0xff] }
 0x562   :  { %7940 = vmatprep.subr.bf16.mxu0 %v12624_v13  ;;  %v6358_v49 = vld [vmem:[#allocation7 + $0x6f0] sm:$0xff]  ;;  %v6227_v13 = vld [vmem:[#allocation7 + $0x2d8] sm:$0xff] }
 0x563   :  { %v12822_v24 = vcombine.high %v6354_v18, %v6358_v49  ;;  %v12821_v10 = vcombine.low %v6354_v18, %v6358_v49  ;;  %v12695_v22 = vcombine.low %v6227_v13, %v6231_v20  ;;  %v5920_v18 = vld [vmem:[#allocation5 + $0x140] sm:$0xff] }
 0x564   :  { %7900 = vmatpush1.bf16.msra.mxu1 %v12749_v2  ;;  %v12696_v2 = vcombine.high %v6227_v13, %v6231_v20  ;;  %v5924_v49 = vld [vmem:[#allocation5 + $0x160] sm:$0xff] }
 0x565   :  { %7941 = vmatpush1.bf16.msra.mxu0 %v12623_v3  ;;  %7901 = vmatprep.subr.bf16.mxu1 %v12742_v11  ;;  %v6346_v3 = vld [vmem:[#allocation7 + $0x690] sm:$0xff] }
 0x566   :  { %7942 = vmatprep.subr.bf16.mxu0 %v12616_v33  ;;  %v6350_v11 = vld [vmem:[#allocation7 + $0x6b0] sm:$0xff]  ;;  %v6219_v33 = vld [vmem:[#allocation7 + $0x298] sm:$0xff] }
 0x567   :  { %v12814_v63 = vcombine.high %v6346_v3, %v6350_v11  ;;  %v12813_v7 = vcombine.low %v6346_v3, %v6350_v11  ;;  %v12687_v8 = vcombine.low %v6219_v33, %v6223_v14  ;;  %v6303_v3 = vld [vmem:[#allocation7 + $0x538] sm:$0xff] }
 0x568   :  { %7902 = vmatpush1.bf16.msra.mxu1 %v12741_v12  ;;  %v12688_v12 = vcombine.high %v6219_v33, %v6223_v14  ;;  %v5912_v33 = vld [vmem:[#allocation5 + $0x100] sm:$0xff] }
 0x569   :  { %7943 = vmatpush1.bf16.msra.mxu0 %v12615_v41  ;;  %7903 = vmatprep.subr.bf16.mxu1 %v12734_v5  ;;  %v6338_v41 = vld [vmem:[#allocation7 + $0x650] sm:$0xff]  ;;  %v5916_v14 = vld [vmem:[#allocation5 + $0x120] sm:$0xff] }
 0x56a   :  { %7944 = vmatprep.subr.bf16.mxu0 %v12608_v42  ;;  %v6342_v5 = vld [vmem:[#allocation7 + $0x670] sm:$0xff]  ;;  %v6211_v42 = vld [vmem:[#allocation7 + $0x258] sm:$0xff] }
 0x56b   :  { %v12806_v47 = vcombine.high %v6338_v41, %v6342_v5  ;;  %v12805_v30 = vcombine.low %v6338_v41, %v6342_v5  ;;  %v12679_v31 = vcombine.low %v6211_v42, %v6215_v55  ;;  %v6295_v41 = vld [vmem:[#allocation7 + $0x4f8] sm:$0xff]  ;;  %v5904_v5 = vld [vmem:[#allocation5 + $0xc0] sm:$0xff] }
 0x56c   :  { %7904 = vmatpush1.bf16.msra.mxu1 %v12733_v1  ;;  %v12680_v1 = vcombine.high %v6211_v42, %v6215_v55  ;;  %v5908_v42 = vld [vmem:[#allocation5 + $0xe0] sm:$0xff] }
 0x56d   :  { %7945 = vmatpush1.bf16.msra.mxu0 %v12607_v53  ;;  %7905 = vmatprep.subr.bf16.mxu1 %v12854_v54  ;;  %v6330_v53 = vld [vmem:[#allocation7 + $0x610] sm:$0xff] }
 0x56e   :  { %7946 = vmatprep.subr.bf16.mxu0 %v12728_v43  ;;  %v6334_v54 = vld [vmem:[#allocation7 + $0x630] sm:$0xff]  ;;  %v6203_v43 = vld [vmem:[#allocation7 + $0x218] sm:$0xff] }
 0x56f   :  { %v12798_v58 = vcombine.high %v6330_v53, %v6334_v54  ;;  %v12797_v57 = vcombine.low %v6330_v53, %v6334_v54  ;;  %v12671_v61 = vcombine.low %v6203_v43, %v6207_v27  ;;  %v6287_v53 = vld [vmem:[#allocation7 + $0x4b8] sm:$0xff]  ;;  %v5896_v54 = vld [vmem:[#allocation5 + $0x80] sm:$0xff] }
 0x570   :  { %7906 = vmatpush2.bf16.msra.mxu1 %v12853_v4  ;;  %v12672_v4 = vcombine.high %v6203_v43, %v6207_v27  ;;  %v5900_v43 = vld [vmem:[#allocation5 + $0xa0] sm:$0xff] }
 0x571   :  { %7947 = vmatpush2.bf16.msra.mxu0 %v12727_v44  ;;  %7907 = vmatprep.subr.bf16.mxu1 %v12846_v52  ;;  %v6323_v44 = vld [vmem:[#allocation7 + $0x5d8] sm:$0xff] }
 0x572   :  { %7948 = vmatprep.subr.bf16.mxu0 %v12720_v62  ;;  %v6327_v52 = vld [vmem:[#allocation7 + $0x5f8] sm:$0xff]  ;;  %v5936_v62 = vld [vmem:[#allocation5 + $0x1c0] sm:$0xff] }
 0x573   :  { %v12792_v25 = vcombine.high %v6323_v44, %v6327_v52  ;;  %v12913_v21 = vcombine.low %v5936_v62, %v5940_v23 }
 0x574   :  { %7908 = vmatpush2.bf16.msra.mxu1 %v12845_v51  ;;  %v12914_v51 = vcombine.high %v5936_v62, %v5940_v23  ;;  %v5892_v62 = vld [vmem:[#allocation5 + $0x60] sm:$0xff] }
 0x575   :  { %7949 = vmatpush2.bf16.msra.mxu0 %v12719_v6  ;;  %7909 = vmatprep.subr.bf16.mxu1 %v12838_v26  ;;  %v6315_v6 = vld [vmem:[#allocation7 + $0x598] sm:$0xff] }
 0x576   :  { %7950 = vmatprep.subr.bf16.mxu0 %v12712_v16  ;;  %v6319_v26 = vld [vmem:[#allocation7 + $0x5b8] sm:$0xff]  ;;  %v12791_v16 = vcombine.low %v6323_v44, %v6327_v52  ;;  %v5888_v52 = vld [vmem:[#allocation5 + $0x40] sm:$0xff] }
 0x577   :  { %v12784_v17 = vcombine.high %v6315_v6, %v6319_v26  ;;  %v12783_v13 = vcombine.low %v6315_v6, %v6319_v26  ;;  %v6279_v44 = vld [vmem:[#allocation7 + $0x478] sm:$0xff]  ;;  %v5880_v26 = vld [vmem:[#allocation5] sm:$0xff] }
 0x578   :  { %7910 = vmatpush2.bf16.msra.mxu1 %v12837_v56  ;;  %v6307_v56 = vld [vmem:[#allocation7 + $0x558] sm:$0xff] }
 0x579   :  { %7951 = vmatpush2.bf16.msra.mxu0 %v12711_v60  ;;  %7911 = vmatprep.subr.bf16.mxu1 %v12830_v35  ;;  %v6311_v60 = vld [vmem:[#allocation7 + $0x578] sm:$0xff] }
 0x57a   :  { %7952 = vmatprep.subr.bf16.mxu0 %v12704_v29  ;;  %v12906_v29 = vcombine.high %v5928_v19, %v5932_v39  ;;  %v6271_v6 = vld [vmem:[#allocation7 + $0x438] sm:$0xff] }
 0x57c   :  { %7912 = vmatpush2.bf16.msra.mxu1 %v12829_v45  ;;  %v12905_v45 = vcombine.low %v5928_v19, %v5932_v39  ;;  %v12865_v39 = vcombine.low %v5888_v52, %v5892_v62 }
 0x57d   :  { %7953 = vmatpush2.bf16.msra.mxu0 %v12703_v28  ;;  %7913 = vmatprep.subr.bf16.mxu1 %v12822_v24  ;;  %v12776_v28 = vcombine.high %v6307_v56, %v6311_v60  ;;  %v12898_v24 = vcombine.high %v5920_v18, %v5924_v49 }
 0x57e   :  { %7954 = vmatprep.subr.bf16.mxu0 %v12696_v2  ;;  %v6299_v2 = vld [vmem:[#allocation7 + $0x518] sm:$0xff] }
 0x57f   :  { %v12767_v55 = vcombine.low %v6299_v2, %v6303_v3 }
 0x580   :  { %7914 = vmatpush2.bf16.msra.mxu1 %v12821_v10 }
 0x581   :  { %7955 = vmatpush2.bf16.msra.mxu0 %v12695_v22  ;;  %7915 = vmatprep.subr.bf16.mxu1 %v12814_v63  ;;  %v12768_v22 = vcombine.high %v6299_v2, %v6303_v3  ;;  %v12890_v63 = vcombine.high %v5912_v33, %v5916_v14  ;;  %v6383_v2 = vld [vmem:[#allocation7 + $0x7b8] sm:$0xff]  ;;  %v5992_v3 = vld [vmem:[#allocation5 + $0x380] sm:$0xff] }
 0x582   :  { %7956 = vmatprep.subr.bf16.mxu0 %v12688_v12  ;;  %v6291_v12 = vld [vmem:[#allocation7 + $0x4d8] sm:$0xff] }
 0x583   :  { %v12759_v27 = vcombine.low %v6291_v12, %v6295_v41 }
 0x584   :  { %7916 = vmatpush2.bf16.msra.mxu1 %v12813_v7  ;;  %v12889_v7 = vcombine.low %v5912_v33, %v5916_v14 }
 0x585   :  { %7957 = vmatpush2.bf16.msra.mxu0 %v12687_v8  ;;  %7917 = vmatprep.subr.bf16.mxu1 %v12806_v47  ;;  %v12760_v8 = vcombine.high %v6291_v12, %v6295_v41  ;;  %v12882_v47 = vcombine.high %v5904_v5, %v5908_v42  ;;  %v5988_v12 = vld [vmem:[#allocation5 + $0x360] sm:$0xff] }
 0x586   :  { %7958 = vmatprep.subr.bf16.mxu0 %v12680_v1  ;;  %v6283_v1 = vld [vmem:[#allocation7 + $0x498] sm:$0xff] }
 0x587   :  { %v12751_v23 = vcombine.low %v6283_v1, %v6287_v53 }
 0x588   :  { %7918 = vmatpush2.bf16.msra.mxu1 %v12805_v30  ;;  %v12881_v30 = vcombine.low %v5904_v5, %v5908_v42 }
 0x589   :  { %7959 = vmatpush2.bf16.msra.mxu0 %v12679_v31  ;;  %7919 = vmatprep.subr.bf16.mxu1 %v12798_v58  ;;  %v12752_v31 = vcombine.high %v6283_v1, %v6287_v53  ;;  %v12874_v58 = vcombine.high %v5896_v54, %v5900_v43  ;;  %v5980_v1 = vld [vmem:[#allocation5 + $0x320] sm:$0xff] }
 0x58a   :  { %7960 = vmatprep.subr.bf16.mxu0 %v12672_v4  ;;  %v6275_v4 = vld [vmem:[#allocation7 + $0x458] sm:$0xff] }
 0x58b   :  { %v12743_v19 = vcombine.low %v6275_v4, %v6279_v44 }
 0x58c   :  { %7920 = vmatpush2.bf16.msra.mxu1 %v12797_v57  ;;  %v12873_v57 = vcombine.low %v5896_v54, %v5900_v43 }
 0x58d   :  { %7961 = vmatpush2.bf16.msra.mxu0 %v12671_v61  ;;  %7971 = vmatprep.subr.bf16.mxu1 %v12792_v25  ;;  %v12744_v61 = vcombine.high %v6275_v4, %v6279_v44  ;;  %v12866_v25 = vcombine.high %v5888_v52, %v5892_v62  ;;  %v5972_v4 = vld [vmem:[#allocation5 + $0x2e0] sm:$0xff] }
 0x58e   :  { %9292 = vmatprep.subr.bf16.mxu0 %v12914_v51  ;;  %v6267_v51 = vld [vmem:[#allocation7 + $0x418] sm:$0xff] }
 0x58f   :  { %7922 = vmatmul.mubr.bf16.vlgmr.msra.gmra.mxu1 %v16409_v40  ;;  %v16424_v35 = vpop.f32.mrf.mxu0 }
 0x590   :  { %7963 = vmatmul.mubr.bf16.vlgmr.msra.gmra.mxu0 %v16389_v15  ;;  %7972 = vmatpush1.bf16.msra.mxu1 %v12791_v16  ;;  %v12775_v15 = vcombine.low %v6307_v56, %v6311_v60  ;;  %v5884_v16 = vld [vmem:[#allocation5 + $0x20] sm:$0xff]  ;;  %v6387_v56 = vld [vmem:[#allocation7 + $0x7d8] sm:$0xff] }
 0x591   :  { %8003 = vmatprep.mubr.bf16.mxu1 %v16406_v48  ;;  %9293 = vmatpush1.bf16.msra.mxu0 %v12913_v21  ;;  %v16428_v20 = vpop.f32.mrf.mxu0  ;;  %v12897_v48 = vcombine.low %v5920_v18, %v5924_v49  ;;  %v12736_v21 = vcombine.high %v6267_v51, %v6271_v6  ;;  %v6391_v60 = vld [vmem:[#allocation7 + $0x7f8] sm:$0xff]  ;;  %v6004_v18 = vld [vmem:[#allocation5 + $0x3e0] sm:$0xff]  ;;  %v12735_v49 = vcombine.low %v6267_v51, %v6271_v6 }
 0x592   :  { %9324 = vmatprep.mubr.bf16.mxu0 %v16383_v32  ;;  %7973 = vmatprep.subr.bf16.mxu1 %v12784_v17  ;;  %v12858_v17 = vcombine.high %v5880_v26, %v5884_v16  ;;  %v12855_v33 = vcombine.low %v6387_v56, %v6391_v60  ;;  %v5964_v51 = vld [vmem:[#allocation5 + $0x2a0] sm:$0xff] }
 0x593   :  { %9294 = vmatprep.subr.bf16.mxu0 %v12906_v29  ;;  %v7722_v11 = vpop.f32.mrf.mxu0  ;;  %v6000_v29 = vld [vmem:[#allocation5 + $0x3c0] sm:$0xff] }
 0x594   :  { %7974 = vmatpush1.bf16.msra.mxu1 %v12783_v13  ;;  %v12857_v13 = vcombine.low %v5880_v26, %v5884_v16  ;;  %v5996_v11 = vld [vmem:[#allocation5 + $0x3a0] sm:$0xff]  ;;  %v12977_v14 = vcombine.low %v6000_v29, %v6004_v18 }
 0x595   :  { %9295 = vmatpush1.bf16.msra.mxu0 %v12905_v45  ;;  %v7723_v10 = vpop.f32.mrf.mxu0  ;;  %7975 = vmatprep.subr.bf16.mxu1 %v12776_v28  ;;  %v12856_v45 = vcombine.high %v6387_v56, %v6391_v60  ;;  %v12978_v28 = vcombine.high %v6000_v29, %v6004_v18  ;;  %v12969_v5 = vcombine.low %v5992_v3, %v5996_v11  ;;  %v5956_v56 = vld [vmem:[#allocation5 + $0x260] sm:$0xff] }
 0x596   :  { %9296 = vmatprep.subr.bf16.mxu0 %v12898_v24  ;;  %v6379_v24 = vld [vmem:[#allocation7 + $0x798] sm:$0xff]  ;;  %v12970_v10 = vcombine.high %v5992_v3, %v5996_v11 }
 0x597   :  { %v12847_v41 = vcombine.low %v6379_v24, %v6383_v2 }
 0x598   :  { %7976 = vmatpush1.bf16.msra.mxu1 %v12775_v15  ;;  %v12848_v15 = vcombine.high %v6379_v24, %v6383_v2  ;;  %v5948_v24 = vld [vmem:[#allocation5 + $0x220] sm:$0xff] }
 0x599   :  { %9297 = vmatpush1.bf16.msra.mxu0 %v12897_v48  ;;  %7977 = vmatprep.subr.bf16.mxu1 %v12768_v22  ;;  %v6371_v48 = vld [vmem:[#allocation7 + $0x758] sm:$0xff] }
 0x59a   :  { %9298 = vmatprep.subr.bf16.mxu0 %v12890_v63  ;;  %v6375_v22 = vld [vmem:[#allocation7 + $0x778] sm:$0xff]  ;;  %v5984_v63 = vld [vmem:[#allocation5 + $0x340] sm:$0xff] }
 0x59b   :  { %v12840_v42 = vcombine.high %v6371_v48, %v6375_v22  ;;  %v12839_v53 = vcombine.low %v6371_v48, %v6375_v22  ;;  %v12961_v54 = vcombine.low %v5984_v63, %v5988_v12  ;;  %v5941_v48 = vld [vmem:[#allocation5 + $0x1e8] sm:$0xff] }
 0x59c   :  { %7978 = vmatpush1.bf16.msra.mxu1 %v12767_v55  ;;  %v12962_v55 = vcombine.high %v5984_v63, %v5988_v12 }
 0x59d   :  { %9299 = vmatpush1.bf16.msra.mxu0 %v12889_v7  ;;  %7979 = vmatprep.subr.bf16.mxu1 %v12760_v8  ;;  %v6363_v7 = vld [vmem:[#allocation7 + $0x718] sm:$0xff] }
 0x59e   :  { %9300 = vmatprep.subr.bf16.mxu0 %v12882_v47  ;;  %v6367_v8 = vld [vmem:[#allocation7 + $0x738] sm:$0xff]  ;;  %v5976_v47 = vld [vmem:[#allocation5 + $0x300] sm:$0xff] }
 0x59f   :  { %v12832_v43 = vcombine.high %v6363_v7, %v6367_v8  ;;  %v12831_v44 = vcombine.low %v6363_v7, %v6367_v8  ;;  %v12953_v52 = vcombine.low %v5976_v47, %v5980_v1  ;;  %v5929_v7 = vld [vmem:[#allocation5 + $0x188] sm:$0xff] }
 0x5a0   :  { %7980 = vmatpush1.bf16.msra.mxu1 %v12759_v27  ;;  %v12954_v27 = vcombine.high %v5976_v47, %v5980_v1  ;;  %v5933_v8 = vld [vmem:[#allocation5 + $0x1a8] sm:$0xff] }
 0x5a1   :  { %9301 = vmatpush1.bf16.msra.mxu0 %v12881_v30  ;;  %7981 = vmatprep.subr.bf16.mxu1 %v12752_v31  ;;  %v6355_v30 = vld [vmem:[#allocation7 + $0x6d8] sm:$0xff] }
 0x5a2   :  { %9302 = vmatprep.subr.bf16.mxu0 %v12874_v58  ;;  %v6359_v31 = vld [vmem:[#allocation7 + $0x6f8] sm:$0xff]  ;;  %v5968_v58 = vld [vmem:[#allocation5 + $0x2c0] sm:$0xff] }
 0x5a3   :  { %v12824_v62 = vcombine.high %v6355_v30, %v6359_v31  ;;  %v12823_v6 = vcombine.low %v6355_v30, %v6359_v31  ;;  %v12945_v26 = vcombine.low %v5968_v58, %v5972_v4  ;;  %v12908_v30 = vcombine.high %v5929_v7, %v5933_v8  ;;  %v5921_v31 = vld [vmem:[#allocation5 + $0x148] sm:$0xff] }
 0x5a4   :  { %7982 = vmatpush1.bf16.msra.mxu1 %v12751_v23  ;;  %v12946_v23 = vcombine.high %v5968_v58, %v5972_v4  ;;  %v5925_v58 = vld [vmem:[#allocation5 + $0x168] sm:$0xff] }
 0x5a5   :  { %9303 = vmatpush1.bf16.msra.mxu0 %v12873_v57  ;;  %7983 = vmatprep.subr.bf16.mxu1 %v12744_v61  ;;  %v6347_v57 = vld [vmem:[#allocation7 + $0x698] sm:$0xff] }
 0x5a6   :  { %9304 = vmatprep.subr.bf16.mxu0 %v12866_v25  ;;  %v6351_v61 = vld [vmem:[#allocation7 + $0x6b8] sm:$0xff]  ;;  %v5960_v25 = vld [vmem:[#allocation5 + $0x280] sm:$0xff] }
 0x5a7   :  { %v12816_v16 = vcombine.high %v6347_v57, %v6351_v61  ;;  %v12815_v60 = vcombine.low %v6347_v57, %v6351_v61  ;;  %v12937_v29 = vcombine.low %v5960_v25, %v5964_v51  ;;  %v12900_v61 = vcombine.high %v5921_v31, %v5925_v58 }
 0x5a8   :  { %7984 = vmatpush1.bf16.msra.mxu1 %v12743_v19  ;;  %v12938_v19 = vcombine.high %v5960_v25, %v5964_v51  ;;  %v6040_v25 = vld [vmem:[#allocation5 + $0x500] sm:$0xff] }
 0x5a9   :  { %9305 = vmatpush1.bf16.msra.mxu0 %v12865_v39  ;;  %7985 = vmatprep.subr.bf16.mxu1 %v12736_v21  ;;  %v6339_v39 = vld [vmem:[#allocation7 + $0x658] sm:$0xff]  ;;  %v9620_v51 = vld [vmem:[%s17572_s11] sm:$0xff] }
 0x5aa   :  { %9306 = vmatprep.subr.bf16.mxu0 %v12858_v17  ;;  %v6343_v21 = vld [vmem:[#allocation7 + $0x678] sm:$0xff]  ;;  %v5952_v17 = vld [vmem:[#allocation5 + $0x240] sm:$0xff]  ;;  %9624 = vperm.xlu0 %13287, %v9620_v51  }
 0x5ab   :  { %v12808_v18 = vcombine.high %v6339_v39, %v6343_v21  ;;  %v12807_v2 = vcombine.low %v6339_v39, %v6343_v21  ;;  %v12929_v3 = vcombine.low %v5952_v17, %v5956_v56 }
 0x5ac   :  { %7986 = vmatpush1.bf16.msra.mxu1 %v12735_v49  ;;  %v12930_v49 = vcombine.high %v5952_v17, %v5956_v56  ;;  %v12899_v17 = vcombine.low %v5921_v31, %v5925_v58 }
 0x5ad   :  { %9307 = vmatpush1.bf16.msra.mxu0 %v12857_v13  ;;  %7987 = vmatprep.subr.bf16.mxu1 %v12856_v45  ;;  %v6331_v13 = vld [vmem:[#allocation7 + $0x618] sm:$0xff] }
 0x5ae   :  { %9308 = vmatprep.subr.bf16.mxu0 %v12978_v28  ;;  %v6335_v45 = vld [vmem:[#allocation7 + $0x638] sm:$0xff]  ;;  %v5944_v28 = vld [vmem:[#allocation5 + $0x200] sm:$0xff] }
 0x5af   :  { %v12800_v11 = vcombine.high %v6331_v13, %v6335_v45  ;;  %v12799_v22 = vcombine.low %v6331_v13, %v6335_v45  ;;  %v12921_v63 = vcombine.low %v5944_v28, %v5948_v24  ;;  %v5905_v13 = vld [vmem:[#allocation5 + $0xc8] sm:$0xff] }
 0x5b0   :  { %7988 = vmatpush2.bf16.msra.mxu1 %v12855_v33  ;;  %v12922_v33 = vcombine.high %v5944_v28, %v5948_v24  ;;  %v5909_v45 = vld [vmem:[#allocation5 + $0xe8] sm:$0xff] }
 0x5b1   :  { %9309 = vmatpush2.bf16.msra.mxu0 %v12977_v14  ;;  %7989 = vmatprep.subr.bf16.mxu1 %v12848_v15  ;;  %v6064_v14 = vld [vmem:[#allocation5 + $0x5c0] sm:$0xff] }
 0x5b2   :  { %9310 = vmatprep.subr.bf16.mxu0 %v12970_v10  ;;  %v6068_v15 = vld [vmem:[#allocation5 + $0x5e0] sm:$0xff]  ;;  %v5937_v10 = vld [vmem:[#allocation5 + $0x1c8] sm:$0xff] }
 0x5b3   :  { %v13042_v12 = vcombine.high %v6064_v14, %v6068_v15  ;;  %v12915_v47 = vcombine.low %v5937_v10, %v5941_v48 }
 0x5b4   :  { %7990 = vmatpush2.bf16.msra.mxu1 %v12847_v41  ;;  %v12916_v41 = vcombine.high %v5937_v10, %v5941_v48  ;;  %v12883_v48 = vcombine.low %v5905_v13, %v5909_v45 }
 0x5b5   :  { %9311 = vmatpush2.bf16.msra.mxu0 %v12969_v5  ;;  %7991 = vmatprep.subr.bf16.mxu1 %v12840_v42  ;;  %v6056_v5 = vld [vmem:[#allocation5 + $0x580] sm:$0xff] }
 0x5b6   :  { %9312 = vmatprep.subr.bf16.mxu0 %v12962_v55  ;;  %v6060_v42 = vld [vmem:[#allocation5 + $0x5a0] sm:$0xff]  ;;  %v13041_v55 = vcombine.low %v6064_v14, %v6068_v15  ;;  %v5897_v14 = vld [vmem:[#allocation5 + $0x88] sm:$0xff] }
 0x5b7   :  { %v13034_v1 = vcombine.high %v6056_v5, %v6060_v42  ;;  %v5901_v15 = vld [vmem:[#allocation5 + $0xa8] sm:$0xff] }
 0x5b8   :  { %7992 = vmatpush2.bf16.msra.mxu1 %v12839_v53  ;;  %v6048_v53 = vld [vmem:[#allocation5 + $0x540] sm:$0xff] }
 0x5b9   :  { %9313 = vmatpush2.bf16.msra.mxu0 %v12961_v54  ;;  %7993 = vmatprep.subr.bf16.mxu1 %v12832_v43  ;;  %v6052_v54 = vld [vmem:[#allocation5 + $0x560] sm:$0xff] }
 0x5ba   :  { %9314 = vmatprep.subr.bf16.mxu0 %v12954_v27  ;;  %v13026_v57 = vcombine.high %v6048_v53, %v6052_v54  ;;  %v13025_v39 = vcombine.low %v6048_v53, %v6052_v54  ;;  %v6012_v53 = vld [vmem:[#allocation5 + $0x420] sm:$0xff]  ;;  %v5881_v54 = vld [vmem:[#allocation5 + $0x8] sm:$0xff] }
 0x5bc   :  { %7994 = vmatpush2.bf16.msra.mxu1 %v12831_v44  ;;  %v13033_v44 = vcombine.low %v6056_v5, %v6060_v42  ;;  %v5889_v5 = vld [vmem:[#allocation5 + $0x48] sm:$0xff] }
 0x5bd   :  { %9315 = vmatpush2.bf16.msra.mxu0 %v12953_v52  ;;  %7995 = vmatprep.subr.bf16.mxu1 %v12824_v62  ;;  %v5893_v42 = vld [vmem:[#allocation5 + $0x68] sm:$0xff] }
 0x5be   :  { %9316 = vmatprep.subr.bf16.mxu0 %v12946_v23  ;;  %v12907_v23 = vcombine.low %v5929_v7, %v5933_v8  ;;  %v12875_v7 = vcombine.low %v5897_v14, %v5901_v15  ;;  %v12867_v31 = vcombine.low %v5889_v5, %v5893_v42 }
 0x5c0   :  { %7996 = vmatpush2.bf16.msra.mxu1 %v12823_v6 }
 0x5c1   :  { %9317 = vmatpush2.bf16.msra.mxu0 %v12945_v26  ;;  %7997 = vmatprep.subr.bf16.mxu1 %v12816_v16  ;;  %v5913_v16 = vld [vmem:[#allocation5 + $0x108] sm:$0xff] }
 0x5c2   :  { %9318 = vmatprep.subr.bf16.mxu0 %v12938_v19  ;;  %v5917_v19 = vld [vmem:[#allocation5 + $0x128] sm:$0xff] }
 0x5c3   :  { %v12891_v24 = vcombine.low %v5913_v16, %v5917_v19 }
 0x5c4   :  { %7998 = vmatpush2.bf16.msra.mxu1 %v12815_v60  ;;  %v12892_v60 = vcombine.high %v5913_v16, %v5917_v19  ;;  %v6124_v16 = vld [vmem:[#allocation5 + $0x7a0] sm:$0xff]  ;;  %v5993_v19 = vld [vmem:[#allocation5 + $0x388] sm:$0xff] }
 0x5c5   :  { %9319 = vmatpush2.bf16.msra.mxu0 %v12937_v29  ;;  %7999 = vmatprep.subr.bf16.mxu1 %v12808_v18  ;;  %v6032_v29 = vld [vmem:[#allocation5 + $0x4c0] sm:$0xff] }
 0x5c6   :  { %9320 = vmatprep.subr.bf16.mxu0 %v12930_v49  ;;  %v6036_v18 = vld [vmem:[#allocation5 + $0x4e0] sm:$0xff] }
 0x5c7   :  { %v9684_v49 = vld [vmem:[%s17573_s12] sm:$0xff]  ;;  %v13009_v10 = vcombine.low %v6032_v29, %v6036_v18 }
 0x5c8   :  { %8000 = vmatpush2.bf16.msra.mxu1 %v12807_v2  ;;  %9688 = vperm.xlu0 %13287, %v9684_v49   ;;  %v13010_v2 = vcombine.high %v6032_v29, %v6036_v18  ;;  %v6116_v29 = vld [vmem:[#allocation5 + $0x760] sm:$0xff]  ;;  %v5985_v18 = vld [vmem:[#allocation5 + $0x348] sm:$0xff] }
 0x5c9   :  { %9321 = vmatpush2.bf16.msra.mxu0 %v12929_v3  ;;  %8001 = vmatprep.subr.bf16.mxu1 %v12800_v11  ;;  %v12884_v3 = vcombine.high %v5905_v13, %v5909_v45  ;;  %v6024_v11 = vld [vmem:[#allocation5 + $0x480] sm:$0xff]  ;;  %v5989_v49 = vld [vmem:[#allocation5 + $0x368] sm:$0xff] }
 0x5ca   :  { %9322 = vmatprep.subr.bf16.mxu0 %v12922_v33  ;;  %v6028_v33 = vld [vmem:[#allocation5 + $0x4a0] sm:$0xff] }
 0x5cc   :  { %8002 = vmatpush2.bf16.msra.mxu1 %v12799_v22  ;;  %v13002_v22 = vcombine.high %v6024_v11, %v6028_v33 }
 0x5cd   :  { %9323 = vmatpush2.bf16.msra.mxu0 %v12921_v63  ;;  %9333 = vmatprep.subr.bf16.mxu1 %v13042_v12  ;;  %v12876_v63 = vcombine.high %v5897_v14, %v5901_v15  ;;  %v6016_v12 = vld [vmem:[#allocation5 + $0x440] sm:$0xff]  ;;  %v12963_v15 = vcombine.low %v5985_v18, %v5989_v49 }
 0x5ce   :  { %9374 = vmatprep.subr.bf16.mxu0 %v12916_v41  ;;  %v6020_v41 = vld [vmem:[#allocation5 + $0x460] sm:$0xff] }
 0x5cf   :  { %v16431_v43 = vpop.f32.mrf.mxu0  ;;  %8004 = vmatmul.mubr.bf16.vlgmr.msra.gmra.mxu1 %v16409_v40  ;;  %v7759_v27 = vpop.f32.mrf.mxu1  ;;  %v12994_v8 = vcombine.high %v6016_v12, %v6020_v41 }
 0x5d0   :  { %9325 = vmatmul.mubr.bf16.vlgmr.msra.gmra.mxu0 %v16381_v50  ;;  %v16436_v4 = vadd.f32 %v7759_v27, %v16424_v35  ;;  %9334 = vmatpush1.bf16.msra.mxu1 %v13041_v55  ;;  %v6044_v35 = vld [vmem:[#allocation5 + $0x520] sm:$0xff]  ;;  %v13001_v55 = vcombine.low %v6024_v11, %v6028_v33  ;;  %v5885_v27 = vld [vmem:[#allocation5 + $0x28] sm:$0xff] }
 0x5d1   :  { %9365 = vmatprep.mubr.bf16.mxu1 %v16403_v9  ;;  %9375 = vmatpush1.bf16.msra.mxu0 %v12915_v47  ;;  %v16439_v52 = vpop.f32.mrf.mxu0  ;;  %v7761_v62 = vpop.f32.mrf.mxu1  ;;  %v13018_v56 = vcombine.high %v6040_v25, %v6044_v35  ;;  %v13017_v28 = vcombine.low %v6040_v25, %v6044_v35  ;;  %v12868_v47 = vcombine.high %v5889_v5, %v5893_v42  ;;  %v5977_v11 = vld [vmem:[#allocation5 + $0x308] sm:$0xff] }
 0x5d2   :  { %9406 = vmatprep.mubr.bf16.mxu0 %v16383_v32  ;;  %v16443_v40 = vadd.f32 %v7761_v62, %v16428_v20  ;;  %9335 = vmatprep.subr.bf16.mxu1 %v13034_v1  ;;  %v6008_v1 = vld [vmem:[#allocation5 + $0x400] sm:$0xff]  ;;  %v12859_v35 = vcombine.low %v5881_v54, %v5885_v27  ;;  %v5981_v33 = vld [vmem:[#allocation5 + $0x328] sm:$0xff] }
 0x5d3   :  { %v7804_v6 = vpop.f32.mrf.mxu0  ;;  %9376 = vmatprep.subr.bf16.mxu0 %v12908_v30  ;;  %v7763_v26 = vpop.f32.mrf.mxu1  ;;  %v12993_v30 = vcombine.low %v6016_v12, %v6020_v41  ;;  %v12986_v58 = vcombine.high %v6008_v1, %v6012_v53  ;;  %v6128_v62 = vld [vmem:[#allocation5 + $0x7c0] sm:$0xff]  ;;  %v12985_v25 = vcombine.low %v6008_v1, %v6012_v53  ;;  %v5969_v12 = vld [vmem:[#allocation5 + $0x2c8] sm:$0xff]  ;;  %v12955_v42 = vcombine.low %v5977_v11, %v5981_v33 }
 0x5d4   :  { %9336 = vmatpush1.bf16.msra.mxu1 %v13033_v44  ;;  %v12860_v44 = vcombine.high %v5881_v54, %v5885_v27  ;;  %v6120_v26 = vld [vmem:[#allocation5 + $0x780] sm:$0xff]  ;;  %v5973_v41 = vld [vmem:[#allocation5 + $0x2e8] sm:$0xff] }
 0x5d5   :  { %9377 = vmatpush1.bf16.msra.mxu0 %v12907_v23  ;;  %v7805_v21 = vpop.f32.mrf.mxu0  ;;  %v7764_v20 = vpop.f32.mrf.mxu1  ;;  %9337 = vmatprep.subr.bf16.mxu1 %v13026_v57  ;;  %v6132_v23 = vld [vmem:[#allocation5 + $0x7e0] sm:$0xff]  ;;  %v6001_v57 = vld [vmem:[#allocation5 + $0x3c8] sm:$0xff]  ;;  %v13097_v13 = vcombine.low %v6120_v26, %v6124_v16  ;;  %v12947_v27 = vcombine.low %v5969_v12, %v5973_v41 }
 0x5d6   :  { %9378 = vmatprep.subr.bf16.mxu0 %v12900_v61  ;;  %v6005_v61 = vld [vmem:[#allocation5 + $0x3e8] sm:$0xff]  ;;  %v13106_v51 = vcombine.high %v6128_v62, %v6132_v23  ;;  %v13105_v21 = vcombine.low %v6128_v62, %v6132_v23 }
 0x5d7   :  { %v12980_v6 = vcombine.high %v6001_v57, %v6005_v61  ;;  %v12979_v20 = vcombine.low %v6001_v57, %v6005_v61  ;;  %v5961_v1 = vld [vmem:[#allocation5 + $0x288] sm:$0xff] }
 0x5d8   :  { %9338 = vmatpush1.bf16.msra.mxu1 %v13025_v39  ;;  %v5997_v39 = vld [vmem:[#allocation5 + $0x3a8] sm:$0xff] }
 0x5d9   :  { %9379 = vmatpush1.bf16.msra.mxu0 %v12899_v17  ;;  %9339 = vmatprep.subr.bf16.mxu1 %v13018_v56  ;;  %v13098_v17 = vcombine.high %v6120_v26, %v6124_v16  ;;  %v12972_v56 = vcombine.high %v5993_v19, %v5997_v39  ;;  %v12971_v45 = vcombine.low %v5993_v19, %v5997_v39  ;;  %v5965_v53 = vld [vmem:[#allocation5 + $0x2a8] sm:$0xff] }
 0x5da   :  { %9380 = vmatprep.subr.bf16.mxu0 %v12892_v60  ;;  %v6112_v60 = vld [vmem:[#allocation5 + $0x740] sm:$0xff]  ;;  %v5953_v62 = vld [vmem:[#allocation5 + $0x248] sm:$0xff]  ;;  %v12939_v61 = vcombine.low %v5961_v1, %v5965_v53 }
 0x5db   :  { %v13089_v14 = vcombine.low %v6112_v60, %v6116_v29  ;;  %v5957_v23 = vld [vmem:[#allocation5 + $0x268] sm:$0xff] }
 0x5dc   :  { %9340 = vmatpush1.bf16.msra.mxu1 %v13017_v28  ;;  %v13090_v28 = vcombine.high %v6112_v60, %v6116_v29  ;;  %v5945_v26 = vld [vmem:[#allocation5 + $0x208] sm:$0xff]  ;;  %v12931_v39 = vcombine.low %v5953_v62, %v5957_v23  ;;  %v5938_v60 = vld [vmem:[#allocation5 + $0x1d0] sm:$0xff] }
 0x5dd   :  { %9381 = vmatpush1.bf16.msra.mxu0 %v12891_v24  ;;  %9341 = vmatprep.subr.bf16.mxu1 %v13010_v2  ;;  %v12964_v24 = vcombine.high %v5985_v18, %v5989_v49  ;;  %v6104_v2 = vld [vmem:[#allocation5 + $0x700] sm:$0xff]  ;;  %v5949_v16 = vld [vmem:[#allocation5 + $0x228] sm:$0xff]  ;;  %v5942_v29 = vld [vmem:[#allocation5 + $0x1f0] sm:$0xff] }
 0x5de   :  { %9382 = vmatprep.subr.bf16.mxu0 %v12884_v3  ;;  %v6108_v3 = vld [vmem:[#allocation5 + $0x720] sm:$0xff]  ;;  %v12923_v49 = vcombine.low %v5945_v26, %v5949_v16 }
 0x5df   :  { %v13081_v5 = vcombine.low %v6104_v2, %v6108_v3 }
 0x5e0   :  { %9342 = vmatpush1.bf16.msra.mxu1 %v13009_v10  ;;  %v13082_v10 = vcombine.high %v6104_v2, %v6108_v3  ;;  %v5930_v3 = vld [vmem:[#allocation5 + $0x190] sm:$0xff] }
 0x5e1   :  { %9383 = vmatpush1.bf16.msra.mxu0 %v12883_v48  ;;  %9343 = vmatprep.subr.bf16.mxu1 %v13002_v22  ;;  %v12956_v48 = vcombine.high %v5977_v11, %v5981_v33  ;;  %v6096_v22 = vld [vmem:[#allocation5 + $0x6c0] sm:$0xff]  ;;  %v5934_v11 = vld [vmem:[#allocation5 + $0x1b0] sm:$0xff]  ;;  %v12917_v33 = vcombine.low %v5938_v60, %v5942_v29 }
 0x5e2   :  { %9384 = vmatprep.subr.bf16.mxu0 %v12876_v63  ;;  %v6100_v63 = vld [vmem:[#allocation5 + $0x6e0] sm:$0xff] }
 0x5e3   :  { %v13073_v54 = vcombine.low %v6096_v22, %v6100_v63 }
 0x5e4   :  { %9344 = vmatpush1.bf16.msra.mxu1 %v13001_v55  ;;  %v13074_v55 = vcombine.high %v6096_v22, %v6100_v63  ;;  %v12910_v63 = vcombine.high %v5930_v3, %v5934_v11 }
 0x5e5   :  { %9385 = vmatpush1.bf16.msra.mxu0 %v12875_v7  ;;  %9345 = vmatprep.subr.bf16.mxu1 %v12994_v8  ;;  %v12948_v7 = vcombine.high %v5969_v12, %v5973_v41  ;;  %v6088_v8 = vld [vmem:[#allocation5 + $0x680] sm:$0xff]  ;;  %v5922_v12 = vld [vmem:[#allocation5 + $0x150] sm:$0xff] }
 0x5e6   :  { %9386 = vmatprep.subr.bf16.mxu0 %v12868_v47  ;;  %v6092_v47 = vld [vmem:[#allocation5 + $0x6a0] sm:$0xff]  ;;  %v5926_v41 = vld [vmem:[#allocation5 + $0x170] sm:$0xff] }
 0x5e7   :  { %v13065_v57 = vcombine.low %v6088_v8, %v6092_v47 }
 0x5e8   :  { %9346 = vmatpush1.bf16.msra.mxu1 %v12993_v30  ;;  %v13066_v30 = vcombine.high %v6088_v8, %v6092_v47  ;;  %v12909_v8 = vcombine.low %v5930_v3, %v5934_v11 }
 0x5e9   :  { %9387 = vmatpush1.bf16.msra.mxu0 %v12867_v31  ;;  %9347 = vmatprep.subr.bf16.mxu1 %v12986_v58  ;;  %v12940_v31 = vcombine.high %v5961_v1, %v5965_v53  ;;  %v6080_v58 = vld [vmem:[#allocation5 + $0x640] sm:$0xff]  ;;  %v6041_v53 = vld [vmem:[#allocation5 + $0x508] sm:$0xff] }
 0x5ea   :  { %9388 = vmatprep.subr.bf16.mxu0 %v12860_v44  ;;  %v6084_v44 = vld [vmem:[#allocation5 + $0x660] sm:$0xff] }
 0x5eb   :  { %v13057_v19 = vcombine.low %v6080_v58, %v6084_v44 }
 0x5ec   :  { %9348 = vmatpush1.bf16.msra.mxu1 %v12985_v25  ;;  %v13058_v25 = vcombine.high %v6080_v58, %v6084_v44  ;;  %v5918_v58 = vld [vmem:[#allocation5 + $0x130] sm:$0xff] }
 0x5ed   :  { %9389 = vmatpush1.bf16.msra.mxu0 %v12859_v35  ;;  %9349 = vmatprep.subr.bf16.mxu1 %v13106_v51  ;;  %v12932_v35 = vcombine.high %v5953_v62, %v5957_v23  ;;  %v6072_v51 = vld [vmem:[#allocation5 + $0x600] sm:$0xff] }
 0x5ee   :  { %9390 = vmatprep.subr.bf16.mxu0 %v12980_v6  ;;  %v6076_v6 = vld [vmem:[#allocation5 + $0x620] sm:$0xff] }
 0x5ef   :  { %v13049_v18 = vcombine.low %v6072_v51, %v6076_v6 }
 0x5f0   :  { %9350 = vmatpush2.bf16.msra.mxu1 %v13105_v21  ;;  %v13050_v21 = vcombine.high %v6072_v51, %v6076_v6  ;;  %v5906_v51 = vld [vmem:[#allocation5 + $0xd0] sm:$0xff] }
 0x5f1   :  { %9391 = vmatpush2.bf16.msra.mxu0 %v12979_v20  ;;  %9351 = vmatprep.subr.bf16.mxu1 %v13098_v17  ;;  %v12924_v20 = vcombine.high %v5945_v26, %v5949_v16  ;;  %v6065_v17 = vld [vmem:[#allocation5 + $0x5c8] sm:$0xff]  ;;  %v5910_v6 = vld [vmem:[#allocation5 + $0xf0] sm:$0xff] }
 0x5f2   :  { %9392 = vmatprep.subr.bf16.mxu0 %v12972_v56  ;;  %v6069_v56 = vld [vmem:[#allocation5 + $0x5e8] sm:$0xff] }
 0x5f3   :  { %v13043_v2 = vcombine.low %v6065_v17, %v6069_v56 }
 0x5f4   :  { %9352 = vmatpush2.bf16.msra.mxu1 %v13097_v13  ;;  %v13044_v13 = vcombine.high %v6065_v17, %v6069_v56  ;;  %v5898_v17 = vld [vmem:[#allocation5 + $0x90] sm:$0xff] }
 0x5f5   :  { %9393 = vmatpush2.bf16.msra.mxu0 %v12971_v45  ;;  %9353 = vmatprep.subr.bf16.mxu1 %v13090_v28  ;;  %v12918_v45 = vcombine.high %v5938_v60, %v5942_v29  ;;  %v6057_v28 = vld [vmem:[#allocation5 + $0x588] sm:$0xff]  ;;  %v5902_v56 = vld [vmem:[#allocation5 + $0xb0] sm:$0xff]  ;;  %v12885_v29 = vcombine.low %v5906_v51, %v5910_v6 }
 0x5f6   :  { %9394 = vmatprep.subr.bf16.mxu0 %v12964_v24  ;;  %v6061_v24 = vld [vmem:[#allocation5 + $0x5a8] sm:$0xff]  ;;  %v12877_v3 = vcombine.low %v5898_v17, %v5902_v56 }
 0x5f8   :  { %9354 = vmatpush2.bf16.msra.mxu1 %v13089_v14  ;;  %v13036_v14 = vcombine.high %v6057_v28, %v6061_v24 }
 0x5f9   :  { %9395 = vmatpush2.bf16.msra.mxu0 %v12963_v15  ;;  %9355 = vmatprep.subr.bf16.mxu1 %v13082_v10  ;;  %v6049_v15 = vld [vmem:[#allocation5 + $0x548] sm:$0xff] }
 0x5fa   :  { %9396 = vmatprep.subr.bf16.mxu0 %v12956_v48  ;;  %v6053_v10 = vld [vmem:[#allocation5 + $0x568] sm:$0xff] }
 0x5fb   :  { %v13028_v47 = vcombine.high %v6049_v15, %v6053_v10  ;;  %v13027_v44 = vcombine.low %v6049_v15, %v6053_v10  ;;  %v6013_v15 = vld [vmem:[#allocation5 + $0x428] sm:$0xff]  ;;  %v5882_v10 = vld [vmem:[#allocation5 + $0x10] sm:$0xff] }
 0x5fc   :  { %9356 = vmatpush2.bf16.msra.mxu1 %v13081_v5 }
 0x5fd   :  { %9397 = vmatpush2.bf16.msra.mxu0 %v12955_v42  ;;  %9357 = vmatprep.subr.bf16.mxu1 %v13074_v55  ;;  %v13035_v42 = vcombine.low %v6057_v28, %v6061_v24  ;;  %v5890_v28 = vld [vmem:[#allocation5 + $0x50] sm:$0xff] }
 0x5fe   :  { %9398 = vmatprep.subr.bf16.mxu0 %v12948_v7  ;;  %v5894_v24 = vld [vmem:[#allocation5 + $0x70] sm:$0xff] }
 0x600   :  { %9358 = vmatpush2.bf16.msra.mxu1 %v13073_v54  ;;  %v6045_v54 = vld [vmem:[#allocation5 + $0x528] sm:$0xff] }
 0x601   :  { %9399 = vmatpush2.bf16.msra.mxu0 %v12947_v27  ;;  %9359 = vmatprep.subr.bf16.mxu1 %v13066_v30  ;;  %v13019_v26 = vcombine.low %v6041_v53, %v6045_v54 }
 0x602   :  { %9400 = vmatprep.subr.bf16.mxu0 %v12940_v31  ;;  %v5914_v31 = vld [vmem:[#allocation5 + $0x110] sm:$0xff] }
 0x603   :  { %v12893_v16 = vcombine.low %v5914_v31, %v5918_v58 }
 0x604   :  { %9360 = vmatpush2.bf16.msra.mxu1 %v13065_v57  ;;  %v12901_v57 = vcombine.low %v5922_v12, %v5926_v41 }
 0x605   :  { %9401 = vmatpush2.bf16.msra.mxu0 %v12939_v61  ;;  %9361 = vmatprep.subr.bf16.mxu1 %v13058_v25  ;;  %v13020_v61 = vcombine.high %v6041_v53, %v6045_v54  ;;  %v6033_v25 = vld [vmem:[#allocation5 + $0x4c8] sm:$0xff] }
 0x606   :  { %9402 = vmatprep.subr.bf16.mxu0 %v12932_v35  ;;  %v6037_v35 = vld [vmem:[#allocation5 + $0x4e8] sm:$0xff] }
 0x607   :  { %v13011_v60 = vcombine.low %v6033_v25, %v6037_v35 }
 0x608   :  { %9362 = vmatpush2.bf16.msra.mxu1 %v13057_v19  ;;  %v13012_v19 = vcombine.high %v6033_v25, %v6037_v35  ;;  %v6113_v25 = vld [vmem:[#allocation5 + $0x748] sm:$0xff] }
 0x609   :  { %9403 = vmatpush2.bf16.msra.mxu0 %v12931_v39  ;;  %9363 = vmatprep.subr.bf16.mxu1 %v13050_v21  ;;  %v12886_v39 = vcombine.high %v5906_v51, %v5910_v6  ;;  %v6025_v21 = vld [vmem:[#allocation5 + $0x488] sm:$0xff]  ;;  %v5986_v51 = vld [vmem:[#allocation5 + $0x350] sm:$0xff] }
 0x60a   :  { %9404 = vmatprep.subr.bf16.mxu0 %v12924_v20  ;;  %v6029_v20 = vld [vmem:[#allocation5 + $0x4a8] sm:$0xff]  ;;  %v5990_v6 = vld [vmem:[#allocation5 + $0x370] sm:$0xff] }
 0x60b   :  { %v6117_v35 = vld [vmem:[#allocation5 + $0x768] sm:$0xff] }
 0x60c   :  { %9364 = vmatpush2.bf16.msra.mxu1 %v13049_v18  ;;  %v13004_v18 = vcombine.high %v6025_v21, %v6029_v20 }
 0x60d   :  { %9405 = vmatpush2.bf16.msra.mxu0 %v12923_v49  ;;  %9415 = vmatprep.subr.bf16.mxu1 %v13044_v13  ;;  %v12878_v49 = vcombine.high %v5898_v17, %v5902_v56  ;;  %v6017_v13 = vld [vmem:[#allocation5 + $0x448] sm:$0xff]  ;;  %v5978_v17 = vld [vmem:[#allocation5 + $0x310] sm:$0xff] }
 0x60e   :  { %9456 = vmatprep.subr.bf16.mxu0 %v12918_v45  ;;  %v6021_v45 = vld [vmem:[#allocation5 + $0x468] sm:$0xff]  ;;  %v5982_v56 = vld [vmem:[#allocation5 + $0x330] sm:$0xff] }
 0x60f   :  { %v7841_v48 = vpop.f32.mrf.mxu1  ;;  %v16451_v22 = vpop.f32.mrf.mxu0  ;;  %9366 = vmatmul.mubr.bf16.vlgmr.msra.gmra.mxu1 %v16401_v46  ;;  %v12996_v11 = vcombine.high %v6017_v13, %v6021_v45 }
 0x610   :  { %v16455_v5 = vadd.f32 %v7841_v48, %v16431_v43  ;;  %9407 = vmatmul.mubr.bf16.vlgmr.msra.gmra.mxu0 %v16381_v50  ;;  %9416 = vmatpush1.bf16.msra.mxu1 %v13043_v2  ;;  %v12902_v43 = vcombine.high %v5922_v12, %v5926_v41  ;;  %v13003_v2 = vcombine.low %v6025_v21, %v6029_v20  ;;  %v5886_v48 = vld [vmem:[#allocation5 + $0x30] sm:$0xff]  ;;  %v6105_v21 = vld [vmem:[#allocation5 + $0x708] sm:$0xff] }
 0x611   :  { %9447 = vmatprep.mubr.bf16.mxu1 %v16403_v9  ;;  %9457 = vmatpush1.bf16.msra.mxu0 %v12917_v33  ;;  %v7843_v55 = vpop.f32.mrf.mxu1  ;;  %v16459_v7 = vpop.f32.mrf.mxu0  ;;  %v12870_v33 = vcombine.high %v5890_v28, %v5894_v24  ;;  %v12869_v12 = vcombine.low %v5890_v28, %v5894_v24  ;;  %v12861_v54 = vcombine.low %v5882_v10, %v5886_v48  ;;  %v6109_v20 = vld [vmem:[#allocation5 + $0x728] sm:$0xff]  ;;  %v5970_v28 = vld [vmem:[#allocation5 + $0x2d0] sm:$0xff] }
 0x612   :  { %9488 = vmatprep.mubr.bf16.mxu0 %v16383_v32  ;;  %v16463_v1 = vadd.f32 %v7843_v55, %v16439_v52  ;;  %9417 = vmatprep.subr.bf16.mxu1 %v13036_v14  ;;  %v12894_v52 = vcombine.high %v5914_v31, %v5918_v58  ;;  %v6009_v14 = vld [vmem:[#allocation5 + $0x408] sm:$0xff]  ;;  %v5974_v24 = vld [vmem:[#allocation5 + $0x2f0] sm:$0xff] }
 0x613   :  { %v7845_v27 = vpop.f32.mrf.mxu1  ;;  %v7886_v30 = vpop.f32.mrf.mxu0  ;;  %9458 = vmatprep.subr.bf16.mxu0 %v12910_v63  ;;  %v12995_v63 = vcombine.low %v6017_v13, %v6021_v45  ;;  %v12988_v41 = vcombine.high %v6009_v14, %v6013_v15  ;;  %v6129_v55 = vld [vmem:[#allocation5 + $0x7c8] sm:$0xff]  ;;  %v12987_v53 = vcombine.low %v6009_v14, %v6013_v15 }
 0x614   :  { %9418 = vmatpush1.bf16.msra.mxu1 %v13035_v42  ;;  %v12862_v42 = vcombine.high %v5882_v10, %v5886_v48  ;;  %v6121_v31 = vld [vmem:[#allocation5 + $0x788] sm:$0xff]  ;;  %v5962_v10 = vld [vmem:[#allocation5 + $0x290] sm:$0xff] }
 0x615   :  { %9459 = vmatpush1.bf16.msra.mxu0 %v12909_v8  ;;  %v7846_v62 = vpop.f32.mrf.mxu1  ;;  %v7887_v23 = vpop.f32.mrf.mxu0  ;;  %9419 = vmatprep.subr.bf16.mxu1 %v13028_v47  ;;  %v6133_v8 = vld [vmem:[#allocation5 + $0x7e8] sm:$0xff]  ;;  %v6002_v47 = vld [vmem:[#allocation5 + $0x3d0] sm:$0xff] }
 0x616   :  { %9460 = vmatprep.subr.bf16.mxu0 %v12902_v43  ;;  %v6006_v43 = vld [vmem:[#allocation5 + $0x3f0] sm:$0xff]  ;;  %v13108_v27 = vcombine.high %v6129_v55, %v6133_v8  ;;  %v6125_v58 = vld [vmem:[#allocation5 + $0x7a8] sm:$0xff]  ;;  %v13107_v23 = vcombine.low %v6129_v55, %v6133_v8 }
 0x617   :  { %v12982_v30 = vcombine.high %v6002_v47, %v6006_v43  ;;  %v5998_v62 = vld [vmem:[#allocation5 + $0x3b0] sm:$0xff]  ;;  %v6097_v13 = vld [vmem:[#allocation5 + $0x6c8] sm:$0xff] }
 0x618   :  { %9420 = vmatpush1.bf16.msra.mxu1 %v13027_v44  ;;  %v5994_v44 = vld [vmem:[#allocation5 + $0x390] sm:$0xff]  ;;  %v6101_v45 = vld [vmem:[#allocation5 + $0x6e8] sm:$0xff] }
 0x619   :  { %9461 = vmatpush1.bf16.msra.mxu0 %v12901_v57  ;;  %9421 = vmatprep.subr.bf16.mxu1 %v13020_v61  ;;  %v12981_v57 = vcombine.low %v6002_v47, %v6006_v43  ;;  %v13100_v61 = vcombine.high %v6121_v31, %v6125_v58  ;;  %v6089_v14 = vld [vmem:[#allocation5 + $0x688] sm:$0xff]  ;;  %v5966_v48 = vld [vmem:[#allocation5 + $0x2b0] sm:$0xff] }
 0x61a   :  { %9462 = vmatprep.subr.bf16.mxu0 %v12894_v52  ;;  %v12974_v52 = vcombine.high %v5994_v44, %v5998_v62  ;;  %v6093_v15 = vld [vmem:[#allocation5 + $0x6a8] sm:$0xff]  ;;  %v5954_v47 = vld [vmem:[#allocation5 + $0x250] sm:$0xff] }
 0x61b   :  { %v6081_v55 = vld [vmem:[#allocation5 + $0x648] sm:$0xff]  ;;  %v5958_v43 = vld [vmem:[#allocation5 + $0x270] sm:$0xff] }
 0x61c   :  { %9422 = vmatpush1.bf16.msra.mxu1 %v13019_v26  ;;  %v13099_v26 = vcombine.low %v6121_v31, %v6125_v58  ;;  %v6085_v8 = vld [vmem:[#allocation5 + $0x668] sm:$0xff] }
 0x61d   :  { %9463 = vmatpush1.bf16.msra.mxu0 %v12893_v16  ;;  %9423 = vmatprep.subr.bf16.mxu1 %v13012_v19  ;;  %v12973_v16 = vcombine.low %v5994_v44, %v5998_v62  ;;  %v13092_v19 = vcombine.high %v6113_v25, %v6117_v35  ;;  %v6073_v31 = vld [vmem:[#allocation5 + $0x608] sm:$0xff]  ;;  %v5946_v44 = vld [vmem:[#allocation5 + $0x210] sm:$0xff] }
 0x61e   :  { %9464 = vmatprep.subr.bf16.mxu0 %v12886_v39  ;;  %v12966_v39 = vcombine.high %v5986_v51, %v5990_v6  ;;  %v6077_v58 = vld [vmem:[#allocation5 + $0x628] sm:$0xff]  ;;  %v5950_v62 = vld [vmem:[#allocation5 + $0x230] sm:$0xff] }
 0x620   :  { %9424 = vmatpush1.bf16.msra.mxu1 %v13011_v60  ;;  %v13091_v60 = vcombine.low %v6113_v25, %v6117_v35  ;;  %v6066_v25 = vld [vmem:[#allocation5 + $0x5d0] sm:$0xff] }
 0x621   :  { %9465 = vmatpush1.bf16.msra.mxu0 %v12885_v29  ;;  %9425 = vmatprep.subr.bf16.mxu1 %v13004_v18  ;;  %v12965_v29 = vcombine.low %v5986_v51, %v5990_v6  ;;  %v13084_v18 = vcombine.high %v6105_v21, %v6109_v20  ;;  %v6070_v35 = vld [vmem:[#allocation5 + $0x5f0] sm:$0xff]  ;;  %v5939_v51 = vld [vmem:[#allocation5 + $0x1d8] sm:$0xff] }
 0x622   :  { %9466 = vmatprep.subr.bf16.mxu0 %v12878_v49  ;;  %v12958_v49 = vcombine.high %v5978_v17, %v5982_v56  ;;  %v5943_v6 = vld [vmem:[#allocation5 + $0x1f8] sm:$0xff] }
 0x624   :  { %9426 = vmatpush1.bf16.msra.mxu1 %v13003_v2  ;;  %v13083_v2 = vcombine.low %v6105_v21, %v6109_v20  ;;  %v6058_v21 = vld [vmem:[#allocation5 + $0x590] sm:$0xff] }
 0x625   :  { %9467 = vmatpush1.bf16.msra.mxu0 %v12877_v3  ;;  %9427 = vmatprep.subr.bf16.mxu1 %v12996_v11  ;;  %v12957_v3 = vcombine.low %v5978_v17, %v5982_v56  ;;  %v13076_v11 = vcombine.high %v6097_v13, %v6101_v45  ;;  %v6062_v20 = vld [vmem:[#allocation5 + $0x5b0] sm:$0xff]  ;;  %v13045_v17 = vcombine.low %v6066_v25, %v6070_v35  ;;  %v5931_v56 = vld [vmem:[#allocation5 + $0x198] sm:$0xff] }
 0x626   :  { %9468 = vmatprep.subr.bf16.mxu0 %v12870_v33  ;;  %v12950_v33 = vcombine.high %v5970_v28, %v5974_v24 }
 0x628   :  { %9428 = vmatpush1.bf16.msra.mxu1 %v12995_v63  ;;  %v13075_v63 = vcombine.low %v6097_v13, %v6101_v45  ;;  %v6054_v13 = vld [vmem:[#allocation5 + $0x570] sm:$0xff] }
 0x629   :  { %9469 = vmatpush1.bf16.msra.mxu0 %v12869_v12  ;;  %9429 = vmatprep.subr.bf16.mxu1 %v12988_v41  ;;  %v12949_v12 = vcombine.low %v5970_v28, %v5974_v24  ;;  %v13068_v41 = vcombine.high %v6089_v14, %v6093_v15  ;;  %v5923_v24 = vld [vmem:[#allocation5 + $0x158] sm:$0xff] }
 0x62a   :  { %9470 = vmatprep.subr.bf16.mxu0 %v12862_v42  ;;  %v12942_v42 = vcombine.high %v5962_v10, %v5966_v48 }
 0x62c   :  { %9430 = vmatpush1.bf16.msra.mxu1 %v12987_v53  ;;  %v13067_v53 = vcombine.low %v6089_v14, %v6093_v15 }
 0x62d   :  { %9471 = vmatpush1.bf16.msra.mxu0 %v12861_v54  ;;  %9431 = vmatprep.subr.bf16.mxu1 %v13108_v27  ;;  %v12941_v54 = vcombine.low %v5962_v10, %v5966_v48  ;;  %v13060_v27 = vcombine.high %v6081_v55, %v6085_v8 }
 0x62e   :  { %9472 = vmatprep.subr.bf16.mxu0 %v12982_v30  ;;  %v12934_v30 = vcombine.high %v5954_v47, %v5958_v43 }
 0x630   :  { %9432 = vmatpush2.bf16.msra.mxu1 %v13107_v23  ;;  %v13059_v23 = vcombine.low %v6081_v55, %v6085_v8  ;;  %v5915_v55 = vld [vmem:[#allocation5 + $0x118] sm:$0xff] }
 0x631   :  { %9473 = vmatpush2.bf16.msra.mxu0 %v12981_v57  ;;  %9433 = vmatprep.subr.bf16.mxu1 %v13100_v61  ;;  %v12933_v57 = vcombine.low %v5954_v47, %v5958_v43  ;;  %v13052_v61 = vcombine.high %v6073_v31, %v6077_v58  ;;  %v5919_v8 = vld [vmem:[#allocation5 + $0x138] sm:$0xff] }
 0x632   :  { %9474 = vmatprep.subr.bf16.mxu0 %v12974_v52  ;;  %v12926_v52 = vcombine.high %v5946_v44, %v5950_v62 }
 0x634   :  { %9434 = vmatpush2.bf16.msra.mxu1 %v13099_v26  ;;  %v13051_v26 = vcombine.low %v6073_v31, %v6077_v58  ;;  %v6038_v31 = vld [vmem:[#allocation5 + $0x4f0] sm:$0xff]  ;;  %v5907_v58 = vld [vmem:[#allocation5 + $0xd8] sm:$0xff] }
 0x635   :  { %9475 = vmatpush2.bf16.msra.mxu0 %v12973_v16  ;;  %9435 = vmatprep.subr.bf16.mxu1 %v13092_v19  ;;  %v12925_v16 = vcombine.low %v5946_v44, %v5950_v62  ;;  %v13046_v19 = vcombine.high %v6066_v25, %v6070_v35  ;;  %v5911_v44 = vld [vmem:[#allocation5 + $0xf8] sm:$0xff]  ;;  %v6030_v25 = vld [vmem:[#allocation5 + $0x4b0] sm:$0xff] }
 0x636   :  { %9476 = vmatprep.subr.bf16.mxu0 %v12966_v39  ;;  %v12920_v39 = vcombine.high %v5939_v51, %v5943_v6  ;;  %v5899_v35 = vld [vmem:[#allocation5 + $0x98] sm:$0xff] }
 0x638   :  { %9436 = vmatpush2.bf16.msra.mxu1 %v13091_v60  ;;  %v5935_v60 = vld [vmem:[#allocation5 + $0x1b8] sm:$0xff] }
 0x639   :  { %9477 = vmatpush2.bf16.msra.mxu0 %v12965_v29  ;;  %9437 = vmatprep.subr.bf16.mxu1 %v13084_v18  ;;  %v12919_v29 = vcombine.low %v5939_v51, %v5943_v6  ;;  %v13038_v18 = vcombine.high %v6058_v21, %v6062_v20  ;;  %v12912_v28 = vcombine.high %v5931_v56, %v5935_v60  ;;  %v5903_v51 = vld [vmem:[#allocation5 + $0xb8] sm:$0xff] }
 0x63a   :  { %9478 = vmatprep.subr.bf16.mxu0 %v12958_v49  ;;  %v6050_v49 = vld [vmem:[#allocation5 + $0x550] sm:$0xff]  ;;  %v12911_v15 = vcombine.low %v5931_v56, %v5935_v60  ;;  %v12879_v60 = vcombine.low %v5899_v35, %v5903_v51 }
 0x63b   :  { %v13030_v10 = vcombine.high %v6050_v49, %v6054_v13  ;;  %v13029_v43 = vcombine.low %v6050_v49, %v6054_v13  ;;  %v6010_v49 = vld [vmem:[#allocation5 + $0x410] sm:$0xff] }
 0x63c   :  { %9438 = vmatpush2.bf16.msra.mxu1 %v13083_v2  ;;  %v5927_v2 = vld [vmem:[#allocation5 + $0x178] sm:$0xff]  ;;  %v6014_v13 = vld [vmem:[#allocation5 + $0x430] sm:$0xff] }
 0x63d   :  { %9479 = vmatpush2.bf16.msra.mxu0 %v12957_v3  ;;  %9439 = vmatprep.subr.bf16.mxu1 %v13076_v11 }
 0x63e   :  { %9480 = vmatprep.subr.bf16.mxu0 %v12950_v33  ;;  %v13037_v33 = vcombine.low %v6058_v21, %v6062_v20  ;;  %v6022_v21 = vld [vmem:[#allocation5 + $0x470] sm:$0xff]  ;;  %v5891_v20 = vld [vmem:[#allocation5 + $0x58] sm:$0xff] }
 0x640   :  { %9440 = vmatpush2.bf16.msra.mxu1 %v13075_v63 }
 0x641   :  { %9481 = vmatpush2.bf16.msra.mxu0 %v12949_v12  ;;  %9441 = vmatprep.subr.bf16.mxu1 %v13068_v41  ;;  %v6042_v12 = vld [vmem:[#allocation5 + $0x510] sm:$0xff] }
 0x642   :  { %9482 = vmatprep.subr.bf16.mxu0 %v12942_v42  ;;  %v6046_v41 = vld [vmem:[#allocation5 + $0x530] sm:$0xff] }
 0x643   :  { %v13021_v62 = vcombine.low %v6042_v12, %v6046_v41 }
 0x644   :  { %9442 = vmatpush2.bf16.msra.mxu1 %v13067_v53 }
 0x645   :  { %9483 = vmatpush2.bf16.msra.mxu0 %v12941_v54  ;;  %9443 = vmatprep.subr.bf16.mxu1 %v13060_v27  ;;  %v13022_v54 = vcombine.high %v6042_v12, %v6046_v41  ;;  %v12896_v27 = vcombine.high %v5915_v55, %v5919_v8  ;;  %v6007_v12 = vld [vmem:[#allocation5 + $0x3f8] sm:$0xff]  ;;  %v12989_v41 = vcombine.low %v6010_v49, %v6014_v13 }
 0x646   :  { %9484 = vmatprep.subr.bf16.mxu0 %v12934_v30  ;;  %v6034_v30 = vld [vmem:[#allocation5 + $0x4d0] sm:$0xff] }
 0x647   :  { %v13013_v6 = vcombine.low %v6034_v30, %v6038_v31 }
 0x648   :  { %9444 = vmatpush2.bf16.msra.mxu1 %v13059_v23  ;;  %v12895_v23 = vcombine.low %v5915_v55, %v5919_v8 }
 0x649   :  { %9485 = vmatpush2.bf16.msra.mxu0 %v12933_v57  ;;  %9445 = vmatprep.subr.bf16.mxu1 %v13052_v61  ;;  %v13014_v57 = vcombine.high %v6034_v30, %v6038_v31  ;;  %v12888_v61 = vcombine.high %v5907_v58, %v5911_v44  ;;  %v6114_v31 = vld [vmem:[#allocation5 + $0x750] sm:$0xff] }
 0x64a   :  { %9486 = vmatprep.subr.bf16.mxu0 %v12926_v52  ;;  %v6026_v52 = vld [vmem:[#allocation5 + $0x490] sm:$0xff] }
 0x64b   :  { %v13005_v56 = vcombine.low %v6026_v52, %v6030_v25 }
 0x64c   :  { %9446 = vmatpush2.bf16.msra.mxu1 %v13051_v26  ;;  %v12887_v26 = vcombine.low %v5907_v58, %v5911_v44  ;;  %v6118_v58 = vld [vmem:[#allocation5 + $0x770] sm:$0xff]  ;;  %v5987_v44 = vld [vmem:[#allocation5 + $0x358] sm:$0xff] }
 0x64d   :  { %9487 = vmatpush2.bf16.msra.mxu0 %v12925_v16  ;;  %9497 = vmatprep.subr.bf16.mxu1 %v13046_v19  ;;  %v13006_v16 = vcombine.high %v6026_v52, %v6030_v25  ;;  %v12880_v19 = vcombine.high %v5899_v35, %v5903_v51  ;;  %v6106_v25 = vld [vmem:[#allocation5 + $0x710] sm:$0xff]  ;;  %v5979_v51 = vld [vmem:[#allocation5 + $0x318] sm:$0xff] }
 0x64e   :  { %9538 = vmatprep.subr.bf16.mxu0 %v12920_v39  ;;  %v6018_v39 = vld [vmem:[#allocation5 + $0x450] sm:$0xff] }
 0x64f   :  { %v7923_v45 = vpop.f32.mrf.mxu1  ;;  %9448 = vmatmul.mubr.bf16.vlgmr.msra.gmra.mxu1 %v16401_v46  ;;  %v6110_v35 = vld [vmem:[#allocation5 + $0x730] sm:$0xff] }
 0x650   :  { %v16467_v3 = vadd.f32 %v7923_v45, %v16451_v22  ;;  %v16469_v11 = vpop.f32.mrf.mxu0  ;;  %9489 = vmatmul.mubr.bf16.vlgmr.msra.gmra.mxu0 %v16381_v50  ;;  %9498 = vmatpush1.bf16.msra.mxu1 %v13045_v17  ;;  %v12904_v22 = vcombine.high %v5923_v24, %v5927_v2  ;;  %v5895_v17 = vld [vmem:[#allocation5 + $0x78] sm:$0xff] }
 0x651   :  { %9529 = vmatprep.mubr.bf16.mxu1 %v16403_v9  ;;  %9539 = vmatpush1.bf16.msra.mxu0 %v12919_v29  ;;  %v7925_v14 = vpop.f32.mrf.mxu1  ;;  %v12998_v29 = vcombine.high %v6018_v39, %v6022_v21  ;;  %v5883_v45 = vld [vmem:[#allocation5 + $0x18] sm:$0xff] }
 0x652   :  { %9570 = vmatprep.mubr.bf16.mxu0 %v16383_v32  ;;  %v16475_v48 = vadd.f32 %v7925_v14, %v16459_v7  ;;  %v16477_v63 = vpop.f32.mrf.mxu0  ;;  %9499 = vmatprep.subr.bf16.mxu1 %v13038_v18  ;;  %v12903_v32 = vcombine.low %v5923_v24, %v5927_v2  ;;  %v12872_v18 = vcombine.high %v5891_v20, %v5895_v17 }
 0x653   :  { %v7927_v42 = vpop.f32.mrf.mxu1  ;;  %9540 = vmatprep.subr.bf16.mxu0 %v12912_v28  ;;  %v5887_v28 = vld [vmem:[#allocation5 + $0x38] sm:$0xff]  ;;  %v12997_v24 = vcombine.low %v6018_v39, %v6022_v21  ;;  %v12871_v2 = vcombine.low %v5891_v20, %v5895_v17  ;;  %v6098_v21 = vld [vmem:[#allocation5 + $0x6d0] sm:$0xff] }
 0x654   :  { %v7968_v47 = vpop.f32.mrf.mxu0  ;;  %9500 = vmatpush1.bf16.msra.mxu1 %v13037_v33  ;;  %v12990_v33 = vcombine.high %v6010_v49, %v6014_v13  ;;  %v12864_v14 = vcombine.high %v5883_v45, %v5887_v28  ;;  %v12863_v42 = vcombine.low %v5883_v45, %v5887_v28  ;;  %v6102_v20 = vld [vmem:[#allocation5 + $0x6f0] sm:$0xff]  ;;  %v5971_v17 = vld [vmem:[#allocation5 + $0x2d8] sm:$0xff] }
 0x655   :  { %9541 = vmatpush1.bf16.msra.mxu0 %v12911_v15  ;;  %v7928_v53 = vpop.f32.mrf.mxu1  ;;  %9501 = vmatprep.subr.bf16.mxu1 %v13030_v10  ;;  %v6130_v15 = vld [vmem:[#allocation5 + $0x7d0] sm:$0xff]  ;;  %v5963_v28 = vld [vmem:[#allocation5 + $0x298] sm:$0xff] }
 0x656   :  { %v7969_v7 = vpop.f32.mrf.mxu0  ;;  %9542 = vmatprep.subr.bf16.mxu0 %v12904_v22  ;;  %v6134_v10 = vld [vmem:[#allocation5 + $0x7f0] sm:$0xff]  ;;  %v6003_v22 = vld [vmem:[#allocation5 + $0x3d8] sm:$0xff] }
 0x657   :  { %v13110_v55 = vcombine.high %v6130_v15, %v6134_v10  ;;  %v12984_v8 = vcombine.high %v6003_v22, %v6007_v12  ;;  %v6122_v47 = vld [vmem:[#allocation5 + $0x790] sm:$0xff]  ;;  %v5995_v53 = vld [vmem:[#allocation5 + $0x398] sm:$0xff]  ;;  %v12983_v7 = vcombine.low %v6003_v22, %v6007_v12 }
 0x658   :  { %9502 = vmatpush1.bf16.msra.mxu1 %v13029_v43  ;;  %v6126_v43 = vld [vmem:[#allocation5 + $0x7b0] sm:$0xff]  ;;  %v5955_v12 = vld [vmem:[#allocation5 + $0x258] sm:$0xff] }
 0x659   :  { %9543 = vmatpush1.bf16.msra.mxu0 %v12903_v32  ;;  %9503 = vmatprep.subr.bf16.mxu1 %v13022_v54  ;;  %v5999_v32 = vld [vmem:[#allocation5 + $0x3b8] sm:$0xff]  ;;  %v13109_v54 = vcombine.low %v6130_v15, %v6134_v10  ;;  %v6090_v13 = vld [vmem:[#allocation5 + $0x690] sm:$0xff] }
 0x65a   :  { %9544 = vmatprep.subr.bf16.mxu0 %v12896_v27  ;;  %v13102_v27 = vcombine.high %v6122_v47, %v6126_v43  ;;  %v12976_v30 = vcombine.high %v5995_v53, %v5999_v32  ;;  %v6094_v45 = vld [vmem:[#allocation5 + $0x6b0] sm:$0xff] }
 0x65b   :  { %v6082_v10 = vld [vmem:[#allocation5 + $0x650] sm:$0xff] }
 0x65c   :  { %9504 = vmatpush1.bf16.msra.mxu1 %v13021_v62  ;;  %v5991_v62 = vld [vmem:[#allocation5 + $0x378] sm:$0xff]  ;;  %v6086_v22 = vld [vmem:[#allocation5 + $0x670] sm:$0xff] }
 0x65d   :  { %9545 = vmatpush1.bf16.msra.mxu0 %v12895_v23  ;;  %9505 = vmatprep.subr.bf16.mxu1 %v13014_v57  ;;  %v13101_v23 = vcombine.low %v6122_v47, %v6126_v43  ;;  %v12975_v57 = vcombine.low %v5995_v53, %v5999_v32  ;;  %v12968_v52 = vcombine.high %v5987_v44, %v5991_v62  ;;  %v6074_v43 = vld [vmem:[#allocation5 + $0x610] sm:$0xff]  ;;  %v5947_v32 = vld [vmem:[#allocation5 + $0x218] sm:$0xff] }
 0x65e   :  { %9546 = vmatprep.subr.bf16.mxu0 %v12888_v61  ;;  %v13094_v61 = vcombine.high %v6114_v31, %v6118_v58  ;;  %v6078_v53 = vld [vmem:[#allocation5 + $0x630] sm:$0xff] }
 0x660   :  { %9506 = vmatpush1.bf16.msra.mxu1 %v13013_v6  ;;  %v5983_v6 = vld [vmem:[#allocation5 + $0x338] sm:$0xff] }
 0x661   :  { %9547 = vmatpush1.bf16.msra.mxu0 %v12887_v26  ;;  %9507 = vmatprep.subr.bf16.mxu1 %v13006_v16  ;;  %v13093_v26 = vcombine.low %v6114_v31, %v6118_v58  ;;  %v12967_v16 = vcombine.low %v5987_v44, %v5991_v62  ;;  %v12960_v39 = vcombine.high %v5979_v51, %v5983_v6  ;;  %v6067_v58 = vld [vmem:[#allocation5 + $0x5d8] sm:$0xff]  ;;  %v9854_v62 = vld [vmem:[#allocation8 + $0x1c0] sm:$0xff] }
 0x662   :  { %9548 = vmatprep.subr.bf16.mxu0 %v12880_v19  ;;  %v13086_v19 = vcombine.high %v6106_v25, %v6110_v35  ;;  %v6071_v44 = vld [vmem:[#allocation5 + $0x5f8] sm:$0xff] }
 0x664   :  { %9508 = vmatpush1.bf16.msra.mxu1 %v13005_v56  ;;  %v5975_v56 = vld [vmem:[#allocation5 + $0x2f8] sm:$0xff] }
 0x665   :  { %9549 = vmatpush1.bf16.msra.mxu0 %v12879_v60  ;;  %9509 = vmatprep.subr.bf16.mxu1 %v12998_v29  ;;  %v13085_v60 = vcombine.low %v6106_v25, %v6110_v35  ;;  %v12959_v29 = vcombine.low %v5979_v51, %v5983_v6  ;;  %v12952_v49 = vcombine.high %v5971_v17, %v5975_v56  ;;  %v6059_v35 = vld [vmem:[#allocation5 + $0x598] sm:$0xff]  ;;  %v9846_v6 = vld [vmem:[#allocation8 + $0x180] sm:$0xff] }
 0x666   :  { %9550 = vmatprep.subr.bf16.mxu0 %v12872_v18  ;;  %v13078_v18 = vcombine.high %v6098_v21, %v6102_v20  ;;  %v6063_v51 = vld [vmem:[#allocation5 + $0x5b8] sm:$0xff] }
 0x668   :  { %9510 = vmatpush1.bf16.msra.mxu1 %v12997_v24  ;;  %v5967_v24 = vld [vmem:[#allocation5 + $0x2b8] sm:$0xff] }
 0x669   :  { %9551 = vmatpush1.bf16.msra.mxu0 %v12871_v2  ;;  %9511 = vmatprep.subr.bf16.mxu1 %v12990_v33  ;;  %v13077_v2 = vcombine.low %v6098_v21, %v6102_v20  ;;  %v12951_v33 = vcombine.low %v5971_v17, %v5975_v56  ;;  %v12944_v15 = vcombine.high %v5963_v28, %v5967_v24  ;;  %v6051_v20 = vld [vmem:[#allocation5 + $0x558] sm:$0xff] }
 0x66a   :  { %9552 = vmatprep.subr.bf16.mxu0 %v12864_v14  ;;  %v13070_v14 = vcombine.high %v6090_v13, %v6094_v45  ;;  %v6055_v17 = vld [vmem:[#allocation5 + $0x578] sm:$0xff] }
 0x66c   :  { %9512 = vmatpush1.bf16.msra.mxu1 %v12989_v41  ;;  %v5959_v41 = vld [vmem:[#allocation5 + $0x278] sm:$0xff] }
 0x66d   :  { %9553 = vmatpush1.bf16.msra.mxu0 %v12863_v42  ;;  %9513 = vmatprep.subr.bf16.mxu1 %v13110_v55  ;;  %v13069_v42 = vcombine.low %v6090_v13, %v6094_v45  ;;  %v12943_v55 = vcombine.low %v5963_v28, %v5967_v24  ;;  %v12936_v47 = vcombine.high %v5955_v12, %v5959_v41 }
 0x66e   :  { %9554 = vmatprep.subr.bf16.mxu0 %v12984_v8  ;;  %v13062_v8 = vcombine.high %v6082_v10, %v6086_v22  ;;  %v13039_v13 = vcombine.low %v6059_v35, %v6063_v51 }
 0x670   :  { %9514 = vmatpush2.bf16.msra.mxu1 %v13109_v54  ;;  %v5951_v54 = vld [vmem:[#allocation5 + $0x238] sm:$0xff] }
 0x671   :  { %9555 = vmatpush2.bf16.msra.mxu0 %v12983_v7  ;;  %9515 = vmatprep.subr.bf16.mxu1 %v13102_v27  ;;  %v13061_v7 = vcombine.low %v6082_v10, %v6086_v22  ;;  %v12935_v27 = vcombine.low %v5955_v12, %v5959_v41  ;;  %v12928_v31 = vcombine.high %v5947_v32, %v5951_v54  ;;  %v9830_v10 = vld [vmem:[#allocation8 + $0x100] sm:$0xff] }
 0x672   :  { %9556 = vmatprep.subr.bf16.mxu0 %v12976_v30  ;;  %v13054_v30 = vcombine.high %v6074_v43, %v6078_v53  ;;  %v9834_v22 = vld [vmem:[#allocation8 + $0x120] sm:$0xff] }
 0x674   :  { %9516 = vmatpush2.bf16.msra.mxu1 %v13101_v23  ;;  %v9858_v23 = vld [vmem:[#allocation8 + $0x1e0] sm:$0xff] }
 0x675   :  { %9557 = vmatpush2.bf16.msra.mxu0 %v12975_v57  ;;  %9517 = vmatprep.subr.bf16.mxu1 %v13094_v61  ;;  %v13053_v57 = vcombine.low %v6074_v43, %v6078_v53  ;;  %v12927_v61 = vcombine.low %v5947_v32, %v5951_v54  ;;  %v16479_v25 = vcombine.high %v9854_v62, %v9858_v23  ;;  %v6039_v43 = vld [vmem:[#allocation5 + $0x4f8] sm:$0xff]  ;;  %v9822_v53 = vld [vmem:[#allocation8 + $0xc0] sm:$0xff] }
 0x676   :  { %9558 = vmatprep.subr.bf16.mxu0 %v12968_v52  ;;  %v13048_v52 = vcombine.high %v6067_v58, %v6071_v44  ;;  %v9826_v32 = vld [vmem:[#allocation8 + $0xe0] sm:$0xff] }
 0x677   :  { %17836 = vst [vmem:[#allocation20_spill] sm:$0xff] %v16479_v25 }
 0x678   :  { %9518 = vmatpush2.bf16.msra.mxu1 %v13093_v26  ;;  %v9850_v26 = vld [vmem:[#allocation8 + $0x1a0] sm:$0xff] }
 0x679   :  { %9559 = vmatpush2.bf16.msra.mxu0 %v12967_v16  ;;  %9519 = vmatprep.subr.bf16.mxu1 %v13086_v19  ;;  %v13047_v16 = vcombine.low %v6067_v58, %v6071_v44  ;;  %v16481_v19 = vcombine.low %v9854_v62, %v9858_v23  ;;  %v16484_v21 = vcombine.high %v9846_v6, %v9850_v26  ;;  %v6031_v58 = vld [vmem:[#allocation5 + $0x4b8] sm:$0xff]  ;;  %v9814_v44 = vld [vmem:[#allocation8 + $0x80] sm:$0xff] }
 0x67a   :  { %9560 = vmatprep.subr.bf16.mxu0 %v12960_v39  ;;  %v13040_v39 = vcombine.high %v6059_v35, %v6063_v51  ;;  %v16496_v24 = vcombine.low %v9846_v6, %v9850_v26  ;;  %v9818_v62 = vld [vmem:[#allocation8 + $0xa0] sm:$0xff]  ;;  %v6019_v35 = vld [vmem:[#allocation5 + $0x458] sm:$0xff] }
 0x67b   :  { %17837 = vst [vmem:[#allocation21_spill] sm:$0xff] %v16481_v19  ;;  %17838 = vst [vmem:[#allocation22_spill] sm:$0xff] %v16484_v21  ;;  %v6023_v51 = vld [vmem:[#allocation5 + $0x478] sm:$0xff]  ;;  %v9806_v6 = vld [vmem:[#allocation8 + $0x40] sm:$0xff] }
 0x67c   :  { %9520 = vmatpush2.bf16.msra.mxu1 %v13085_v60  ;;  %v9838_v60 = vld [vmem:[#allocation8 + $0x140] sm:$0xff]  ;;  %17839 = vst [vmem:[#allocation23_spill] sm:$0xff] %v16496_v24 }
 0x67d   :  { %9561 = vmatpush2.bf16.msra.mxu0 %v12959_v29  ;;  %9521 = vmatprep.subr.bf16.mxu1 %v13078_v18  ;;  %v9842_v29 = vld [vmem:[#allocation8 + $0x160] sm:$0xff] }
 0x67e   :  { %9562 = vmatprep.subr.bf16.mxu0 %v12952_v49  ;;  %v9810_v26 = vld [vmem:[#allocation8 + $0x60] sm:$0xff] }
 0x680   :  { %9522 = vmatpush2.bf16.msra.mxu1 %v13077_v2  ;;  %v13032_v2 = vcombine.high %v6051_v20, %v6055_v17 }
 0x681   :  { %9563 = vmatpush2.bf16.msra.mxu0 %v12951_v33  ;;  %9523 = vmatprep.subr.bf16.mxu1 %v13070_v14  ;;  %v6043_v14 = vld [vmem:[#allocation5 + $0x518] sm:$0xff] }
 0x682   :  { %9564 = vmatprep.subr.bf16.mxu0 %v12944_v15 }
 0x684   :  { %9524 = vmatpush2.bf16.msra.mxu1 %v13069_v42  ;;  %v16509_v42 = vcombine.low %v9838_v60, %v9842_v29 }
 0x685   :  { %9565 = vmatpush2.bf16.msra.mxu0 %v12943_v55  ;;  %9525 = vmatprep.subr.bf16.mxu1 %v13062_v8 }
 0x686   :  { %9566 = vmatprep.subr.bf16.mxu0 %v12936_v47  ;;  %17841 = vst [vmem:[#allocation25_spill] sm:$0xff] %v16509_v42  ;;  %v6035_v47 = vld [vmem:[#allocation5 + $0x4d8] sm:$0xff] }
 0x687   :  { %v13015_v23 = vcombine.low %v6035_v47, %v6039_v43 }
 0x688   :  { %9526 = vmatpush2.bf16.msra.mxu1 %v13061_v7  ;;  %v16515_v7 = vcombine.low %v9830_v10, %v9834_v22 }
 0x689   :  { %9567 = vmatpush2.bf16.msra.mxu0 %v12935_v27  ;;  %9527 = vmatprep.subr.bf16.mxu1 %v13054_v30  ;;  %v13016_v27 = vcombine.high %v6035_v47, %v6039_v43  ;;  %v16518_v30 = vcombine.high %v9822_v53, %v9826_v32  ;;  %v9910_v47 = vld [vmem:[#allocation8 + $0x380] sm:$0xff] }
 0x68a   :  { %9568 = vmatprep.subr.bf16.mxu0 %v12928_v31  ;;  %17843 = vst [vmem:[#allocation27_spill] sm:$0xff] %v16515_v7  ;;  %v6027_v31 = vld [vmem:[#allocation5 + $0x498] sm:$0xff]  ;;  %v9914_v43 = vld [vmem:[#allocation8 + $0x3a0] sm:$0xff] }
 0x68b   :  { %17844 = vst [vmem:[#allocation28_spill] sm:$0xff] %v16518_v30 }
 0x68c   :  { %9528 = vmatpush2.bf16.msra.mxu1 %v13053_v57  ;;  %v16521_v57 = vcombine.low %v9822_v53, %v9826_v32 }
 0x68d   :  { %9569 = vmatpush2.bf16.msra.mxu0 %v12927_v61  ;;  %9579 = vmatprep.subr.bf16.mxu1 %v13048_v52  ;;  %v13008_v61 = vcombine.high %v6027_v31, %v6031_v58  ;;  %v16524_v52 = vcombine.high %v9814_v44, %v9818_v62 }
 0x68e   :  { %10566 = vmatprep.subr.bf16.mxu0 %v16479_v25  ;;  %17845 = vst [vmem:[#allocation29_spill] sm:$0xff] %v16521_v57 }
 0x68f   :  { %v8005_v56 = vpop.f32.mrf.mxu1  ;;  %9530 = vmatmul.mubr.bf16.vlgmr.msra.gmra.mxu1 %v16401_v46  ;;  %17846 = vst [vmem:[#allocation30_spill] sm:$0xff] %v16524_v52 }
 0x690   :  { %v16488_v18 = vadd.f32 %v8005_v56, %v16469_v11  ;;  %v9326_v49 = vpop.f32.mrf.mxu0  ;;  %9571 = vmatmul.mubr.bf16.vlgmr.msra.gmra.mxu0 %v16381_v50  ;;  %9580 = vmatpush1.bf16.msra.mxu1 %v13047_v16  ;;  %v16502_v50 = vcombine.high %v9838_v60, %v9842_v29  ;;  %v13007_v16 = vcombine.low %v6027_v31, %v6031_v58  ;;  %v6011_v56 = vld [vmem:[#allocation5 + $0x418] sm:$0xff]  ;;  %v9798_v29 = vld [vmem:[#allocation8] sm:$0xff] }
 0x691   :  { %v16492_v45 = vadd.f32 %v9326_v49, %v16436_v4  ;;  %9611 = vmatprep.mubr.bf16.mxu1 %v16403_v9  ;;  %10567 = vmatpush1.bf16.msra.mxu0 %v16481_v19  ;;  %v8007_v28 = vpop.f32.mrf.mxu1  ;;  %v6047_v4 = vld [vmem:[#allocation5 + $0x538] sm:$0xff]  ;;  %v9802_v49 = vld [vmem:[#allocation8 + $0x20] sm:$0xff] }
 0x692   :  { %v16499_v33 = vadd.f32 %v8007_v28, %v16477_v63  ;;  %v9328_v11 = vpop.f32.mrf.mxu0  ;;  %9581 = vmatprep.subr.bf16.mxu1 %v13040_v39  ;;  %10568 = vmatprep.subr.bf16.mxu0 %v16484_v21  ;;  %17840 = vst [vmem:[#allocation24_spill] sm:$0xff] %v16502_v50  ;;  %v13031_v63 = vcombine.low %v6051_v20, %v6055_v17  ;;  %v6015_v60 = vld [vmem:[#allocation5 + $0x438] sm:$0xff] }
 0x693   :  { %v16505_v15 = vadd.f32 %v9328_v11, %v16443_v40  ;;  %v8009_v9 = vpop.f32.mrf.mxu1  ;;  %10598 = vmatprep.mubr.bf16.mxu0 %v17581_v0  ;;  %v13024_v55 = vcombine.high %v6043_v14, %v6047_v4  ;;  %v16512_v40 = vcombine.high %v9830_v10, %v9834_v22  ;;  %v13023_v54 = vcombine.low %v6043_v14, %v6047_v4  ;;  %v6131_v14 = vld [vmem:[#allocation5 + $0x7d8] sm:$0xff]  ;;  %v9922_v10 = vld [vmem:[#allocation8 + $0x3e0] sm:$0xff] }
 0x694   :  { %v9330_v12 = vpop.f32.mrf.mxu0  ;;  %9582 = vmatpush1.bf16.msra.mxu1 %v13039_v13  ;;  %v16527_v39 = vcombine.low %v9814_v44, %v9818_v62  ;;  %v13000_v20 = vcombine.high %v6019_v35, %v6023_v51  ;;  %v16530_v17 = vcombine.high %v9806_v6, %v9810_v26  ;;  %v12999_v13 = vcombine.low %v6019_v35, %v6023_v51  ;;  %v6135_v4 = vld [vmem:[#allocation5 + $0x7f8] sm:$0xff]  ;;  %v9918_v9 = vld [vmem:[#allocation8 + $0x3c0] sm:$0xff] }
 0x695   :  { %10569 = vmatpush1.bf16.msra.mxu0 %v16496_v24  ;;  %v8010_v41 = vpop.f32.mrf.mxu1  ;;  %9583 = vmatprep.subr.bf16.mxu1 %v13032_v2  ;;  %17842 = vst [vmem:[#allocation26_spill] sm:$0xff] %v16512_v40  ;;  %v16533_v28 = vcombine.low %v9806_v6, %v9810_v26  ;;  %v12992_v2 = vcombine.high %v6011_v56, %v6015_v60  ;;  %v6115_v31 = vld [vmem:[#allocation5 + $0x758] sm:$0xff]  ;;  %v9902_v44 = vld [vmem:[#allocation8 + $0x340] sm:$0xff] }
 0x696   :  { %v9331_v8 = vpop.f32.mrf.mxu0  ;;  %10570 = vmatprep.subr.bf16.mxu0 %v16502_v50  ;;  %17847 = vst [vmem:[#allocation31_spill] sm:$0xff] %v16527_v39  ;;  %17848 = vst [vmem:[#allocation32_spill] sm:$0xff] %v16530_v17  ;;  %v16536_v11 = vcombine.high %v9798_v29, %v9802_v49  ;;  %v12991_v22 = vcombine.low %v6011_v56, %v6015_v60  ;;  %v16539_v12 = vcombine.low %v9798_v29, %v9802_v49  ;;  %v6119_v58 = vld [vmem:[#allocation5 + $0x778] sm:$0xff]  ;;  %v9906_v62 = vld [vmem:[#allocation8 + $0x360] sm:$0xff] }
 0x697   :  { %17849 = vst [vmem:[#allocation33_spill] sm:$0xff] %v16533_v28  ;;  %v16542_v41 = vcombine.high %v9918_v9, %v9922_v10  ;;  %v6127_v8 = vld [vmem:[#allocation5 + $0x7b8] sm:$0xff]  ;;  %v13111_v53 = vcombine.low %v6131_v14, %v6135_v4  ;;  %v16545_v32 = vcombine.low %v9918_v9, %v9922_v10  ;;  %v13096_v35 = vcombine.high %v6115_v31, %v6119_v58 }
 0x698   :  { %9584 = vmatpush1.bf16.msra.mxu1 %v13031_v63  ;;  %17850 = vst [vmem:[#allocation34_spill] sm:$0xff] %v16536_v11  ;;  %17851 = vst [vmem:[#allocation35_spill] sm:$0xff] %v16539_v12  ;;  %v13112_v63 = vcombine.high %v6131_v14, %v6135_v4  ;;  %v16554_v51 = vcombine.high %v9902_v44, %v9906_v62  ;;  %v6107_v6 = vld [vmem:[#allocation5 + $0x718] sm:$0xff]  ;;  %v13095_v56 = vcombine.low %v6115_v31, %v6119_v58  ;;  %v9886_v14 = vld [vmem:[#allocation8 + $0x2c0] sm:$0xff] }
 0x699   :  { %10571 = vmatpush1.bf16.msra.mxu0 %v16509_v42  ;;  %9585 = vmatprep.subr.bf16.mxu1 %v13024_v55  ;;  %17852 = vst [vmem:[#allocation36_spill] sm:$0xff] %v16542_v41  ;;  %v6123_v55 = vld [vmem:[#allocation5 + $0x798] sm:$0xff]  ;;  %17853 = vst [vmem:[#allocation37_spill] sm:$0xff] %v16545_v32  ;;  %v16557_v60 = vcombine.low %v9902_v44, %v9906_v62  ;;  %v9890_v4 = vld [vmem:[#allocation8 + $0x2e0] sm:$0xff] }
 0x69a   :  { %10572 = vmatprep.subr.bf16.mxu0 %v16512_v40  ;;  %17856 = vst [vmem:[#allocation40_spill] sm:$0xff] %v16554_v51  ;;  %v6111_v26 = vld [vmem:[#allocation5 + $0x738] sm:$0xff] }
 0x69b   :  { %17857 = vst [vmem:[#allocation41_spill] sm:$0xff] %v16557_v60  ;;  %v13088_v29 = vcombine.high %v6107_v6, %v6111_v26  ;;  %v13087_v9 = vcombine.low %v6107_v6, %v6111_v26  ;;  %v6083_v44 = vld [vmem:[#allocation5 + $0x658] sm:$0xff] }
 0x69c   :  { %9586 = vmatpush1.bf16.msra.mxu1 %v13023_v54  ;;  %v13104_v54 = vcombine.high %v6123_v55, %v6127_v8  ;;  %v6087_v62 = vld [vmem:[#allocation5 + $0x678] sm:$0xff] }
 0x69d   :  { %10573 = vmatpush1.bf16.msra.mxu0 %v16515_v7  ;;  %9587 = vmatprep.subr.bf16.mxu1 %v13016_v27  ;;  %v16548_v27 = vcombine.high %v9910_v47, %v9914_v43 }
 0x69e   :  { %10574 = vmatprep.subr.bf16.mxu0 %v16518_v30 }
 0x69f   :  { %17854 = vst [vmem:[#allocation38_spill] sm:$0xff] %v16548_v27 }
 0x6a0   :  { %9588 = vmatpush1.bf16.msra.mxu1 %v13015_v23  ;;  %v13103_v23 = vcombine.low %v6123_v55, %v6127_v8  ;;  %v6091_v55 = vld [vmem:[#allocation5 + $0x698] sm:$0xff] }
 0x6a1   :  { %10575 = vmatpush1.bf16.msra.mxu0 %v16521_v57  ;;  %9589 = vmatprep.subr.bf16.mxu1 %v13008_v61  ;;  %v16551_v61 = vcombine.low %v9910_v47, %v9914_v43  ;;  %v6095_v8 = vld [vmem:[#allocation5 + $0x6b8] sm:$0xff]  ;;  %v9878_v47 = vld [vmem:[#allocation8 + $0x280] sm:$0xff] }
 0x6a2   :  { %10576 = vmatprep.subr.bf16.mxu0 %v16524_v52  ;;  %v9882_v43 = vld [vmem:[#allocation8 + $0x2a0] sm:$0xff]  ;;  %v13072_v31 = vcombine.high %v6091_v55, %v6095_v8  ;;  %v13071_v6 = vcombine.low %v6091_v55, %v6095_v8  ;;  %v9855_v55 = vld [vmem:[#allocation8 + $0x1c8] sm:$0xff] }
 0x6a3   :  { %17855 = vst [vmem:[#allocation39_spill] sm:$0xff] %v16551_v61  ;;  %v16572_v58 = vcombine.high %v9878_v47, %v9882_v43  ;;  %v16575_v26 = vcombine.low %v9878_v47, %v9882_v43  ;;  %v9859_v8 = vld [vmem:[#allocation8 + $0x1e8] sm:$0xff]  ;;  %v9856_v47 = vld [vmem:[#allocation8 + $0x1d0] sm:$0xff] }
 0x6a4   :  { %9590 = vmatpush1.bf16.msra.mxu1 %v13007_v16  ;;  %v9894_v16 = vld [vmem:[#allocation8 + $0x300] sm:$0xff]  ;;  %v9860_v43 = vld [vmem:[#allocation8 + $0x1f0] sm:$0xff]  ;;  %v16594_v0 = vcombine.low %v9855_v55, %v9859_v8 }
 0x6a5   :  { %10577 = vmatpush1.bf16.msra.mxu0 %v16527_v39  ;;  %9591 = vmatprep.subr.bf16.mxu1 %v13000_v20  ;;  %v9898_v20 = vld [vmem:[#allocation8 + $0x320] sm:$0xff]  ;;  %17862 = vst [vmem:[#allocation46_spill] sm:$0xff] %v16572_v58  ;;  %17863 = vst [vmem:[#allocation47_spill] sm:$0xff] %v16575_v26 }
 0x6a6   :  { %10578 = vmatprep.subr.bf16.mxu0 %v16530_v17  ;;  %v16560_v49 = vcombine.high %v9894_v16, %v9898_v20  ;;  %v16563_v10 = vcombine.low %v9894_v16, %v9898_v20  ;;  %v13064_v16 = vcombine.high %v6083_v44, %v6087_v62  ;;  %17870 = vst [vmem:[#allocation54_spill] sm:$0xff] %v16594_v0 }
 0x6a8   :  { %9592 = vmatpush1.bf16.msra.mxu1 %v12999_v13  ;;  %17858 = vst [vmem:[#allocation42_spill] sm:$0xff] %v16560_v49  ;;  %v6099_v13 = vld [vmem:[#allocation5 + $0x6d8] sm:$0xff]  ;;  %17859 = vst [vmem:[#allocation43_spill] sm:$0xff] %v16563_v10 }
 0x6a9   :  { %10579 = vmatpush1.bf16.msra.mxu0 %v16533_v28  ;;  %9593 = vmatprep.subr.bf16.mxu1 %v12992_v2  ;;  %v6103_v2 = vld [vmem:[#allocation5 + $0x6f8] sm:$0xff] }
 0x6aa   :  { %10580 = vmatprep.subr.bf16.mxu0 %v16536_v11 }
 0x6ac   :  { %9594 = vmatpush1.bf16.msra.mxu1 %v12991_v22  ;;  %v13080_v22 = vcombine.high %v6099_v13, %v6103_v2 }
 0x6ad   :  { %10581 = vmatpush1.bf16.msra.mxu0 %v16539_v12  ;;  %9595 = vmatprep.subr.bf16.mxu1 %v13112_v63  ;;  %v16566_v63 = vcombine.high %v9886_v14, %v9890_v4 }
 0x6ae   :  { %10582 = vmatprep.subr.bf16.mxu0 %v16542_v41 }
 0x6af   :  { %17860 = vst [vmem:[#allocation44_spill] sm:$0xff] %v16566_v63 }
 0x6b0   :  { %9596 = vmatpush2.bf16.msra.mxu1 %v13111_v53  ;;  %v13079_v53 = vcombine.low %v6099_v13, %v6103_v2  ;;  %v9862_v13 = vld [vmem:[#allocation8 + $0x200] sm:$0xff] }
 0x6b1   :  { %10583 = vmatpush2.bf16.msra.mxu0 %v16545_v32  ;;  %9597 = vmatprep.subr.bf16.mxu1 %v13104_v54  ;;  %v16569_v54 = vcombine.low %v9886_v14, %v9890_v4  ;;  %v9866_v2 = vld [vmem:[#allocation8 + $0x220] sm:$0xff]  ;;  %v13063_v14 = vcombine.low %v6083_v44, %v6087_v62  ;;  %v16589_v44 = vcombine.high %v9855_v55, %v9859_v8  ;;  %v9844_v55 = vld [vmem:[#allocation8 + $0x170] sm:$0xff] }
 0x6b2   :  { %10584 = vmatprep.subr.bf16.mxu0 %v16548_v27  ;;  %v16592_v62 = vcombine.high %v9856_v47, %v9860_v43 }
 0x6b3   :  { %17861 = vst [vmem:[#allocation45_spill] sm:$0xff] %v16569_v54  ;;  %17868 = vst [vmem:[#allocation52_spill] sm:$0xff] %v16589_v44 }
 0x6b4   :  { %9598 = vmatpush2.bf16.msra.mxu1 %v13103_v23  ;;  %v9870_v23 = vld [vmem:[#allocation8 + $0x240] sm:$0xff]  ;;  %17869 = vst [vmem:[#allocation53_spill] sm:$0xff] %v16592_v62 }
 0x6b5   :  { %10585 = vmatpush2.bf16.msra.mxu0 %v16551_v61  ;;  %9599 = vmatprep.subr.bf16.mxu1 %v13096_v35  ;;  %v9874_v35 = vld [vmem:[#allocation8 + $0x260] sm:$0xff] }
 0x6b6   :  { %10586 = vmatprep.subr.bf16.mxu0 %v16554_v51  ;;  %v16578_v20 = vcombine.high %v9870_v23, %v9874_v35  ;;  %v16581_v4 = vcombine.low %v9870_v23, %v9874_v35  ;;  %v9847_v23 = vld [vmem:[#allocation8 + $0x188] sm:$0xff] }
 0x6b7   :  { %v9851_v35 = vld [vmem:[#allocation8 + $0x1a8] sm:$0xff] }
 0x6b8   :  { %9600 = vmatpush2.bf16.msra.mxu1 %v13095_v56  ;;  %17864 = vst [vmem:[#allocation48_spill] sm:$0xff] %v16578_v20  ;;  %v6075_v56 = vld [vmem:[#allocation5 + $0x618] sm:$0xff]  ;;  %17865 = vst [vmem:[#allocation49_spill] sm:$0xff] %v16581_v4 }
 0x6b9   :  { %10587 = vmatpush2.bf16.msra.mxu0 %v16557_v60  ;;  %9601 = vmatprep.subr.bf16.mxu1 %v13088_v29  ;;  %v6079_v29 = vld [vmem:[#allocation5 + $0x638] sm:$0xff] }
 0x6ba   :  { %10588 = vmatprep.subr.bf16.mxu0 %v16560_v49 }
 0x6bc   :  { %9602 = vmatpush2.bf16.msra.mxu1 %v13087_v9  ;;  %v13056_v9 = vcombine.high %v6075_v56, %v6079_v29 }
 0x6bd   :  { %10589 = vmatpush2.bf16.msra.mxu0 %v16563_v10  ;;  %9603 = vmatprep.subr.bf16.mxu1 %v13080_v22  ;;  %v16584_v22 = vcombine.high %v9862_v13, %v9866_v2 }
 0x6be   :  { %10590 = vmatprep.subr.bf16.mxu0 %v16566_v63 }
 0x6bf   :  { %17866 = vst [vmem:[#allocation50_spill] sm:$0xff] %v16584_v22 }
 0x6c0   :  { %9604 = vmatpush2.bf16.msra.mxu1 %v13079_v53  ;;  %v13055_v53 = vcombine.low %v6075_v56, %v6079_v29  ;;  %v16598_v56 = vcombine.low %v9856_v47, %v9860_v43  ;;  %v16600_v29 = vcombine.high %v9847_v23, %v9851_v35  ;;  %v16611_v47 = vcombine.low %v9847_v23, %v9851_v35  ;;  %v9831_v35 = vld [vmem:[#allocation8 + $0x108] sm:$0xff] }
 0x6c1   :  { %10591 = vmatpush2.bf16.msra.mxu0 %v16569_v54  ;;  %9605 = vmatprep.subr.bf16.mxu1 %v13072_v31  ;;  %v16587_v31 = vcombine.low %v9862_v13, %v9866_v2  ;;  %v9839_v2 = vld [vmem:[#allocation8 + $0x148] sm:$0xff] }
 0x6c2   :  { %10592 = vmatprep.subr.bf16.mxu0 %v16572_v58  ;;  %17871 = vst [vmem:[#allocation55_spill] sm:$0xff] %v16598_v56  ;;  %17872 = vst [vmem:[#allocation56_spill] sm:$0xff] %v16600_v29 }
 0x6c3   :  { %17867 = vst [vmem:[#allocation51_spill] sm:$0xff] %v16587_v31  ;;  %17876 = vst [vmem:[#allocation59_spill] sm:$0xff] %v16611_v47 }
 0x6c4   :  { %9606 = vmatpush2.bf16.msra.mxu1 %v13071_v6  ;;  %v9848_v6 = vld [vmem:[#allocation8 + $0x190] sm:$0xff] }
 0x6c5   :  { %10593 = vmatpush2.bf16.msra.mxu0 %v16575_v26  ;;  %9607 = vmatprep.subr.bf16.mxu1 %v13064_v16  ;;  %v9852_v16 = vld [vmem:[#allocation8 + $0x1b0] sm:$0xff] }
 0x6c6   :  { %10594 = vmatprep.subr.bf16.mxu0 %v16578_v20  ;;  %v16603_v13 = vcombine.high %v9848_v6, %v9852_v16 }
 0x6c8   :  { %9608 = vmatpush2.bf16.msra.mxu1 %v13063_v14  ;;  %17873 = vst [vmem:[#allocation57_spill] sm:$0xff] %v16603_v13  ;;  %v9843_v14 = vld [vmem:[#allocation8 + $0x168] sm:$0xff] }
 0x6c9   :  { %10595 = vmatpush2.bf16.msra.mxu0 %v16581_v4  ;;  %9609 = vmatprep.subr.bf16.mxu1 %v13056_v9  ;;  %v16620_v37 = vcombine.high %v9839_v2, %v9843_v14 }
 0x6ca   :  { %10596 = vmatprep.subr.bf16.mxu0 %v16584_v22 }
 0x6cb   :  { %17878 = vst [vmem:[#allocation61_spill] sm:$0xff] %v16620_v37 }
 0x6cc   :  { %9610 = vmatpush2.bf16.msra.mxu1 %v13055_v53  ;;  %v9840_v53 = vld [vmem:[#allocation8 + $0x150] sm:$0xff] }
 0x6cd   :  { %10597 = vmatpush2.bf16.msra.mxu0 %v16587_v31  ;;  %10607 = vmatprep.subr.bf16.mxu1 %v16589_v44  ;;  %v16626_v23 = vcombine.high %v9840_v53, %v9844_v55 }
 0x6ce   :  { %10648 = vmatprep.subr.bf16.mxu0 %v16592_v62 }
 0x6cf   :  { %v9367_v9 = vpop.f32.mrf.mxu1  ;;  %9612 = vmatmul.mubr.bf16.vlgmr.msra.gmra.mxu1 %v16401_v46  ;;  %v16618_v46 = vcombine.low %v9848_v6, %v9852_v16  ;;  %17880 = vst [vmem:[#allocation63_spill] sm:$0xff] %v16626_v23  ;;  %v9832_v6 = vld [vmem:[#allocation8 + $0x110] sm:$0xff] }
 0x6d0   :  { %v16607_v8 = vadd.f32 %v9367_v9, %v16492_v45  ;;  %v9408_v34 = vpop.f32.mrf.mxu0  ;;  %10599 = vmatmul.mubr.bf16.vlgmr.msra.gmra.mxu0 %v17875_v38  ;;  %10608 = vmatpush1.bf16.msra.mxu1 %v16594_v0  ;;  %v9836_v16 = vld [vmem:[#allocation8 + $0x130] sm:$0xff] }
 0x6d1   :  { %v16614_v43 = vadd.f32 %v9408_v34, %v16455_v5  ;;  %10649 = vmatpush1.bf16.msra.mxu0 %v16598_v56  ;;  %v9369_v59 = vpop.f32.mrf.mxu1  ;;  %10609 = vmatprep.subr.bf16.mxu1 %v16600_v29  ;;  %17877 = vst [vmem:[#allocation60_spill] sm:$0xff] %v16618_v46  ;;  %v9835_v34 = vld [vmem:[#allocation8 + $0x128] sm:$0xff] }
 0x6d2   :  { %17874 = vst [vmem:[#allocation58_spill] sm:$0xff] %v16607_v8  ;;  %v16623_v45 = vadd.f32 %v9369_v59, %v16505_v15  ;;  %v9410_v9 = vpop.f32.mrf.mxu0  ;;  %10650 = vmatprep.subr.bf16.mxu0 %v16603_v13  ;;  %10639 = vmatprep.mubr.bf16.mxu1 %v17875_v38  ;;  %v16634_v59 = vcombine.low %v9839_v2, %v9843_v14 }
 0x6d3   :  { %v16630_v5 = vadd.f32 %v9410_v9, %v16463_v1  ;;  %v9371_v56 = vpop.f32.mrf.mxu1  ;;  %10680 = vmatprep.mubr.bf16.mxu0 %v17875_v38  ;;  %v16638_v13 = vcombine.low %v9840_v53, %v9844_v55  ;;  %v9823_v9 = vld [vmem:[#allocation8 + $0xc8] sm:$0xff]  ;;  %v16646_v2 = vcombine.low %v9831_v35, %v9835_v34  ;;  %v16650_v14 = vcombine.low %v9832_v6, %v9836_v16 }
 0x6d4   :  { %17879 = vst [vmem:[#allocation62_spill] sm:$0xff] %v16623_v45  ;;  %v9412_v8 = vpop.f32.mrf.mxu0  ;;  %10610 = vmatpush1.bf16.msra.mxu1 %v16611_v47  ;;  %17881 = vst [vmem:[#allocation64_spill] sm:$0xff] %v16634_v59  ;;  %v16640_v45 = vcombine.high %v9831_v35, %v9835_v34  ;;  %v16643_v56 = vcombine.high %v9832_v6, %v9836_v16  ;;  %v9828_v47 = vld [vmem:[#allocation8 + $0xf0] sm:$0xff] }
 0x6d5   :  { %10651 = vmatpush1.bf16.msra.mxu0 %v16618_v46  ;;  %v9372_v15 = vpop.f32.mrf.mxu1  ;;  %10611 = vmatprep.subr.bf16.mxu1 %v16620_v37  ;;  %17882 = vst [vmem:[#allocation65_spill] sm:$0xff] %v16638_v13  ;;  %v9827_v8 = vld [vmem:[#allocation8 + $0xe8] sm:$0xff]  ;;  %17885 = vst [vmem:[#allocation68_spill] sm:$0xff] %v16646_v2  ;;  %v16655_v55 = vcombine.high %v9824_v36, %v9828_v47  ;;  %v9820_v46 = vld [vmem:[#allocation8 + $0xb0] sm:$0xff]  ;;  %v16662_v34 = vcombine.low %v9824_v36, %v9828_v47 }
 0x6d6   :  { %17883 = vst [vmem:[#allocation66_spill] sm:$0xff] %v16640_v45  ;;  %v9413_v1 = vpop.f32.mrf.mxu0  ;;  %10652 = vmatprep.subr.bf16.mxu0 %v16626_v23  ;;  %17884 = vst [vmem:[#allocation67_spill] sm:$0xff] %v16643_v56  ;;  %v16652_v53 = vcombine.high %v9823_v9, %v9827_v8  ;;  %v9815_v15 = vld [vmem:[#allocation8 + $0x88] sm:$0xff]  ;;  %v9816_v23 = vld [vmem:[#allocation8 + $0x90] sm:$0xff]  ;;  %v16658_v35 = vcombine.low %v9823_v9, %v9827_v8 }
 0x6d7   :  { %17886 = vst [vmem:[#allocation69_spill] sm:$0xff] %v16650_v14  ;;  %17888 = vst [vmem:[#allocation71_spill] sm:$0xff] %v16655_v55  ;;  %v9819_v1 = vld [vmem:[#allocation8 + $0xa8] sm:$0xff]  ;;  %v16667_v16 = vcombine.high %v9816_v23, %v9820_v46  ;;  %v16674_v36 = vcombine.low %v9816_v23, %v9820_v46 }
 0x6d8   :  { %10612 = vmatpush1.bf16.msra.mxu1 %v16634_v59  ;;  %17887 = vst [vmem:[#allocation70_spill] sm:$0xff] %v16652_v53  ;;  %17889 = vst [vmem:[#allocation72_spill] sm:$0xff] %v16658_v35  ;;  %v16664_v6 = vcombine.high %v9815_v15, %v9819_v1  ;;  %v9812_v59 = vld [vmem:[#allocation8 + $0x70] sm:$0xff]  ;;  %v16670_v9 = vcombine.low %v9815_v15, %v9819_v1 }
 0x6d9   :  { %10653 = vmatpush1.bf16.msra.mxu0 %v16638_v13  ;;  %10613 = vmatprep.subr.bf16.mxu1 %v16640_v45  ;;  %17890 = vst [vmem:[#allocation73_spill] sm:$0xff] %v16662_v34  ;;  %17892 = vst [vmem:[#allocation75_spill] sm:$0xff] %v16667_v16  ;;  %v9811_v13 = vld [vmem:[#allocation8 + $0x68] sm:$0xff]  ;;  %v9808_v45 = vld [vmem:[#allocation8 + $0x50] sm:$0xff] }
 0x6da   :  { %10654 = vmatprep.subr.bf16.mxu0 %v16643_v56  ;;  %17891 = vst [vmem:[#allocation74_spill] sm:$0xff] %v16664_v6  ;;  %v9807_v56 = vld [vmem:[#allocation8 + $0x48] sm:$0xff]  ;;  %17893 = vst [vmem:[#allocation76_spill] sm:$0xff] %v16670_v9  ;;  %v16679_v8 = vcombine.high %v9808_v45, %v9812_v59  ;;  %v16686_v46 = vcombine.low %v9808_v45, %v9812_v59 }
 0x6db   :  { %17894 = vst [vmem:[#allocation77_spill] sm:$0xff] %v16674_v36  ;;  %v16676_v47 = vcombine.high %v9807_v56, %v9811_v13  ;;  %v16682_v15 = vcombine.low %v9807_v56, %v9811_v13 }
 0x6dc   :  { %10614 = vmatpush1.bf16.msra.mxu1 %v16646_v2  ;;  %17896 = vst [vmem:[#allocation79_spill] sm:$0xff] %v16679_v8  ;;  %v9804_v2 = vld [vmem:[#allocation8 + $0x30] sm:$0xff]  ;;  %17898 = vst [vmem:[#allocation81_spill] sm:$0xff] %v16686_v46 }
 0x6dd   :  { %10655 = vmatpush1.bf16.msra.mxu0 %v16650_v14  ;;  %10615 = vmatprep.subr.bf16.mxu1 %v16652_v53  ;;  %17895 = vst [vmem:[#allocation78_spill] sm:$0xff] %v16676_v47  ;;  %v9803_v14 = vld [vmem:[#allocation8 + $0x28] sm:$0xff]  ;;  %v9800_v53 = vld [vmem:[#allocation8 + $0x10] sm:$0xff]  ;;  %17897 = vst [vmem:[#allocation80_spill] sm:$0xff] %v16682_v15 }
 0x6de   :  { %10656 = vmatprep.subr.bf16.mxu0 %v16655_v55  ;;  %v9799_v55 = vld [vmem:[#allocation8 + $0x8] sm:$0xff]  ;;  %v16691_v1 = vcombine.high %v9800_v53, %v9804_v2  ;;  %v16698_v45 = vcombine.low %v9800_v53, %v9804_v2 }
 0x6df   :  { %v16688_v23 = vcombine.high %v9799_v55, %v9803_v14  ;;  %v16694_v13 = vcombine.low %v9799_v55, %v9803_v14 }
 0x6e0   :  { %10616 = vmatpush1.bf16.msra.mxu1 %v16658_v35  ;;  %17900 = vst [vmem:[#allocation83_spill] sm:$0xff] %v16691_v1  ;;  %v9924_v35 = vld [vmem:[#allocation8 + $0x3f0] sm:$0xff]  ;;  %17902 = vst [vmem:[#allocation85_spill] sm:$0xff] %v16698_v45 }
 0x6e1   :  { %10657 = vmatpush1.bf16.msra.mxu0 %v16662_v34  ;;  %10617 = vmatprep.subr.bf16.mxu1 %v16664_v6  ;;  %17899 = vst [vmem:[#allocation82_spill] sm:$0xff] %v16688_v23  ;;  %v9923_v34 = vld [vmem:[#allocation8 + $0x3e8] sm:$0xff]  ;;  %v9920_v6 = vld [vmem:[#allocation8 + $0x3d0] sm:$0xff]  ;;  %17901 = vst [vmem:[#allocation84_spill] sm:$0xff] %v16694_v13 }
 0x6e2   :  { %10658 = vmatprep.subr.bf16.mxu0 %v16667_v16  ;;  %v9919_v16 = vld [vmem:[#allocation8 + $0x3c8] sm:$0xff]  ;;  %v16703_v56 = vcombine.high %v9920_v6, %v9924_v35  ;;  %v16710_v2 = vcombine.low %v9920_v6, %v9924_v35 }
 0x6e3   :  { %v16700_v59 = vcombine.high %v9919_v16, %v9923_v34  ;;  %v16706_v14 = vcombine.low %v9919_v16, %v9923_v34 }
 0x6e4   :  { %10618 = vmatpush1.bf16.msra.mxu1 %v16670_v9  ;;  %17904 = vst [vmem:[#allocation87_spill] sm:$0xff] %v16703_v56  ;;  %v9916_v9 = vld [vmem:[#allocation8 + $0x3b0] sm:$0xff]  ;;  %17906 = vst [vmem:[#allocation89_spill] sm:$0xff] %v16710_v2 }
 0x6e5   :  { %10659 = vmatpush1.bf16.msra.mxu0 %v16674_v36  ;;  %10619 = vmatprep.subr.bf16.mxu1 %v16676_v47  ;;  %17903 = vst [vmem:[#allocation86_spill] sm:$0xff] %v16700_v59  ;;  %v9915_v36 = vld [vmem:[#allocation8 + $0x3a8] sm:$0xff]  ;;  %v9912_v47 = vld [vmem:[#allocation8 + $0x390] sm:$0xff]  ;;  %17905 = vst [vmem:[#allocation88_spill] sm:$0xff] %v16706_v14 }
 0x6e6   :  { %10660 = vmatprep.subr.bf16.mxu0 %v16679_v8  ;;  %v9911_v8 = vld [vmem:[#allocation8 + $0x388] sm:$0xff]  ;;  %v16715_v55 = vcombine.high %v9912_v47, %v9916_v9  ;;  %v16722_v35 = vcombine.low %v9912_v47, %v9916_v9 }
 0x6e7   :  { %v16712_v53 = vcombine.high %v9911_v8, %v9915_v36  ;;  %v16718_v34 = vcombine.low %v9911_v8, %v9915_v36 }
 0x6e8   :  { %10620 = vmatpush1.bf16.msra.mxu1 %v16682_v15  ;;  %17908 = vst [vmem:[#allocation91_spill] sm:$0xff] %v16715_v55  ;;  %v9908_v15 = vld [vmem:[#allocation8 + $0x370] sm:$0xff]  ;;  %17910 = vst [vmem:[#allocation93_spill] sm:$0xff] %v16722_v35 }
 0x6e9   :  { %10661 = vmatpush1.bf16.msra.mxu0 %v16686_v46  ;;  %10621 = vmatprep.subr.bf16.mxu1 %v16688_v23  ;;  %17907 = vst [vmem:[#allocation90_spill] sm:$0xff] %v16712_v53  ;;  %v9907_v46 = vld [vmem:[#allocation8 + $0x368] sm:$0xff]  ;;  %v9904_v23 = vld [vmem:[#allocation8 + $0x350] sm:$0xff]  ;;  %17909 = vst [vmem:[#allocation92_spill] sm:$0xff] %v16718_v34 }
 0x6ea   :  { %10662 = vmatprep.subr.bf16.mxu0 %v16691_v1  ;;  %v9903_v1 = vld [vmem:[#allocation8 + $0x348] sm:$0xff]  ;;  %v16727_v16 = vcombine.high %v9904_v23, %v9908_v15  ;;  %v16734_v9 = vcombine.low %v9904_v23, %v9908_v15 }
 0x6eb   :  { %v16724_v6 = vcombine.high %v9903_v1, %v9907_v46  ;;  %v16730_v36 = vcombine.low %v9903_v1, %v9907_v46 }
 0x6ec   :  { %10622 = vmatpush1.bf16.msra.mxu1 %v16694_v13  ;;  %17912 = vst [vmem:[#allocation95_spill] sm:$0xff] %v16727_v16  ;;  %v9900_v13 = vld [vmem:[#allocation8 + $0x330] sm:$0xff]  ;;  %17914 = vst [vmem:[#allocation97_spill] sm:$0xff] %v16734_v9 }
 0x6ed   :  { %10663 = vmatpush1.bf16.msra.mxu0 %v16698_v45  ;;  %10623 = vmatprep.subr.bf16.mxu1 %v16700_v59  ;;  %17911 = vst [vmem:[#allocation94_spill] sm:$0xff] %v16724_v6  ;;  %v9899_v45 = vld [vmem:[#allocation8 + $0x328] sm:$0xff]  ;;  %v9896_v59 = vld [vmem:[#allocation8 + $0x310] sm:$0xff]  ;;  %17913 = vst [vmem:[#allocation96_spill] sm:$0xff] %v16730_v36 }
 0x6ee   :  { %10664 = vmatprep.subr.bf16.mxu0 %v16703_v56  ;;  %v9895_v56 = vld [vmem:[#allocation8 + $0x308] sm:$0xff]  ;;  %v16739_v8 = vcombine.high %v9896_v59, %v9900_v13  ;;  %v16746_v15 = vcombine.low %v9896_v59, %v9900_v13 }
 0x6ef   :  { %v16736_v47 = vcombine.high %v9895_v56, %v9899_v45  ;;  %v16742_v46 = vcombine.low %v9895_v56, %v9899_v45 }
 0x6f0   :  { %10624 = vmatpush2.bf16.msra.mxu1 %v16706_v14  ;;  %17916 = vst [vmem:[#allocation99_spill] sm:$0xff] %v16739_v8  ;;  %v9892_v14 = vld [vmem:[#allocation8 + $0x2f0] sm:$0xff]  ;;  %17918 = vst [vmem:[#allocation101_spill] sm:$0xff] %v16746_v15 }
 0x6f1   :  { %10665 = vmatpush2.bf16.msra.mxu0 %v16710_v2  ;;  %10625 = vmatprep.subr.bf16.mxu1 %v16712_v53  ;;  %17915 = vst [vmem:[#allocation98_spill] sm:$0xff] %v16736_v47  ;;  %v9891_v2 = vld [vmem:[#allocation8 + $0x2e8] sm:$0xff]  ;;  %v9888_v53 = vld [vmem:[#allocation8 + $0x2d0] sm:$0xff]  ;;  %17917 = vst [vmem:[#allocation100_spill] sm:$0xff] %v16742_v46 }
 0x6f2   :  { %10666 = vmatprep.subr.bf16.mxu0 %v16715_v55  ;;  %v9887_v55 = vld [vmem:[#allocation8 + $0x2c8] sm:$0xff]  ;;  %v16751_v1 = vcombine.high %v9888_v53, %v9892_v14  ;;  %v16758_v13 = vcombine.low %v9888_v53, %v9892_v14 }
 0x6f3   :  { %v16748_v23 = vcombine.high %v9887_v55, %v9891_v2  ;;  %v16754_v45 = vcombine.low %v9887_v55, %v9891_v2 }
 0x6f4   :  { %10626 = vmatpush2.bf16.msra.mxu1 %v16718_v34  ;;  %17920 = vst [vmem:[#allocation103_spill] sm:$0xff] %v16751_v1  ;;  %v9884_v34 = vld [vmem:[#allocation8 + $0x2b0] sm:$0xff]  ;;  %17922 = vst [vmem:[#allocation105_spill] sm:$0xff] %v16758_v13 }
 0x6f5   :  { %10667 = vmatpush2.bf16.msra.mxu0 %v16722_v35  ;;  %10627 = vmatprep.subr.bf16.mxu1 %v16724_v6  ;;  %17919 = vst [vmem:[#allocation102_spill] sm:$0xff] %v16748_v23  ;;  %v9883_v35 = vld [vmem:[#allocation8 + $0x2a8] sm:$0xff]  ;;  %v9880_v6 = vld [vmem:[#allocation8 + $0x290] sm:$0xff]  ;;  %17921 = vst [vmem:[#allocation104_spill] sm:$0xff] %v16754_v45 }
 0x6f6   :  { %10668 = vmatprep.subr.bf16.mxu0 %v16727_v16  ;;  %v9879_v16 = vld [vmem:[#allocation8 + $0x288] sm:$0xff]  ;;  %v16763_v56 = vcombine.high %v9880_v6, %v9884_v34  ;;  %v16770_v14 = vcombine.low %v9880_v6, %v9884_v34 }
 0x6f7   :  { %v16760_v59 = vcombine.high %v9879_v16, %v9883_v35  ;;  %v16766_v2 = vcombine.low %v9879_v16, %v9883_v35 }
 0x6f8   :  { %10628 = vmatpush2.bf16.msra.mxu1 %v16730_v36  ;;  %17924 = vst [vmem:[#allocation107_spill] sm:$0xff] %v16763_v56  ;;  %v9876_v36 = vld [vmem:[#allocation8 + $0x270] sm:$0xff]  ;;  %17926 = vst [vmem:[#allocation109_spill] sm:$0xff] %v16770_v14 }
 0x6f9   :  { %10669 = vmatpush2.bf16.msra.mxu0 %v16734_v9  ;;  %10629 = vmatprep.subr.bf16.mxu1 %v16736_v47  ;;  %17923 = vst [vmem:[#allocation106_spill] sm:$0xff] %v16760_v59  ;;  %v9875_v9 = vld [vmem:[#allocation8 + $0x268] sm:$0xff]  ;;  %v9872_v47 = vld [vmem:[#allocation8 + $0x250] sm:$0xff]  ;;  %17925 = vst [vmem:[#allocation108_spill] sm:$0xff] %v16766_v2 }
 0x6fa   :  { %10670 = vmatprep.subr.bf16.mxu0 %v16739_v8  ;;  %v9871_v8 = vld [vmem:[#allocation8 + $0x248] sm:$0xff]  ;;  %v16775_v55 = vcombine.high %v9872_v47, %v9876_v36  ;;  %v16782_v34 = vcombine.low %v9872_v47, %v9876_v36  ;;  %v9849_v47 = vld [vmem:[#allocation8 + $0x198] sm:$0xff] }
 0x6fb   :  { %v16772_v53 = vcombine.high %v9871_v8, %v9875_v9  ;;  %v16778_v35 = vcombine.low %v9871_v8, %v9875_v9  ;;  %v9853_v8 = vld [vmem:[#allocation8 + $0x1b8] sm:$0xff] }
 0x6fc   :  { %10630 = vmatpush2.bf16.msra.mxu1 %v16742_v46  ;;  %17928 = vst [vmem:[#allocation111_spill] sm:$0xff] %v16775_v55  ;;  %v9868_v46 = vld [vmem:[#allocation8 + $0x230] sm:$0xff]  ;;  %17930 = vst [vmem:[#allocation113_spill] sm:$0xff] %v16782_v34 }
 0x6fd   :  { %10671 = vmatpush2.bf16.msra.mxu0 %v16746_v15  ;;  %10631 = vmatprep.subr.bf16.mxu1 %v16748_v23  ;;  %17927 = vst [vmem:[#allocation110_spill] sm:$0xff] %v16772_v53  ;;  %v9867_v15 = vld [vmem:[#allocation8 + $0x228] sm:$0xff]  ;;  %v9864_v23 = vld [vmem:[#allocation8 + $0x210] sm:$0xff]  ;;  %17929 = vst [vmem:[#allocation112_spill] sm:$0xff] %v16778_v35 }
 0x6fe   :  { %10672 = vmatprep.subr.bf16.mxu0 %v16751_v1  ;;  %v9863_v1 = vld [vmem:[#allocation8 + $0x208] sm:$0xff]  ;;  %v16787_v16 = vcombine.high %v9864_v23, %v9868_v46  ;;  %v16794_v9 = vcombine.low %v9864_v23, %v9868_v46 }
 0x6ff   :  { %v16784_v6 = vcombine.high %v9863_v1, %v9867_v15 }
 0x700   :  { %10632 = vmatpush2.bf16.msra.mxu1 %v16754_v45  ;;  %17932 = vst [vmem:[#allocation115_spill] sm:$0xff] %v16787_v16  ;;  %17934 = vst [vmem:[#allocation117_spill] sm:$0xff] %v16794_v9 }
 0x701   :  { %10673 = vmatpush2.bf16.msra.mxu0 %v16758_v13  ;;  %10633 = vmatprep.subr.bf16.mxu1 %v16760_v59  ;;  %17931 = vst [vmem:[#allocation114_spill] sm:$0xff] %v16784_v6  ;;  %v9861_v13 = vld [vmem:[#allocation8 + $0x1f8] sm:$0xff]  ;;  %v16790_v59 = vcombine.low %v9863_v1, %v9867_v15  ;;  %v16804_v15 = vcombine.high %v9849_v47, %v9853_v8 }
 0x702   :  { %10674 = vmatprep.subr.bf16.mxu0 %v16763_v56  ;;  %v9857_v56 = vld [vmem:[#allocation8 + $0x1d8] sm:$0xff] }
 0x703   :  { %17933 = vst [vmem:[#allocation116_spill] sm:$0xff] %v16790_v59  ;;  %v16796_v36 = vcombine.high %v9857_v56, %v9861_v13  ;;  %17937 = vst [vmem:[#allocation120_spill] sm:$0xff] %v16804_v15  ;;  %v9841_v1 = vld [vmem:[#allocation8 + $0x158] sm:$0xff] }
 0x704   :  { %10634 = vmatpush2.bf16.msra.mxu1 %v16766_v2 }
 0x705   :  { %10675 = vmatpush2.bf16.msra.mxu0 %v16770_v14  ;;  %10635 = vmatprep.subr.bf16.mxu1 %v16772_v53  ;;  %17935 = vst [vmem:[#allocation118_spill] sm:$0xff] %v16796_v36  ;;  %v9833_v14 = vld [vmem:[#allocation8 + $0x118] sm:$0xff] }
 0x706   :  { %10676 = vmatprep.subr.bf16.mxu0 %v16775_v55  ;;  %v16800_v55 = vcombine.low %v9857_v56, %v9861_v13  ;;  %v16813_v13 = vcombine.low %v9849_v47, %v9853_v8 }
 0x708   :  { %10636 = vmatpush2.bf16.msra.mxu1 %v16778_v35  ;;  %17936 = vst [vmem:[#allocation119_spill] sm:$0xff] %v16800_v55 }
 0x709   :  { %10677 = vmatpush2.bf16.msra.mxu0 %v16782_v34  ;;  %10637 = vmatprep.subr.bf16.mxu1 %v16784_v6  ;;  %v9845_v34 = vld [vmem:[#allocation8 + $0x178] sm:$0xff] }
 0x70a   :  { %10678 = vmatprep.subr.bf16.mxu0 %v16787_v16  ;;  %v16831_v8 = vcombine.low %v9841_v1, %v9845_v34 }
 0x70c   :  { %10638 = vmatpush2.bf16.msra.mxu1 %v16790_v59 }
 0x70d   :  { %10679 = vmatpush2.bf16.msra.mxu0 %v16794_v9  ;;  %10689 = vmatprep.subr.bf16.mxu1 %v16796_v36 }
 0x70e   :  { %10776 = vmatprep.subr.bf16.mxu0 %v16479_v25  ;;  %v16819_v25 = vcombine.high %v9841_v1, %v9845_v34  ;;  %v9821_v1 = vld [vmem:[#allocation8 + $0xb8] sm:$0xff] }
 0x70f   :  { %v9449_v46 = vpop.f32.mrf.mxu1  ;;  %10640 = vmatmul.mubr.bf16.vlgmr.msra.gmra.mxu1 %v17875_v38 }
 0x710   :  { %v16809_v23 = vadd.f32 %v9449_v46, %v16614_v43  ;;  %v9490_v16 = vpop.f32.mrf.mxu0  ;;  %10681 = vmatmul.mubr.bf16.vlgmr.msra.gmra.mxu0 %v17875_v38  ;;  %10690 = vmatpush1.bf16.msra.mxu1 %v16800_v55  ;;  %v9825_v55 = vld [vmem:[#allocation8 + $0xd8] sm:$0xff] }
 0x711   :  { %v16816_v56 = vadd.f32 %v9490_v16, %v16467_v3  ;;  %v9451_v9 = vpop.f32.mrf.mxu1  ;;  %10691 = vmatprep.subr.bf16.mxu1 %v16804_v15  ;;  %10721 = vmatprep.mubr.bf16.mxu1 %v17875_v38 }
 0x712   :  { %17938 = vst [vmem:[#allocation121_spill] sm:$0xff] %v16809_v23  ;;  %v16823_v43 = vadd.f32 %v9451_v9, %v16630_v5  ;;  %v9492_v46 = vpop.f32.mrf.mxu0  ;;  %v9837_v23 = vld [vmem:[#allocation8 + $0x138] sm:$0xff]  ;;  %10777 = vmatpush1.bf16.msra.mxu0 %v16481_v19 }
 0x713   :  { %v16827_v47 = vadd.f32 %v9492_v46, %v16475_v48  ;;  %v9453_v3 = vpop.f32.mrf.mxu1  ;;  %10778 = vmatprep.subr.bf16.mxu0 %v16484_v21  ;;  %v16834_v5 = vcombine.high %v9833_v14, %v9837_v23  ;;  %v16839_v48 = vcombine.low %v9833_v14, %v9837_v23  ;;  %v9809_v14 = vld [vmem:[#allocation8 + $0x58] sm:$0xff] }
 0x714   :  { %17939 = vst [vmem:[#allocation122_spill] sm:$0xff] %v16823_v43  ;;  %v9494_v16 = vpop.f32.mrf.mxu0  ;;  %10692 = vmatpush1.bf16.msra.mxu1 %v16813_v13  ;;  %v9829_v43 = vld [vmem:[#allocation8 + $0xf8] sm:$0xff] }
 0x715   :  { %v9454_v15 = vpop.f32.mrf.mxu1  ;;  %10693 = vmatprep.subr.bf16.mxu1 %v16819_v25  ;;  %v16842_v34 = vcombine.high %v9825_v55, %v9829_v43  ;;  %v16847_v46 = vcombine.low %v9825_v55, %v9829_v43  ;;  %v9813_v23 = vld [vmem:[#allocation8 + $0x78] sm:$0xff] }
 0x716   :  { %v9495_v9 = vpop.f32.mrf.mxu0  ;;  %10779 = vmatpush1.bf16.msra.mxu0 %v16496_v24  ;;  %v9817_v15 = vld [vmem:[#allocation8 + $0x98] sm:$0xff] }
 0x717   :  { %10780 = vmatprep.subr.bf16.mxu0 %v16502_v50  ;;  %v16850_v3 = vcombine.high %v9817_v15, %v9821_v1  ;;  %v16855_v16 = vcombine.low %v9817_v15, %v9821_v1  ;;  %v16858_v9 = vcombine.high %v9809_v14, %v9813_v23  ;;  %v9801_v55 = vld [vmem:[#allocation8 + $0x18] sm:$0xff] }
 0x718   :  { %10694 = vmatpush1.bf16.msra.mxu1 %v16831_v8  ;;  %v9805_v43 = vld [vmem:[#allocation8 + $0x38] sm:$0xff] }
 0x719   :  { %10695 = vmatprep.subr.bf16.mxu1 %v16834_v5  ;;  %v9921_v15 = vld [vmem:[#allocation8 + $0x3d8] sm:$0xff] }
 0x71a   :  { %10781 = vmatpush1.bf16.msra.mxu0 %v16509_v42  ;;  %v9925_v1 = vld [vmem:[#allocation8 + $0x3f8] sm:$0xff] }
 0x71b   :  { %10782 = vmatprep.subr.bf16.mxu0 %v16512_v40  ;;  %v16863_v40 = vcombine.low %v9809_v14, %v9813_v23  ;;  %v9913_v14 = vld [vmem:[#allocation8 + $0x398] sm:$0xff] }
 0x71c   :  { %10696 = vmatpush1.bf16.msra.mxu1 %v16839_v48  ;;  %v9917_v23 = vld [vmem:[#allocation8 + $0x3b8] sm:$0xff] }
 0x71d   :  { %10697 = vmatprep.subr.bf16.mxu1 %v16842_v34 }
 0x71e   :  { %10783 = vmatpush1.bf16.msra.mxu0 %v16515_v7  ;;  %v16871_v7 = vcombine.low %v9801_v55, %v9805_v43 }
 0x71f   :  { %10784 = vmatprep.subr.bf16.mxu0 %v16518_v30  ;;  %v16866_v30 = vcombine.high %v9801_v55, %v9805_v43  ;;  %v9905_v55 = vld [vmem:[#allocation8 + $0x358] sm:$0xff] }
 0x720   :  { %10698 = vmatpush1.bf16.msra.mxu1 %v16847_v46  ;;  %v9909_v43 = vld [vmem:[#allocation8 + $0x378] sm:$0xff] }
 0x721   :  { %10699 = vmatprep.subr.bf16.mxu1 %v16850_v3 }
 0x722   :  { %10785 = vmatpush1.bf16.msra.mxu0 %v16521_v57  ;;  %v16879_v57 = vcombine.low %v9921_v15, %v9925_v1 }
 0x723   :  { %10786 = vmatprep.subr.bf16.mxu0 %v16524_v52  ;;  %v16874_v52 = vcombine.high %v9921_v15, %v9925_v1  ;;  %v9897_v15 = vld [vmem:[#allocation8 + $0x318] sm:$0xff] }
 0x724   :  { %10700 = vmatpush1.bf16.msra.mxu1 %v16855_v16  ;;  %v9901_v1 = vld [vmem:[#allocation8 + $0x338] sm:$0xff] }
 0x725   :  { %10701 = vmatprep.subr.bf16.mxu1 %v16858_v9 }
 0x726   :  { %10787 = vmatpush1.bf16.msra.mxu0 %v16527_v39  ;;  %v16887_v39 = vcombine.low %v9913_v14, %v9917_v23 }
 0x727   :  { %10788 = vmatprep.subr.bf16.mxu0 %v16530_v17  ;;  %v16882_v17 = vcombine.high %v9913_v14, %v9917_v23  ;;  %v9889_v14 = vld [vmem:[#allocation8 + $0x2d8] sm:$0xff] }
 0x728   :  { %10702 = vmatpush1.bf16.msra.mxu1 %v16863_v40  ;;  %17941 = vst [vmem:[#allocation124_spill] sm:$0xff] %v16887_v39  ;;  %v9893_v23 = vld [vmem:[#allocation8 + $0x2f8] sm:$0xff] }
 0x729   :  { %10703 = vmatprep.subr.bf16.mxu1 %v16866_v30  ;;  %17940 = vst [vmem:[#allocation123_spill] sm:$0xff] %v16882_v17 }
 0x72a   :  { %10789 = vmatpush1.bf16.msra.mxu0 %v16533_v28  ;;  %v16895_v28 = vcombine.low %v9905_v55, %v9909_v43 }
 0x72b   :  { %10790 = vmatprep.subr.bf16.mxu0 %v16536_v11  ;;  %v16890_v11 = vcombine.high %v9905_v55, %v9909_v43  ;;  %v9881_v55 = vld [vmem:[#allocation8 + $0x298] sm:$0xff] }
 0x72c   :  { %10704 = vmatpush1.bf16.msra.mxu1 %v16871_v7  ;;  %17943 = vst [vmem:[#allocation126_spill] sm:$0xff] %v16895_v28  ;;  %v9885_v43 = vld [vmem:[#allocation8 + $0x2b8] sm:$0xff] }
 0x72d   :  { %10705 = vmatprep.subr.bf16.mxu1 %v16874_v52  ;;  %17942 = vst [vmem:[#allocation125_spill] sm:$0xff] %v16890_v11 }
 0x72e   :  { %10791 = vmatpush1.bf16.msra.mxu0 %v16539_v12  ;;  %v16903_v12 = vcombine.low %v9897_v15, %v9901_v1 }
 0x72f   :  { %10792 = vmatprep.subr.bf16.mxu0 %v16542_v41  ;;  %v16898_v41 = vcombine.high %v9897_v15, %v9901_v1  ;;  %v9873_v15 = vld [vmem:[#allocation8 + $0x258] sm:$0xff] }
 0x730   :  { %10706 = vmatpush2.bf16.msra.mxu1 %v16879_v57  ;;  %17945 = vst [vmem:[#allocation128_spill] sm:$0xff] %v16903_v12  ;;  %v9877_v1 = vld [vmem:[#allocation8 + $0x278] sm:$0xff] }
 0x731   :  { %10707 = vmatprep.subr.bf16.mxu1 %v16882_v17  ;;  %17944 = vst [vmem:[#allocation127_spill] sm:$0xff] %v16898_v41 }
 0x732   :  { %10793 = vmatpush2.bf16.msra.mxu0 %v16545_v32  ;;  %v16911_v32 = vcombine.low %v9889_v14, %v9893_v23 }
 0x733   :  { %10794 = vmatprep.subr.bf16.mxu0 %v16548_v27  ;;  %v16906_v27 = vcombine.high %v9889_v14, %v9893_v23  ;;  %v9865_v14 = vld [vmem:[#allocation8 + $0x218] sm:$0xff] }
 0x734   :  { %10708 = vmatpush2.bf16.msra.mxu1 %v16887_v39  ;;  %17947 = vst [vmem:[#allocation130_spill] sm:$0xff] %v16911_v32  ;;  %v9869_v23 = vld [vmem:[#allocation8 + $0x238] sm:$0xff] }
 0x735   :  { %10709 = vmatprep.subr.bf16.mxu1 %v16890_v11  ;;  %17946 = vst [vmem:[#allocation129_spill] sm:$0xff] %v16906_v27 }
 0x736   :  { %10795 = vmatpush2.bf16.msra.mxu0 %v16551_v61  ;;  %v16919_v61 = vcombine.low %v9881_v55, %v9885_v43 }
 0x737   :  { %10796 = vmatprep.subr.bf16.mxu0 %v16554_v51  ;;  %v16914_v51 = vcombine.high %v9881_v55, %v9885_v43  ;;  %v16935_v55 = vcombine.low %v9865_v14, %v9869_v23 }
 0x738   :  { %10710 = vmatpush2.bf16.msra.mxu1 %v16895_v28  ;;  %17949 = vst [vmem:[#allocation132_spill] sm:$0xff] %v16919_v61 }
 0x739   :  { %10711 = vmatprep.subr.bf16.mxu1 %v16898_v41  ;;  %17948 = vst [vmem:[#allocation131_spill] sm:$0xff] %v16914_v51  ;;  %17953 = vst [vmem:[#allocation136_spill] sm:$0xff] %v16935_v55 }
 0x73a   :  { %10797 = vmatpush2.bf16.msra.mxu0 %v16557_v60  ;;  %v16927_v60 = vcombine.low %v9873_v15, %v9877_v1 }
 0x73b   :  { %10798 = vmatprep.subr.bf16.mxu0 %v16560_v49  ;;  %v16922_v49 = vcombine.high %v9873_v15, %v9877_v1 }
 0x73c   :  { %10712 = vmatpush2.bf16.msra.mxu1 %v16903_v12  ;;  %17951 = vst [vmem:[#allocation134_spill] sm:$0xff] %v16927_v60 }
 0x73d   :  { %10713 = vmatprep.subr.bf16.mxu1 %v16906_v27  ;;  %17950 = vst [vmem:[#allocation133_spill] sm:$0xff] %v16922_v49 }
 0x73e   :  { %10799 = vmatpush2.bf16.msra.mxu0 %v16563_v10  ;;  %v17968_v10 = vld [vmem:[#allocation90_spill] sm:$0xff] }
 0x73f   :  { %10800 = vmatprep.subr.bf16.mxu0 %v16566_v63  ;;  %v16930_v63 = vcombine.high %v9865_v14, %v9869_v23 }
 0x740   :  { %10714 = vmatpush2.bf16.msra.mxu1 %v16911_v32 }
 0x741   :  { %10715 = vmatprep.subr.bf16.mxu1 %v16914_v51  ;;  %17952 = vst [vmem:[#allocation135_spill] sm:$0xff] %v16930_v63 }
 0x742   :  { %10801 = vmatpush2.bf16.msra.mxu0 %v16569_v54  ;;  %v17967_v54 = vld [vmem:[#allocation88_spill] sm:$0xff] }
 0x743   :  { %10802 = vmatprep.subr.bf16.mxu0 %v16572_v58  ;;  %v17958_v58 = vld [vmem:[#allocation70_spill] sm:$0xff] }
 0x744   :  { %10716 = vmatpush2.bf16.msra.mxu1 %v16919_v61 }
 0x745   :  { %10717 = vmatprep.subr.bf16.mxu1 %v16922_v49  ;;  %v17983_v49 = vld [vmem:[#allocation62_spill] sm:$0xff] }
 0x746   :  { %10803 = vmatpush2.bf16.msra.mxu0 %v16575_v26  ;;  %v17955_v26 = vld [vmem:[#allocation64_spill] sm:$0xff] }
 0x747   :  { %10804 = vmatprep.subr.bf16.mxu0 %v16578_v20 }
 0x748   :  { %10718 = vmatpush2.bf16.msra.mxu1 %v16927_v60 }
 0x749   :  { %10719 = vmatprep.subr.bf16.mxu1 %v16930_v63 }
 0x74a   :  { %10805 = vmatpush2.bf16.msra.mxu0 %v16581_v4 }
 0x74b   :  { %10806 = vmatprep.subr.bf16.mxu0 %v16584_v22 }
 0x74c   :  { %10720 = vmatpush2.bf16.msra.mxu1 %v16935_v55  ;;  %v17982_v55 = vld [vmem:[#allocation122_spill] sm:$0xff] }
 0x74d   :  { %10817 = vmatprep.subr.bf16.mxu1 %v16589_v44 }
 0x74e   :  { %10807 = vmatpush2.bf16.msra.mxu0 %v16587_v31 }
 0x74f   :  { %v9531_v43 = vpop.f32.mrf.mxu1  ;;  %10722 = vmatmul.mubr.bf16.vlgmr.msra.gmra.mxu1 %v17875_v38  ;;  %10858 = vmatprep.subr.bf16.mxu0 %v16592_v62  ;;  %v17954_v62 = vld [vmem:[#allocation59_spill] sm:$0xff] }
 0x750   :  { %v16946_v15 = vadd.f32 %v9531_v43, %v16816_v56  ;;  %v9572_v1 = vpop.f32.mrf.mxu0  ;;  %10818 = vmatpush1.bf16.msra.mxu1 %v16594_v0 }
 0x751   :  { %v9573_v14 = vadd.f32 %v9572_v1, %v16488_v18  ;;  %v9533_v23 = vpop.f32.mrf.mxu1  ;;  %10819 = vmatprep.subr.bf16.mxu1 %v16600_v29  ;;  %v17956_v18 = vld [vmem:[#allocation66_spill] sm:$0xff]  ;;  %v17957_v1 = vld [vmem:[#allocation68_spill] sm:$0xff]  ;;  %v17980_v29 = vld [vmem:[#allocation121_spill] sm:$0xff] }
 0x752   :  { %v16952_v22 = vadd.f32 %v9533_v23, %v16827_v47  ;;  %v9574_v31 = vpop.f32.mrf.mxu0  ;;  %v17959_v47 = vld [vmem:[#allocation72_spill] sm:$0xff]  ;;  %v17960_v23 = vld [vmem:[#allocation74_spill] sm:$0xff] }
 0x753   :  { %v9575_v4 = vadd.f32 %v9574_v31, %v16499_v33  ;;  %v9535_v38 = vpop.f32.mrf.mxu1  ;;  %v17961_v33 = vld [vmem:[#allocation76_spill] sm:$0xff] }
 0x754   :  { %v9576_v20 = vpop.f32.mrf.mxu0  ;;  %10820 = vmatpush1.bf16.msra.mxu1 %v17954_v62  ;;  %v17963_v31 = vld [vmem:[#allocation80_spill] sm:$0xff]  ;;  %v17964_v38 = vld [vmem:[#allocation82_spill] sm:$0xff] }
 0x755   :  { %v9536_v56 = vpop.f32.mrf.mxu1  ;;  %10821 = vmatprep.subr.bf16.mxu1 %v16620_v37  ;;  %v17962_v20 = vld [vmem:[#allocation78_spill] sm:$0xff] }
 0x756   :  { %v9577_v43 = vpop.f32.mrf.mxu0  ;;  %v17965_v56 = vld [vmem:[#allocation84_spill] sm:$0xff] }
 0x757   :  { %v17966_v43 = vld [vmem:[#allocation86_spill] sm:$0xff] }
 0x758   :  { %10822 = vmatpush1.bf16.msra.mxu1 %v17955_v26 }
 0x759   :  { %10823 = vmatprep.subr.bf16.mxu1 %v17956_v18 }
 0x75c   :  { %10824 = vmatpush1.bf16.msra.mxu1 %v17957_v1 }
 0x75d   :  { %10825 = vmatprep.subr.bf16.mxu1 %v17958_v58  ;;  %v17969_v58 = vld [vmem:[#allocation92_spill] sm:$0xff] }
 0x760   :  { %10826 = vmatpush1.bf16.msra.mxu1 %v17959_v47  ;;  %v17970_v47 = vld [vmem:[#allocation94_spill] sm:$0xff] }
 0x761   :  { %10827 = vmatprep.subr.bf16.mxu1 %v17960_v23  ;;  %v17971_v23 = vld [vmem:[#allocation96_spill] sm:$0xff] }
 0x764   :  { %10828 = vmatpush1.bf16.msra.mxu1 %v17961_v33  ;;  %v17972_v33 = vld [vmem:[#allocation98_spill] sm:$0xff] }
 0x765   :  { %10829 = vmatprep.subr.bf16.mxu1 %v17962_v20  ;;  %v17973_v20 = vld [vmem:[#allocation100_spill] sm:$0xff] }
 0x768   :  { %10830 = vmatpush1.bf16.msra.mxu1 %v17963_v31  ;;  %v17974_v31 = vld [vmem:[#allocation102_spill] sm:$0xff] }
 0x769   :  { %10831 = vmatprep.subr.bf16.mxu1 %v17964_v38  ;;  %v17978_v38 = vld [vmem:[#allocation19_spill] sm:$0xff] }
 0x76c   :  { %10832 = vmatpush1.bf16.msra.mxu1 %v17965_v56  ;;  %v17975_v56 = vld [vmem:[#allocation106_spill] sm:$0xff] }
 0x76d   :  { %10833 = vmatprep.subr.bf16.mxu1 %v17966_v43  ;;  %v17976_v43 = vld [vmem:[#allocation16_spill] sm:$0xff] }
 0x770   :  { %10834 = vmatpush2.bf16.msra.mxu1 %v17967_v54 }
 0x771   :  { %10835 = vmatprep.subr.bf16.mxu1 %v17968_v10 }
 0x774   :  { %10836 = vmatpush2.bf16.msra.mxu1 %v17969_v58 }
 0x775   :  { %10837 = vmatprep.subr.bf16.mxu1 %v17970_v47 }
 0x778   :  { %10838 = vmatpush2.bf16.msra.mxu1 %v17971_v23 }
 0x779   :  { %10839 = vmatprep.subr.bf16.mxu1 %v17972_v33 }
 0x77c   :  { %10840 = vmatpush2.bf16.msra.mxu1 %v17973_v20 }
 0x77d   :  { %10841 = vmatprep.subr.bf16.mxu1 %v17974_v31 }
 0x780   :  { %10842 = vmatpush2.bf16.msra.mxu1 %v16754_v45 }
 0x781   :  { %10843 = vmatprep.subr.bf16.mxu1 %v17975_v56 }
 0x784   :  { %10844 = vmatpush2.bf16.msra.mxu1 %v16766_v2 }
 0x785   :  { %10845 = vmatprep.subr.bf16.mxu1 %v16772_v53 }
 0x788   :  { %10846 = vmatpush2.bf16.msra.mxu1 %v16778_v35 }
 0x789   :  { %10847 = vmatprep.subr.bf16.mxu1 %v16784_v6 }
 0x78c   :  { %10848 = vmatpush2.bf16.msra.mxu1 %v16790_v59 }
 0x78d   :  { %10899 = vmatprep.subr.bf16.mxu1 %v16796_v36 }
 0x78f   :  { %v9613_v33 = vpop.f32.mrf.mxu1 }
 0x790   :  { %v16985_v20 = vadd.f32 %v9613_v33, %v9573_v14  ;;  %v10600_v31 = vpop.f32.mrf.mxu0 }
 0x791   :  { %v9615_v23 = vpop.f32.mrf.mxu1 }
 0x792   :  { %v16987_v45 = vadd.f32 %v9615_v23, %v9575_v4  ;;  %v16989_v56 = vpop.f32.mrf.mxu0  ;;  %v9621_v4 = vld [vmem:[%s17570_s9] sm:$0xff]  ;;  %v9625_v23 = vpop.permute.xlu0 %9624 }
 0x793   :  { %v9617_v2 = vpop.f32.mrf.mxu1  ;;  %v9643_v1 = vrot.slane %v9621_v4, %v17978_v38 }
 0x794   :  { %v10604_v47 = vpop.f32.mrf.mxu0  ;;  %v9639_v2 = vrot.slane %v9621_v4, %v17976_v43 }
 0x795   :  { %v9618_v53 = vpop.f32.mrf.mxu1  ;;  %v17977_v47 = vld [vmem:[#allocation17_spill] sm:$0xff]  ;;  %v9671_v37 = vmul.f32 %v9643_v1, %v9625_v23 }
 0x796   :  { %v10605_v58 = vpop.f32.mrf.mxu0  ;;  %v9631_v53 = vrot.slane %v9621_v4, %v17977_v47  ;;  %v9689_v42 = vpop.permute.xlu0 %9688 }
 0x797   :  { %v17003_v58 = vld [vmem:[%s17571_s10] sm:$0xff]  ;;  %v9679_v1 = vadd.f32 %v9671_v37, %v17982_v55 }
 0x798   :  { %v9668_v18 = vmul.f32 %v9631_v53, %v9625_v23  ;;  %v9695_v26 = vrot.slane %v17003_v58, %v17977_v47  ;;  %v9707_v50 = vrot.slane %v17003_v58, %v17978_v38  ;;  %v17020_v53 = vld [vmem:[%s17574_s13] sm:$0xff] }
 0x79a   :  { %v9732_v44 = vmul.f32 %v9695_v26, %v9689_v42  ;;  %v9735_v63 = vmul.f32 %v9707_v50, %v9689_v42  ;;  %v9753_v26 = vrot.slane %v17020_v53, %v17977_v47 }
 0x7cf   :  { %v10641_v35 = vpop.f32.mrf.mxu1 }
 0x7d0   :  { %v16991_v10 = vpop.f32.mrf.mxu0 }
 0x7d1   :  { %v10643_v6 = vpop.f32.mrf.mxu1 }
 0x7d2   :  { %v16993_v59 = vpop.f32.mrf.mxu0 }
 0x7d3   :  { %v10645_v36 = vpop.f32.mrf.mxu1 }
 0x7d4   :  { %v10686_v54 = vpop.f32.mrf.mxu0  ;;  %v17979_v36 = vld [vmem:[#allocation18_spill] sm:$0xff] }
 0x7d5   :  { %v10646_v14 = vpop.f32.mrf.mxu1  ;;  %v9635_v54 = vrot.slane %v9621_v4, %v17979_v36  ;;  %v9699_v62 = vrot.slane %v17003_v58, %v17979_v36 }
 0x7d6   :  { %v10687_v33 = vpop.f32.mrf.mxu0  ;;  %v9670_v14 = vmul.f32 %v9639_v2, %v9625_v23  ;;  %v17981_v2 = vld [vmem:[#allocation58_spill] sm:$0xff] }
 0x7d7   :  { %v9703_v33 = vrot.slane %v17003_v58, %v17976_v43  ;;  %v9669_v24 = vmul.f32 %v9635_v54, %v9625_v23  ;;  %v9676_v19 = vadd.f32 %v9668_v18, %v17981_v2  ;;  %v9733_v60 = vmul.f32 %v9699_v62, %v9689_v42 }
 0x7d8   :  { %v9678_v21 = vadd.f32 %v9670_v14, %v17980_v29  ;;  %v9761_v54 = vrot.slane %v17020_v53, %v17976_v43  ;;  %v17984_v29 = vld [vmem:[#allocation15_spill] sm:$0xff]  ;;  %v9743_v18 = vadd.f32 %v9735_v63, %v9679_v1  ;;  %v9765_v2 = vrot.slane %v17020_v53, %v17978_v38 }
 0x7d9   :  { %v9734_v0 = vmul.f32 %v9703_v33, %v9689_v42  ;;  %v9677_v61 = vadd.f32 %v9669_v24, %v17983_v49  ;;  %v9654_v14 = vsub.s32 6, %v17984_v29  ;;  %v9740_v33 = vadd.f32 %v9732_v44, %v9676_v19 }
 0x7da   :  { %v9658_v37 = vsub.s32 7, %v17984_v29  ;;  %v9646_v50 = vsub.s32 4, %v17984_v29  ;;  %v9650_v19 = vsub.s32 5, %v17984_v29  ;;  %v17040_v44 = vadd.f32 %v9765_v2, %v9743_v18 }
 0x7db   :  { %v9742_v51 = vadd.f32 %v9734_v0, %v9678_v21  ;;  %v9741_v62 = vadd.f32 %v9733_v60, %v9677_v61  ;;  %v9757_v0 = vrot.slane %v17020_v53, %v17979_v36  ;;  %v9655_v24 = vrot.slane %v9621_v4, %v9654_v14 }
 0x7dc   :  { %v17038_v49 = vadd.f32 %v9753_v26, %v9740_v33  ;;  %17985 = vst [vmem:[#allocation16_spill] sm:$0xff] %v17040_v44  ;;  %v9659_v63 = vrot.slane %v9621_v4, %v9658_v37  ;;  %v9647_v38 = vrot.slane %v9621_v4, %v9646_v50  ;;  %v9719_v60 = vrot.slane %v17003_v58, %v9654_v14 }
 0x7dd   :  { %v17035_v21 = vadd.f32 %v9761_v54, %v9742_v51  ;;  %v17044_v47 = vadd.f32 %v9757_v0, %v9741_v62  ;;  %v9674_v61 = vmul.f32 %v9655_v24, %v9625_v23  ;;  %v10733_v51 = vadd.f32 %v10643_v6, %v17040_v44 }
 0x7de   :  { %v10730_v43 = vadd.f32 %v10600_v31, %v17038_v49  ;;  %v9651_v36 = vrot.slane %v9621_v4, %v9650_v19  ;;  %v9675_v1 = vmul.f32 %v9659_v63, %v9625_v23  ;;  %v9723_v54 = vrot.slane %v17003_v58, %v9658_v37 }
 0x7df   :  { %v10732_v55 = vadd.f32 %v10641_v35, %v17035_v21  ;;  %17986 = vst [vmem:[#allocation17_spill] sm:$0xff] %v17044_v47  ;;  %v10731_v29 = vadd.f32 %v16989_v56, %v17044_v47  ;;  %v9711_v35 = vrot.slane %v17003_v58, %v9646_v50  ;;  %v9672_v18 = vmul.f32 %v9647_v38, %v9625_v23 }
 0x7e0   :  { %v10738_v26 = vmul.f32 0.5, %v10730_v43  ;;  %v9682_v31 = vadd.f32 %v9674_v61, %v16985_v20  ;;  %v9738_v2 = vmul.f32 %v9719_v60, %v9689_v42  ;;  %v10741_v62 = vmul.f32 0.5, %v10733_v51 }
 0x7e1   :  { %v10740_v33 = vmul.f32 0.5, %v10732_v55  ;;  %v9673_v0 = vmul.f32 %v9651_v36, %v9625_v23  ;;  %v9715_v24 = vrot.slane %v17003_v58, %v9650_v19  ;;  %v9683_v6 = vadd.f32 %v9675_v1, %v16987_v45 }
 0x7e2   :  { %v9739_v4 = vmul.f32 %v9723_v54, %v9689_v42  ;;  %v10739_v63 = vmul.f32 0.5, %v10731_v29  ;;  %v9736_v44 = vmul.f32 %v9711_v35, %v9689_v42  ;;  %v9680_v56 = vadd.f32 %v9672_v18, %v16946_v15 }
 0x7e3   :  { %14332 = vtanh.f32 %v10740_v33  ;;  %v9746_v55 = vadd.f32 %v9738_v2, %v9682_v31  ;;  %v9777_v43 = vrot.slane %v17020_v53, %v9654_v14  ;;  %v9737_v38 = vmul.f32 %v9715_v24, %v9689_v42 }
 0x7e4   :  { %14334 = vtanh.f32 %v10738_v26  ;;  %v9681_v20 = vadd.f32 %v9673_v0, %v16952_v22  ;;  %v9747_v61 = vadd.f32 %v9739_v4, %v9683_v6  ;;  %v9781_v23 = vrot.slane %v17020_v53, %v9658_v37 }
 0x7e5   :  { %14336 = vtanh.f32 %v10741_v62  ;;  %v9744_v58 = vadd.f32 %v9736_v44, %v9680_v56  ;;  %v9769_v45 = vrot.slane %v17020_v53, %v9646_v50  ;;  %v17060_v60 = vadd.f32 %v9777_v43, %v9746_v55 }
 0x7e6   :  { %14338 = vtanh.f32 %v10739_v63  ;;  %v9745_v36 = vadd.f32 %v9737_v38, %v9681_v20  ;;  %v9773_v15 = vrot.slane %v17020_v53, %v9650_v19  ;;  %v17063_v1 = vadd.f32 %v9781_v23, %v9747_v61 }
 0x7e7   :  { %v17066_v54 = vadd.f32 %v9769_v45, %v9744_v58 }
 0x7e8   :  { %17987 = vst [vmem:[#allocation19_spill] sm:$0xff] %v17063_v1  ;;  %v17069_v44 = vadd.f32 %v9773_v15, %v9745_v36 }
 0x7e9   :  { %17988 = vst [vmem:[#allocation18_spill] sm:$0xff] %v17066_v54  ;;  %v10734_v50 = vadd.f32 %v16991_v10, %v17066_v54 }
 0x7ea   :  { %v10735_v19 = vadd.f32 %v16993_v59, %v17069_v44 }
 0x7eb   :  { %v10742_v18 = vmul.f32 0.5, %v10734_v50 }
 0x7ec   :  { %v10743_v0 = vmul.f32 0.5, %v10735_v19  ;;  %v17990_v19 = vld [vmem:[#allocation119_spill] sm:$0xff] }
 0x7f0   :  { %v14333_v29 = vpop.eup %14332 }
 0x7f1   :  { %v14335_v53 = vpop.eup %14334  ;;  %v10752_v26 = vmul.f32 0.5, %v14333_v29 }
 0x7f2   :  { %v14337_v35 = vpop.eup %14336  ;;  %v10750_v2 = vmul.f32 0.5, %v14335_v53  ;;  %v17989_v53 = vld [vmem:[#allocation55_spill] sm:$0xff] }
 0x7f3   :  { %v14339_v31 = vpop.eup %14338  ;;  %v10753_v62 = vmul.f32 0.5, %v14337_v35  ;;  %v10758_v6 = vadd.f32 0.5, %v10752_v26  ;;  %v17991_v35 = vld [vmem:[#allocation57_spill] sm:$0xff]  ;;  %v17992_v26 = vld [vmem:[#allocation120_spill] sm:$0xff] }
 0x7f4   :  { %v10751_v24 = vmul.f32 0.5, %v14339_v31  ;;  %v10756_v4 = vadd.f32 0.5, %v10750_v2  ;;  %v17994_v31 = vld [vmem:[#allocation63_spill] sm:$0xff]  ;;  %v17995_v2 = vld [vmem:[#allocation65_spill] sm:$0xff] }
 0x7f5   :  { %v10759_v63 = vadd.f32 0.5, %v10753_v62  ;;  %v10764_v55 = vmul.f32 0.0, %v10758_v6  ;;  %v17996_v62 = vld [vmem:[#allocation67_spill] sm:$0xff]  ;;  %v17999_v6 = vld [vmem:[#allocation73_spill] sm:$0xff] }
 0x7f6   :  { %v10757_v56 = vadd.f32 0.5, %v10751_v24  ;;  %v17998_v24 = vld [vmem:[#allocation71_spill] sm:$0xff] }
 0x7f7   :  { %v10765_v20 = vmul.f32 0.0, %v10759_v63  ;;  %v18001_v63 = vld [vmem:[#allocation77_spill] sm:$0xff] }
 0x80f   :  { %v10723_v51 = vpop.f32.mrf.mxu1 }
 0x810   :  { %v10736_v14 = vadd.f32 %v10723_v51, %v17060_v60 }
 0x811   :  { %v10725_v42 = vpop.f32.mrf.mxu1 }
 0x812   :  { %14340 = vtanh.f32 %v10736_v14  ;;  %v10737_v22 = vadd.f32 %v10725_v42, %v17063_v1 }
 0x813   :  { %v10727_v37 = vpop.f32.mrf.mxu1 }
 0x814   :  { %14342 = vtanh.f32 %v10737_v22 }
 0x815   :  { %v10728_v33 = vpop.f32.mrf.mxu1  ;;  %14344 = vtanh.f32 %v10742_v18  ;;  %v17993_v18 = vld [vmem:[#allocation60_spill] sm:$0xff] }
 0x816   :  { %14346 = vtanh.f32 %v10743_v0  ;;  %v17997_v0 = vld [vmem:[#allocation69_spill] sm:$0xff] }
 0x81f   :  { %v14341_v10 = vpop.eup %14340 }
 0x820   :  { %v10766_v43 = vmul.f32 %v14341_v10, %v10756_v4  ;;  %v18000_v4 = vld [vmem:[#allocation75_spill] sm:$0xff] }
 0x821   :  { %v14343_v38 = vpop.eup %14342  ;;  %v18002_v10 = vld [vmem:[#allocation79_spill] sm:$0xff] }
 0x822   :  { %v17075_v59 = vadd.f32 %v10766_v43, %v10764_v55  ;;  %v10767_v61 = vmul.f32 %v14343_v38, %v10757_v56  ;;  %v14345_v58 = vpop.eup %14344  ;;  %v18003_v56 = vld [vmem:[#allocation81_spill] sm:$0xff]  ;;  %v18004_v55 = vld [vmem:[#allocation83_spill] sm:$0xff] }
 0x823   :  { %v14347_v45 = vpop.eup %14346  ;;  %v10754_v51 = vmul.f32 0.5, %v14345_v58  ;;  %v18005_v43 = vld [vmem:[#allocation85_spill] sm:$0xff]  ;;  %v18006_v38 = vld [vmem:[#allocation87_spill] sm:$0xff] }
 0x824   :  { %14348 = vtanh.f32 %v17075_v59  ;;  %v17078_v23 = vadd.f32 %v10767_v61, %v10765_v20  ;;  %v10755_v36 = vmul.f32 0.5, %v14347_v45  ;;  %v18007_v20 = vld [vmem:[#allocation89_spill] sm:$0xff]  ;;  %v18008_v61 = vld [vmem:[#allocation91_spill] sm:$0xff] }
 0x825   :  { %v10760_v15 = vadd.f32 0.5, %v10754_v51  ;;  %v18009_v58 = vld [vmem:[#allocation93_spill] sm:$0xff]  ;;  %v18010_v45 = vld [vmem:[#allocation95_spill] sm:$0xff] }
 0x826   :  { %14350 = vtanh.f32 %v17078_v23  ;;  %v10761_v42 = vadd.f32 0.5, %v10755_v36  ;;  %v18011_v51 = vld [vmem:[#allocation97_spill] sm:$0xff]  ;;  %v18012_v36 = vld [vmem:[#allocation99_spill] sm:$0xff] }
 0x831   :  { %v14349_v14 = vpop.eup %14348 }
 0x832   :  { %v10772_v22 = vmul.f32 %v14349_v14, %v10760_v15  ;;  %v18013_v15 = vld [vmem:[#allocation101_spill] sm:$0xff]  ;;  %v18014_v14 = vld [vmem:[#allocation103_spill] sm:$0xff] }
 0x833   :  { %v14351_v37 = vpop.eup %14350 }
 0x834   :  { %v10773_v50 = vmul.f32 %v14351_v37, %v10761_v42  ;;  %v17081_v33 = vpack.c.bf16 %v10772_v22, %v10772_v22  ;;  %v18015_v42 = vld [vmem:[#allocation105_spill] sm:$0xff]  ;;  %v18016_v22 = vld [vmem:[#allocation107_spill] sm:$0xff] }
 0x835   :  { %v18017_v37 = vld [vmem:[#allocation131_spill] sm:$0xff] }
 0x836   :  { %v10775_v29 = vpack.c.bf16 %v10773_v50, %v10773_v50  ;;  %v18018_v50 = vld [vmem:[#allocation109_spill] sm:$0xff] }
 0x838   :  { %10808 = vmatprep.mubr.bf16.mxu0 %v10775_v29  ;;  %10849 = vmatprep.mubr.bf16.mxu1 %v10775_v29 }
 0x839   :  { %10809 = vmatmul.mubr.bf16.vlgmr.msra.gmra.mxu0 %v17081_v33  ;;  %10850 = vmatmul.mubr.bf16.vlgmr.msra.gmra.mxu1 %v17081_v33 }
 0x83a   :  { %10859 = vmatpush1.bf16.msra.mxu0 %v17989_v53  ;;  %10900 = vmatpush1.bf16.msra.mxu1 %v17990_v19 }
 0x83b   :  { %10890 = vmatprep.mubr.bf16.mxu0 %v10775_v29  ;;  %10931 = vmatprep.mubr.bf16.mxu1 %v10775_v29  ;;  %v18019_v29 = vld [vmem:[#allocation132_spill] sm:$0xff] }
 0x83c   :  { %10860 = vmatprep.subr.bf16.mxu0 %v17991_v35  ;;  %10901 = vmatprep.subr.bf16.mxu1 %v17992_v26 }
 0x83e   :  { %10861 = vmatpush1.bf16.msra.mxu0 %v17993_v18  ;;  %10902 = vmatpush1.bf16.msra.mxu1 %v16813_v13 }
 0x83f   :  { %10862 = vmatprep.subr.bf16.mxu0 %v17994_v31  ;;  %10903 = vmatprep.subr.bf16.mxu1 %v16819_v25 }
 0x842   :  { %10863 = vmatpush1.bf16.msra.mxu0 %v17995_v2  ;;  %10904 = vmatpush1.bf16.msra.mxu1 %v16831_v8 }
 0x843   :  { %10864 = vmatprep.subr.bf16.mxu0 %v17996_v62  ;;  %10905 = vmatprep.subr.bf16.mxu1 %v16834_v5 }
 0x846   :  { %10865 = vmatpush1.bf16.msra.mxu0 %v17997_v0  ;;  %10906 = vmatpush1.bf16.msra.mxu1 %v16839_v48 }
 0x847   :  { %10866 = vmatprep.subr.bf16.mxu0 %v17998_v24  ;;  %10907 = vmatprep.subr.bf16.mxu1 %v16842_v34 }
 0x84a   :  { %10867 = vmatpush1.bf16.msra.mxu0 %v17999_v6  ;;  %10908 = vmatpush1.bf16.msra.mxu1 %v16847_v46 }
 0x84b   :  { %10868 = vmatprep.subr.bf16.mxu0 %v18000_v4  ;;  %10909 = vmatprep.subr.bf16.mxu1 %v16850_v3 }
 0x84e   :  { %10869 = vmatpush1.bf16.msra.mxu0 %v18001_v63  ;;  %10910 = vmatpush1.bf16.msra.mxu1 %v16855_v16 }
 0x84f   :  { %10870 = vmatprep.subr.bf16.mxu0 %v18002_v10  ;;  %10911 = vmatprep.subr.bf16.mxu1 %v16858_v9 }
 0x852   :  { %10871 = vmatpush1.bf16.msra.mxu0 %v18003_v56  ;;  %10912 = vmatpush1.bf16.msra.mxu1 %v16863_v40 }
 0x853   :  { %10872 = vmatprep.subr.bf16.mxu0 %v18004_v55  ;;  %10913 = vmatprep.subr.bf16.mxu1 %v16866_v30 }
 0x856   :  { %10873 = vmatpush1.bf16.msra.mxu0 %v18005_v43  ;;  %10914 = vmatpush1.bf16.msra.mxu1 %v16871_v7 }
 0x857   :  { %10874 = vmatprep.subr.bf16.mxu0 %v18006_v38  ;;  %10915 = vmatprep.subr.bf16.mxu1 %v16874_v52 }
 0x85a   :  { %10875 = vmatpush2.bf16.msra.mxu0 %v18007_v20  ;;  %10916 = vmatpush2.bf16.msra.mxu1 %v16879_v57 }
 0x85b   :  { %10876 = vmatprep.subr.bf16.mxu0 %v18008_v61  ;;  %10917 = vmatprep.subr.bf16.mxu1 %v16882_v17 }
 0x85e   :  { %10877 = vmatpush2.bf16.msra.mxu0 %v18009_v58  ;;  %10918 = vmatpush2.bf16.msra.mxu1 %v16887_v39 }
 0x85f   :  { %10878 = vmatprep.subr.bf16.mxu0 %v18010_v45  ;;  %10919 = vmatprep.subr.bf16.mxu1 %v16890_v11  ;;  %v18094_v45 = vld [vmem:[#allocation16_spill] sm:$0xff] }
 0x862   :  { %10879 = vmatpush2.bf16.msra.mxu0 %v18011_v51  ;;  %10920 = vmatpush2.bf16.msra.mxu1 %v16895_v28 }
 0x863   :  { %10880 = vmatprep.subr.bf16.mxu0 %v18012_v36  ;;  %10921 = vmatprep.subr.bf16.mxu1 %v16898_v41  ;;  %v18020_v41 = vld [vmem:[#allocation111_spill] sm:$0xff] }
 0x866   :  { %10881 = vmatpush2.bf16.msra.mxu0 %v18013_v15  ;;  %10922 = vmatpush2.bf16.msra.mxu1 %v16903_v12  ;;  %v18021_v15 = vld [vmem:[#allocation133_spill] sm:$0xff] }
 0x867   :  { %10882 = vmatprep.subr.bf16.mxu0 %v18014_v14  ;;  %10923 = vmatprep.subr.bf16.mxu1 %v16906_v27  ;;  %v18022_v12 = vld [vmem:[#allocation113_spill] sm:$0xff]  ;;  %v18023_v14 = vld [vmem:[#allocation134_spill] sm:$0xff]  ;;  %v18024_v27 = vld [vmem:[#allocation115_spill] sm:$0xff] }
 0x86a   :  { %10883 = vmatpush2.bf16.msra.mxu0 %v18015_v42  ;;  %10924 = vmatpush2.bf16.msra.mxu1 %v16911_v32  ;;  %v18025_v42 = vld [vmem:[#allocation135_spill] sm:$0xff]  ;;  %v18026_v32 = vld [vmem:[#allocation117_spill] sm:$0xff] }
 0x86b   :  { %10884 = vmatprep.subr.bf16.mxu0 %v18016_v22  ;;  %10925 = vmatprep.subr.bf16.mxu1 %v18017_v37  ;;  %v18027_v22 = vld [vmem:[#allocation136_spill] sm:$0xff] }
 0x86c   :  { %v18028_v37 = vld [vmem:[#allocation20_spill] sm:$0xff] }
 0x86e   :  { %10885 = vmatpush2.bf16.msra.mxu0 %v18018_v50  ;;  %10926 = vmatpush2.bf16.msra.mxu1 %v18019_v29  ;;  %v18029_v50 = vld [vmem:[#allocation52_spill] sm:$0xff] }
 0x86f   :  { %10886 = vmatprep.subr.bf16.mxu0 %v18020_v41  ;;  %10927 = vmatprep.subr.bf16.mxu1 %v18021_v15  ;;  %v18030_v15 = vld [vmem:[#allocation21_spill] sm:$0xff]  ;;  %v18039_v41 = vld [vmem:[#allocation64_spill] sm:$0xff] }
 0x872   :  { %10887 = vmatpush2.bf16.msra.mxu0 %v18022_v12  ;;  %10928 = vmatpush2.bf16.msra.mxu1 %v18023_v14  ;;  %v18031_v12 = vld [vmem:[#allocation54_spill] sm:$0xff] }
 0x873   :  { %10888 = vmatprep.subr.bf16.mxu0 %v18024_v27  ;;  %10929 = vmatprep.subr.bf16.mxu1 %v18025_v42  ;;  %v18032_v14 = vld [vmem:[#allocation22_spill] sm:$0xff]  ;;  %v18033_v27 = vld [vmem:[#allocation56_spill] sm:$0xff]  ;;  %v18034_v42 = vld [vmem:[#allocation23_spill] sm:$0xff] }
 0x876   :  { %10889 = vmatpush2.bf16.msra.mxu0 %v18026_v32  ;;  %10930 = vmatpush2.bf16.msra.mxu1 %v18027_v22  ;;  %v18035_v32 = vld [vmem:[#allocation59_spill] sm:$0xff]  ;;  %v18036_v22 = vld [vmem:[#allocation24_spill] sm:$0xff] }
 0x877   :  { %11022 = vmatprep.subr.bf16.mxu0 %v18028_v37  ;;  %11063 = vmatprep.subr.bf16.mxu1 %v18029_v50  ;;  %v18037_v37 = vld [vmem:[#allocation61_spill] sm:$0xff] }
 0x878   :  { %v18038_v50 = vld [vmem:[#allocation25_spill] sm:$0xff] }
 0x879   :  { %10891 = vmatmul.mubr.bf16.vlgmr.msra.gmra.mxu0 %v17081_v33  ;;  %10932 = vmatmul.mubr.bf16.vlgmr.msra.gmra.mxu1 %v17081_v33  ;;  %v18040_v33 = vld [vmem:[#allocation26_spill] sm:$0xff] }
 0x87a   :  { %11023 = vmatpush1.bf16.msra.mxu0 %v18030_v15  ;;  %11064 = vmatpush1.bf16.msra.mxu1 %v18031_v12  ;;  %v18041_v15 = vld [vmem:[#allocation66_spill] sm:$0xff]  ;;  %v18042_v12 = vld [vmem:[#allocation27_spill] sm:$0xff] }
 0x87b   :  { %11024 = vmatprep.subr.bf16.mxu0 %v18032_v14  ;;  %11065 = vmatprep.subr.bf16.mxu1 %v18033_v27  ;;  %v18043_v14 = vld [vmem:[#allocation68_spill] sm:$0xff] }
 0x87c   :  { %v18044_v27 = vld [vmem:[#allocation28_spill] sm:$0xff] }
 0x87e   :  { %11025 = vmatpush1.bf16.msra.mxu0 %v18034_v42  ;;  %11066 = vmatpush1.bf16.msra.mxu1 %v18035_v32  ;;  %v18045_v42 = vld [vmem:[#allocation70_spill] sm:$0xff]  ;;  %v18046_v32 = vld [vmem:[#allocation29_spill] sm:$0xff] }
 0x87f   :  { %11026 = vmatprep.subr.bf16.mxu0 %v18036_v22  ;;  %11067 = vmatprep.subr.bf16.mxu1 %v18037_v37  ;;  %v18047_v22 = vld [vmem:[#allocation72_spill] sm:$0xff]  ;;  %v18048_v37 = vld [vmem:[#allocation30_spill] sm:$0xff] }
 0x882   :  { %11027 = vmatpush1.bf16.msra.mxu0 %v18038_v50  ;;  %11068 = vmatpush1.bf16.msra.mxu1 %v18039_v41  ;;  %v18049_v50 = vld [vmem:[#allocation74_spill] sm:$0xff]  ;;  %v18050_v41 = vld [vmem:[#allocation31_spill] sm:$0xff] }
 0x883   :  { %11028 = vmatprep.subr.bf16.mxu0 %v18040_v33  ;;  %11069 = vmatprep.subr.bf16.mxu1 %v18041_v15  ;;  %v18051_v33 = vld [vmem:[#allocation76_spill] sm:$0xff] }
 0x884   :  { %v18052_v15 = vld [vmem:[#allocation32_spill] sm:$0xff] }
 0x886   :  { %11029 = vmatpush1.bf16.msra.mxu0 %v18042_v12  ;;  %11070 = vmatpush1.bf16.msra.mxu1 %v18043_v14  ;;  %v18053_v12 = vld [vmem:[#allocation78_spill] sm:$0xff]  ;;  %v18054_v14 = vld [vmem:[#allocation33_spill] sm:$0xff] }
 0x887   :  { %11030 = vmatprep.subr.bf16.mxu0 %v18044_v27  ;;  %11071 = vmatprep.subr.bf16.mxu1 %v18045_v42  ;;  %v18055_v27 = vld [vmem:[#allocation80_spill] sm:$0xff]  ;;  %v18056_v42 = vld [vmem:[#allocation34_spill] sm:$0xff] }
 0x88a   :  { %11031 = vmatpush1.bf16.msra.mxu0 %v18046_v32  ;;  %11072 = vmatpush1.bf16.msra.mxu1 %v18047_v22  ;;  %v18057_v32 = vld [vmem:[#allocation82_spill] sm:$0xff]  ;;  %v18058_v22 = vld [vmem:[#allocation35_spill] sm:$0xff] }
 0x88b   :  { %11032 = vmatprep.subr.bf16.mxu0 %v18048_v37  ;;  %11073 = vmatprep.subr.bf16.mxu1 %v18049_v50  ;;  %v18059_v37 = vld [vmem:[#allocation84_spill] sm:$0xff] }
 0x88c   :  { %v18060_v50 = vld [vmem:[#allocation36_spill] sm:$0xff] }
 0x88e   :  { %11033 = vmatpush1.bf16.msra.mxu0 %v18050_v41  ;;  %11074 = vmatpush1.bf16.msra.mxu1 %v18051_v33  ;;  %v18061_v41 = vld [vmem:[#allocation86_spill] sm:$0xff]  ;;  %v18062_v33 = vld [vmem:[#allocation37_spill] sm:$0xff] }
 0x88f   :  { %11034 = vmatprep.subr.bf16.mxu0 %v18052_v15  ;;  %11075 = vmatprep.subr.bf16.mxu1 %v18053_v12  ;;  %v18063_v15 = vld [vmem:[#allocation88_spill] sm:$0xff]  ;;  %v18064_v12 = vld [vmem:[#allocation38_spill] sm:$0xff] }
 0x892   :  { %11035 = vmatpush1.bf16.msra.mxu0 %v18054_v14  ;;  %11076 = vmatpush1.bf16.msra.mxu1 %v18055_v27  ;;  %v18065_v14 = vld [vmem:[#allocation90_spill] sm:$0xff]  ;;  %v18066_v27 = vld [vmem:[#allocation39_spill] sm:$0xff] }
 0x893   :  { %11036 = vmatprep.subr.bf16.mxu0 %v18056_v42  ;;  %11077 = vmatprep.subr.bf16.mxu1 %v18057_v32  ;;  %v18067_v42 = vld [vmem:[#allocation92_spill] sm:$0xff] }
 0x894   :  { %v18068_v32 = vld [vmem:[#allocation40_spill] sm:$0xff] }
 0x896   :  { %11037 = vmatpush1.bf16.msra.mxu0 %v18058_v22  ;;  %11078 = vmatpush1.bf16.msra.mxu1 %v18059_v37  ;;  %v18069_v22 = vld [vmem:[#allocation94_spill] sm:$0xff]  ;;  %v18070_v37 = vld [vmem:[#allocation41_spill] sm:$0xff] }
 0x897   :  { %11038 = vmatprep.subr.bf16.mxu0 %v18060_v50  ;;  %11079 = vmatprep.subr.bf16.mxu1 %v18061_v41  ;;  %v18071_v50 = vld [vmem:[#allocation96_spill] sm:$0xff]  ;;  %v18072_v41 = vld [vmem:[#allocation42_spill] sm:$0xff] }
 0x89a   :  { %11039 = vmatpush2.bf16.msra.mxu0 %v18062_v33  ;;  %11080 = vmatpush2.bf16.msra.mxu1 %v18063_v15  ;;  %v18073_v33 = vld [vmem:[#allocation98_spill] sm:$0xff]  ;;  %v18074_v15 = vld [vmem:[#allocation43_spill] sm:$0xff] }
 0x89b   :  { %11040 = vmatprep.subr.bf16.mxu0 %v18064_v12  ;;  %11081 = vmatprep.subr.bf16.mxu1 %v18065_v14  ;;  %v18075_v12 = vld [vmem:[#allocation100_spill] sm:$0xff] }
 0x89c   :  { %v18076_v14 = vld [vmem:[#allocation44_spill] sm:$0xff] }
 0x89e   :  { %11041 = vmatpush2.bf16.msra.mxu0 %v18066_v27  ;;  %11082 = vmatpush2.bf16.msra.mxu1 %v18067_v42  ;;  %v18077_v27 = vld [vmem:[#allocation102_spill] sm:$0xff]  ;;  %v18078_v42 = vld [vmem:[#allocation45_spill] sm:$0xff] }
 0x89f   :  { %11042 = vmatprep.subr.bf16.mxu0 %v18068_v32  ;;  %11083 = vmatprep.subr.bf16.mxu1 %v18069_v22  ;;  %v18079_v32 = vld [vmem:[#allocation104_spill] sm:$0xff]  ;;  %v18080_v22 = vld [vmem:[#allocation46_spill] sm:$0xff] }
 0x8a2   :  { %11043 = vmatpush2.bf16.msra.mxu0 %v18070_v37  ;;  %11084 = vmatpush2.bf16.msra.mxu1 %v18071_v50  ;;  %v18081_v37 = vld [vmem:[#allocation106_spill] sm:$0xff]  ;;  %v18082_v50 = vld [vmem:[#allocation47_spill] sm:$0xff] }
 0x8a3   :  { %11044 = vmatprep.subr.bf16.mxu0 %v18072_v41  ;;  %11085 = vmatprep.subr.bf16.mxu1 %v18073_v33  ;;  %v18083_v41 = vld [vmem:[#allocation108_spill] sm:$0xff] }
 0x8a4   :  { %v18084_v33 = vld [vmem:[#allocation48_spill] sm:$0xff] }
 0x8a6   :  { %11045 = vmatpush2.bf16.msra.mxu0 %v18074_v15  ;;  %11086 = vmatpush2.bf16.msra.mxu1 %v18075_v12  ;;  %v18085_v15 = vld [vmem:[#allocation110_spill] sm:$0xff]  ;;  %v18086_v12 = vld [vmem:[#allocation49_spill] sm:$0xff] }
 0x8a7   :  { %11046 = vmatprep.subr.bf16.mxu0 %v18076_v14  ;;  %11087 = vmatprep.subr.bf16.mxu1 %v18077_v27  ;;  %v18087_v14 = vld [vmem:[#allocation112_spill] sm:$0xff]  ;;  %v18088_v27 = vld [vmem:[#allocation50_spill] sm:$0xff] }
 0x8aa   :  { %11047 = vmatpush2.bf16.msra.mxu0 %v18078_v42  ;;  %11088 = vmatpush2.bf16.msra.mxu1 %v18079_v32  ;;  %v18089_v42 = vld [vmem:[#allocation114_spill] sm:$0xff]  ;;  %v18090_v32 = vld [vmem:[#allocation51_spill] sm:$0xff] }
 0x8ab   :  { %11048 = vmatprep.subr.bf16.mxu0 %v18080_v22  ;;  %11089 = vmatprep.subr.bf16.mxu1 %v18081_v37  ;;  %v18091_v22 = vld [vmem:[#allocation116_spill] sm:$0xff]  ;;  %v18092_v37 = vld [vmem:[#allocation53_spill] sm:$0xff] }
 0x8ae   :  { %11049 = vmatpush2.bf16.msra.mxu0 %v18082_v50  ;;  %11090 = vmatpush2.bf16.msra.mxu1 %v18083_v41  ;;  %v18093_v50 = vld [vmem:[#allocation118_spill] sm:$0xff] }
 0x8af   :  { %11050 = vmatprep.subr.bf16.mxu0 %v18084_v33  ;;  %11091 = vmatprep.subr.bf16.mxu1 %v18085_v15 }
 0x8b2   :  { %11051 = vmatpush2.bf16.msra.mxu0 %v18086_v12  ;;  %11092 = vmatpush2.bf16.msra.mxu1 %v18087_v14 }
 0x8b3   :  { %11052 = vmatprep.subr.bf16.mxu0 %v18088_v27  ;;  %11093 = vmatprep.subr.bf16.mxu1 %v18089_v42 }
 0x8b6   :  { %11053 = vmatpush2.bf16.msra.mxu0 %v18090_v32  ;;  %11094 = vmatpush2.bf16.msra.mxu1 %v18091_v22 }
 0x8b7   :  { %11104 = vmatprep.subr.bf16.mxu0 %v18092_v37  ;;  %11145 = vmatprep.subr.bf16.mxu1 %v18093_v50 }
 0x8f9   :  { %v10810_v41 = vpop.f32.mrf.mxu0  ;;  %v10851_v33 = vpop.f32.mrf.mxu1 }
 0x8fa   :  { %v10950_v51 = vrot.slane %v10851_v33, 6  ;;  %v10948_v27 = vrot.slane %v10810_v41, 6 }
 0x8fb   :  { %v10812_v29 = vpop.f32.mrf.mxu0  ;;  %v10853_v15 = vpop.f32.mrf.mxu1 }
 0x8fc   :  { %v10951_v11 = vrot.slane %v10853_v15, 6  ;;  %v10966_v42 = vadd.f32 %v10950_v51, %v17035_v21  ;;  %v10949_v32 = vrot.slane %v10812_v29, 6  ;;  %v10964_v22 = vadd.f32 %v10948_v27, %v17038_v49 }
 0x8fd   :  { %v10814_v36 = vpop.f32.mrf.mxu0  ;;  %v10855_v12 = vpop.f32.mrf.mxu1 }
 0x8fe   :  { %v10967_v37 = vadd.f32 %v10951_v11, %v18094_v45  ;;  %v10974_v39 = vmul.f32 0.5, %v10966_v42  ;;  %v10965_v50 = vadd.f32 %v10949_v32, %v17044_v47  ;;  %v10972_v58 = vmul.f32 0.5, %v10964_v22 }
 0x8ff   :  { %v10815_v28 = vpop.f32.mrf.mxu0  ;;  %v10856_v14 = vpop.f32.mrf.mxu1 }
 0x900   :  { %v10975_v17 = vmul.f32 0.5, %v10967_v37  ;;  %14352 = vtanh.f32 %v10974_v39  ;;  %v10973_v36 = vmul.f32 0.5, %v10965_v50 }
 0x901   :  { %14354 = vtanh.f32 %v10972_v58 }
 0x902   :  { %14356 = vtanh.f32 %v10975_v17 }
 0x903   :  { %14358 = vtanh.f32 %v10973_v36 }
 0x90d   :  { %v14353_v58 = vpop.eup %14352 }
 0x90e   :  { %v14355_v50 = vpop.eup %14354 }
 0x90f   :  { %v14357_v36 = vpop.eup %14356 }
 0x939   :  { %v10892_v28 = vpop.f32.mrf.mxu0  ;;  %v10933_v12 = vpop.f32.mrf.mxu1 }
 0x93a   :  { %v10954_v41 = vrot.slane %v10933_v12, 6  ;;  %v10952_v14 = vrot.slane %v10892_v28, 6  ;;  %v10986_v28 = vmul.f32 0.5, %v14353_v58 }
 0x93b   :  { %v10894_v15 = vpop.f32.mrf.mxu0  ;;  %v10935_v51 = vpop.f32.mrf.mxu1 }
 0x93c   :  { %v10970_v27 = vadd.f32 %v10954_v41, %v17060_v60  ;;  %v10955_v29 = vrot.slane %v10935_v51, 6  ;;  %v10953_v22 = vrot.slane %v10894_v15, 6  ;;  %v10968_v17 = vadd.f32 %v10952_v14, %v17066_v54  ;;  %v14359_v41 = vpop.eup %14358 }
 0x93d   :  { %v10896_v11 = vpop.f32.mrf.mxu0  ;;  %v10937_v42 = vpop.f32.mrf.mxu1  ;;  %v10984_v51 = vmul.f32 0.5, %v14355_v50 }
 0x93e   :  { %14360 = vtanh.f32 %v10970_v27  ;;  %v10971_v32 = vadd.f32 %v10955_v29, %v17063_v1  ;;  %v10969_v33 = vadd.f32 %v10953_v22, %v17069_v44  ;;  %v10976_v12 = vmul.f32 0.5, %v10968_v17 }
 0x93f   :  { %v10897_v39 = vpop.f32.mrf.mxu0  ;;  %v10938_v37 = vpop.f32.mrf.mxu1  ;;  %v10987_v11 = vmul.f32 0.5, %v14357_v36  ;;  %v10992_v27 = vadd.f32 0.5, %v10986_v28  ;;  %v10985_v29 = vmul.f32 0.5, %v14359_v41  ;;  %v10990_v15 = vadd.f32 0.5, %v10984_v51 }
 0x940   :  { %14362 = vtanh.f32 %v10971_v32  ;;  %v10977_v42 = vmul.f32 0.5, %v10969_v33  ;;  %v11000_v39 = vrot.slane %v17075_v59, 6  ;;  %v11001_v22 = vrot.slane %v17078_v23, 6 }
 0x941   :  { %14364 = vtanh.f32 %v10976_v12  ;;  %v10993_v14 = vadd.f32 0.5, %v10987_v11  ;;  %v10991_v1 = vadd.f32 0.5, %v10985_v29 }
 0x942   :  { %14366 = vtanh.f32 %v10977_v42  ;;  %v11004_v32 = vmul.f32 %v11000_v39, %v10992_v27 }
 0x943   :  { %v11005_v50 = vmul.f32 %v11001_v22, %v10993_v14  ;;  %v18096_v14 = vld [vmem:[#allocation93_spill] sm:$0xff]  ;;  %v18098_v22 = vld [vmem:[#allocation95_spill] sm:$0xff] }
 0x94b   :  { %v14361_v37 = vpop.eup %14360 }
 0x94c   :  { %v11006_v54 = vmul.f32 %v14361_v37, %v10990_v15  ;;  %v18095_v37 = vld [vmem:[#allocation123_spill] sm:$0xff] }
 0x94d   :  { %v14363_v58 = vpop.eup %14362 }
 0x94e   :  { %v17225_v17 = vadd.f32 %v11006_v54, %v11004_v32  ;;  %v11007_v36 = vmul.f32 %v14363_v58, %v10991_v1  ;;  %v14365_v59 = vpop.eup %14364  ;;  %v18097_v32 = vld [vmem:[#allocation124_spill] sm:$0xff]  ;;  %v18099_v58 = vld [vmem:[#allocation125_spill] sm:$0xff] }
 0x94f   :  { %v14367_v28 = vpop.eup %14366  ;;  %v10988_v12 = vmul.f32 0.5, %v14365_v59  ;;  %v18102_v59 = vld [vmem:[#allocation99_spill] sm:$0xff] }
 0x950   :  { %14368 = vtanh.f32 %v17225_v17  ;;  %v17228_v33 = vadd.f32 %v11007_v36, %v11005_v50  ;;  %v10989_v41 = vmul.f32 0.5, %v14367_v28  ;;  %v18100_v50 = vld [vmem:[#allocation97_spill] sm:$0xff]  ;;  %v18101_v36 = vld [vmem:[#allocation126_spill] sm:$0xff]  ;;  %v18103_v28 = vld [vmem:[#allocation127_spill] sm:$0xff] }
 0x951   :  { %v10994_v51 = vadd.f32 0.5, %v10988_v12  ;;  %v18104_v12 = vld [vmem:[#allocation101_spill] sm:$0xff] }
 0x952   :  { %14370 = vtanh.f32 %v17228_v33  ;;  %v10995_v27 = vadd.f32 0.5, %v10989_v41  ;;  %v18105_v41 = vld [vmem:[#allocation128_spill] sm:$0xff] }
 0x95d   :  { %v14369_v11 = vpop.eup %14368 }
 0x95e   :  { %v11012_v42 = vmul.f32 %v14369_v11, %v10994_v51  ;;  %v18106_v51 = vld [vmem:[#allocation103_spill] sm:$0xff]  ;;  %v18107_v11 = vld [vmem:[#allocation129_spill] sm:$0xff] }
 0x95f   :  { %v14371_v23 = vpop.eup %14370 }
 0x960   :  { %v11013_v29 = vmul.f32 %v14371_v23, %v10995_v27  ;;  %v11014_v54 = vpack.c.bf16 %v11012_v42, %v11012_v42  ;;  %v18108_v42 = vld [vmem:[#allocation105_spill] sm:$0xff]  ;;  %v18109_v27 = vld [vmem:[#allocation130_spill] sm:$0xff]  ;;  %v18110_v23 = vld [vmem:[#allocation107_spill] sm:$0xff] }
 0x962   :  { %v11015_v15 = vpack.c.bf16 %v11013_v29, %v11013_v29  ;;  %v17231_v1 = vrot.slane %v11014_v54, 1  ;;  %v18111_v29 = vld [vmem:[#allocation131_spill] sm:$0xff]  ;;  %v18112_v54 = vld [vmem:[#allocation109_spill] sm:$0xff] }
 0x964   :  { %v11019_v39 = vrot.slane %v11015_v15, 1  ;;  %v18113_v15 = vld [vmem:[#allocation132_spill] sm:$0xff] }
 0x966   :  { %11054 = vmatprep.mubr.bf16.mxu0 %v11019_v39  ;;  %11095 = vmatprep.mubr.bf16.mxu1 %v11019_v39 }
 0x967   :  { %11055 = vmatmul.mubr.bf16.vlgmr.msra.gmra.mxu0 %v17231_v1  ;;  %11096 = vmatmul.mubr.bf16.vlgmr.msra.gmra.mxu1 %v17231_v1 }
 0x968   :  { %11105 = vmatpush1.bf16.msra.mxu0 %v17989_v53  ;;  %11146 = vmatpush1.bf16.msra.mxu1 %v17990_v19 }
 0x969   :  { %11136 = vmatprep.mubr.bf16.mxu0 %v11019_v39  ;;  %11177 = vmatprep.mubr.bf16.mxu1 %v11019_v39  ;;  %v18114_v39 = vld [vmem:[#allocation111_spill] sm:$0xff] }
 0x96a   :  { %11106 = vmatprep.subr.bf16.mxu0 %v17991_v35  ;;  %11147 = vmatprep.subr.bf16.mxu1 %v17992_v26 }
 0x96c   :  { %11107 = vmatpush1.bf16.msra.mxu0 %v17993_v18  ;;  %11148 = vmatpush1.bf16.msra.mxu1 %v16813_v13 }
 0x96d   :  { %11108 = vmatprep.subr.bf16.mxu0 %v17994_v31  ;;  %11149 = vmatprep.subr.bf16.mxu1 %v16819_v25 }
 0x970   :  { %11109 = vmatpush1.bf16.msra.mxu0 %v17995_v2  ;;  %11150 = vmatpush1.bf16.msra.mxu1 %v16831_v8 }
 0x971   :  { %11110 = vmatprep.subr.bf16.mxu0 %v17996_v62  ;;  %11151 = vmatprep.subr.bf16.mxu1 %v16834_v5 }
 0x974   :  { %11111 = vmatpush1.bf16.msra.mxu0 %v17997_v0  ;;  %11152 = vmatpush1.bf16.msra.mxu1 %v16839_v48 }
 0x975   :  { %11112 = vmatprep.subr.bf16.mxu0 %v17998_v24  ;;  %11153 = vmatprep.subr.bf16.mxu1 %v16842_v34 }
 0x978   :  { %11113 = vmatpush1.bf16.msra.mxu0 %v17999_v6  ;;  %11154 = vmatpush1.bf16.msra.mxu1 %v16847_v46 }
 0x979   :  { %11114 = vmatprep.subr.bf16.mxu0 %v18000_v4  ;;  %11155 = vmatprep.subr.bf16.mxu1 %v16850_v3 }
 0x97c   :  { %11115 = vmatpush1.bf16.msra.mxu0 %v18001_v63  ;;  %11156 = vmatpush1.bf16.msra.mxu1 %v16855_v16 }
 0x97d   :  { %11116 = vmatprep.subr.bf16.mxu0 %v18002_v10  ;;  %11157 = vmatprep.subr.bf16.mxu1 %v16858_v9 }
 0x980   :  { %11117 = vmatpush1.bf16.msra.mxu0 %v18003_v56  ;;  %11158 = vmatpush1.bf16.msra.mxu1 %v16863_v40 }
 0x981   :  { %11118 = vmatprep.subr.bf16.mxu0 %v18004_v55  ;;  %11159 = vmatprep.subr.bf16.mxu1 %v16866_v30 }
 0x984   :  { %11119 = vmatpush1.bf16.msra.mxu0 %v18005_v43  ;;  %11160 = vmatpush1.bf16.msra.mxu1 %v16871_v7 }
 0x985   :  { %11120 = vmatprep.subr.bf16.mxu0 %v18006_v38  ;;  %11161 = vmatprep.subr.bf16.mxu1 %v16874_v52 }
 0x988   :  { %11121 = vmatpush2.bf16.msra.mxu0 %v18007_v20  ;;  %11162 = vmatpush2.bf16.msra.mxu1 %v16879_v57 }
 0x989   :  { %11122 = vmatprep.subr.bf16.mxu0 %v18008_v61  ;;  %11163 = vmatprep.subr.bf16.mxu1 %v18095_v37 }
 0x98c   :  { %11123 = vmatpush2.bf16.msra.mxu0 %v18096_v14  ;;  %11164 = vmatpush2.bf16.msra.mxu1 %v18097_v32 }
 0x98d   :  { %11124 = vmatprep.subr.bf16.mxu0 %v18098_v22  ;;  %11165 = vmatprep.subr.bf16.mxu1 %v18099_v58 }
 0x990   :  { %11125 = vmatpush2.bf16.msra.mxu0 %v18100_v50  ;;  %11166 = vmatpush2.bf16.msra.mxu1 %v18101_v36 }
 0x991   :  { %11126 = vmatprep.subr.bf16.mxu0 %v18102_v59  ;;  %11167 = vmatprep.subr.bf16.mxu1 %v18103_v28 }
 0x994   :  { %11127 = vmatpush2.bf16.msra.mxu0 %v18104_v12  ;;  %11168 = vmatpush2.bf16.msra.mxu1 %v18105_v41  ;;  %v18115_v12 = vld [vmem:[#allocation133_spill] sm:$0xff] }
 0x995   :  { %11128 = vmatprep.subr.bf16.mxu0 %v18106_v51  ;;  %11169 = vmatprep.subr.bf16.mxu1 %v18107_v11  ;;  %v18116_v41 = vld [vmem:[#allocation113_spill] sm:$0xff]  ;;  %v18117_v51 = vld [vmem:[#allocation134_spill] sm:$0xff]  ;;  %v18118_v11 = vld [vmem:[#allocation115_spill] sm:$0xff] }
 0x998   :  { %11129 = vmatpush2.bf16.msra.mxu0 %v18108_v42  ;;  %11170 = vmatpush2.bf16.msra.mxu1 %v18109_v27  ;;  %v18119_v42 = vld [vmem:[#allocation135_spill] sm:$0xff]  ;;  %v18120_v27 = vld [vmem:[#allocation117_spill] sm:$0xff] }
 0x999   :  { %11130 = vmatprep.subr.bf16.mxu0 %v18110_v23  ;;  %11171 = vmatprep.subr.bf16.mxu1 %v18111_v29  ;;  %v18121_v23 = vld [vmem:[#allocation136_spill] sm:$0xff] }
 0x99a   :  { %v18122_v29 = vld [vmem:[#allocation20_spill] sm:$0xff] }
 0x99c   :  { %11131 = vmatpush2.bf16.msra.mxu0 %v18112_v54  ;;  %11172 = vmatpush2.bf16.msra.mxu1 %v18113_v15  ;;  %v18123_v54 = vld [vmem:[#allocation52_spill] sm:$0xff] }
 0x99d   :  { %11132 = vmatprep.subr.bf16.mxu0 %v18114_v39  ;;  %11173 = vmatprep.subr.bf16.mxu1 %v18115_v12  ;;  %v18124_v12 = vld [vmem:[#allocation21_spill] sm:$0xff]  ;;  %v18133_v39 = vld [vmem:[#allocation64_spill] sm:$0xff] }
 0x9a0   :  { %11133 = vmatpush2.bf16.msra.mxu0 %v18116_v41  ;;  %11174 = vmatpush2.bf16.msra.mxu1 %v18117_v51  ;;  %v18125_v41 = vld [vmem:[#allocation54_spill] sm:$0xff] }
 0x9a1   :  { %11134 = vmatprep.subr.bf16.mxu0 %v18118_v11  ;;  %11175 = vmatprep.subr.bf16.mxu1 %v18119_v42  ;;  %v18126_v51 = vld [vmem:[#allocation22_spill] sm:$0xff]  ;;  %v18127_v11 = vld [vmem:[#allocation56_spill] sm:$0xff]  ;;  %v18128_v42 = vld [vmem:[#allocation23_spill] sm:$0xff] }
 0x9a4   :  { %11135 = vmatpush2.bf16.msra.mxu0 %v18120_v27  ;;  %11176 = vmatpush2.bf16.msra.mxu1 %v18121_v23  ;;  %v18129_v27 = vld [vmem:[#allocation59_spill] sm:$0xff]  ;;  %v18130_v23 = vld [vmem:[#allocation24_spill] sm:$0xff] }
 0x9a5   :  { %11268 = vmatprep.subr.bf16.mxu0 %v18122_v29  ;;  %11309 = vmatprep.subr.bf16.mxu1 %v18123_v54  ;;  %v18131_v29 = vld [vmem:[#allocation61_spill] sm:$0xff] }
 0x9a6   :  { %v18132_v54 = vld [vmem:[#allocation25_spill] sm:$0xff] }
 0x9a7   :  { %11137 = vmatmul.mubr.bf16.vlgmr.msra.gmra.mxu0 %v17231_v1  ;;  %11178 = vmatmul.mubr.bf16.vlgmr.msra.gmra.mxu1 %v17231_v1  ;;  %v18134_v1 = vld [vmem:[#allocation26_spill] sm:$0xff] }
 0x9a8   :  { %11269 = vmatpush1.bf16.msra.mxu0 %v18124_v12  ;;  %11310 = vmatpush1.bf16.msra.mxu1 %v18125_v41  ;;  %v18135_v12 = vld [vmem:[#allocation66_spill] sm:$0xff]  ;;  %v18136_v41 = vld [vmem:[#allocation27_spill] sm:$0xff] }
 0x9a9   :  { %11270 = vmatprep.subr.bf16.mxu0 %v18126_v51  ;;  %11311 = vmatprep.subr.bf16.mxu1 %v18127_v11  ;;  %v18137_v51 = vld [vmem:[#allocation68_spill] sm:$0xff] }
 0x9aa   :  { %v18138_v11 = vld [vmem:[#allocation28_spill] sm:$0xff] }
 0x9ac   :  { %11271 = vmatpush1.bf16.msra.mxu0 %v18128_v42  ;;  %11312 = vmatpush1.bf16.msra.mxu1 %v18129_v27  ;;  %v18139_v42 = vld [vmem:[#allocation70_spill] sm:$0xff]  ;;  %v18140_v27 = vld [vmem:[#allocation29_spill] sm:$0xff] }
 0x9ad   :  { %11272 = vmatprep.subr.bf16.mxu0 %v18130_v23  ;;  %11313 = vmatprep.subr.bf16.mxu1 %v18131_v29  ;;  %v18141_v23 = vld [vmem:[#allocation72_spill] sm:$0xff]  ;;  %v18142_v29 = vld [vmem:[#allocation30_spill] sm:$0xff] }
 0x9b0   :  { %11273 = vmatpush1.bf16.msra.mxu0 %v18132_v54  ;;  %11314 = vmatpush1.bf16.msra.mxu1 %v18133_v39  ;;  %v18143_v54 = vld [vmem:[#allocation74_spill] sm:$0xff]  ;;  %v18144_v39 = vld [vmem:[#allocation31_spill] sm:$0xff] }
 0x9b1   :  { %11274 = vmatprep.subr.bf16.mxu0 %v18134_v1  ;;  %11315 = vmatprep.subr.bf16.mxu1 %v18135_v12  ;;  %v18145_v1 = vld [vmem:[#allocation76_spill] sm:$0xff] }
 0x9b2   :  { %v18146_v12 = vld [vmem:[#allocation32_spill] sm:$0xff] }
 0x9b4   :  { %11275 = vmatpush1.bf16.msra.mxu0 %v18136_v41  ;;  %11316 = vmatpush1.bf16.msra.mxu1 %v18137_v51  ;;  %v18147_v41 = vld [vmem:[#allocation78_spill] sm:$0xff]  ;;  %v18148_v51 = vld [vmem:[#allocation33_spill] sm:$0xff] }
 0x9b5   :  { %11276 = vmatprep.subr.bf16.mxu0 %v18138_v11  ;;  %11317 = vmatprep.subr.bf16.mxu1 %v18139_v42  ;;  %v18149_v11 = vld [vmem:[#allocation80_spill] sm:$0xff]  ;;  %v18150_v42 = vld [vmem:[#allocation34_spill] sm:$0xff] }
 0x9b8   :  { %11277 = vmatpush1.bf16.msra.mxu0 %v18140_v27  ;;  %11318 = vmatpush1.bf16.msra.mxu1 %v18141_v23  ;;  %v18151_v27 = vld [vmem:[#allocation82_spill] sm:$0xff]  ;;  %v18152_v23 = vld [vmem:[#allocation35_spill] sm:$0xff] }
 0x9b9   :  { %11278 = vmatprep.subr.bf16.mxu0 %v18142_v29  ;;  %11319 = vmatprep.subr.bf16.mxu1 %v18143_v54  ;;  %v18153_v29 = vld [vmem:[#allocation84_spill] sm:$0xff] }
 0x9ba   :  { %v18154_v54 = vld [vmem:[#allocation36_spill] sm:$0xff] }
 0x9bc   :  { %11279 = vmatpush1.bf16.msra.mxu0 %v18144_v39  ;;  %11320 = vmatpush1.bf16.msra.mxu1 %v18145_v1  ;;  %v18155_v39 = vld [vmem:[#allocation86_spill] sm:$0xff]  ;;  %v18156_v1 = vld [vmem:[#allocation37_spill] sm:$0xff] }
 0x9bd   :  { %11280 = vmatprep.subr.bf16.mxu0 %v18146_v12  ;;  %11321 = vmatprep.subr.bf16.mxu1 %v18147_v41  ;;  %v18157_v12 = vld [vmem:[#allocation88_spill] sm:$0xff]  ;;  %v18158_v41 = vld [vmem:[#allocation38_spill] sm:$0xff] }
 0x9c0   :  { %11281 = vmatpush1.bf16.msra.mxu0 %v18148_v51  ;;  %11322 = vmatpush1.bf16.msra.mxu1 %v18149_v11  ;;  %v18159_v51 = vld [vmem:[#allocation90_spill] sm:$0xff]  ;;  %v18160_v11 = vld [vmem:[#allocation39_spill] sm:$0xff] }
 0x9c1   :  { %11282 = vmatprep.subr.bf16.mxu0 %v18150_v42  ;;  %11323 = vmatprep.subr.bf16.mxu1 %v18151_v27  ;;  %v18161_v42 = vld [vmem:[#allocation92_spill] sm:$0xff] }
 0x9c2   :  { %v18162_v27 = vld [vmem:[#allocation40_spill] sm:$0xff] }
 0x9c4   :  { %11283 = vmatpush1.bf16.msra.mxu0 %v18152_v23  ;;  %11324 = vmatpush1.bf16.msra.mxu1 %v18153_v29  ;;  %v18163_v23 = vld [vmem:[#allocation94_spill] sm:$0xff]  ;;  %v18164_v29 = vld [vmem:[#allocation41_spill] sm:$0xff] }
 0x9c5   :  { %11284 = vmatprep.subr.bf16.mxu0 %v18154_v54  ;;  %11325 = vmatprep.subr.bf16.mxu1 %v18155_v39  ;;  %v18165_v54 = vld [vmem:[#allocation96_spill] sm:$0xff]  ;;  %v18166_v39 = vld [vmem:[#allocation42_spill] sm:$0xff] }
 0x9c8   :  { %11285 = vmatpush2.bf16.msra.mxu0 %v18156_v1  ;;  %11326 = vmatpush2.bf16.msra.mxu1 %v18157_v12  ;;  %v18167_v1 = vld [vmem:[#allocation98_spill] sm:$0xff]  ;;  %v18168_v12 = vld [vmem:[#allocation43_spill] sm:$0xff] }
 0x9c9   :  { %11286 = vmatprep.subr.bf16.mxu0 %v18158_v41  ;;  %11327 = vmatprep.subr.bf16.mxu1 %v18159_v51  ;;  %v18169_v41 = vld [vmem:[#allocation100_spill] sm:$0xff] }
 0x9ca   :  { %v18170_v51 = vld [vmem:[#allocation44_spill] sm:$0xff] }
 0x9cc   :  { %11287 = vmatpush2.bf16.msra.mxu0 %v18160_v11  ;;  %11328 = vmatpush2.bf16.msra.mxu1 %v18161_v42  ;;  %v18171_v11 = vld [vmem:[#allocation102_spill] sm:$0xff]  ;;  %v18172_v42 = vld [vmem:[#allocation45_spill] sm:$0xff] }
 0x9cd   :  { %11288 = vmatprep.subr.bf16.mxu0 %v18162_v27  ;;  %11329 = vmatprep.subr.bf16.mxu1 %v18163_v23  ;;  %v18173_v27 = vld [vmem:[#allocation104_spill] sm:$0xff]  ;;  %v18174_v23 = vld [vmem:[#allocation46_spill] sm:$0xff] }
 0x9d0   :  { %11289 = vmatpush2.bf16.msra.mxu0 %v18164_v29  ;;  %11330 = vmatpush2.bf16.msra.mxu1 %v18165_v54  ;;  %v18175_v29 = vld [vmem:[#allocation106_spill] sm:$0xff]  ;;  %v18176_v54 = vld [vmem:[#allocation47_spill] sm:$0xff] }
 0x9d1   :  { %11290 = vmatprep.subr.bf16.mxu0 %v18166_v39  ;;  %11331 = vmatprep.subr.bf16.mxu1 %v18167_v1  ;;  %v18177_v39 = vld [vmem:[#allocation108_spill] sm:$0xff] }
 0x9d2   :  { %v18178_v1 = vld [vmem:[#allocation48_spill] sm:$0xff] }
 0x9d4   :  { %11291 = vmatpush2.bf16.msra.mxu0 %v18168_v12  ;;  %11332 = vmatpush2.bf16.msra.mxu1 %v18169_v41  ;;  %v18179_v12 = vld [vmem:[#allocation110_spill] sm:$0xff]  ;;  %v18180_v41 = vld [vmem:[#allocation49_spill] sm:$0xff] }
 0x9d5   :  { %11292 = vmatprep.subr.bf16.mxu0 %v18170_v51  ;;  %11333 = vmatprep.subr.bf16.mxu1 %v18171_v11  ;;  %v18181_v51 = vld [vmem:[#allocation112_spill] sm:$0xff]  ;;  %v18182_v11 = vld [vmem:[#allocation50_spill] sm:$0xff] }
 0x9d8   :  { %11293 = vmatpush2.bf16.msra.mxu0 %v18172_v42  ;;  %11334 = vmatpush2.bf16.msra.mxu1 %v18173_v27  ;;  %v18183_v42 = vld [vmem:[#allocation114_spill] sm:$0xff]  ;;  %v18184_v27 = vld [vmem:[#allocation51_spill] sm:$0xff] }
 0x9d9   :  { %11294 = vmatprep.subr.bf16.mxu0 %v18174_v23  ;;  %11335 = vmatprep.subr.bf16.mxu1 %v18175_v29  ;;  %v18185_v23 = vld [vmem:[#allocation116_spill] sm:$0xff]  ;;  %v18186_v29 = vld [vmem:[#allocation53_spill] sm:$0xff] }
 0x9dc   :  { %11295 = vmatpush2.bf16.msra.mxu0 %v18176_v54  ;;  %11336 = vmatpush2.bf16.msra.mxu1 %v18177_v39  ;;  %v18187_v54 = vld [vmem:[#allocation118_spill] sm:$0xff] }
 0x9dd   :  { %11296 = vmatprep.subr.bf16.mxu0 %v18178_v1  ;;  %11337 = vmatprep.subr.bf16.mxu1 %v18179_v12 }
 0x9e0   :  { %11297 = vmatpush2.bf16.msra.mxu0 %v18180_v41  ;;  %11338 = vmatpush2.bf16.msra.mxu1 %v18181_v51 }
 0x9e1   :  { %11298 = vmatprep.subr.bf16.mxu0 %v18182_v11  ;;  %11339 = vmatprep.subr.bf16.mxu1 %v18183_v42 }
 0x9e4   :  { %11299 = vmatpush2.bf16.msra.mxu0 %v18184_v27  ;;  %11340 = vmatpush2.bf16.msra.mxu1 %v18185_v23 }
 0x9e5   :  { %11350 = vmatprep.subr.bf16.mxu0 %v18186_v29  ;;  %11391 = vmatprep.subr.bf16.mxu1 %v18187_v54 }
 0xa27   :  { %v11056_v39 = vpop.f32.mrf.mxu0  ;;  %v11097_v1 = vpop.f32.mrf.mxu1 }
 0xa28   :  { %v11196_v36 = vrot.slane %v11097_v1, 4  ;;  %v11194_v11 = vrot.slane %v11056_v39, 4 }
 0xa29   :  { %v11058_v15 = vpop.f32.mrf.mxu0  ;;  %v11099_v12 = vpop.f32.mrf.mxu1 }
 0xa2a   :  { %v11197_v50 = vrot.slane %v11099_v12, 4  ;;  %v11212_v42 = vadd.f32 %v11196_v36, %v17035_v21  ;;  %v11195_v27 = vrot.slane %v11058_v15, 4  ;;  %v11210_v23 = vadd.f32 %v11194_v11, %v17038_v49 }
 0xa2b   :  { %v11060_v28 = vpop.f32.mrf.mxu0  ;;  %v11101_v41 = vpop.f32.mrf.mxu1 }
 0xa2c   :  { %v11213_v29 = vadd.f32 %v11197_v50, %v18094_v45  ;;  %v11220_v58 = vmul.f32 0.5, %v11212_v42  ;;  %v11211_v54 = vadd.f32 %v11195_v27, %v17044_v47  ;;  %v11218_v22 = vmul.f32 0.5, %v11210_v23  ;;  %v18188_v42 = vld [vmem:[#allocation19_spill] sm:$0xff] }
 0xa2d   :  { %v11061_v59 = vpop.f32.mrf.mxu0  ;;  %v11102_v51 = vpop.f32.mrf.mxu1 }
 0xa2e   :  { %v11221_v32 = vmul.f32 0.5, %v11213_v29  ;;  %14372 = vtanh.f32 %v11220_v58  ;;  %v11219_v28 = vmul.f32 0.5, %v11211_v54 }
 0xa2f   :  { %14374 = vtanh.f32 %v11218_v22  ;;  %v18189_v22 = vld [vmem:[#allocation18_spill] sm:$0xff] }
 0xa30   :  { %14376 = vtanh.f32 %v11221_v32 }
 0xa31   :  { %14378 = vtanh.f32 %v11219_v28 }
 0xa3b   :  { %v14373_v54 = vpop.eup %14372 }
 0xa3c   :  { %v14375_v28 = vpop.eup %14374 }
 0xa3d   :  { %v14377_v47 = vpop.eup %14376 }
 0xa67   :  { %v11138_v59 = vpop.f32.mrf.mxu0  ;;  %v11179_v39 = vpop.f32.mrf.mxu1 }
 0xa68   :  { %v11200_v1 = vrot.slane %v11179_v39, 4  ;;  %v11198_v15 = vrot.slane %v11138_v59, 4  ;;  %v11232_v59 = vmul.f32 0.5, %v14373_v54 }
 0xa69   :  { %v11140_v12 = vpop.f32.mrf.mxu0  ;;  %v11181_v36 = vpop.f32.mrf.mxu1 }
 0xa6a   :  { %v11216_v41 = vadd.f32 %v11200_v1, %v17060_v60  ;;  %v11201_v51 = vrot.slane %v11181_v36, 4  ;;  %v11199_v23 = vrot.slane %v11140_v12, 4  ;;  %v11214_v32 = vadd.f32 %v11198_v15, %v18189_v22  ;;  %v14379_v1 = vpop.eup %14378 }
 0xa6b   :  { %v11142_v50 = vpop.f32.mrf.mxu0  ;;  %v11183_v11 = vpop.f32.mrf.mxu1  ;;  %v11230_v36 = vmul.f32 0.5, %v14375_v28 }
 0xa6c   :  { %14380 = vtanh.f32 %v11216_v41  ;;  %v11217_v27 = vadd.f32 %v11201_v51, %v18188_v42  ;;  %v11215_v39 = vadd.f32 %v11199_v23, %v17069_v44  ;;  %v11222_v45 = vmul.f32 0.5, %v11214_v32 }
 0xa6d   :  { %v11143_v58 = vpop.f32.mrf.mxu0  ;;  %v11184_v29 = vpop.f32.mrf.mxu1  ;;  %v11233_v50 = vmul.f32 0.5, %v14377_v47  ;;  %v11238_v41 = vadd.f32 0.5, %v11232_v59  ;;  %v11231_v51 = vmul.f32 0.5, %v14379_v1  ;;  %v11236_v12 = vadd.f32 0.5, %v11230_v36 }
 0xa6e   :  { %14382 = vtanh.f32 %v11217_v27  ;;  %v11223_v11 = vmul.f32 0.5, %v11215_v39  ;;  %v11246_v58 = vrot.slane %v17225_v17, 6  ;;  %v11247_v23 = vrot.slane %v17228_v33, 6 }
 0xa6f   :  { %14384 = vtanh.f32 %v11222_v45  ;;  %v11239_v15 = vadd.f32 0.5, %v11233_v50  ;;  %v11237_v42 = vadd.f32 0.5, %v11231_v51 }
 0xa70   :  { %14386 = vtanh.f32 %v11223_v11  ;;  %v11250_v27 = vmul.f32 %v11246_v58, %v11238_v41 }
 0xa71   :  { %v11251_v28 = vmul.f32 %v11247_v23, %v11239_v15  ;;  %v11515_v15 = vld [vmem:[%s17576_s15 + $0x48] sm:$0xff]  ;;  %v11514_v23 = vld [vmem:[%s17576_s15 + $0x40] sm:$0xff] }
 0xa79   :  { %v14381_v29 = vpop.eup %14380 }
 0xa7a   :  { %v11252_v22 = vmul.f32 %v14381_v29, %v11236_v12  ;;  %v11531_v29 = vld [vmem:[%s17576_s15 + $0xc8] sm:$0xff] }
 0xa7b   :  { %v14383_v54 = vpop.eup %14382 }
 0xa7c   :  { %v17375_v32 = vadd.f32 %v11252_v22, %v11250_v27  ;;  %v11253_v47 = vmul.f32 %v14383_v54, %v11237_v42  ;;  %v14385_v17 = vpop.eup %14384  ;;  %v11530_v27 = vld [vmem:[%s17576_s15 + $0xc0] sm:$0xff]  ;;  %v11529_v54 = vld [vmem:[%s17576_s15 + $0xb8] sm:$0xff] }
 0xa7d   :  { %v14387_v39 = vpop.eup %14386  ;;  %v11234_v59 = vmul.f32 0.5, %v14385_v17  ;;  %v11512_v17 = vld [vmem:[%s17576_s15 + $0x30] sm:$0xff] }
 0xa7e   :  { %14388 = vtanh.f32 %v17375_v32  ;;  %v17378_v45 = vadd.f32 %v11253_v47, %v11251_v28  ;;  %v11235_v1 = vmul.f32 0.5, %v14387_v39  ;;  %v11513_v28 = vld [vmem:[%s17576_s15 + $0x38] sm:$0xff]  ;;  %v11528_v47 = vld [vmem:[%s17576_s15 + $0xb0] sm:$0xff]  ;;  %v11527_v39 = vld [vmem:[%s17576_s15 + $0xa8] sm:$0xff] }
 0xa7f   :  { %v11240_v36 = vadd.f32 0.5, %v11234_v59  ;;  %v11511_v59 = vld [vmem:[%s17576_s15 + $0x28] sm:$0xff] }
 0xa80   :  { %14390 = vtanh.f32 %v17378_v45  ;;  %v11241_v41 = vadd.f32 0.5, %v11235_v1  ;;  %v11526_v1 = vld [vmem:[%s17576_s15 + $0xa0] sm:$0xff] }
 0xa8b   :  { %v14389_v50 = vpop.eup %14388 }
 0xa8c   :  { %v11258_v11 = vmul.f32 %v14389_v50, %v11240_v36  ;;  %v11510_v36 = vld [vmem:[%s17576_s15 + $0x20] sm:$0xff]  ;;  %v11525_v50 = vld [vmem:[%s17576_s15 + $0x98] sm:$0xff] }
 0xa8d   :  { %v14391_v33 = vpop.eup %14390 }
 0xa8e   :  { %v11259_v51 = vmul.f32 %v14391_v33, %v11241_v41  ;;  %v11260_v22 = vpack.c.bf16 %v11258_v11, %v11258_v11  ;;  %v11509_v11 = vld [vmem:[%s17576_s15 + $0x18] sm:$0xff]  ;;  %v11524_v41 = vld [vmem:[%s17576_s15 + $0x90] sm:$0xff] }
 0xa8f   :  { %v11508_v33 = vld [vmem:[%s17576_s15 + $0x10] sm:$0xff] }
 0xa90   :  { %v11261_v12 = vpack.c.bf16 %v11259_v51, %v11259_v51  ;;  %v17381_v42 = vrot.slane %v11260_v22, 2  ;;  %v11523_v51 = vld [vmem:[%s17576_s15 + $0x88] sm:$0xff] }
 0xa91   :  { %v11507_v22 = vld [vmem:[%s17576_s15 + $0x8] sm:$0xff] }
 0xa92   :  { %v11265_v58 = vrot.slane %v11261_v12, 2  ;;  %v11522_v12 = vld [vmem:[%s17576_s15 + $0x80] sm:$0xff] }
 0xa94   :  { %11300 = vmatprep.mubr.bf16.mxu0 %v11265_v58  ;;  %11341 = vmatprep.mubr.bf16.mxu1 %v11265_v58 }
 0xa95   :  { %11301 = vmatmul.mubr.bf16.vlgmr.msra.gmra.mxu0 %v17381_v42  ;;  %11342 = vmatmul.mubr.bf16.vlgmr.msra.gmra.mxu1 %v17381_v42 }
 0xa96   :  { %11351 = vmatpush1.bf16.msra.mxu0 %v17989_v53  ;;  %11392 = vmatpush1.bf16.msra.mxu1 %v17990_v19  ;;  %v18205_v53 = vld [vmem:[#allocation109_spill] sm:$0xff]  ;;  %v18206_v19 = vld [vmem:[#allocation132_spill] sm:$0xff] }
 0xa97   :  { %11382 = vmatprep.mubr.bf16.mxu0 %v11265_v58  ;;  %11423 = vmatprep.mubr.bf16.mxu1 %v11265_v58  ;;  %v11506_v58 = vld [vmem:[%s17576_s15] sm:$0xff] }
 0xa98   :  { %11352 = vmatprep.subr.bf16.mxu0 %v17991_v35  ;;  %11393 = vmatprep.subr.bf16.mxu1 %v17992_v26  ;;  %v18207_v35 = vld [vmem:[#allocation111_spill] sm:$0xff]  ;;  %v18208_v26 = vld [vmem:[#allocation133_spill] sm:$0xff] }
 0xa9a   :  { %11353 = vmatpush1.bf16.msra.mxu0 %v17993_v18  ;;  %11394 = vmatpush1.bf16.msra.mxu1 %v16813_v13  ;;  %v18194_v13 = vld [vmem:[#allocation126_spill] sm:$0xff]  ;;  %v18209_v18 = vld [vmem:[#allocation113_spill] sm:$0xff] }
 0xa9b   :  { %11354 = vmatprep.subr.bf16.mxu0 %v17994_v31  ;;  %11395 = vmatprep.subr.bf16.mxu1 %v16819_v25  ;;  %v18190_v25 = vld [vmem:[#allocation124_spill] sm:$0xff]  ;;  %v18210_v31 = vld [vmem:[#allocation134_spill] sm:$0xff] }
 0xa9e   :  { %11355 = vmatpush1.bf16.msra.mxu0 %v17995_v2  ;;  %11396 = vmatpush1.bf16.msra.mxu1 %v16831_v8  ;;  %v18196_v8 = vld [vmem:[#allocation127_spill] sm:$0xff] }
 0xa9f   :  { %11356 = vmatprep.subr.bf16.mxu0 %v17996_v62  ;;  %11397 = vmatprep.subr.bf16.mxu1 %v16834_v5  ;;  %v18198_v5 = vld [vmem:[#allocation128_spill] sm:$0xff]  ;;  %v18211_v2 = vld [vmem:[#allocation115_spill] sm:$0xff] }
 0xaa0   :  { %v18212_v62 = vld [vmem:[#allocation135_spill] sm:$0xff] }
 0xaa2   :  { %11357 = vmatpush1.bf16.msra.mxu0 %v17997_v0  ;;  %11398 = vmatpush1.bf16.msra.mxu1 %v16839_v48  ;;  %v18199_v48 = vld [vmem:[#allocation103_spill] sm:$0xff]  ;;  %v18213_v0 = vld [vmem:[#allocation117_spill] sm:$0xff] }
 0xaa3   :  { %11358 = vmatprep.subr.bf16.mxu0 %v17998_v24  ;;  %11399 = vmatprep.subr.bf16.mxu1 %v16842_v34  ;;  %v18200_v34 = vld [vmem:[#allocation129_spill] sm:$0xff]  ;;  %v18214_v24 = vld [vmem:[#allocation136_spill] sm:$0xff] }
 0xaa6   :  { %11359 = vmatpush1.bf16.msra.mxu0 %v17999_v6  ;;  %11400 = vmatpush1.bf16.msra.mxu1 %v16847_v46  ;;  %v18201_v46 = vld [vmem:[#allocation105_spill] sm:$0xff] }
 0xaa7   :  { %11360 = vmatprep.subr.bf16.mxu0 %v18000_v4  ;;  %11401 = vmatprep.subr.bf16.mxu1 %v16850_v3  ;;  %v18202_v3 = vld [vmem:[#allocation130_spill] sm:$0xff] }
 0xaa8   :  { %v11537_v6 = vld [vmem:[%s17576_s15 + $0xf8] sm:$0xff] }
 0xaa9   :  { %v11521_v4 = vld [vmem:[%s17576_s15 + $0x78] sm:$0xff] }
 0xaaa   :  { %11361 = vmatpush1.bf16.msra.mxu0 %v18001_v63  ;;  %11402 = vmatpush1.bf16.msra.mxu1 %v16855_v16  ;;  %v18203_v16 = vld [vmem:[#allocation107_spill] sm:$0xff]  ;;  %v11536_v63 = vld [vmem:[%s17576_s15 + $0xf0] sm:$0xff] }
 0xaab   :  { %11362 = vmatprep.subr.bf16.mxu0 %v18002_v10  ;;  %11403 = vmatprep.subr.bf16.mxu1 %v16858_v9  ;;  %v18204_v9 = vld [vmem:[#allocation131_spill] sm:$0xff]  ;;  %v11520_v10 = vld [vmem:[%s17576_s15 + $0x70] sm:$0xff] }
 0xaae   :  { %11363 = vmatpush1.bf16.msra.mxu0 %v18003_v56  ;;  %11404 = vmatpush1.bf16.msra.mxu1 %v16863_v40  ;;  %v18191_v40 = vld [vmem:[#allocation95_spill] sm:$0xff] }
 0xaaf   :  { %11364 = vmatprep.subr.bf16.mxu0 %v18004_v55  ;;  %11405 = vmatprep.subr.bf16.mxu1 %v16866_v30  ;;  %v18192_v30 = vld [vmem:[#allocation125_spill] sm:$0xff]  ;;  %v11535_v56 = vld [vmem:[%s17576_s15 + $0xe8] sm:$0xff] }
 0xab0   :  { %v11519_v55 = vld [vmem:[%s17576_s15 + $0x68] sm:$0xff] }
 0xab2   :  { %11365 = vmatpush1.bf16.msra.mxu0 %v18005_v43  ;;  %11406 = vmatpush1.bf16.msra.mxu1 %v16871_v7  ;;  %v18193_v7 = vld [vmem:[#allocation97_spill] sm:$0xff]  ;;  %v11534_v43 = vld [vmem:[%s17576_s15 + $0xe0] sm:$0xff] }
 0xab3   :  { %11366 = vmatprep.subr.bf16.mxu0 %v18006_v38  ;;  %11407 = vmatprep.subr.bf16.mxu1 %v16874_v52  ;;  %v18195_v52 = vld [vmem:[#allocation99_spill] sm:$0xff] }
 0xab4   :  { %v11518_v38 = vld [vmem:[%s17576_s15 + $0x60] sm:$0xff] }
 0xab6   :  { %11367 = vmatpush2.bf16.msra.mxu0 %v18007_v20  ;;  %11408 = vmatpush2.bf16.msra.mxu1 %v16879_v57  ;;  %v18197_v57 = vld [vmem:[#allocation101_spill] sm:$0xff] }
 0xab7   :  { %11368 = vmatprep.subr.bf16.mxu0 %v18008_v61  ;;  %11409 = vmatprep.subr.bf16.mxu1 %v18095_v37  ;;  %v11533_v20 = vld [vmem:[%s17576_s15 + $0xd8] sm:$0xff]  ;;  %v11532_v37 = vld [vmem:[%s17576_s15 + $0xd0] sm:$0xff] }
 0xab8   :  { %v11517_v61 = vld [vmem:[%s17576_s15 + $0x58] sm:$0xff] }
 0xaba   :  { %11369 = vmatpush2.bf16.msra.mxu0 %v18096_v14  ;;  %11410 = vmatpush2.bf16.msra.mxu1 %v18190_v25  ;;  %v11516_v14 = vld [vmem:[%s17576_s15 + $0x50] sm:$0xff] }
 0xabb   :  { %11370 = vmatprep.subr.bf16.mxu0 %v18191_v40  ;;  %11411 = vmatprep.subr.bf16.mxu1 %v18192_v30 }
 0xabe   :  { %11371 = vmatpush2.bf16.msra.mxu0 %v18193_v7  ;;  %11412 = vmatpush2.bf16.msra.mxu1 %v18194_v13 }
 0xabf   :  { %11372 = vmatprep.subr.bf16.mxu0 %v18195_v52  ;;  %11413 = vmatprep.subr.bf16.mxu1 %v18196_v8 }
 0xac2   :  { %11373 = vmatpush2.bf16.msra.mxu0 %v18197_v57  ;;  %11414 = vmatpush2.bf16.msra.mxu1 %v18198_v5 }
 0xac3   :  { %11374 = vmatprep.subr.bf16.mxu0 %v18199_v48  ;;  %11415 = vmatprep.subr.bf16.mxu1 %v18200_v34 }
 0xac6   :  { %11375 = vmatpush2.bf16.msra.mxu0 %v18201_v46  ;;  %11416 = vmatpush2.bf16.msra.mxu1 %v18202_v3 }
 0xac7   :  { %11376 = vmatprep.subr.bf16.mxu0 %v18203_v16  ;;  %11417 = vmatprep.subr.bf16.mxu1 %v18204_v9  ;;  %v18215_v16 = vld [vmem:[#allocation16_spill] sm:$0xff] }
 0xaca   :  { %11377 = vmatpush2.bf16.msra.mxu0 %v18205_v53  ;;  %11418 = vmatpush2.bf16.msra.mxu1 %v18206_v19  ;;  %v18216_v19 = vld [vmem:[#allocation17_spill] sm:$0xff] }
 0xacb   :  { %11378 = vmatprep.subr.bf16.mxu0 %v18207_v35  ;;  %11419 = vmatprep.subr.bf16.mxu1 %v18208_v26 }
 0xace   :  { %11379 = vmatpush2.bf16.msra.mxu0 %v18209_v18  ;;  %11420 = vmatpush2.bf16.msra.mxu1 %v18210_v31 }
 0xacf   :  { %11380 = vmatprep.subr.bf16.mxu0 %v18211_v2  ;;  %11421 = vmatprep.subr.bf16.mxu1 %v18212_v62 }
 0xad2   :  { %11381 = vmatpush2.bf16.msra.mxu0 %v18213_v0  ;;  %11422 = vmatpush2.bf16.msra.mxu1 %v18214_v24 }
 0xad3   :  { %13242 = vmatprep.subr.mxu0 %v11537_v6 }
 0xad5   :  { %11383 = vmatmul.mubr.bf16.vlgmr.msra.gmra.mxu0 %v17381_v42  ;;  %11424 = vmatmul.mubr.bf16.vlgmr.msra.gmra.mxu1 %v17381_v42 }
 0xad6   :  { %13243 = vmatpush3.msra.mxu0 %v11521_v4 }
 0xad7   :  { %13244 = vmatprep.subr.mxu0 %v11536_v63 }
 0xad8   :  { %13245 = vmatpush3.msra.mxu0 %v11520_v10 }
 0xad9   :  { %13246 = vmatprep.subr.mxu0 %v11535_v56  ;;  %v18217_v56 = vld [vmem:[#allocation19_spill] sm:$0xff] }
 0xada   :  { %13247 = vmatpush3.msra.mxu0 %v11519_v55 }
 0xadb   :  { %13248 = vmatprep.subr.mxu0 %v11534_v43 }
 0xadc   :  { %13249 = vmatpush3.msra.mxu0 %v11518_v38 }
 0xadd   :  { %13250 = vmatprep.subr.mxu0 %v11533_v20 }
 0xade   :  { %13251 = vmatpush3.msra.mxu0 %v11517_v61 }
 0xadf   :  { %13252 = vmatprep.subr.mxu0 %v11532_v37  ;;  %v18218_v37 = vld [vmem:[#allocation18_spill] sm:$0xff] }
 0xae0   :  { %13253 = vmatpush3.msra.mxu0 %v11516_v14 }
 0xae1   :  { %13254 = vmatprep.subr.mxu0 %v11531_v29 }
 0xae2   :  { %13255 = vmatpush3.msra.mxu0 %v11515_v15 }
 0xae3   :  { %13256 = vmatprep.subr.mxu0 %v11530_v27 }
 0xae4   :  { %13257 = vmatpush3.msra.mxu0 %v11514_v23 }
 0xae5   :  { %13258 = vmatprep.subr.mxu0 %v11529_v54 }
 0xae6   :  { %13259 = vmatpush3.msra.mxu0 %v11513_v28 }
 0xae7   :  { %13260 = vmatprep.subr.mxu0 %v11528_v47 }
 0xae8   :  { %13261 = vmatpush3.msra.mxu0 %v11512_v17 }
 0xae9   :  { %13262 = vmatprep.subr.mxu0 %v11527_v39 }
 0xaea   :  { %13263 = vmatpush3.msra.mxu0 %v11511_v59 }
 0xaeb   :  { %13264 = vmatprep.subr.mxu0 %v11526_v1 }
 0xaec   :  { %13265 = vmatpush3.msra.mxu0 %v11510_v36  ;;  %v11492_v36 = vrot.slane %v17375_v32, 6 }
 0xaed   :  { %13266 = vmatprep.subr.mxu0 %v11525_v50 }
 0xaee   :  { %13267 = vmatpush3.msra.mxu0 %v11509_v11 }
 0xaef   :  { %13268 = vmatprep.subr.mxu0 %v11524_v41 }
 0xaf0   :  { %13269 = vmatpush3.msra.mxu0 %v11508_v33 }
 0xaf1   :  { %13270 = vmatprep.subr.mxu0 %v11523_v51 }
 0xaf2   :  { %13271 = vmatpush3.msra.mxu0 %v11507_v22 }
 0xaf3   :  { %13272 = vmatprep.subr.mxu0 %v11522_v12 }
 0xaf4   :  { %13273 = vmatpush3.msra.mxu0 %v11506_v58 }
 0xb55   :  { %v11302_v42 = vpop.f32.mrf.mxu0  ;;  %v11343_v25 = vpop.f32.mrf.mxu1 }
 0xb56   :  { %v11442_v57 = vrot.slane %v11343_v25, 2  ;;  %v11440_v5 = vrot.slane %v11302_v42, 2 }
 0xb57   :  { %v11304_v40 = vpop.f32.mrf.mxu0  ;;  %v11345_v30 = vpop.f32.mrf.mxu1 }
 0xb58   :  { %v11443_v48 = vrot.slane %v11345_v30, 2  ;;  %v11458_v34 = vadd.f32 %v11442_v57, %v17035_v21  ;;  %v11441_v46 = vrot.slane %v11304_v40, 2  ;;  %v11456_v3 = vadd.f32 %v11440_v5, %v17038_v49 }
 0xb59   :  { %v11306_v7 = vpop.f32.mrf.mxu0  ;;  %v11347_v13 = vpop.f32.mrf.mxu1 }
 0xb5a   :  { %v11459_v9 = vadd.f32 %v11443_v48, %v18215_v16  ;;  %v11466_v53 = vmul.f32 0.5, %v11458_v34  ;;  %v11457_v35 = vadd.f32 %v11441_v46, %v18216_v19  ;;  %v11464_v26 = vmul.f32 0.5, %v11456_v3  ;;  %v13241_v3 = vld [vmem:[%s17577_s16] ss:$0 sm:$0xff] }
 0xb5b   :  { %v11307_v52 = vpop.f32.mrf.mxu0  ;;  %v11348_v8 = vpop.f32.mrf.mxu1 }
 0xb5c   :  { %v11467_v18 = vmul.f32 0.5, %v11459_v9  ;;  %14392 = vtanh.f32 %v11466_v53  ;;  %v11465_v31 = vmul.f32 0.5, %v11457_v35 }
 0xb5d   :  { %14394 = vtanh.f32 %v11464_v26 }
 0xb5e   :  { %14396 = vtanh.f32 %v11467_v18 }
 0xb5f   :  { %14398 = vtanh.f32 %v11465_v31 }
 0xb69   :  { %v14393_v61 = vpop.eup %14392 }
 0xb6a   :  { %v14395_v29 = vpop.eup %14394  ;;  %v11478_v23 = vmul.f32 0.5, %v14393_v61 }
 0xb6b   :  { %v14397_v27 = vpop.eup %14396  ;;  %v11476_v54 = vmul.f32 0.5, %v14395_v29 }
 0xb6c   :  { %v11479_v47 = vmul.f32 0.5, %v14397_v27  ;;  %v11484_v39 = vadd.f32 0.5, %v11478_v23 }
 0xb6d   :  { %v11482_v1 = vadd.f32 0.5, %v11476_v54 }
 0xb6e   :  { %v11485_v11 = vadd.f32 0.5, %v11479_v47  ;;  %v11496_v41 = vmul.f32 %v11492_v36, %v11484_v39 }
 0xb95   :  { %v11384_v2 = vpop.f32.mrf.mxu0  ;;  %v11425_v62 = vpop.f32.mrf.mxu1 }
 0xb96   :  { %v11446_v0 = vrot.slane %v11425_v62, 2  ;;  %v11444_v10 = vrot.slane %v11384_v2, 2 }
 0xb97   :  { %v11386_v24 = vpop.f32.mrf.mxu0  ;;  %v11427_v21 = vpop.f32.mrf.mxu1 }
 0xb98   :  { %v11462_v6 = vadd.f32 %v11446_v0, %v17060_v60  ;;  %v11447_v49 = vrot.slane %v11427_v21, 2  ;;  %v11445_v43 = vrot.slane %v11386_v24, 2  ;;  %v11460_v14 = vadd.f32 %v11444_v10, %v18218_v37  ;;  %v14399_v60 = vpop.eup %14398 }
 0xb99   :  { %v11388_v4 = vpop.f32.mrf.mxu0  ;;  %v11429_v63 = vpop.f32.mrf.mxu1  ;;  %v11477_v59 = vmul.f32 0.5, %v14399_v60 }
 0xb9a   :  { %14400 = vtanh.f32 %v11462_v6  ;;  %v11463_v55 = vadd.f32 %v11447_v49, %v18217_v56  ;;  %v11461_v15 = vadd.f32 %v11445_v43, %v17069_v44  ;;  %v11468_v28 = vmul.f32 0.5, %v11460_v14 }
 0xb9b   :  { %v11389_v38 = vpop.f32.mrf.mxu0  ;;  %v11430_v20 = vpop.f32.mrf.mxu1  ;;  %v11483_v51 = vadd.f32 0.5, %v11477_v59  ;;  %v11493_v44 = vrot.slane %v17378_v45, 6 }
 0xb9c   :  { %14402 = vtanh.f32 %v11463_v55  ;;  %v11469_v17 = vmul.f32 0.5, %v11461_v15 }
 0xb9d   :  { %14404 = vtanh.f32 %v11468_v28  ;;  %v11497_v58 = vmul.f32 %v11493_v44, %v11485_v11 }
 0xb9e   :  { %14406 = vtanh.f32 %v11469_v17 }
 0xba7   :  { %v14401_v50 = vpop.eup %14400 }
 0xba8   :  { %v11498_v33 = vmul.f32 %v14401_v50, %v11482_v1 }
 0xba9   :  { %v14403_v22 = vpop.eup %14402 }
 0xbaa   :  { %v11500_v12 = vadd.f32 %v11498_v33, %v11496_v41  ;;  %v11499_v42 = vmul.f32 %v14403_v22, %v11483_v51  ;;  %v14405_v40 = vpop.eup %14404 }
 0xbab   :  { %v14407_v30 = vpop.eup %14406  ;;  %v11480_v7 = vmul.f32 0.5, %v14405_v40 }
 0xbac   :  { %14408 = vtanh.f32 %v11500_v12  ;;  %v11501_v25 = vadd.f32 %v11499_v42, %v11497_v58  ;;  %v11481_v32 = vmul.f32 0.5, %v14407_v30 }
 0xbad   :  { %v11486_v52 = vadd.f32 0.5, %v11480_v7 }
 0xbae   :  { %14410 = vtanh.f32 %v11501_v25  ;;  %v11487_v8 = vadd.f32 0.5, %v11481_v32 }
 0xbb9   :  { %v14409_v13 = vpop.eup %14408 }
 0xbba   :  { %v11504_v5 = vmul.f32 %v14409_v13, %v11486_v52 }
 0xbbb   :  { %v14411_v57 = vpop.eup %14410 }
 0xbbc   :  { %v11505_v48 = vmul.f32 %v14411_v57, %v11487_v8  ;;  %v11547_v46 = vrot.slane %v11504_v5, 6 }
 0xbbe   :  { %v11548_v34 = vrot.slane %v11505_v48, 6 }
 0xbc0   :  { %11615 = vmatprep.mubr.f32.mxu0 %v11548_v34 }
 0xbc1   :  { %11616 = vmatmul.mubr.f32.vlgmr.msra.gmra.mxu0 %v11547_v46 }
 0xc81   :  { %v13274_v45 = vpop.f32.mrf.mxu0 }
 0xc83   :  { %v13275_v16 = vpop.f32.mrf.mxu0 }
 0xc84   :  { %v13276_v9 = vadd.f32 %v13275_v16, %v13274_v45 }
 0xc86   :  { %v11618_v53 = vadd.f32 %v13276_v9, %v13241_v3 }
 0xc88   :  { %11622 = vst.msk [vmem:[#allocation10] sm:$0x3] %vm11621_vm2, %v11618_v53 }
 0xc89   :  { %14503 = shalt.err (!%p14500_p10)
}
 0xc8a   :  { %11632 = dma.vmem_to_hbm [thread:$0]  %s11630_s0, 32, %s17578_s17, [#allocation4]  }
 0xc8b   :  { %14518 = dma.done.wait [#allocation4], 32  }
 0xc8c   :  { %14519 = vsyncadd [#allocation4], 4294967264 }
 0xc8d   :  { %11636 = vsyncpa [#allocation3], 1 }
 0xc8e   :  { %11637 = vsyncpa [#allocation6], 1 }
 0xc8f   :  { %11638 = vsyncpa [#allocation9], 1 }
 0xc90   :  { %11639 = vsyncpa [#allocation4], 1 }

</bundles_post_ra>
